<compile_context>
chip_gen: v7x
topology: tpu7x:2x2x1
jax: 0.10.0
libtpu: 0.0.40
codegen_flags: <defaults>
</compile_context>

<pallas_src>
import numpy as np
import jax
import jax.numpy as jnp
from jax.experimental import pallas as pl
from jax.experimental.pallas import tpu as pltpu

# ---- model / problem sizes --------------------------------------------------
B = 2          # graphs in the batch
N = 16         # nodes per graph (brain ROIs)
H = 8          # attention heads
C = 16         # channels per head
D = H * C      # 128 = hidden width of the GNN trunk
GF = 16        # global features: 4 meta + 2 graph + 10 pca
LANE = 128     # input-slab lane width
WSLAB = 256    # parameter-slab lane width (fits fused [Wl | Wr])


# -----------------------------------------------------------------------------
# Pure-JAX reference (ground truth, identical math to the PyTorch module in
# eval mode).  `plist` is the flat, ordered list of parameter arrays.
# -----------------------------------------------------------------------------
def forward_single(x, adj, mask, gf, plist):
    """x: (N, 4), adj/mask: (N_dst, N_src), gf: (1, 16) -> (1, 1) prediction."""
    it = iter(plist)
    nxt = lambda: next(it)

    def linear(h, W, b):
        return jnp.dot(h, W, preferred_element_type=jnp.float32) + b

    def relu(v):
        return jnp.maximum(v, 0.0)

    def lrelu(v):
        return jnp.where(v > 0, v, 0.2 * v)

    def gatv2(h, Wl, bl, Wr, br, We, att, bias):
        xl = linear(h, Wl, bl)                            # (N, D) source-side (lin_l)
        xr = linear(h, Wr, br)                            # (N, D) target-side (lin_r)
        e = adj[:, :, None] * We[0][None, None, :]        # lin_edge (no bias)
        s = lrelu(xr[:, None, :] + xl[None, :, :] + e)    # (N_dst, N_src, D)
        prod = s * att[0][None, None, :]
        outs = []
        for hh in range(H):
            sc = jnp.sum(prod[:, :, hh * C:(hh + 1) * C], axis=-1)      # (N, N)
            sc = jnp.where(mask > 0, sc, jnp.float32(-1e30))
            m = jnp.max(sc, axis=1, keepdims=True)
            pe = jnp.exp(sc - m) * mask
            dn = jnp.sum(pe, axis=1, keepdims=True)
            alpha = pe / jnp.maximum(dn, 1e-16)
            outs.append(jnp.dot(alpha, xl[:, hh * C:(hh + 1) * C],
                                preferred_element_type=jnp.float32))    # (N, C)
        return jnp.concatenate(outs, axis=-1) + bias                    # (N, D)

    def bnorm(h, gamma, beta, rmean, rvar):
        return gamma * (h - rmean) * jax.lax.rsqrt(rvar + 1e-5) + beta

    # node_embed: Linear(4, 64) + ReLU (+ Dropout == identity in eval)
    h = relu(linear(x, nxt(), nxt()))

    # 4 x (GATv2Conv -> BatchNorm -> [residual] -> ReLU)
    for l in range(4):
        Wl, bl, Wr, br, We, att, gbias = (nxt() for _ in range(7))
        gamma, beta, rmean, rvar = (nxt() for _ in range(4))
        g = bnorm(gatv2(h, Wl, bl, Wr, br, We, att, gbias), gamma, beta, rmean, rvar)
        h = relu(g) if l == 0 else relu(g + h)

    pooled = jnp.mean(h, axis=0, keepdims=True)                         # (1, 128)

    def mlp2(v, W1, b1, W2, b2):
        return relu(linear(relu(linear(v, W1, b1)), W2, b2))

    meta = mlp2(gf[:, 0:4], nxt(), nxt(), nxt(), nxt())                 # (1, 16)
    graph = mlp2(gf[:, 4:6], nxt(), nxt(), nxt(), nxt())                # (1, 16)
    pca = mlp2(gf[:, 6:16], nxt(), nxt(), nxt(), nxt())                 # (1, 32)

    feat = jnp.concatenate([pooled, meta, graph, pca], axis=-1)         # (1, 192)
    h1 = relu(linear(feat, nxt(), nxt()))
    h2 = relu(linear(h1, nxt(), nxt()))
    return linear(h2, nxt(), nxt())                                     # (1, 1)


# -----------------------------------------------------------------------------
# Deterministic parameter init (shapes follow the PyTorch module __init__).
# -----------------------------------------------------------------------------
def _w(key, shape):
    return jax.random.normal(key, shape, jnp.float32) / jnp.sqrt(jnp.float32(shape[0]))


def _b(key, shape):
    return 0.01 * jax.random.normal(key, shape, jnp.float32)


def init_params(key):
    ki = iter(jax.random.split(key, 96))
    p = []
    # node_embed: Linear(4, 64)
    p += [_w(next(ki), (4, 64)), _b(next(ki), (64,))]
    # GATv2Conv(in, 16, heads=8, edge_dim=1) + BatchNorm(128), x4
    for d_in in (64, 128, 128, 128):
        p += [_w(next(ki), (d_in, D)), _b(next(ki), (D,)),   # lin_l (W, b)
              _w(next(ki), (d_in, D)), _b(next(ki), (D,)),   # lin_r (W, b)
              _w(next(ki), (1, D)),                          # lin_edge (no bias)
              0.5 * _w(next(ki), (1, D)),                    # att, flattened (1, H*C)
              _b(next(ki), (D,))]                            # GAT output bias
        p += [jnp.ones((D,), jnp.float32),                   # BN gamma
              jnp.zeros((D,), jnp.float32),                  # BN beta
              0.05 * jax.random.normal(next(ki), (D,), jnp.float32),              # run mean
              1.0 + 0.1 * jax.random.uniform(next(ki), (D,), dtype=jnp.float32)]  # run var
    # meta_head: Linear(4,16), Linear(16,16)
    p += [_w(next(ki), (4, 16)), _b(next(ki), (16,)),
          _w(next(ki), (16, 16)), _b(next(ki), (16,))]
    # graph_head: Linear(2,16), Linear(16,16)
    p += [_w(next(ki), (2, 16)), _b(next(ki), (16,)),
          _w(next(ki), (16, 16)), _b(next(ki), (16,))]
    # pca_head: Linear(10,32), Linear(32,32)
    p += [_w(next(ki), (10, 32)), _b(next(ki), (32,)),
          _w(next(ki), (32, 32)), _b(next(ki), (32,))]
    # fc: Linear(192,128), Linear(128,64), Linear(64,1)
    p += [_w(next(ki), (192, 128)), _b(next(ki), (128,)),
          _w(next(ki), (128, 64)), _b(next(ki), (64,)),
          _w(next(ki), (64, 1)), _b(next(ki), (1,))]
    return p


# -----------------------------------------------------------------------------
# Host-side parameter packing: one lane-dense (P, 256) slab.
#   - eval-mode BatchNorm folded into per-channel scale/shift
#   - [Wl | Wr] fused into one (128, 256) block per GAT layer (one matmul)
#   - att folded into the block-diag head-selection matrix (hma = diag(att)@hm)
#   - one (8, 128) group-sum matrix shared by both dst-row halves
#   - head-MLP outputs placed in disjoint lane ranges so they simply add
#   - fc1 split into a pooled part and a global-embedding part
#   - matrices first (8-row-aligned offsets), all 1-row vectors afterwards
# -----------------------------------------------------------------------------
def pack_params(plist):
    it = iter(plist)
    nxt = lambda: np.asarray(next(it), np.float32)
    mats, vecs = [], []

    def zmat(rows):
        return np.zeros((rows, WSLAB), np.float32)

    def m_add(name, arr):
        mats.append((name, arr))

    def v_add(name, row, lane0=0):
        e = np.zeros((1, WSLAB), np.float32)
        e[0, lane0:lane0 + row.shape[0]] = row
        vecs.append((name, e))

    # node_embed Linear(4, 64); node features are zero-padded to 8 lanes
    W, b = nxt(), nxt()
    e = zmat(8); e[:4, :64] = W; m_add("embW", e)
    v_add("embB", b)

    # block-diag head selector (base for per-layer hma)
    hm = np.zeros((D, D), np.float32)
    for h in range(H):
        hm[h * C:(h + 1) * C, h * C:(h + 1) * C] = 1.0

    # per-dst group-sum matrix for one dst-row half: (8, 128)
    g = zmat(8)
    for j in range(8):
        g[j, j * 16:(j + 1) * 16] = 1.0
    m_add("Gh", g)

    # 4 x GATv2 + folded BatchNorm
    for l, d_in in enumerate((64, 128, 128, 128)):
        Wl, bl, Wr, br, We, att, gb = (nxt() for _ in range(7))
        gamma, beta, rmean, rvar = (nxt() for _ in range(4))
        # fused [Wl | Wr]: (128, 256)
        e = zmat(D); e[:d_in, 0:D] = Wl; e[:d_in, D:2 * D] = Wr; m_add(f"Wlr{l}", e)
        # fused bias row [bl | br]
        brow = np.zeros((1, WSLAB), np.float32)
        brow[0, 0:D] = bl; brow[0, D:2 * D] = br
        vecs.append((f"blr{l}", brow))
        # att folded into head selector: hma = diag(att) @ hm
        e = zmat(D); e[:, :D] = att[0][:, None] * hm; m_add(f"hma{l}", e)
        v_add(f"We{l}", We[0])
        v_add(f"gb{l}", gb)
        a = gamma / np.sqrt(rvar + 1e-5)
        v_add(f"bna{l}", a)
        v_add(f"bnb{l}", beta - rmean * a)

    # global-feature heads: W1 rows select the gf slice; W2 columns place the
    # head's output into a disjoint lane range so the three embeddings just add.
    def add_head(pref, row0, col_out):
        W1, b1, W2, b2 = nxt(), nxt(), nxt(), nxt()
        w1_out, w2_out = W1.shape[1], W2.shape[1]
        e = zmat(16); e[row0:row0 + W1.shape[0], :w1_out] = W1; m_add(pref + "W1", e)
        v_add(pref + "B1", b1)
        e = zmat(D); e[:w1_out, col_out:col_out + w2_out] = W2; m_add(pref + "W2", e)
        v_add(pref + "B2", b2, lane0=col_out)

    add_head("m", 0, 0)     # meta : gf[:, 0:4]  -> lanes [0, 16)
    add_head("g", 4, 16)    # graph: gf[:, 4:6]  -> lanes [16, 32)
    add_head("p", 6, 32)    # pca  : gf[:, 6:16] -> lanes [32, 64)

    # fc1 (192,128) split into pooled rows and global-embedding rows
    W1, b1 = nxt(), nxt()
    e = zmat(D); e[:, :128] = W1[:128, :]; m_add("fcP", e)
    e = zmat(D)
    e[0:16, :128] = W1[128:144, :]       # meta lanes
    e[16:32, :128] = W1[144:160, :]      # graph lanes
    e[32:64, :128] = W1[160:192, :]      # pca lanes
    m_add("fcG", e)
    v_add("fc1b", b1)
    W2, b2 = nxt(), nxt()
    e = zmat(D); e[:, :64] = W2; m_add("fc2W", e)
    v_add("fc2b", b2)
    W3, b3 = nxt(), nxt()
    e = zmat(D); e[:64, 0:1] = W3; m_add("fc3W", e)
    v_add("fc3b", b3)

    offs, row, blocks = {}, 0, []
    for name, arr in mats + vecs:
        offs[name] = (row, arr.shape[0])
        row += arr.shape[0]
        blocks.append(arr)
    slab = np.concatenate(blocks, axis=0)
    pad = (-slab.shape[0]) % 8
    if pad:
        slab = np.concatenate([slab, np.zeros((pad, WSLAB), np.float32)], axis=0)
    return jnp.asarray(slab), offs


# -----------------------------------------------------------------------------
# Host-side input packing: one lane-dense (B, 16, 128) slab per batch.
#   lanes  0: 8  node features x (zero-padded 4 -> 8)
#   lanes 16:32  dense edge attrs adj (incl. self-loops)
#   lanes 32:48  additive mask: 0 where edge exists, -1e30 where not
#   lanes 48:64  global features gf (row 0 only)
# -----------------------------------------------------------------------------
def pack_inputs(x, adj, mask, gf):
    bsz = x.shape[0]
    blk = jnp.zeros((bsz, N, LANE), jnp.float32)
    blk = blk.at[:, :, 0:4].set(x)
    blk = blk.at[:, :, 16:32].set(adj)
    blk = blk.at[:, :, 32:48].set((mask - 1.0) * jnp.float32(1e30))
    blk = blk.at[:, 0:1, 48:48 + GF].set(gf)
    return blk


# -----------------------------------------------------------------------------
# Pallas kernel: one grid step = one graph; one input slab + one param slab.
# -----------------------------------------------------------------------------
def make_kernel(offs):
    HALF = N // 2

    def kernel(in_ref, p_ref, out_ref):
        f32 = jnp.float32

        def matw(name):                       # full-width block (rows, 256)
            r, n = offs[name]
            return p_ref[r:r + n, :]

        def mat(name):                        # 128-lane block
            r, n = offs[name]
            return p_ref[r:r + n, 0:LANE]

        def vroww(name):                      # full-width row (1, 256)
            r, _ = offs[name]
            return p_ref[r:r + 1, :]

        def vec(name):                        # 128-lane row (1, 128)
            r, _ = offs[name]
            return p_ref[r:r + 1, 0:LANE]

        relu = lambda v: jnp.maximum(v, 0.0)
        dot = lambda a, b: jnp.dot(a, b, preferred_element_type=jnp.float32)

        blk = in_ref[0]                       # (16, 128) packed per-graph inputs
        x = blk[:, 0:8]                       # (N, 8)  node features
        adj = blk[:, 16:32]                   # (N, N)  edge attrs
        neg = blk[:, 32:48]                   # (N, N)  additive -1e30 mask
        gf = blk[0:1, 48:48 + GF]             # (1, GF) global features

        # node embedding: Linear(4,64)+ReLU, zero-padded to 128 lanes
        h = relu(dot(x, mat("embW")) + vec("embB"))                       # (N,128)

        Gh = mat("Gh")                        # (8,128) per-dst group sums (one half)

        for l in range(4):
            # fused lin_l | lin_r: one (16,128)@(128,256) matmul
            xlr = dot(h, matw(f"Wlr{l}")) + vroww(f"blr{l}")              # (N,256)
            xl = xlr[:, 0:LANE]                                           # src side
            xr = xlr[:, LANE:2 * LANE]                                    # dst side
            We = vec(f"We{l}")                                            # (1,128)
            hma = mat(f"hma{l}")                                          # (128,128)

            aggs = []
            for hh in range(2):               # dst-row halves: keeps temps in vregs
                r0 = hh * HALF
                xr_h = xr[r0:r0 + HALF, :]                                # (8,128)
                adj_h = adj[r0:r0 + HALF, :]                              # (8,16)
                neg_h = neg[r0:r0 + HALF, :]                              # (8,16)
                # GATv2 score input: s[j,i,:] = xr[j] + xl[i] + adj[j,i]*We
                s = (xr_h[:, None, :] + xl[None, :, :]
                     + adj_h[:, :, None] * We[None, :, :])                # (8,16,128)
                s = jnp.maximum(s, 0.2 * s)                               # leaky_relu
                # per-head scores (att folded into hma), replicated over channels
                sc = dot(s.reshape(HALF * N, D), hma).reshape(HALF, N, D)
                scm = sc + neg_h[:, :, None]                              # -1e30 mask
                mh = jnp.max(scm, axis=1, keepdims=True)                  # per-head max
                pe = jnp.exp(scm - mh)                                    # masked -> 0
                pz = pe * xl[None, :, :]                                  # (8,16,128)
                # fused softmax denominator + weighted aggregation (one MXU call)
                rhs = jnp.concatenate(
                    [pe.reshape(HALF * N, D), pz.reshape(HALF * N, D)], axis=1)
                dn_num = dot(Gh, rhs)                                     # (8,256)
                dn = jnp.maximum(dn_num[:, 0:LANE], f32(1e-16))
                aggs.append(dn_num[:, LANE:2 * LANE]
                            * pl.reciprocal(dn, approx=True))             # (8,128)
            agg = jnp.concatenate(aggs, axis=0)                           # (16,128)

            # GAT bias, folded BatchNorm, residual (layers 2-4), ReLU
            g = ((agg + vec(f"gb{l}")) * vec(f"bna{l}") + vec(f"bnb{l}"))
            h = relu(g) if l == 0 else relu(g + h)

        # dropout == identity; global mean pool over this graph's nodes
        pooled = jnp.mean(h, axis=0, keepdims=True)                       # (1,128)

        # global-feature heads; outputs live in disjoint lane ranges -> just add
        def head(pref):
            h1 = relu(dot(gf, mat(pref + "W1")) + vec(pref + "B1"))
            return relu(dot(h1, mat(pref + "W2")) + vec(pref + "B2"))

        glob = head("m") + head("g") + head("p")                          # (1,128)

        f1 = relu(dot(pooled, mat("fcP")) + dot(glob, mat("fcG"))
                  + vec("fc1b"))                                          # (1,128)
        f2 = relu(dot(f1, mat("fc2W")) + vec("fc2b"))                     # (1,128)
        f3 = dot(f2, mat("fc3W")) + vec("fc3b")                           # lane 0 = pred
        out_ref[...] = f3.reshape(1, 1, LANE)

    return kernel


def brain_age_gatv2(x, adj, mask, gf, params):
    bsz = x.shape[0]
    slab, offs = pack_params(params)
    P = slab.shape[0]
    inp = pack_inputs(x, adj, mask, gf)       # (B, 16, 128) single dense input slab

    out = pl.pallas_call(
        make_kernel(offs),
        out_shape=jax.ShapeDtypeStruct((bsz, 1, LANE), jnp.float32),
        grid_spec=pltpu.PrefetchScalarGridSpec(
            num_scalar_prefetch=0,
            grid=(bsz,),
            in_specs=[
                pl.BlockSpec((1, N, LANE), lambda b: (b, 0, 0)),   # per-graph inputs
                pl.BlockSpec((P, WSLAB), lambda b: (0, 0)),        # packed param slab
            ],
            out_specs=pl.BlockSpec((1, 1, LANE), lambda b: (b, 0, 0)),
        ),
        compiler_params=pltpu.CompilerParams(
            dimension_semantics=("parallel",)),                    # both TCs on v7x
    )(inp, slab)

    return out[:, 0, 0:1]   # (B, 1), matching the PyTorch module output


# -----------------------------------------------------------------------------
if __name__ == "__main__":
    key = jax.random.PRNGKey(0)
    k1, k2, k3, k4, kp = jax.random.split(key, 5)

    # node features and global features
    x = jax.random.normal(k1, (B, N, 4), jnp.float32)
    gf = jax.random.normal(k2, (B, 1, GF), jnp.float32)

    # synthetic sparse graph per batch element (dense adjacency representation),
    # then add self-loops with edge_attr = per-target mean of incoming attrs
    # (matching GATv2Conv add_self_loops=True, fill_value='mean').
    eye = jnp.eye(N, dtype=jnp.float32)[None]
    mask_offdiag = (jax.random.uniform(k3, (B, N, N)) < 0.3).astype(jnp.float32) * (1.0 - eye)
    attr_offdiag = jax.random.uniform(k4, (B, N, N), dtype=jnp.float32) * mask_offdiag
    deg = jnp.sum(mask_offdiag, axis=2, keepdims=True)
    loop_attr = jnp.sum(attr_offdiag, axis=2, keepdims=True) / jnp.maximum(deg, 1.0)
    mask = mask_offdiag + eye
    adj = attr_offdiag + eye * loop_attr

    params = init_params(kp)

    out = brain_age_gatv2(x, adj, mask, gf, params)
    out = jax.block_until_ready(out)

    # pure-JAX reference using the original per-head math (per graph)
    ref = jnp.concatenate(
        [forward_single(x[b], adj[b], mask[b], gf[b], params) for b in range(B)], axis=0)
    diff = float(jnp.max(jnp.abs(out - ref)))
    scale = float(jnp.max(jnp.abs(ref))) + 1.0
    assert out.shape == (B, 1)
    assert bool(jnp.all(jnp.isfinite(out)))
    # headroom only for the EUP approx reciprocal; real regressions are O(1)
    assert diff <= 2e-2 * scale, f"kernel/reference mismatch: {diff}"

    print("KERNEL_OK")
</pallas_src>

<mosaic_0001>
module attributes {stable_mosaic.version = 11 : i64} {
  func.func @kernel(%arg0: i32, %arg1: memref<1x16x128xf32, #tpu.memory_space<vmem>>, %arg2: memref<2016x256xf32, #tpu.memory_space<vmem>>, %arg3: memref<1x1x128xf32, #tpu.memory_space<vmem>>) attributes {dimension_semantics = [#tpu.dimension_semantics<parallel>], iteration_bounds = array<i64: 2>, scalar_prefetch = 0 : i64, scratch_operands = 0 : i64, tpu.core_type = #tpu.core_type<tc>, window_params = [{transform_indices = @transform_0, window_bounds = array<i64: 1, 16, 128>}, {pipeline_mode = #tpu.pipeline_mode<synchronous>, transform_indices = @transform_1, window_bounds = array<i64: 2016, 256>}, {transform_indices = @transform_2, window_bounds = array<i64: 1, 1, 128>}]} {
    %c0 = arith.constant 0 : index
    %c0_0 = arith.constant 0 : index
    %c0_1 = arith.constant 0 : index
    %0 = vector.load %arg1[%c0, %c0_0, %c0_1] : memref<1x16x128xf32, #tpu.memory_space<vmem>>, vector<1x16x128xf32>
    %1 = vector.shape_cast %0 : vector<1x16x128xf32> to vector<16x128xf32>
    %2 = vector.extract_strided_slice %1 {offsets = [0, 0], sizes = [16, 8], strides = [1, 1]} : vector<16x128xf32> to vector<16x8xf32>
    %3 = vector.extract_strided_slice %1 {offsets = [0, 16], sizes = [16, 16], strides = [1, 1]} : vector<16x128xf32> to vector<16x16xf32>
    %4 = vector.extract_strided_slice %1 {offsets = [0, 32], sizes = [16, 16], strides = [1, 1]} : vector<16x128xf32> to vector<16x16xf32>
    %5 = vector.extract_strided_slice %1 {offsets = [0, 48], sizes = [1, 16], strides = [1, 1]} : vector<16x128xf32> to vector<1x16xf32>
    %c0_2 = arith.constant 0 : index
    %c0_3 = arith.constant 0 : index
    %6 = vector.load %arg2[%c0_2, %c0_3] : memref<2016x256xf32, #tpu.memory_space<vmem>>, vector<8x128xf32>
    %cst = arith.constant dense<0.000000e+00> : vector<16x128xf32>
    %7 = tpu.matmul %2, %6, %cst {dimension_numbers = #tpu.dot_dimension_numbers<[1], [0], [0], [1], [0, 0, 1, 1], [], []>} : vector<16x8xf32>, vector<8x128xf32>, vector<16x128xf32> -> vector<16x128xf32>
    %c1984 = arith.constant 1984 : index
    %c0_4 = arith.constant 0 : index
    %8 = vector.load %arg2[%c1984, %c0_4] : memref<2016x256xf32, #tpu.memory_space<vmem>>, vector<1x128xf32>
    %9 = vector.broadcast %8 : vector<1x128xf32> to vector<16x128xf32>
    %10 = arith.addf %7, %9 : vector<16x128xf32>
    %cst_5 = arith.constant 0.000000e+00 : f32
    %11 = vector.broadcast %cst_5 : f32 to vector<16x128xf32>
    %12 = arith.maximumf %10, %11 : vector<16x128xf32>
    %c8 = arith.constant 8 : index
    %c0_6 = arith.constant 0 : index
    %13 = vector.load %arg2[%c8, %c0_6] : memref<2016x256xf32, #tpu.memory_space<vmem>>, vector<8x128xf32>
    %c16 = arith.constant 16 : index
    %c0_7 = arith.constant 0 : index
    %14 = vector.load %arg2[%c16, %c0_7] : memref<2016x256xf32, #tpu.memory_space<vmem>>, vector<128x256xf32>
    %cst_8 = arith.constant dense<0.000000e+00> : vector<16x256xf32>
    %15 = tpu.matmul %12, %14, %cst_8 {dimension_numbers = #tpu.dot_dimension_numbers<[1], [0], [0], [1], [0, 0, 1, 1], [], []>} : vector<16x128xf32>, vector<128x256xf32>, vector<16x256xf32> -> vector<16x256xf32>
    %c1985 = arith.constant 1985 : index
    %c0_9 = arith.constant 0 : index
    %16 = vector.load %arg2[%c1985, %c0_9] : memref<2016x256xf32, #tpu.memory_space<vmem>>, vector<1x256xf32>
    %17 = vector.broadcast %16 : vector<1x256xf32> to vector<16x256xf32>
    %18 = arith.addf %15, %17 : vector<16x256xf32>
    %19 = vector.extract_strided_slice %18 {offsets = [0, 0], sizes = [16, 128], strides = [1, 1]} : vector<16x256xf32> to vector<16x128xf32>
    %20 = vector.extract_strided_slice %18 {offsets = [0, 128], sizes = [16, 128], strides = [1, 1]} : vector<16x256xf32> to vector<16x128xf32>
    %c1986 = arith.constant 1986 : index
    %c0_10 = arith.constant 0 : index
    %21 = vector.load %arg2[%c1986, %c0_10] : memref<2016x256xf32, #tpu.memory_space<vmem>>, vector<1x128xf32>
    %c144 = arith.constant 144 : index
    %c0_11 = arith.constant 0 : index
    %22 = vector.load %arg2[%c144, %c0_11] : memref<2016x256xf32, #tpu.memory_space<vmem>>, vector<128x128xf32>
    %23 = vector.extract_strided_slice %20 {offsets = [0, 0], sizes = [8, 128], strides = [1, 1]} : vector<16x128xf32> to vector<8x128xf32>
    %24 = vector.extract_strided_slice %3 {offsets = [0, 0], sizes = [8, 16], strides = [1, 1]} : vector<16x16xf32> to vector<8x16xf32>
    %25 = vector.extract_strided_slice %4 {offsets = [0, 0], sizes = [8, 16], strides = [1, 1]} : vector<16x16xf32> to vector<8x16xf32>
    %26 = vector.shape_cast %23 : vector<8x128xf32> to vector<8x1x128xf32>
    %27 = vector.shape_cast %19 : vector<16x128xf32> to vector<1x16x128xf32>
    %28 = vector.broadcast %26 : vector<8x1x128xf32> to vector<8x16x128xf32>
    %29 = vector.broadcast %27 : vector<1x16x128xf32> to vector<8x16x128xf32>
    %30 = arith.addf %28, %29 : vector<8x16x128xf32>
    %31 = vector.shape_cast %24 : vector<8x16xf32> to vector<8x16x1xf32>
    %32 = vector.shape_cast %21 : vector<1x128xf32> to vector<1x1x128xf32>
    %33 = vector.broadcast %31 : vector<8x16x1xf32> to vector<8x16x128xf32>
    %34 = vector.broadcast %32 : vector<1x1x128xf32> to vector<8x16x128xf32>
    %35 = arith.mulf %33, %34 : vector<8x16x128xf32>
    %36 = arith.addf %30, %35 : vector<8x16x128xf32>
    %cst_12 = arith.constant 2.000000e-01 : f32
    %37 = vector.broadcast %cst_12 : f32 to vector<8x16x128xf32>
    %38 = arith.mulf %37, %36 : vector<8x16x128xf32>
    %39 = arith.maximumf %36, %38 : vector<8x16x128xf32>
    %40 = vector.shape_cast %39 : vector<8x16x128xf32> to vector<128x128xf32>
    %cst_13 = arith.constant dense<0.000000e+00> : vector<128x128xf32>
    %41 = tpu.matmul %40, %22, %cst_13 {dimension_numbers = #tpu.dot_dimension_numbers<[1], [0], [0], [1], [0, 0, 1, 1], [], []>} : vector<128x128xf32>, vector<128x128xf32>, vector<128x128xf32> -> vector<128x128xf32>
    %42 = vector.shape_cast %41 : vector<128x128xf32> to vector<8x16x128xf32>
    %43 = vector.shape_cast %25 : vector<8x16xf32> to vector<8x16x1xf32>
    %44 = vector.broadcast %43 : vector<8x16x1xf32> to vector<8x16x128xf32>
    %45 = arith.addf %42, %44 : vector<8x16x128xf32>
    %cst_14 = arith.constant dense<0xFF800000> : vector<8x128xf32>
    %46 = vector.multi_reduction <maximumf>, %45, %cst_14 [1] : vector<8x16x128xf32> to vector<8x128xf32>
    %47 = vector.shape_cast %46 : vector<8x128xf32> to vector<8x1x128xf32>
    %48 = vector.broadcast %47 : vector<8x1x128xf32> to vector<8x16x128xf32>
    %49 = arith.subf %45, %48 : vector<8x16x128xf32>
    %50 = math.exp %49 : vector<8x16x128xf32>
    %51 = vector.shape_cast %19 : vector<16x128xf32> to vector<1x16x128xf32>
    %52 = vector.broadcast %51 : vector<1x16x128xf32> to vector<8x16x128xf32>
    %53 = arith.mulf %50, %52 : vector<8x16x128xf32>
    %54 = vector.shape_cast %50 : vector<8x16x128xf32> to vector<128x128xf32>
    %55 = vector.shape_cast %53 : vector<8x16x128xf32> to vector<128x128xf32>
    %56 = tpu.concatenate %54, %55 in 1 : vector<128x128xf32>, vector<128x128xf32> -> vector<128x256xf32>
    %cst_15 = arith.constant dense<0.000000e+00> : vector<8x256xf32>
    %57 = tpu.matmul %13, %56, %cst_15 {dimension_numbers = #tpu.dot_dimension_numbers<[1], [0], [0], [1], [0, 0, 1, 1], [], []>} : vector<8x128xf32>, vector<128x256xf32>, vector<8x256xf32> -> vector<8x256xf32>
    %58 = vector.extract_strided_slice %57 {offsets = [0, 0], sizes = [8, 128], strides = [1, 1]} : vector<8x256xf32> to vector<8x128xf32>
    %cst_16 = arith.constant 1.000000e-16 : f32
    %59 = vector.broadcast %cst_16 : f32 to vector<8x128xf32>
    %60 = arith.maximumf %58, %59 : vector<8x128xf32>
    %61 = vector.extract_strided_slice %57 {offsets = [0, 128], sizes = [8, 128], strides = [1, 1]} : vector<8x256xf32> to vector<8x128xf32>
    %62 = tpu.reciprocal %60 {approx = true} : vector<8x128xf32> -> vector<8x128xf32>
    %63 = arith.mulf %61, %62 : vector<8x128xf32>
    %64 = vector.extract_strided_slice %20 {offsets = [8, 0], sizes = [8, 128], strides = [1, 1]} : vector<16x128xf32> to vector<8x128xf32>
    %65 = vector.extract_strided_slice %3 {offsets = [8, 0], sizes = [8, 16], strides = [1, 1]} : vector<16x16xf32> to vector<8x16xf32>
    %66 = vector.extract_strided_slice %4 {offsets = [8, 0], sizes = [8, 16], strides = [1, 1]} : vector<16x16xf32> to vector<8x16xf32>
    %67 = vector.shape_cast %64 : vector<8x128xf32> to vector<8x1x128xf32>
    %68 = vector.shape_cast %19 : vector<16x128xf32> to vector<1x16x128xf32>
    %69 = vector.broadcast %67 : vector<8x1x128xf32> to vector<8x16x128xf32>
    %70 = vector.broadcast %68 : vector<1x16x128xf32> to vector<8x16x128xf32>
    %71 = arith.addf %69, %70 : vector<8x16x128xf32>
    %72 = vector.shape_cast %65 : vector<8x16xf32> to vector<8x16x1xf32>
    %73 = vector.shape_cast %21 : vector<1x128xf32> to vector<1x1x128xf32>
    %74 = vector.broadcast %72 : vector<8x16x1xf32> to vector<8x16x128xf32>
    %75 = vector.broadcast %73 : vector<1x1x128xf32> to vector<8x16x128xf32>
    %76 = arith.mulf %74, %75 : vector<8x16x128xf32>
    %77 = arith.addf %71, %76 : vector<8x16x128xf32>
    %cst_17 = arith.constant 2.000000e-01 : f32
    %78 = vector.broadcast %cst_17 : f32 to vector<8x16x128xf32>
    %79 = arith.mulf %78, %77 : vector<8x16x128xf32>
    %80 = arith.maximumf %77, %79 : vector<8x16x128xf32>
    %81 = vector.shape_cast %80 : vector<8x16x128xf32> to vector<128x128xf32>
    %cst_18 = arith.constant dense<0.000000e+00> : vector<128x128xf32>
    %82 = tpu.matmul %81, %22, %cst_18 {dimension_numbers = #tpu.dot_dimension_numbers<[1], [0], [0], [1], [0, 0, 1, 1], [], []>} : vector<128x128xf32>, vector<128x128xf32>, vector<128x128xf32> -> vector<128x128xf32>
    %83 = vector.shape_cast %82 : vector<128x128xf32> to vector<8x16x128xf32>
    %84 = vector.shape_cast %66 : vector<8x16xf32> to vector<8x16x1xf32>
    %85 = vector.broadcast %84 : vector<8x16x1xf32> to vector<8x16x128xf32>
    %86 = arith.addf %83, %85 : vector<8x16x128xf32>
    %cst_19 = arith.constant dense<0xFF800000> : vector<8x128xf32>
    %87 = vector.multi_reduction <maximumf>, %86, %cst_19 [1] : vector<8x16x128xf32> to vector<8x128xf32>
    %88 = vector.shape_cast %87 : vector<8x128xf32> to vector<8x1x128xf32>
    %89 = vector.broadcast %88 : vector<8x1x128xf32> to vector<8x16x128xf32>
    %90 = arith.subf %86, %89 : vector<8x16x128xf32>
    %91 = math.exp %90 : vector<8x16x128xf32>
    %92 = vector.shape_cast %19 : vector<16x128xf32> to vector<1x16x128xf32>
    %93 = vector.broadcast %92 : vector<1x16x128xf32> to vector<8x16x128xf32>
    %94 = arith.mulf %91, %93 : vector<8x16x128xf32>
    %95 = vector.shape_cast %91 : vector<8x16x128xf32> to vector<128x128xf32>
    %96 = vector.shape_cast %94 : vector<8x16x128xf32> to vector<128x128xf32>
    %97 = tpu.concatenate %95, %96 in 1 : vector<128x128xf32>, vector<128x128xf32> -> vector<128x256xf32>
    %cst_20 = arith.constant dense<0.000000e+00> : vector<8x256xf32>
    %98 = tpu.matmul %13, %97, %cst_20 {dimension_numbers = #tpu.dot_dimension_numbers<[1], [0], [0], [1], [0, 0, 1, 1], [], []>} : vector<8x128xf32>, vector<128x256xf32>, vector<8x256xf32> -> vector<8x256xf32>
    %99 = vector.extract_strided_slice %98 {offsets = [0, 0], sizes = [8, 128], strides = [1, 1]} : vector<8x256xf32> to vector<8x128xf32>
    %cst_21 = arith.constant 1.000000e-16 : f32
    %100 = vector.broadcast %cst_21 : f32 to vector<8x128xf32>
    %101 = arith.maximumf %99, %100 : vector<8x128xf32>
    %102 = vector.extract_strided_slice %98 {offsets = [0, 128], sizes = [8, 128], strides = [1, 1]} : vector<8x256xf32> to vector<8x128xf32>
    %103 = tpu.reciprocal %101 {approx = true} : vector<8x128xf32> -> vector<8x128xf32>
    %104 = arith.mulf %102, %103 : vector<8x128xf32>
    %105 = tpu.concatenate %63, %104 in 0 : vector<8x128xf32>, vector<8x128xf32> -> vector<16x128xf32>
    %c1987 = arith.constant 1987 : index
    %c0_22 = arith.constant 0 : index
    %106 = vector.load %arg2[%c1987, %c0_22] : memref<2016x256xf32, #tpu.memory_space<vmem>>, vector<1x128xf32>
    %107 = vector.broadcast %106 : vector<1x128xf32> to vector<16x128xf32>
    %108 = arith.addf %105, %107 : vector<16x128xf32>
    %c1988 = arith.constant 1988 : index
    %c0_23 = arith.constant 0 : index
    %109 = vector.load %arg2[%c1988, %c0_23] : memref<2016x256xf32, #tpu.memory_space<vmem>>, vector<1x128xf32>
    %110 = vector.broadcast %109 : vector<1x128xf32> to vector<16x128xf32>
    %111 = arith.mulf %108, %110 : vector<16x128xf32>
    %c1989 = arith.constant 1989 : index
    %c0_24 = arith.constant 0 : index
    %112 = vector.load %arg2[%c1989, %c0_24] : memref<2016x256xf32, #tpu.memory_space<vmem>>, vector<1x128xf32>
    %113 = vector.broadcast %112 : vector<1x128xf32> to vector<16x128xf32>
    %114 = arith.addf %111, %113 : vector<16x128xf32>
    %cst_25 = arith.constant 0.000000e+00 : f32
    %115 = vector.broadcast %cst_25 : f32 to vector<16x128xf32>
    %116 = arith.maximumf %114, %115 : vector<16x128xf32>
    %c272 = arith.constant 272 : index
    %c0_26 = arith.constant 0 : index
    %117 = vector.load %arg2[%c272, %c0_26] : memref<2016x256xf32, #tpu.memory_space<vmem>>, vector<128x256xf32>
    %cst_27 = arith.constant dense<0.000000e+00> : vector<16x256xf32>
    %118 = tpu.matmul %116, %117, %cst_27 {dimension_numbers = #tpu.dot_dimension_numbers<[1], [0], [0], [1], [0, 0, 1, 1], [], []>} : vector<16x128xf32>, vector<128x256xf32>, vector<16x256xf32> -> vector<16x256xf32>
    %c1990 = arith.constant 1990 : index
    %c0_28 = arith.constant 0 : index
    %119 = vector.load %arg2[%c1990, %c0_28] : memref<2016x256xf32, #tpu.memory_space<vmem>>, vector<1x256xf32>
    %120 = vector.broadcast %119 : vector<1x256xf32> to vector<16x256xf32>
    %121 = arith.addf %118, %120 : vector<16x256xf32>
    %122 = vector.extract_strided_slice %121 {offsets = [0, 0], sizes = [16, 128], strides = [1, 1]} : vector<16x256xf32> to vector<16x128xf32>
    %123 = vector.extract_strided_slice %121 {offsets = [0, 128], sizes = [16, 128], strides = [1, 1]} : vector<16x256xf32> to vector<16x128xf32>
    %c1991 = arith.constant 1991 : index
    %c0_29 = arith.constant 0 : index
    %124 = vector.load %arg2[%c1991, %c0_29] : memref<2016x256xf32, #tpu.memory_space<vmem>>, vector<1x128xf32>
    %c400 = arith.constant 400 : index
    %c0_30 = arith.constant 0 : index
    %125 = vector.load %arg2[%c400, %c0_30] : memref<2016x256xf32, #tpu.memory_space<vmem>>, vector<128x128xf32>
    %126 = vector.extract_strided_slice %123 {offsets = [0, 0], sizes = [8, 128], strides = [1, 1]} : vector<16x128xf32> to vector<8x128xf32>
    %127 = vector.extract_strided_slice %3 {offsets = [0, 0], sizes = [8, 16], strides = [1, 1]} : vector<16x16xf32> to vector<8x16xf32>
    %128 = vector.extract_strided_slice %4 {offsets = [0, 0], sizes = [8, 16], strides = [1, 1]} : vector<16x16xf32> to vector<8x16xf32>
    %129 = vector.shape_cast %126 : vector<8x128xf32> to vector<8x1x128xf32>
    %130 = vector.shape_cast %122 : vector<16x128xf32> to vector<1x16x128xf32>
    %131 = vector.broadcast %129 : vector<8x1x128xf32> to vector<8x16x128xf32>
    %132 = vector.broadcast %130 : vector<1x16x128xf32> to vector<8x16x128xf32>
    %133 = arith.addf %131, %132 : vector<8x16x128xf32>
    %134 = vector.shape_cast %127 : vector<8x16xf32> to vector<8x16x1xf32>
    %135 = vector.shape_cast %124 : vector<1x128xf32> to vector<1x1x128xf32>
    %136 = vector.broadcast %134 : vector<8x16x1xf32> to vector<8x16x128xf32>
    %137 = vector.broadcast %135 : vector<1x1x128xf32> to vector<8x16x128xf32>
    %138 = arith.mulf %136, %137 : vector<8x16x128xf32>
    %139 = arith.addf %133, %138 : vector<8x16x128xf32>
    %cst_31 = arith.constant 2.000000e-01 : f32
    %140 = vector.broadcast %cst_31 : f32 to vector<8x16x128xf32>
    %141 = arith.mulf %140, %139 : vector<8x16x128xf32>
    %142 = arith.maximumf %139, %141 : vector<8x16x128xf32>
    %143 = vector.shape_cast %142 : vector<8x16x128xf32> to vector<128x128xf32>
    %cst_32 = arith.constant dense<0.000000e+00> : vector<128x128xf32>
    %144 = tpu.matmul %143, %125, %cst_32 {dimension_numbers = #tpu.dot_dimension_numbers<[1], [0], [0], [1], [0, 0, 1, 1], [], []>} : vector<128x128xf32>, vector<128x128xf32>, vector<128x128xf32> -> vector<128x128xf32>
    %145 = vector.shape_cast %144 : vector<128x128xf32> to vector<8x16x128xf32>
    %146 = vector.shape_cast %128 : vector<8x16xf32> to vector<8x16x1xf32>
    %147 = vector.broadcast %146 : vector<8x16x1xf32> to vector<8x16x128xf32>
    %148 = arith.addf %145, %147 : vector<8x16x128xf32>
    %cst_33 = arith.constant dense<0xFF800000> : vector<8x128xf32>
    %149 = vector.multi_reduction <maximumf>, %148, %cst_33 [1] : vector<8x16x128xf32> to vector<8x128xf32>
    %150 = vector.shape_cast %149 : vector<8x128xf32> to vector<8x1x128xf32>
    %151 = vector.broadcast %150 : vector<8x1x128xf32> to vector<8x16x128xf32>
    %152 = arith.subf %148, %151 : vector<8x16x128xf32>
    %153 = math.exp %152 : vector<8x16x128xf32>
    %154 = vector.shape_cast %122 : vector<16x128xf32> to vector<1x16x128xf32>
    %155 = vector.broadcast %154 : vector<1x16x128xf32> to vector<8x16x128xf32>
    %156 = arith.mulf %153, %155 : vector<8x16x128xf32>
    %157 = vector.shape_cast %153 : vector<8x16x128xf32> to vector<128x128xf32>
    %158 = vector.shape_cast %156 : vector<8x16x128xf32> to vector<128x128xf32>
    %159 = tpu.concatenate %157, %158 in 1 : vector<128x128xf32>, vector<128x128xf32> -> vector<128x256xf32>
    %cst_34 = arith.constant dense<0.000000e+00> : vector<8x256xf32>
    %160 = tpu.matmul %13, %159, %cst_34 {dimension_numbers = #tpu.dot_dimension_numbers<[1], [0], [0], [1], [0, 0, 1, 1], [], []>} : vector<8x128xf32>, vector<128x256xf32>, vector<8x256xf32> -> vector<8x256xf32>
    %161 = vector.extract_strided_slice %160 {offsets = [0, 0], sizes = [8, 128], strides = [1, 1]} : vector<8x256xf32> to vector<8x128xf32>
    %cst_35 = arith.constant 1.000000e-16 : f32
    %162 = vector.broadcast %cst_35 : f32 to vector<8x128xf32>
    %163 = arith.maximumf %161, %162 : vector<8x128xf32>
    %164 = vector.extract_strided_slice %160 {offsets = [0, 128], sizes = [8, 128], strides = [1, 1]} : vector<8x256xf32> to vector<8x128xf32>
    %165 = tpu.reciprocal %163 {approx = true} : vector<8x128xf32> -> vector<8x128xf32>
    %166 = arith.mulf %164, %165 : vector<8x128xf32>
    %167 = vector.extract_strided_slice %123 {offsets = [8, 0], sizes = [8, 128], strides = [1, 1]} : vector<16x128xf32> to vector<8x128xf32>
    %168 = vector.extract_strided_slice %3 {offsets = [8, 0], sizes = [8, 16], strides = [1, 1]} : vector<16x16xf32> to vector<8x16xf32>
    %169 = vector.extract_strided_slice %4 {offsets = [8, 0], sizes = [8, 16], strides = [1, 1]} : vector<16x16xf32> to vector<8x16xf32>
    %170 = vector.shape_cast %167 : vector<8x128xf32> to vector<8x1x128xf32>
    %171 = vector.shape_cast %122 : vector<16x128xf32> to vector<1x16x128xf32>
    %172 = vector.broadcast %170 : vector<8x1x128xf32> to vector<8x16x128xf32>
    %173 = vector.broadcast %171 : vector<1x16x128xf32> to vector<8x16x128xf32>
    %174 = arith.addf %172, %173 : vector<8x16x128xf32>
    %175 = vector.shape_cast %168 : vector<8x16xf32> to vector<8x16x1xf32>
    %176 = vector.shape_cast %124 : vector<1x128xf32> to vector<1x1x128xf32>
    %177 = vector.broadcast %175 : vector<8x16x1xf32> to vector<8x16x128xf32>
    %178 = vector.broadcast %176 : vector<1x1x128xf32> to vector<8x16x128xf32>
    %179 = arith.mulf %177, %178 : vector<8x16x128xf32>
    %180 = arith.addf %174, %179 : vector<8x16x128xf32>
    %cst_36 = arith.constant 2.000000e-01 : f32
    %181 = vector.broadcast %cst_36 : f32 to vector<8x16x128xf32>
    %182 = arith.mulf %181, %180 : vector<8x16x128xf32>
    %183 = arith.maximumf %180, %182 : vector<8x16x128xf32>
    %184 = vector.shape_cast %183 : vector<8x16x128xf32> to vector<128x128xf32>
    %cst_37 = arith.constant dense<0.000000e+00> : vector<128x128xf32>
    %185 = tpu.matmul %184, %125, %cst_37 {dimension_numbers = #tpu.dot_dimension_numbers<[1], [0], [0], [1], [0, 0, 1, 1], [], []>} : vector<128x128xf32>, vector<128x128xf32>, vector<128x128xf32> -> vector<128x128xf32>
    %186 = vector.shape_cast %185 : vector<128x128xf32> to vector<8x16x128xf32>
    %187 = vector.shape_cast %169 : vector<8x16xf32> to vector<8x16x1xf32>
    %188 = vector.broadcast %187 : vector<8x16x1xf32> to vector<8x16x128xf32>
    %189 = arith.addf %186, %188 : vector<8x16x128xf32>
    %cst_38 = arith.constant dense<0xFF800000> : vector<8x128xf32>
    %190 = vector.multi_reduction <maximumf>, %189, %cst_38 [1] : vector<8x16x128xf32> to vector<8x128xf32>
    %191 = vector.shape_cast %190 : vector<8x128xf32> to vector<8x1x128xf32>
    %192 = vector.broadcast %191 : vector<8x1x128xf32> to vector<8x16x128xf32>
    %193 = arith.subf %189, %192 : vector<8x16x128xf32>
    %194 = math.exp %193 : vector<8x16x128xf32>
    %195 = vector.shape_cast %122 : vector<16x128xf32> to vector<1x16x128xf32>
    %196 = vector.broadcast %195 : vector<1x16x128xf32> to vector<8x16x128xf32>
    %197 = arith.mulf %194, %196 : vector<8x16x128xf32>
    %198 = vector.shape_cast %194 : vector<8x16x128xf32> to vector<128x128xf32>
    %199 = vector.shape_cast %197 : vector<8x16x128xf32> to vector<128x128xf32>
    %200 = tpu.concatenate %198, %199 in 1 : vector<128x128xf32>, vector<128x128xf32> -> vector<128x256xf32>
    %cst_39 = arith.constant dense<0.000000e+00> : vector<8x256xf32>
    %201 = tpu.matmul %13, %200, %cst_39 {dimension_numbers = #tpu.dot_dimension_numbers<[1], [0], [0], [1], [0, 0, 1, 1], [], []>} : vector<8x128xf32>, vector<128x256xf32>, vector<8x256xf32> -> vector<8x256xf32>
    %202 = vector.extract_strided_slice %201 {offsets = [0, 0], sizes = [8, 128], strides = [1, 1]} : vector<8x256xf32> to vector<8x128xf32>
    %cst_40 = arith.constant 1.000000e-16 : f32
    %203 = vector.broadcast %cst_40 : f32 to vector<8x128xf32>
    %204 = arith.maximumf %202, %203 : vector<8x128xf32>
    %205 = vector.extract_strided_slice %201 {offsets = [0, 128], sizes = [8, 128], strides = [1, 1]} : vector<8x256xf32> to vector<8x128xf32>
    %206 = tpu.reciprocal %204 {approx = true} : vector<8x128xf32> -> vector<8x128xf32>
    %207 = arith.mulf %205, %206 : vector<8x128xf32>
    %208 = tpu.concatenate %166, %207 in 0 : vector<8x128xf32>, vector<8x128xf32> -> vector<16x128xf32>
    %c1992 = arith.constant 1992 : index
    %c0_41 = arith.constant 0 : index
    %209 = vector.load %arg2[%c1992, %c0_41] : memref<2016x256xf32, #tpu.memory_space<vmem>>, vector<1x128xf32>
    %210 = vector.broadcast %209 : vector<1x128xf32> to vector<16x128xf32>
    %211 = arith.addf %208, %210 : vector<16x128xf32>
    %c1993 = arith.constant 1993 : index
    %c0_42 = arith.constant 0 : index
    %212 = vector.load %arg2[%c1993, %c0_42] : memref<2016x256xf32, #tpu.memory_space<vmem>>, vector<1x128xf32>
    %213 = vector.broadcast %212 : vector<1x128xf32> to vector<16x128xf32>
    %214 = arith.mulf %211, %213 : vector<16x128xf32>
    %c1994 = arith.constant 1994 : index
    %c0_43 = arith.constant 0 : index
    %215 = vector.load %arg2[%c1994, %c0_43] : memref<2016x256xf32, #tpu.memory_space<vmem>>, vector<1x128xf32>
    %216 = vector.broadcast %215 : vector<1x128xf32> to vector<16x128xf32>
    %217 = arith.addf %214, %216 : vector<16x128xf32>
    %218 = arith.addf %217, %116 : vector<16x128xf32>
    %cst_44 = arith.constant 0.000000e+00 : f32
    %219 = vector.broadcast %cst_44 : f32 to vector<16x128xf32>
    %220 = arith.maximumf %218, %219 : vector<16x128xf32>
    %c528 = arith.constant 528 : index
    %c0_45 = arith.constant 0 : index
    %221 = vector.load %arg2[%c528, %c0_45] : memref<2016x256xf32, #tpu.memory_space<vmem>>, vector<128x256xf32>
    %cst_46 = arith.constant dense<0.000000e+00> : vector<16x256xf32>
    %222 = tpu.matmul %220, %221, %cst_46 {dimension_numbers = #tpu.dot_dimension_numbers<[1], [0], [0], [1], [0, 0, 1, 1], [], []>} : vector<16x128xf32>, vector<128x256xf32>, vector<16x256xf32> -> vector<16x256xf32>
    %c1995 = arith.constant 1995 : index
    %c0_47 = arith.constant 0 : index
    %223 = vector.load %arg2[%c1995, %c0_47] : memref<2016x256xf32, #tpu.memory_space<vmem>>, vector<1x256xf32>
    %224 = vector.broadcast %223 : vector<1x256xf32> to vector<16x256xf32>
    %225 = arith.addf %222, %224 : vector<16x256xf32>
    %226 = vector.extract_strided_slice %225 {offsets = [0, 0], sizes = [16, 128], strides = [1, 1]} : vector<16x256xf32> to vector<16x128xf32>
    %227 = vector.extract_strided_slice %225 {offsets = [0, 128], sizes = [16, 128], strides = [1, 1]} : vector<16x256xf32> to vector<16x128xf32>
    %c1996 = arith.constant 1996 : index
    %c0_48 = arith.constant 0 : index
    %228 = vector.load %arg2[%c1996, %c0_48] : memref<2016x256xf32, #tpu.memory_space<vmem>>, vector<1x128xf32>
    %c656 = arith.constant 656 : index
    %c0_49 = arith.constant 0 : index
    %229 = vector.load %arg2[%c656, %c0_49] : memref<2016x256xf32, #tpu.memory_space<vmem>>, vector<128x128xf32>
    %230 = vector.extract_strided_slice %227 {offsets = [0, 0], sizes = [8, 128], strides = [1, 1]} : vector<16x128xf32> to vector<8x128xf32>
    %231 = vector.extract_strided_slice %3 {offsets = [0, 0], sizes = [8, 16], strides = [1, 1]} : vector<16x16xf32> to vector<8x16xf32>
    %232 = vector.extract_strided_slice %4 {offsets = [0, 0], sizes = [8, 16], strides = [1, 1]} : vector<16x16xf32> to vector<8x16xf32>
    %233 = vector.shape_cast %230 : vector<8x128xf32> to vector<8x1x128xf32>
    %234 = vector.shape_cast %226 : vector<16x128xf32> to vector<1x16x128xf32>
    %235 = vector.broadcast %233 : vector<8x1x128xf32> to vector<8x16x128xf32>
    %236 = vector.broadcast %234 : vector<1x16x128xf32> to vector<8x16x128xf32>
    %237 = arith.addf %235, %236 : vector<8x16x128xf32>
    %238 = vector.shape_cast %231 : vector<8x16xf32> to vector<8x16x1xf32>
    %239 = vector.shape_cast %228 : vector<1x128xf32> to vector<1x1x128xf32>
    %240 = vector.broadcast %238 : vector<8x16x1xf32> to vector<8x16x128xf32>
    %241 = vector.broadcast %239 : vector<1x1x128xf32> to vector<8x16x128xf32>
    %242 = arith.mulf %240, %241 : vector<8x16x128xf32>
    %243 = arith.addf %237, %242 : vector<8x16x128xf32>
    %cst_50 = arith.constant 2.000000e-01 : f32
    %244 = vector.broadcast %cst_50 : f32 to vector<8x16x128xf32>
    %245 = arith.mulf %244, %243 : vector<8x16x128xf32>
    %246 = arith.maximumf %243, %245 : vector<8x16x128xf32>
    %247 = vector.shape_cast %246 : vector<8x16x128xf32> to vector<128x128xf32>
    %cst_51 = arith.constant dense<0.000000e+00> : vector<128x128xf32>
    %248 = tpu.matmul %247, %229, %cst_51 {dimension_numbers = #tpu.dot_dimension_numbers<[1], [0], [0], [1], [0, 0, 1, 1], [], []>} : vector<128x128xf32>, vector<128x128xf32>, vector<128x128xf32> -> vector<128x128xf32>
    %249 = vector.shape_cast %248 : vector<128x128xf32> to vector<8x16x128xf32>
    %250 = vector.shape_cast %232 : vector<8x16xf32> to vector<8x16x1xf32>
    %251 = vector.broadcast %250 : vector<8x16x1xf32> to vector<8x16x128xf32>
    %252 = arith.addf %249, %251 : vector<8x16x128xf32>
    %cst_52 = arith.constant dense<0xFF800000> : vector<8x128xf32>
    %253 = vector.multi_reduction <maximumf>, %252, %cst_52 [1] : vector<8x16x128xf32> to vector<8x128xf32>
    %254 = vector.shape_cast %253 : vector<8x128xf32> to vector<8x1x128xf32>
    %255 = vector.broadcast %254 : vector<8x1x128xf32> to vector<8x16x128xf32>
    %256 = arith.subf %252, %255 : vector<8x16x128xf32>
    %257 = math.exp %256 : vector<8x16x128xf32>
    %258 = vector.shape_cast %226 : vector<16x128xf32> to vector<1x16x128xf32>
    %259 = vector.broadcast %258 : vector<1x16x128xf32> to vector<8x16x128xf32>
    %260 = arith.mulf %257, %259 : vector<8x16x128xf32>
    %261 = vector.shape_cast %257 : vector<8x16x128xf32> to vector<128x128xf32>
    %262 = vector.shape_cast %260 : vector<8x16x128xf32> to vector<128x128xf32>
    %263 = tpu.concatenate %261, %262 in 1 : vector<128x128xf32>, vector<128x128xf32> -> vector<128x256xf32>
    %cst_53 = arith.constant dense<0.000000e+00> : vector<8x256xf32>
    %264 = tpu.matmul %13, %263, %cst_53 {dimension_numbers = #tpu.dot_dimension_numbers<[1], [0], [0], [1], [0, 0, 1, 1], [], []>} : vector<8x128xf32>, vector<128x256xf32>, vector<8x256xf32> -> vector<8x256xf32>
    %265 = vector.extract_strided_slice %264 {offsets = [0, 0], sizes = [8, 128], strides = [1, 1]} : vector<8x256xf32> to vector<8x128xf32>
    %cst_54 = arith.constant 1.000000e-16 : f32
    %266 = vector.broadcast %cst_54 : f32 to vector<8x128xf32>
    %267 = arith.maximumf %265, %266 : vector<8x128xf32>
    %268 = vector.extract_strided_slice %264 {offsets = [0, 128], sizes = [8, 128], strides = [1, 1]} : vector<8x256xf32> to vector<8x128xf32>
    %269 = tpu.reciprocal %267 {approx = true} : vector<8x128xf32> -> vector<8x128xf32>
    %270 = arith.mulf %268, %269 : vector<8x128xf32>
    %271 = vector.extract_strided_slice %227 {offsets = [8, 0], sizes = [8, 128], strides = [1, 1]} : vector<16x128xf32> to vector<8x128xf32>
    %272 = vector.extract_strided_slice %3 {offsets = [8, 0], sizes = [8, 16], strides = [1, 1]} : vector<16x16xf32> to vector<8x16xf32>
    %273 = vector.extract_strided_slice %4 {offsets = [8, 0], sizes = [8, 16], strides = [1, 1]} : vector<16x16xf32> to vector<8x16xf32>
    %274 = vector.shape_cast %271 : vector<8x128xf32> to vector<8x1x128xf32>
    %275 = vector.shape_cast %226 : vector<16x128xf32> to vector<1x16x128xf32>
    %276 = vector.broadcast %274 : vector<8x1x128xf32> to vector<8x16x128xf32>
    %277 = vector.broadcast %275 : vector<1x16x128xf32> to vector<8x16x128xf32>
    %278 = arith.addf %276, %277 : vector<8x16x128xf32>
    %279 = vector.shape_cast %272 : vector<8x16xf32> to vector<8x16x1xf32>
    %280 = vector.shape_cast %228 : vector<1x128xf32> to vector<1x1x128xf32>
    %281 = vector.broadcast %279 : vector<8x16x1xf32> to vector<8x16x128xf32>
    %282 = vector.broadcast %280 : vector<1x1x128xf32> to vector<8x16x128xf32>
    %283 = arith.mulf %281, %282 : vector<8x16x128xf32>
    %284 = arith.addf %278, %283 : vector<8x16x128xf32>
    %cst_55 = arith.constant 2.000000e-01 : f32
    %285 = vector.broadcast %cst_55 : f32 to vector<8x16x128xf32>
    %286 = arith.mulf %285, %284 : vector<8x16x128xf32>
    %287 = arith.maximumf %284, %286 : vector<8x16x128xf32>
    %288 = vector.shape_cast %287 : vector<8x16x128xf32> to vector<128x128xf32>
    %cst_56 = arith.constant dense<0.000000e+00> : vector<128x128xf32>
    %289 = tpu.matmul %288, %229, %cst_56 {dimension_numbers = #tpu.dot_dimension_numbers<[1], [0], [0], [1], [0, 0, 1, 1], [], []>} : vector<128x128xf32>, vector<128x128xf32>, vector<128x128xf32> -> vector<128x128xf32>
    %290 = vector.shape_cast %289 : vector<128x128xf32> to vector<8x16x128xf32>
    %291 = vector.shape_cast %273 : vector<8x16xf32> to vector<8x16x1xf32>
    %292 = vector.broadcast %291 : vector<8x16x1xf32> to vector<8x16x128xf32>
    %293 = arith.addf %290, %292 : vector<8x16x128xf32>
    %cst_57 = arith.constant dense<0xFF800000> : vector<8x128xf32>
    %294 = vector.multi_reduction <maximumf>, %293, %cst_57 [1] : vector<8x16x128xf32> to vector<8x128xf32>
    %295 = vector.shape_cast %294 : vector<8x128xf32> to vector<8x1x128xf32>
    %296 = vector.broadcast %295 : vector<8x1x128xf32> to vector<8x16x128xf32>
    %297 = arith.subf %293, %296 : vector<8x16x128xf32>
    %298 = math.exp %297 : vector<8x16x128xf32>
    %299 = vector.shape_cast %226 : vector<16x128xf32> to vector<1x16x128xf32>
    %300 = vector.broadcast %299 : vector<1x16x128xf32> to vector<8x16x128xf32>
    %301 = arith.mulf %298, %300 : vector<8x16x128xf32>
    %302 = vector.shape_cast %298 : vector<8x16x128xf32> to vector<128x128xf32>
    %303 = vector.shape_cast %301 : vector<8x16x128xf32> to vector<128x128xf32>
    %304 = tpu.concatenate %302, %303 in 1 : vector<128x128xf32>, vector<128x128xf32> -> vector<128x256xf32>
    %cst_58 = arith.constant dense<0.000000e+00> : vector<8x256xf32>
    %305 = tpu.matmul %13, %304, %cst_58 {dimension_numbers = #tpu.dot_dimension_numbers<[1], [0], [0], [1], [0, 0, 1, 1], [], []>} : vector<8x128xf32>, vector<128x256xf32>, vector<8x256xf32> -> vector<8x256xf32>
    %306 = vector.extract_strided_slice %305 {offsets = [0, 0], sizes = [8, 128], strides = [1, 1]} : vector<8x256xf32> to vector<8x128xf32>
    %cst_59 = arith.constant 1.000000e-16 : f32
    %307 = vector.broadcast %cst_59 : f32 to vector<8x128xf32>
    %308 = arith.maximumf %306, %307 : vector<8x128xf32>
    %309 = vector.extract_strided_slice %305 {offsets = [0, 128], sizes = [8, 128], strides = [1, 1]} : vector<8x256xf32> to vector<8x128xf32>
    %310 = tpu.reciprocal %308 {approx = true} : vector<8x128xf32> -> vector<8x128xf32>
    %311 = arith.mulf %309, %310 : vector<8x128xf32>
    %312 = tpu.concatenate %270, %311 in 0 : vector<8x128xf32>, vector<8x128xf32> -> vector<16x128xf32>
    %c1997 = arith.constant 1997 : index
    %c0_60 = arith.constant 0 : index
    %313 = vector.load %arg2[%c1997, %c0_60] : memref<2016x256xf32, #tpu.memory_space<vmem>>, vector<1x128xf32>
    %314 = vector.broadcast %313 : vector<1x128xf32> to vector<16x128xf32>
    %315 = arith.addf %312, %314 : vector<16x128xf32>
    %c1998 = arith.constant 1998 : index
    %c0_61 = arith.constant 0 : index
    %316 = vector.load %arg2[%c1998, %c0_61] : memref<2016x256xf32, #tpu.memory_space<vmem>>, vector<1x128xf32>
    %317 = vector.broadcast %316 : vector<1x128xf32> to vector<16x128xf32>
    %318 = arith.mulf %315, %317 : vector<16x128xf32>
    %c1999 = arith.constant 1999 : index
    %c0_62 = arith.constant 0 : index
    %319 = vector.load %arg2[%c1999, %c0_62] : memref<2016x256xf32, #tpu.memory_space<vmem>>, vector<1x128xf32>
    %320 = vector.broadcast %319 : vector<1x128xf32> to vector<16x128xf32>
    %321 = arith.addf %318, %320 : vector<16x128xf32>
    %322 = arith.addf %321, %220 : vector<16x128xf32>
    %cst_63 = arith.constant 0.000000e+00 : f32
    %323 = vector.broadcast %cst_63 : f32 to vector<16x128xf32>
    %324 = arith.maximumf %322, %323 : vector<16x128xf32>
    %c784 = arith.constant 784 : index
    %c0_64 = arith.constant 0 : index
    %325 = vector.load %arg2[%c784, %c0_64] : memref<2016x256xf32, #tpu.memory_space<vmem>>, vector<128x256xf32>
    %cst_65 = arith.constant dense<0.000000e+00> : vector<16x256xf32>
    %326 = tpu.matmul %324, %325, %cst_65 {dimension_numbers = #tpu.dot_dimension_numbers<[1], [0], [0], [1], [0, 0, 1, 1], [], []>} : vector<16x128xf32>, vector<128x256xf32>, vector<16x256xf32> -> vector<16x256xf32>
    %c2000 = arith.constant 2000 : index
    %c0_66 = arith.constant 0 : index
    %327 = vector.load %arg2[%c2000, %c0_66] : memref<2016x256xf32, #tpu.memory_space<vmem>>, vector<1x256xf32>
    %328 = vector.broadcast %327 : vector<1x256xf32> to vector<16x256xf32>
    %329 = arith.addf %326, %328 : vector<16x256xf32>
    %330 = vector.extract_strided_slice %329 {offsets = [0, 0], sizes = [16, 128], strides = [1, 1]} : vector<16x256xf32> to vector<16x128xf32>
    %331 = vector.extract_strided_slice %329 {offsets = [0, 128], sizes = [16, 128], strides = [1, 1]} : vector<16x256xf32> to vector<16x128xf32>
    %c2001 = arith.constant 2001 : index
    %c0_67 = arith.constant 0 : index
    %332 = vector.load %arg2[%c2001, %c0_67] : memref<2016x256xf32, #tpu.memory_space<vmem>>, vector<1x128xf32>
    %c912 = arith.constant 912 : index
    %c0_68 = arith.constant 0 : index
    %333 = vector.load %arg2[%c912, %c0_68] : memref<2016x256xf32, #tpu.memory_space<vmem>>, vector<128x128xf32>
    %334 = vector.extract_strided_slice %331 {offsets = [0, 0], sizes = [8, 128], strides = [1, 1]} : vector<16x128xf32> to vector<8x128xf32>
    %335 = vector.extract_strided_slice %3 {offsets = [0, 0], sizes = [8, 16], strides = [1, 1]} : vector<16x16xf32> to vector<8x16xf32>
    %336 = vector.extract_strided_slice %4 {offsets = [0, 0], sizes = [8, 16], strides = [1, 1]} : vector<16x16xf32> to vector<8x16xf32>
    %337 = vector.shape_cast %334 : vector<8x128xf32> to vector<8x1x128xf32>
    %338 = vector.shape_cast %330 : vector<16x128xf32> to vector<1x16x128xf32>
    %339 = vector.broadcast %337 : vector<8x1x128xf32> to vector<8x16x128xf32>
    %340 = vector.broadcast %338 : vector<1x16x128xf32> to vector<8x16x128xf32>
    %341 = arith.addf %339, %340 : vector<8x16x128xf32>
    %342 = vector.shape_cast %335 : vector<8x16xf32> to vector<8x16x1xf32>
    %343 = vector.shape_cast %332 : vector<1x128xf32> to vector<1x1x128xf32>
    %344 = vector.broadcast %342 : vector<8x16x1xf32> to vector<8x16x128xf32>
    %345 = vector.broadcast %343 : vector<1x1x128xf32> to vector<8x16x128xf32>
    %346 = arith.mulf %344, %345 : vector<8x16x128xf32>
    %347 = arith.addf %341, %346 : vector<8x16x128xf32>
    %cst_69 = arith.constant 2.000000e-01 : f32
    %348 = vector.broadcast %cst_69 : f32 to vector<8x16x128xf32>
    %349 = arith.mulf %348, %347 : vector<8x16x128xf32>
    %350 = arith.maximumf %347, %349 : vector<8x16x128xf32>
    %351 = vector.shape_cast %350 : vector<8x16x128xf32> to vector<128x128xf32>
    %cst_70 = arith.constant dense<0.000000e+00> : vector<128x128xf32>
    %352 = tpu.matmul %351, %333, %cst_70 {dimension_numbers = #tpu.dot_dimension_numbers<[1], [0], [0], [1], [0, 0, 1, 1], [], []>} : vector<128x128xf32>, vector<128x128xf32>, vector<128x128xf32> -> vector<128x128xf32>
    %353 = vector.shape_cast %352 : vector<128x128xf32> to vector<8x16x128xf32>
    %354 = vector.shape_cast %336 : vector<8x16xf32> to vector<8x16x1xf32>
    %355 = vector.broadcast %354 : vector<8x16x1xf32> to vector<8x16x128xf32>
    %356 = arith.addf %353, %355 : vector<8x16x128xf32>
    %cst_71 = arith.constant dense<0xFF800000> : vector<8x128xf32>
    %357 = vector.multi_reduction <maximumf>, %356, %cst_71 [1] : vector<8x16x128xf32> to vector<8x128xf32>
    %358 = vector.shape_cast %357 : vector<8x128xf32> to vector<8x1x128xf32>
    %359 = vector.broadcast %358 : vector<8x1x128xf32> to vector<8x16x128xf32>
    %360 = arith.subf %356, %359 : vector<8x16x128xf32>
    %361 = math.exp %360 : vector<8x16x128xf32>
    %362 = vector.shape_cast %330 : vector<16x128xf32> to vector<1x16x128xf32>
    %363 = vector.broadcast %362 : vector<1x16x128xf32> to vector<8x16x128xf32>
    %364 = arith.mulf %361, %363 : vector<8x16x128xf32>
    %365 = vector.shape_cast %361 : vector<8x16x128xf32> to vector<128x128xf32>
    %366 = vector.shape_cast %364 : vector<8x16x128xf32> to vector<128x128xf32>
    %367 = tpu.concatenate %365, %366 in 1 : vector<128x128xf32>, vector<128x128xf32> -> vector<128x256xf32>
    %cst_72 = arith.constant dense<0.000000e+00> : vector<8x256xf32>
    %368 = tpu.matmul %13, %367, %cst_72 {dimension_numbers = #tpu.dot_dimension_numbers<[1], [0], [0], [1], [0, 0, 1, 1], [], []>} : vector<8x128xf32>, vector<128x256xf32>, vector<8x256xf32> -> vector<8x256xf32>
    %369 = vector.extract_strided_slice %368 {offsets = [0, 0], sizes = [8, 128], strides = [1, 1]} : vector<8x256xf32> to vector<8x128xf32>
    %cst_73 = arith.constant 1.000000e-16 : f32
    %370 = vector.broadcast %cst_73 : f32 to vector<8x128xf32>
    %371 = arith.maximumf %369, %370 : vector<8x128xf32>
    %372 = vector.extract_strided_slice %368 {offsets = [0, 128], sizes = [8, 128], strides = [1, 1]} : vector<8x256xf32> to vector<8x128xf32>
    %373 = tpu.reciprocal %371 {approx = true} : vector<8x128xf32> -> vector<8x128xf32>
    %374 = arith.mulf %372, %373 : vector<8x128xf32>
    %375 = vector.extract_strided_slice %331 {offsets = [8, 0], sizes = [8, 128], strides = [1, 1]} : vector<16x128xf32> to vector<8x128xf32>
    %376 = vector.extract_strided_slice %3 {offsets = [8, 0], sizes = [8, 16], strides = [1, 1]} : vector<16x16xf32> to vector<8x16xf32>
    %377 = vector.extract_strided_slice %4 {offsets = [8, 0], sizes = [8, 16], strides = [1, 1]} : vector<16x16xf32> to vector<8x16xf32>
    %378 = vector.shape_cast %375 : vector<8x128xf32> to vector<8x1x128xf32>
    %379 = vector.shape_cast %330 : vector<16x128xf32> to vector<1x16x128xf32>
    %380 = vector.broadcast %378 : vector<8x1x128xf32> to vector<8x16x128xf32>
    %381 = vector.broadcast %379 : vector<1x16x128xf32> to vector<8x16x128xf32>
    %382 = arith.addf %380, %381 : vector<8x16x128xf32>
    %383 = vector.shape_cast %376 : vector<8x16xf32> to vector<8x16x1xf32>
    %384 = vector.shape_cast %332 : vector<1x128xf32> to vector<1x1x128xf32>
    %385 = vector.broadcast %383 : vector<8x16x1xf32> to vector<8x16x128xf32>
    %386 = vector.broadcast %384 : vector<1x1x128xf32> to vector<8x16x128xf32>
    %387 = arith.mulf %385, %386 : vector<8x16x128xf32>
    %388 = arith.addf %382, %387 : vector<8x16x128xf32>
    %cst_74 = arith.constant 2.000000e-01 : f32
    %389 = vector.broadcast %cst_74 : f32 to vector<8x16x128xf32>
    %390 = arith.mulf %389, %388 : vector<8x16x128xf32>
    %391 = arith.maximumf %388, %390 : vector<8x16x128xf32>
    %392 = vector.shape_cast %391 : vector<8x16x128xf32> to vector<128x128xf32>
    %cst_75 = arith.constant dense<0.000000e+00> : vector<128x128xf32>
    %393 = tpu.matmul %392, %333, %cst_75 {dimension_numbers = #tpu.dot_dimension_numbers<[1], [0], [0], [1], [0, 0, 1, 1], [], []>} : vector<128x128xf32>, vector<128x128xf32>, vector<128x128xf32> -> vector<128x128xf32>
    %394 = vector.shape_cast %393 : vector<128x128xf32> to vector<8x16x128xf32>
    %395 = vector.shape_cast %377 : vector<8x16xf32> to vector<8x16x1xf32>
    %396 = vector.broadcast %395 : vector<8x16x1xf32> to vector<8x16x128xf32>
    %397 = arith.addf %394, %396 : vector<8x16x128xf32>
    %cst_76 = arith.constant dense<0xFF800000> : vector<8x128xf32>
    %398 = vector.multi_reduction <maximumf>, %397, %cst_76 [1] : vector<8x16x128xf32> to vector<8x128xf32>
    %399 = vector.shape_cast %398 : vector<8x128xf32> to vector<8x1x128xf32>
    %400 = vector.broadcast %399 : vector<8x1x128xf32> to vector<8x16x128xf32>
    %401 = arith.subf %397, %400 : vector<8x16x128xf32>
    %402 = math.exp %401 : vector<8x16x128xf32>
    %403 = vector.shape_cast %330 : vector<16x128xf32> to vector<1x16x128xf32>
    %404 = vector.broadcast %403 : vector<1x16x128xf32> to vector<8x16x128xf32>
    %405 = arith.mulf %402, %404 : vector<8x16x128xf32>
    %406 = vector.shape_cast %402 : vector<8x16x128xf32> to vector<128x128xf32>
    %407 = vector.shape_cast %405 : vector<8x16x128xf32> to vector<128x128xf32>
    %408 = tpu.concatenate %406, %407 in 1 : vector<128x128xf32>, vector<128x128xf32> -> vector<128x256xf32>
    %cst_77 = arith.constant dense<0.000000e+00> : vector<8x256xf32>
    %409 = tpu.matmul %13, %408, %cst_77 {dimension_numbers = #tpu.dot_dimension_numbers<[1], [0], [0], [1], [0, 0, 1, 1], [], []>} : vector<8x128xf32>, vector<128x256xf32>, vector<8x256xf32> -> vector<8x256xf32>
    %410 = vector.extract_strided_slice %409 {offsets = [0, 0], sizes = [8, 128], strides = [1, 1]} : vector<8x256xf32> to vector<8x128xf32>
    %cst_78 = arith.constant 1.000000e-16 : f32
    %411 = vector.broadcast %cst_78 : f32 to vector<8x128xf32>
    %412 = arith.maximumf %410, %411 : vector<8x128xf32>
    %413 = vector.extract_strided_slice %409 {offsets = [0, 128], sizes = [8, 128], strides = [1, 1]} : vector<8x256xf32> to vector<8x128xf32>
    %414 = tpu.reciprocal %412 {approx = true} : vector<8x128xf32> -> vector<8x128xf32>
    %415 = arith.mulf %413, %414 : vector<8x128xf32>
    %416 = tpu.concatenate %374, %415 in 0 : vector<8x128xf32>, vector<8x128xf32> -> vector<16x128xf32>
    %c2002 = arith.constant 2002 : index
    %c0_79 = arith.constant 0 : index
    %417 = vector.load %arg2[%c2002, %c0_79] : memref<2016x256xf32, #tpu.memory_space<vmem>>, vector<1x128xf32>
    %418 = vector.broadcast %417 : vector<1x128xf32> to vector<16x128xf32>
    %419 = arith.addf %416, %418 : vector<16x128xf32>
    %c2003 = arith.constant 2003 : index
    %c0_80 = arith.constant 0 : index
    %420 = vector.load %arg2[%c2003, %c0_80] : memref<2016x256xf32, #tpu.memory_space<vmem>>, vector<1x128xf32>
    %421 = vector.broadcast %420 : vector<1x128xf32> to vector<16x128xf32>
    %422 = arith.mulf %419, %421 : vector<16x128xf32>
    %c2004 = arith.constant 2004 : index
    %c0_81 = arith.constant 0 : index
    %423 = vector.load %arg2[%c2004, %c0_81] : memref<2016x256xf32, #tpu.memory_space<vmem>>, vector<1x128xf32>
    %424 = vector.broadcast %423 : vector<1x128xf32> to vector<16x128xf32>
    %425 = arith.addf %422, %424 : vector<16x128xf32>
    %426 = arith.addf %425, %324 : vector<16x128xf32>
    %cst_82 = arith.constant 0.000000e+00 : f32
    %427 = vector.broadcast %cst_82 : f32 to vector<16x128xf32>
    %428 = arith.maximumf %426, %427 : vector<16x128xf32>
    %cst_83 = arith.constant dense<0.000000e+00> : vector<128xf32>
    %429 = vector.multi_reduction <add>, %428, %cst_83 [0] : vector<16x128xf32> to vector<128xf32>
    %430 = vector.shape_cast %429 : vector<128xf32> to vector<1x128xf32>
    %cst_84 = arith.constant 1.600000e+01 : f32
    %431 = vector.broadcast %cst_84 : f32 to vector<1x128xf32>
    %432 = arith.divf %430, %431 : vector<1x128xf32>
    %c1040 = arith.constant 1040 : index
    %c0_85 = arith.constant 0 : index
    %433 = vector.load %arg2[%c1040, %c0_85] : memref<2016x256xf32, #tpu.memory_space<vmem>>, vector<16x128xf32>
    %cst_86 = arith.constant dense<0.000000e+00> : vector<1x128xf32>
    %434 = tpu.matmul %5, %433, %cst_86 {dimension_numbers = #tpu.dot_dimension_numbers<[1], [0], [0], [1], [0, 0, 1, 1], [], []>} : vector<1x16xf32>, vector<16x128xf32>, vector<1x128xf32> -> vector<1x128xf32>
    %c2005 = arith.constant 2005 : index
    %c0_87 = arith.constant 0 : index
    %435 = vector.load %arg2[%c2005, %c0_87] : memref<2016x256xf32, #tpu.memory_space<vmem>>, vector<1x128xf32>
    %436 = arith.addf %434, %435 : vector<1x128xf32>
    %cst_88 = arith.constant 0.000000e+00 : f32
    %437 = vector.broadcast %cst_88 : f32 to vector<1x128xf32>
    %438 = arith.maximumf %436, %437 : vector<1x128xf32>
    %c1056 = arith.constant 1056 : index
    %c0_89 = arith.constant 0 : index
    %439 = vector.load %arg2[%c1056, %c0_89] : memref<2016x256xf32, #tpu.memory_space<vmem>>, vector<128x128xf32>
    %cst_90 = arith.constant dense<0.000000e+00> : vector<1x128xf32>
    %440 = tpu.matmul %438, %439, %cst_90 {dimension_numbers = #tpu.dot_dimension_numbers<[1], [0], [0], [1], [0, 0, 1, 1], [], []>} : vector<1x128xf32>, vector<128x128xf32>, vector<1x128xf32> -> vector<1x128xf32>
    %c2006 = arith.constant 2006 : index
    %c0_91 = arith.constant 0 : index
    %441 = vector.load %arg2[%c2006, %c0_91] : memref<2016x256xf32, #tpu.memory_space<vmem>>, vector<1x128xf32>
    %442 = arith.addf %440, %441 : vector<1x128xf32>
    %cst_92 = arith.constant 0.000000e+00 : f32
    %443 = vector.broadcast %cst_92 : f32 to vector<1x128xf32>
    %444 = arith.maximumf %442, %443 : vector<1x128xf32>
    %c1184 = arith.constant 1184 : index
    %c0_93 = arith.constant 0 : index
    %445 = vector.load %arg2[%c1184, %c0_93] : memref<2016x256xf32, #tpu.memory_space<vmem>>, vector<16x128xf32>
    %cst_94 = arith.constant dense<0.000000e+00> : vector<1x128xf32>
    %446 = tpu.matmul %5, %445, %cst_94 {dimension_numbers = #tpu.dot_dimension_numbers<[1], [0], [0], [1], [0, 0, 1, 1], [], []>} : vector<1x16xf32>, vector<16x128xf32>, vector<1x128xf32> -> vector<1x128xf32>
    %c2007 = arith.constant 2007 : index
    %c0_95 = arith.constant 0 : index
    %447 = vector.load %arg2[%c2007, %c0_95] : memref<2016x256xf32, #tpu.memory_space<vmem>>, vector<1x128xf32>
    %448 = arith.addf %446, %447 : vector<1x128xf32>
    %cst_96 = arith.constant 0.000000e+00 : f32
    %449 = vector.broadcast %cst_96 : f32 to vector<1x128xf32>
    %450 = arith.maximumf %448, %449 : vector<1x128xf32>
    %c1200 = arith.constant 1200 : index
    %c0_97 = arith.constant 0 : index
    %451 = vector.load %arg2[%c1200, %c0_97] : memref<2016x256xf32, #tpu.memory_space<vmem>>, vector<128x128xf32>
    %cst_98 = arith.constant dense<0.000000e+00> : vector<1x128xf32>
    %452 = tpu.matmul %450, %451, %cst_98 {dimension_numbers = #tpu.dot_dimension_numbers<[1], [0], [0], [1], [0, 0, 1, 1], [], []>} : vector<1x128xf32>, vector<128x128xf32>, vector<1x128xf32> -> vector<1x128xf32>
    %c2008 = arith.constant 2008 : index
    %c0_99 = arith.constant 0 : index
    %453 = vector.load %arg2[%c2008, %c0_99] : memref<2016x256xf32, #tpu.memory_space<vmem>>, vector<1x128xf32>
    %454 = arith.addf %452, %453 : vector<1x128xf32>
    %cst_100 = arith.constant 0.000000e+00 : f32
    %455 = vector.broadcast %cst_100 : f32 to vector<1x128xf32>
    %456 = arith.maximumf %454, %455 : vector<1x128xf32>
    %457 = arith.addf %444, %456 : vector<1x128xf32>
    %c1328 = arith.constant 1328 : index
    %c0_101 = arith.constant 0 : index
    %458 = vector.load %arg2[%c1328, %c0_101] : memref<2016x256xf32, #tpu.memory_space<vmem>>, vector<16x128xf32>
    %cst_102 = arith.constant dense<0.000000e+00> : vector<1x128xf32>
    %459 = tpu.matmul %5, %458, %cst_102 {dimension_numbers = #tpu.dot_dimension_numbers<[1], [0], [0], [1], [0, 0, 1, 1], [], []>} : vector<1x16xf32>, vector<16x128xf32>, vector<1x128xf32> -> vector<1x128xf32>
    %c2009 = arith.constant 2009 : index
    %c0_103 = arith.constant 0 : index
    %460 = vector.load %arg2[%c2009, %c0_103] : memref<2016x256xf32, #tpu.memory_space<vmem>>, vector<1x128xf32>
    %461 = arith.addf %459, %460 : vector<1x128xf32>
    %cst_104 = arith.constant 0.000000e+00 : f32
    %462 = vector.broadcast %cst_104 : f32 to vector<1x128xf32>
    %463 = arith.maximumf %461, %462 : vector<1x128xf32>
    %c1344 = arith.constant 1344 : index
    %c0_105 = arith.constant 0 : index
    %464 = vector.load %arg2[%c1344, %c0_105] : memref<2016x256xf32, #tpu.memory_space<vmem>>, vector<128x128xf32>
    %cst_106 = arith.constant dense<0.000000e+00> : vector<1x128xf32>
    %465 = tpu.matmul %463, %464, %cst_106 {dimension_numbers = #tpu.dot_dimension_numbers<[1], [0], [0], [1], [0, 0, 1, 1], [], []>} : vector<1x128xf32>, vector<128x128xf32>, vector<1x128xf32> -> vector<1x128xf32>
    %c2010 = arith.constant 2010 : index
    %c0_107 = arith.constant 0 : index
    %466 = vector.load %arg2[%c2010, %c0_107] : memref<2016x256xf32, #tpu.memory_space<vmem>>, vector<1x128xf32>
    %467 = arith.addf %465, %466 : vector<1x128xf32>
    %cst_108 = arith.constant 0.000000e+00 : f32
    %468 = vector.broadcast %cst_108 : f32 to vector<1x128xf32>
    %469 = arith.maximumf %467, %468 : vector<1x128xf32>
    %470 = arith.addf %457, %469 : vector<1x128xf32>
    %c1472 = arith.constant 1472 : index
    %c0_109 = arith.constant 0 : index
    %471 = vector.load %arg2[%c1472, %c0_109] : memref<2016x256xf32, #tpu.memory_space<vmem>>, vector<128x128xf32>
    %cst_110 = arith.constant dense<0.000000e+00> : vector<1x128xf32>
    %472 = tpu.matmul %432, %471, %cst_110 {dimension_numbers = #tpu.dot_dimension_numbers<[1], [0], [0], [1], [0, 0, 1, 1], [], []>} : vector<1x128xf32>, vector<128x128xf32>, vector<1x128xf32> -> vector<1x128xf32>
    %c1600 = arith.constant 1600 : index
    %c0_111 = arith.constant 0 : index
    %473 = vector.load %arg2[%c1600, %c0_111] : memref<2016x256xf32, #tpu.memory_space<vmem>>, vector<128x128xf32>
    %cst_112 = arith.constant dense<0.000000e+00> : vector<1x128xf32>
    %474 = tpu.matmul %470, %473, %cst_112 {dimension_numbers = #tpu.dot_dimension_numbers<[1], [0], [0], [1], [0, 0, 1, 1], [], []>} : vector<1x128xf32>, vector<128x128xf32>, vector<1x128xf32> -> vector<1x128xf32>
    %475 = arith.addf %472, %474 : vector<1x128xf32>
    %c2011 = arith.constant 2011 : index
    %c0_113 = arith.constant 0 : index
    %476 = vector.load %arg2[%c2011, %c0_113] : memref<2016x256xf32, #tpu.memory_space<vmem>>, vector<1x128xf32>
    %477 = arith.addf %475, %476 : vector<1x128xf32>
    %cst_114 = arith.constant 0.000000e+00 : f32
    %478 = vector.broadcast %cst_114 : f32 to vector<1x128xf32>
    %479 = arith.maximumf %477, %478 : vector<1x128xf32>
    %c1728 = arith.constant 1728 : index
    %c0_115 = arith.constant 0 : index
    %480 = vector.load %arg2[%c1728, %c0_115] : memref<2016x256xf32, #tpu.memory_space<vmem>>, vector<128x128xf32>
    %cst_116 = arith.constant dense<0.000000e+00> : vector<1x128xf32>
    %481 = tpu.matmul %479, %480, %cst_116 {dimension_numbers = #tpu.dot_dimension_numbers<[1], [0], [0], [1], [0, 0, 1, 1], [], []>} : vector<1x128xf32>, vector<128x128xf32>, vector<1x128xf32> -> vector<1x128xf32>
    %c2012 = arith.constant 2012 : index
    %c0_117 = arith.constant 0 : index
    %482 = vector.load %arg2[%c2012, %c0_117] : memref<2016x256xf32, #tpu.memory_space<vmem>>, vector<1x128xf32>
    %483 = arith.addf %481, %482 : vector<1x128xf32>
    %cst_118 = arith.constant 0.000000e+00 : f32
    %484 = vector.broadcast %cst_118 : f32 to vector<1x128xf32>
    %485 = arith.maximumf %483, %484 : vector<1x128xf32>
    %c1856 = arith.constant 1856 : index
    %c0_119 = arith.constant 0 : index
    %486 = vector.load %arg2[%c1856, %c0_119] : memref<2016x256xf32, #tpu.memory_space<vmem>>, vector<128x128xf32>
    %cst_120 = arith.constant dense<0.000000e+00> : vector<1x128xf32>
    %487 = tpu.matmul %485, %486, %cst_120 {dimension_numbers = #tpu.dot_dimension_numbers<[1], [0], [0], [1], [0, 0, 1, 1], [], []>} : vector<1x128xf32>, vector<128x128xf32>, vector<1x128xf32> -> vector<1x128xf32>
    %c2013 = arith.constant 2013 : index
    %c0_121 = arith.constant 0 : index
    %488 = vector.load %arg2[%c2013, %c0_121] : memref<2016x256xf32, #tpu.memory_space<vmem>>, vector<1x128xf32>
    %489 = arith.addf %487, %488 : vector<1x128xf32>
    %490 = vector.shape_cast %489 : vector<1x128xf32> to vector<1x1x128xf32>
    %c0_122 = arith.constant 0 : index
    %c0_123 = arith.constant 0 : index
    %c0_124 = arith.constant 0 : index
    %491 = vector.load %arg3[%c0_122, %c0_123, %c0_124] : memref<1x1x128xf32, #tpu.memory_space<vmem>>, vector<1x1x128xf32>
    tpu.vector_store %arg3[%c0_122, %c0_123, %c0_124], %490 {strides = array<i32>} : memref<1x1x128xf32, #tpu.memory_space<vmem>>, vector<1x1x128xf32>,
    return
  }
  func.func @transform_0(%arg0: i32) -> (i32, i32, i32) {
    %c0_i32 = arith.constant 0 : i32
    %c0_i32_0 = arith.constant 0 : i32
    %c0_i32_1 = arith.constant 0 : i32
    return %arg0, %c0_i32, %c0_i32_0 : i32, i32, i32
  }
  func.func @transform_1(%arg0: i32) -> (i32, i32) {
    %c0_i32 = arith.constant 0 : i32
    %c0_i32_0 = arith.constant 0 : i32
    %c0_i32_1 = arith.constant 0 : i32
    return %c0_i32, %c0_i32_0 : i32, i32
  }
  func.func @transform_2(%arg0: i32) -> (i32, i32, i32) {
    %c0_i32 = arith.constant 0 : i32
    %c0_i32_0 = arith.constant 0 : i32
    %c0_i32_1 = arith.constant 0 : i32
    return %arg0, %c0_i32, %c0_i32_0 : i32, i32, i32
  }
}

</mosaic_0001>

<bundles_post_ra>
// kernel: tpu_custom_call.1
= control target key start
LH: loop header
LB: loop body
LE: loop exit
PB: predicated region body
PF: predicated region fallthrough
CT: control target
= control target key end

     0   :  { %7 = vsyncpa [#allocation3], 0  ;;  %s11482_s0 = inlined_call_operand.hbm [shape: f32[2,16,128], index: 0, kind: input, shape index: {}]   ;;  %s11483_s1 = inlined_call_operand.hbm [shape: f32[2016,256], index: 1, kind: input, shape index: {}]   ;;  %s11484_s2 = inlined_call_operand.hbm [shape: f32[2,1,128], index: 2, kind: output, shape index: {}]  }
   0x1   :  { %9 = vsyncpa [#allocation3 + $0x1], 0 }
   0x2   :  { %10 = vsyncpa [#allocation6], 0 }
   0x3   :  { %11 = vsyncpa [#allocation4], 0 }
   0x4   :  { %13 = vsyncpa [#allocation4 + $0x1], 0  ;;  %s8774_s9 = smov 0   ;;  %s8776_s10 = smov 0  }
   0x5   :  { %s8778_s11 = smov 0   ;;  %s8780_s12 = smov 0  }
   0x6 LB: > { %s8795_s13 = sadd.s32 4294967295, %s8745_s12   ;;  %s6333_s14 = sadd.s32 4294967294, %s8745_s12   ;;  %s8745_s12 = sphi %s8780_s12, %s11880_s12   ;;  %s8741_s11 = sphi %s8778_s11, %s11879_s11   ;;  %s8737_s10 = sphi %s8776_s10, %s11878_s10   ;;  %s8733_s9 = sphi %s8774_s9, %s11877_s9  }
   0x7   : > { %p39_p0 = scmp.ne.s32.totalorder %s8737_s10, %s8733_s9  ;;  %p11485_p1 = scmp.eq.s32.totalorder %s8795_s13, 0 }
   0x8   : > { %p90_p3 = scmp.eq.s32.totalorder %s6333_s14, 1  ;;  %p6334_p5 = scmp.ge.s32.totalorder %s8745_s12, 1 }
   0x9   : > { %p8804_p4 = por %p11485_p1, %p39_p0  ;;  %p97_p7 = scmp.lt.s32.totalorder %s8745_s12, 3 }
   0xa   : > { %p8809_p6 = por %p90_p3, %p39_p0  ;;  %s8747_s18 = smov [#allocation5]  }
   0xb   : > { %s11628_s15 = scalar_select %p8804_p4, 1, 0 }
   0xc   : > { %s11629_s16 = scalar_select %p8809_p6, 1, 0 }
   0xd   : > { %p8814_p8 = pnand %p6334_p5, %p97_p7  ;;  %s109_s19 = sshll.u32 %s8747_s18, 4  ;;  %s8818_s19 = int_to_ptr.vmem [resolvable:$true] %s109_s19 }
   0xe   : > { %s8830_s21 = sadd.s32 1, %s8745_s12   ;;  %s26_s22 = sadd.s32 1, %s8741_s11 }
   0xf   : > { %s11630_s17 = scalar_select %p8814_p8, 1, 0 }
  0x10   : > { %p8283_p9 = pneg %p8814_p8  ;;  %s23_s23 = ssub.s32 %s8745_s12, %s8830_s21 }
  0x11   : > { %s8617_s26 = scalar_lea.hbm %s11483_s1, 64512 }
  0x12   : > { %p8825_p11 = pnand %p8283_p9, %p11485_p1  ;;  %p8618_p12 = scmp.ne.s32.totalorder %s11483_s1, %s8617_s26 }
  0x13   : > { %p8624_p5 = scmp.lt.u32.totalorder %s8617_s26, %s11483_s1 }
  0x14   : > { %p8619_p13 = pneg %p8825_p11 }
  0x16   : > { %p8620_p0 = pnand %p8619_p13, %p8618_p12 }
  0x18   : > { %p8621_p3 = pneg %p8620_p0 }
  0x1a   : > { %p8626_p7 = pnand %p8624_p5, %p8621_p3 }
  0x1c   : > { %8629 = shalt.err (!%p8626_p7)
}
  0x1d   : > { %s8630_s3 = scalar_lea.vmem %s8818_s19, 64512  ;;  %p8638_p2 = scmp.lt.s32.totalorder %s8818_s19, %s8818_s19 }
  0x1e   : > { %p8631_p9 = scmp.ne.s32.totalorder %s8818_s19, %s8630_s3  ;;  %p8639_p6 = scmp.lt.s32.totalorder %s8630_s3, %s8630_s3 }
  0x20   : > { %p8633_p10 = pnand %p8631_p9, %p8619_p13  ;;  %p8640_p4 = por %p8639_p6, %p8638_p2 }
  0x22   : > { %p8634_p1 = pneg %p8633_p10 }
  0x24   : > { %p8641_p8 = pnand %p8640_p4, %p8634_p1 }
  0x26   : > { %8644 = shalt.err (!%p8641_p8)
}
  0x27   : > { %s8748_s4 = smov 256   ;;  %s8749_s5 = smov 16  }
  0x28   : > { %8286 = dma.hbm_to_vmem [thread:$0]  (!%p8825_p11), %s11483_s1, 64512, %s8818_s19, [#allocation6], %s8748_s4, %s8748_s4, %s8749_s5  }
  0x29   : > { %p24_p2 = scmp.eq.s32.totalorder %s23_s23, 0  ;;  %p33_p1 = scmp.ne.s32.totalorder %s8741_s11, %s8737_s10 }
  0x2a   : > { %p34_p4 = scmp.eq.s32.totalorder %s8745_s12, 0  ;;  %p8296_p6 = scmp.lt.s32.totalorder %s8745_s12, 2 }
  0x2b   : > { %s8861_s8 = scalar_select %p24_p2, %s8741_s11, %s26_s22  }
  0x2c   : > { %p35_p8 = por %p34_p4, %p33_p1  ;;  %p11632_p10 = scmp.eq.s32.totalorder %s8795_s13, 1 }
  0x2d   : > { %s123_s18 = sand.u32 1, %s8741_s11   ;;  %s6351_s24 = sshll.u32 %s8745_s12, 8 }
  0x2e   : > { %p8865_p12 = por %p11632_p10, %p33_p1  ;;  %s6337_s25 = sshll.u32 %s123_s18, 4 }
  0x2f   : > { %s8874_s27 = scalar_lea.hbm %s11482_s0, %s6351_s24  ;;  %s127_s19 = scalar_lea.vmem [#allocation2], %s6337_s25 }
  0x30   : > { %s134_s22 = sshll.u32 %s127_s19, 4  ;;  %p8876_p11 = pnand %p8296_p6, %p35_p8  ;;  %s8880_s22 = int_to_ptr.vmem [resolvable:$true] %s134_s22 }
  0x31   : > { %s8882_s28 = scalar_lea.sflag [#allocation3], %s123_s18  ;;  %s8645_s29 = scalar_lea.hbm %s8874_s27, 256 }
  0x32   : > { %p8646_p13 = scmp.ne.s32.totalorder %s8874_s27, %s8645_s29  ;;  %p8647_p0 = pneg %p8876_p11 }
  0x33   : > { %s8650_s4 = scalar_lea.hbm %s11482_s0, 512  ;;  %p8651_p7 = scmp.lt.u32.totalorder %s8874_s27, %s11482_s0 }
  0x34   : > { %p8648_p3 = pnand %p8647_p0, %p8646_p13  ;;  %p8652_p9 = scmp.lt.u32.totalorder %s8650_s4, %s8645_s29 }
  0x35   : > { %p8654_p1 = scmp.lt.u32.totalorder %s8645_s29, %s8874_s27 }
  0x36   : > { %p8649_p5 = pneg %p8648_p3  ;;  %p8653_p2 = por %p8652_p9, %p8651_p7 }
  0x38   : > { %p8655_p4 = por %p8654_p1, %p8653_p2 }
  0x3a   : > { %p8656_p6 = pnand %p8655_p4, %p8649_p5 }
  0x3c   : > { %8659 = shalt.err (!%p8656_p6)
}
  0x3d   : > { %s8660_s7 = scalar_lea.vmem %s8880_s22, 256  ;;  %s8750_s18 = smov [#allocation2]  }
  0x3e   : > { %p8661_p8 = scmp.ne.s32.totalorder %s8880_s22, %s8660_s7  ;;  %s8665_s24 = sshll.u32 %s8750_s18, 4  ;;  %s8666_s24 = int_to_ptr.vmem [resolvable:$false] %s8665_s24 }
  0x3f   : > { %s8667_s25 = scalar_lea.vmem %s8666_s24, 512  ;;  %p8668_p3 = scmp.lt.s32.totalorder %s8880_s22, %s8666_s24 }
  0x40   : > { %p8663_p10 = pnand %p8661_p8, %p8647_p0  ;;  %p8669_p7 = scmp.lt.s32.totalorder %s8667_s25, %s8660_s7 }
  0x42   : > { %p8664_p13 = pneg %p8663_p10  ;;  %p8670_p9 = por %p8669_p7, %p8668_p3 }
  0x44   : > { %p8671_p2 = pnand %p8670_p9, %p8664_p13 }
  0x46   : > { %8674 = shalt.err (!%p8671_p2)
}
  0x47   : > { %s8751_s20 = smov 128   ;;  %s8752_s26 = smov 8  }
  0x48   : > { %8290 = dma.hbm_to_vmem [thread:$0]  (!%p8876_p11), %s8874_s27, 256, %s8880_s22, %s8882_s28, %s8751_s20, %s8751_s20, %s8752_s26  }
  0x49   : > { %p11635_p0 = scmp.ne.s32.totalorder %s11630_s17, 0 }
  0x4b   : > { %146 = sbr.rel (%p11635_p0) target bundleno = 4534 (0x11b6), region = 28 }
  0x52   : > { %s8913_s19 = sand.u32 1, %s8737_s10   ;;  %p11636_p5 = scmp.ne.s32.totalorder %s11628_s15, 0 }
  0x53   : > { %s6341_s29 = sshll.u32 %s8913_s19, 4  ;;  %s149_s30 = scalar_lea.sflag [#allocation3], %s8913_s19 }
  0x54   : > { %s8917_s3 = scalar_lea.vmem [#allocation2], %s6341_s29 }
  0x55   : > { %8720 = dma.done.wait (%p11636_p5), %s149_s30, 256  }
  0x56   : > { %8722 = vsyncadd (%p11636_p5), %s149_s30, 4294967040  ;;  %p11637_p11 = scmp.eq.s32.totalorder %s8795_s13, 0 }
  0x58   : > { %8724 = dma.done.wait (%p11637_p11), [#allocation6], 64512   ;;  %p11638_p1 = pmov %p11637_p11 }
  0x59   : > { %vm180_vm0 = vcmask 64512   ;;  %v178_v0 = vld [vmem:[#allocation5] sm:$0xff]  ;;  %v8931_v2 = vld [vmem:[%s8917_s3 + $0x8] sm:$0xff]  ;;  %v267_v7 = vld [vmem:[#allocation5 + $0x30] sm:$0xff]  ;;  %v11488_v51 = vmov 0.0   ;;  %v300_v52 = vlaneseq  ;;  %s8755_s15 = smov 80  }
  0x5a   : > { %8726 = vsyncadd (%p11638_p1), [#allocation6], 4294902784  ;;  %v8928_v1 = vld [vmem:[%s8917_s3] sm:$0xff]  ;;  %6739 = vmatprep.subr.mxu0 %v178_v0  ;;  %v266_v3 = vld [vmem:[#allocation5 + $0x28] sm:$0xff]  ;;  %374 = vmatprep.mubr.f32.mxu1 %v11488_v51  ;;  %vm8757_vm1 = vmmov 0   ;;  %vm5405_vm2 = vcmask 130048  }
  0x5b   : > { %6741 = vmatprep.mubr.msk.f32.mxu0 %vm180_vm0, %v8928_v1  ;;  %v268_v4 = vld [vmem:[#allocation5 + $0x38] sm:$0xff]  ;;  %v265_v5 = vld [vmem:[#allocation5 + $0x20] sm:$0xff]  ;;  %6740 = vmatpush3.msra.mxu0 %v178_v0  ;;  %v270_v8 = vld [vmem:[#allocation5 + $0x48] sm:$0xff]  ;;  %v8936_v53 = vshrl.u32 %v300_v52, 7  ;;  %s6348_s17 = sshll.u32 %s8795_s13, 4  ;;  %s175_s27 = scalar_lea.vmem [#allocation7], %s8913_s19 }
  0x5c   : > { %v7458_v6 = vpack.c.bf16 %v268_v4, %v266_v3  ;;  %v272_v9 = vld [vmem:[#allocation5 + $0x58] sm:$0xff]  ;;  %6742 = vmatmul.mubr.msk.f32.vlgmr.msra.gmra.mrb[0].mxu0 %vm180_vm0, %v8931_v2  ;;  %v7460_v10 = vpack.c.bf16 %v267_v7, %v265_v5  ;;  %v269_v12 = vld [vmem:[#allocation5 + $0x40] sm:$0xff]  ;;  %v271_v13 = vld [vmem:[#allocation5 + $0x50] sm:$0xff]  ;;  %s6257_s22 = sshll.u32 %s175_s27, 4  ;;  %s11438_s4 = scalar_lea.hbm %s11484_s2, %s6348_s17  ;;  %s11440_s22 = int_to_ptr.vmem [resolvable:$true] %s6257_s22 }
  0x5d   : > { %v7462_v11 = vpack.c.bf16 %v272_v9, %v270_v8  ;;  %v274_v14 = vld [vmem:[#allocation5 + $0x68] sm:$0xff]  ;;  %v276_v15 = vld [vmem:[#allocation5 + $0x78] sm:$0xff]  ;;  %v7464_v16 = vpack.c.bf16 %v271_v13, %v269_v12  ;;  %v273_v18 = vld [vmem:[#allocation5 + $0x60] sm:$0xff]  ;;  %v8939_v54 = vsub.s32 0, %v8936_v53  ;;  %v8942_v55 = vsub.s32 1, %v8936_v53  ;;  %s6245_s5 = scalar_lea.sflag [#allocation4], %s8913_s19 }
  0x5e   : > { %7459 = vmatprep.subr.bf16.mxu1 %v7458_v6  ;;  %v7466_v17 = vpack.c.bf16 %v276_v15, %v274_v14  ;;  %v275_v19 = vld [vmem:[#allocation5 + $0x70] sm:$0xff]  ;;  %v278_v20 = vld [vmem:[#allocation5 + $0x88] sm:$0xff]  ;;  %v280_v21 = vld [vmem:[#allocation5 + $0x98] sm:$0xff]  ;;  %v536_v58 = vsub.s32 2, %v8936_v53  ;;  %v548_v60 = vsub.s32 3, %v8936_v53  ;;  %v560_v62 = vsub.s32 4, %v8936_v53 }
  0x5f   : > { %7461 = vmatpush1.bf16.msra.mxu1 %v7460_v10  ;;  %v7468_v22 = vpack.c.bf16 %v275_v19, %v273_v18  ;;  %v7470_v23 = vpack.c.bf16 %v280_v21, %v278_v20  ;;  %v277_v24 = vld [vmem:[#allocation5 + $0x80] sm:$0xff]  ;;  %v279_v25 = vld [vmem:[#allocation5 + $0x90] sm:$0xff]  ;;  %v282_v26 = vld [vmem:[#allocation5 + $0xa8] sm:$0xff]  ;;  %11639 = vst [vmem:[#allocation11_spill] sm:$0xff] %v8942_v55  ;;  %v8946_v56 = vrot.slane %v8928_v1, %v8942_v55  ;;  %v572_v0 = vsub.s32 5, %v8936_v53  ;;  %s8675_s6 = scalar_lea.vmem %s11440_s22, 16 }
  0x60   : > { %7463 = vmatprep.subr.bf16.mxu1 %v7462_v11  ;;  %v284_v27 = vld [vmem:[#allocation5 + $0xb8] sm:$0xff]  ;;  %v7472_v28 = vpack.c.bf16 %v279_v25, %v277_v24  ;;  %v281_v30 = vld [vmem:[#allocation5 + $0xa0] sm:$0xff]  ;;  %v283_v31 = vld [vmem:[#allocation5 + $0xb0] sm:$0xff]  ;;  %v8950_v57 = vrot.slane %v8928_v1, %v8939_v54  ;;  %v8958_v59 = vrot.slane %v8928_v1, %v536_v58  ;;  %v8964_v61 = vrot.slane %v8928_v1, %v548_v60  ;;  %p8676_p4 = scmp.ne.s32.totalorder %s11440_s22, %s8675_s6  ;;  %s8758_s13 = smov [#allocation7]  }
  0x61   : > { %v7474_v29 = vpack.c.bf16 %v284_v27, %v282_v26  ;;  %v286_v32 = vld [vmem:[#allocation5 + $0xc8] sm:$0xff]  ;;  %v288_v33 = vld [vmem:[#allocation5 + $0xd8] sm:$0xff]  ;;  %v7476_v34 = vpack.c.bf16 %v283_v31, %v281_v30  ;;  %v285_v36 = vld [vmem:[#allocation5 + $0xc0] sm:$0xff]  ;;  %528 = vbcast.lane.b32.xlu1 %v8946_v56, 272  ;;  %v8970_v63 = vrot.slane %v8928_v1, %v560_v62  ;;  %v573_v6 = vrot.slane %v8928_v1, %v572_v0  ;;  %s8679_s7 = sshll.u32 %s8758_s13, 4  ;;  %s8680_s7 = int_to_ptr.vmem [resolvable:$false] %s8679_s7 }
  0x62   : > { %v7478_v35 = vpack.c.bf16 %v288_v33, %v286_v32  ;;  %v287_v37 = vld [vmem:[#allocation5 + $0xd0] sm:$0xff]  ;;  %v290_v38 = vld [vmem:[#allocation5 + $0xe8] sm:$0xff]  ;;  %v292_v39 = vld [vmem:[#allocation5 + $0xf8] sm:$0xff]  ;;  %516 = vbcast.lane.b32.xlu0 %v8950_v57, 272  ;;  %v584_v7 = vsub.s32 6, %v8936_v53  ;;  %v596_v9 = vsub.s32 7, %v8936_v53  ;;  %v1222_v21 = vrot.slane %v8931_v2, %v536_v58  ;;  %p8677_p6 = pnand %p8676_p4, %p8865_p12  ;;  %p8682_p10 = scmp.lt.s32.totalorder %s11440_s22, %s8680_s7 }
  0x63   : > { %7465 = vmatpush1.bf16.msra.mxu1 %v7464_v16  ;;  %v7480_v40 = vpack.c.bf16 %v287_v37, %v285_v36  ;;  %v7482_v41 = vpack.c.bf16 %v292_v39, %v290_v38  ;;  %v289_v42 = vld [vmem:[#allocation5 + $0xe0] sm:$0xff]  ;;  %v291_v43 = vld [vmem:[#allocation5 + $0xf0] sm:$0xff]  ;;  %v294_v45 = vld [vmem:[#allocation5 + $0x108] sm:$0xff]  ;;  %v1258_v24 = vrot.slane %v8931_v2, %v572_v0  ;;  %s8681_s18 = scalar_lea.vmem %s8680_s7, 32 }
  0x64   : > { %7467 = vmatprep.subr.bf16.mxu1 %v7466_v17  ;;  %v7484_v44 = vpack.c.bf16 %v291_v43, %v289_v42  ;;  %v296_v46 = vld [vmem:[#allocation5 + $0x118] sm:$0xff]  ;;  %v293_v48 = vld [vmem:[#allocation5 + $0x100] sm:$0xff]  ;;  %v295_v49 = vld [vmem:[#allocation5 + $0x110] sm:$0xff]  ;;  %v585_v8 = vrot.slane %v8928_v1, %v584_v7  ;;  %v597_v13 = vrot.slane %v8928_v1, %v596_v9  ;;  %v1198_v17 = vrot.slane %v8931_v2, %v8939_v54  ;;  %p8678_p8 = pneg %p8677_p6  ;;  %p8683_p13 = scmp.lt.s32.totalorder %s8681_s18, %s8675_s6 }
  0x65   : > { %v7486_v47 = vpack.c.bf16 %v296_v46, %v294_v45  ;;  %v7488_v50 = vpack.c.bf16 %v295_v49, %v293_v48  ;;  %532 = vbcast.lane.b32.xlu1 %v8946_v56, 280  ;;  %v388_v3 = vld [vmem:[#allocation5 + $0x120] sm:$0xff]  ;;  %v389_v4 = vld [vmem:[#allocation5 + $0x130] sm:$0xff]  ;;  %v1210_v1 = vrot.slane %v8931_v2, %v8942_v55  ;;  %v1270_v25 = vrot.slane %v8931_v2, %v584_v7 }
  0x66   : > { %520 = vbcast.lane.b32.xlu0 %v8950_v57, 280  ;;  %v8973_v5 = vpack.c.bf16 %v389_v4, %v388_v3  ;;  %v390_v10 = vld [vmem:[#allocation5 + $0x140] sm:$0xff]  ;;  %v391_v11 = vld [vmem:[#allocation5 + $0x150] sm:$0xff]  ;;  %v1282_v26 = vrot.slane %v8931_v2, %v596_v9  ;;  %p8684_p3 = por %p8683_p13, %p8682_p10 }
  0x67   : > { %7469 = vmatpush1.bf16.msra.mxu1 %v7468_v22  ;;  %v8983_v12 = vpack.c.bf16 %v391_v11, %v390_v10  ;;  %v392_v14 = vld [vmem:[#allocation5 + $0x160] sm:$0xff]  ;;  %v393_v15 = vld [vmem:[#allocation5 + $0x170] sm:$0xff]  ;;  %v1234_v22 = vrot.slane %v8931_v2, %v548_v60 }
  0x68   : > { %7471 = vmatprep.subr.bf16.mxu1 %v7470_v23  ;;  %7491 = vmatprep.subr.bf16.mxu0 %v8973_v5  ;;  %v8988_v16 = vpack.c.bf16 %v393_v15, %v392_v14  ;;  %v394_v18 = vld [vmem:[#allocation5 + $0x180] sm:$0xff]  ;;  %v395_v19 = vld [vmem:[#allocation5 + $0x190] sm:$0xff]  ;;  %v1246_v23 = vrot.slane %v8931_v2, %v560_v62  ;;  %p8685_p7 = pnand %p8684_p3, %p8678_p8 }
  0x69   : > { %544 = vbcast.lane.b32.xlu1 %v8958_v59, 280  ;;  %7493 = vmatpush3.bf16.msra.mxu0 %v8973_v5  ;;  %v8994_v20 = vpack.c.bf16 %v395_v19, %v394_v18  ;;  %v179_v2 = vld [vmem:[#allocation5 + $0xf80] ss:$0 sm:$0xff]  ;;  %v399_v37 = vld [vmem:[#allocation5 + $0x1d0] sm:$0xff]  ;;  %v9068_v18 = vld [vmem:[#allocation5 + $0xf82] ss:$0 sm:$0xff] }
  0x6a   : > { %540 = vbcast.lane.b32.xlu0 %v8958_v59, 272  ;;  %7495 = vmatprep.subr.bf16.mxu0 %v8983_v12  ;;  %v396_v33 = vld [vmem:[#allocation5 + $0x1a0] sm:$0xff]  ;;  %v403_v43 = vld [vmem:[#allocation5 + $0x210] sm:$0xff] }
  0x6b   : > { %7473 = vmatpush1.bf16.msra.mxu1 %v7472_v28  ;;  %v398_v36 = vld [vmem:[#allocation5 + $0x1c0] sm:$0xff] }
  0x6c   : > { %7475 = vmatprep.subr.bf16.mxu1 %v7474_v29  ;;  %v9022_v38 = vpack.c.bf16 %v399_v37, %v398_v36  ;;  %v400_v39 = vld [vmem:[#allocation5 + $0x1e0] sm:$0xff] }
  0x6d   : > { %556 = vbcast.lane.b32.xlu1 %v8964_v61, 280  ;;  %7497 = vmatpush3.bf16.msra.mxu0 %v8983_v12  ;;  %v402_v42 = vld [vmem:[#allocation5 + $0x200] sm:$0xff] }
  0x6e   : > { %552 = vbcast.lane.b32.xlu0 %v8964_v61, 272  ;;  %7499 = vmatprep.subr.bf16.mxu0 %v8988_v16  ;;  %v298_v60 = vld [vmem:[#allocation5 + $0xf81] ss:$8 sm:$0x3] }
  0x6f   : > { %7477 = vmatpush1.bf16.msra.mxu1 %v7476_v34  ;;  %v397_v34 = vld [vmem:[#allocation5 + $0x1b0] sm:$0xff]  ;;  %v303_v15 = vrot.slane %v298_v60, %v8939_v54 }
  0x70   : > { %7479 = vmatprep.subr.bf16.mxu1 %v7478_v35  ;;  %v9018_v35 = vpack.c.bf16 %v397_v34, %v396_v33 }
  0x71   : > { %568 = vbcast.lane.b32.xlu1 %v8970_v63, 280  ;;  %7501 = vmatpush3.bf16.msra.mxu0 %v8988_v16 }
  0x72   : > { %564 = vbcast.lane.b32.xlu0 %v8970_v63, 272  ;;  %7503 = vmatprep.subr.bf16.mxu0 %v8994_v20 }
  0x73   : > { %7481 = vmatpush1.bf16.msra.mxu1 %v7480_v40  ;;  %v401_v40 = vld [vmem:[#allocation5 + $0x1f0] sm:$0xff] }
  0x74   : > { %7483 = vmatprep.subr.bf16.mxu1 %v7482_v41  ;;  %v9026_v41 = vpack.c.bf16 %v401_v40, %v400_v39 }
  0x75   : > { %580 = vbcast.lane.b32.xlu1 %v573_v6, 280  ;;  %7505 = vmatpush3.bf16.msra.mxu0 %v8994_v20 }
  0x76   : > { %576 = vbcast.lane.b32.xlu0 %v573_v6, 272  ;;  %7507 = vmatprep.subr.bf16.mxu0 %v9018_v35 }
  0x77   : > { %7485 = vmatpush1.bf16.msra.mxu1 %v7484_v44  ;;  %v9030_v44 = vpack.c.bf16 %v403_v43, %v402_v42 }
  0x78   : > { %7487 = vmatprep.subr.bf16.mxu1 %v7486_v47 }
  0x79   : > { %592 = vbcast.lane.b32.xlu1 %v585_v8, 280  ;;  %7509 = vmatpush3.bf16.msra.mxu0 %v9018_v35 }
  0x7a   : > { %588 = vbcast.lane.b32.xlu0 %v585_v8, 272  ;;  %7511 = vmatprep.subr.bf16.mxu0 %v9022_v38 }
  0x7b   : > { %7489 = vmatpush1.bf16.msra.mxu1 %v7488_v50 }
  0x7d   : > { %604 = vbcast.lane.b32.xlu1 %v597_v13, 280  ;;  %7513 = vmatpush3.bf16.msra.mxu0 %v9022_v38 }
  0x7e   : > { %600 = vbcast.lane.b32.xlu0 %v597_v13, 272  ;;  %7515 = vmatprep.subr.bf16.mxu0 %v9026_v41 }
  0x81   : > { %1205 = vbcast.lane.b32.xlu1 %v1198_v17, 280  ;;  %7517 = vmatpush3.bf16.msra.mxu0 %v9026_v41 }
  0x82   : > { %1201 = vbcast.lane.b32.xlu0 %v1198_v17, 272  ;;  %7519 = vmatprep.subr.bf16.mxu0 %v9030_v44 }
  0x85   : > { %1217 = vbcast.lane.b32.xlu1 %v1210_v1, 280  ;;  %7521 = vmatpush3.bf16.msra.mxu0 %v9030_v44 }
  0x86   : > { %1213 = vbcast.lane.b32.xlu0 %v1210_v1, 272  ;;  %7555 = vmatprep.subr.bf16.mxu0 %v8973_v5 }
  0x89   : > { %1229 = vbcast.lane.b32.xlu1 %v1222_v21, 280 }
  0x8a   : > { %1225 = vbcast.lane.b32.xlu0 %v1222_v21, 272 }
  0x8d   : > { %1241 = vbcast.lane.b32.xlu1 %v1234_v22, 280 }
  0x8e   : > { %1237 = vbcast.lane.b32.xlu0 %v1234_v22, 272 }
  0x91   : > { %1253 = vbcast.lane.b32.xlu1 %v1246_v23, 280 }
  0x92   : > { %1249 = vbcast.lane.b32.xlu0 %v1246_v23, 272 }
  0x95   : > { %1265 = vbcast.lane.b32.xlu1 %v1258_v24, 280 }
  0x96   : > { %1261 = vbcast.lane.b32.xlu0 %v1258_v24, 272 }
  0x99   : > { %1277 = vbcast.lane.b32.xlu1 %v1270_v25, 280 }
  0x9a   : > { %1273 = vbcast.lane.b32.xlu0 %v1270_v25, 272 }
  0x9d   : > { %1289 = vbcast.lane.b32.xlu1 %v1282_v26, 280 }
  0x9e   : > { %1285 = vbcast.lane.b32.xlu0 %v1282_v26, 272 }
  0xa1   : > { %821 = vbcast.lane.b32.xlu1 %v8950_v57, 296 }
  0xa2   : > { %817 = vbcast.lane.b32.xlu0 %v8950_v57, 288 }
  0xa5   : > { %829 = vbcast.lane.b32.xlu1 %v8946_v56, 296 }
  0xa6   : > { %825 = vbcast.lane.b32.xlu0 %v8946_v56, 288  ;;  %v8754_v56 = vmov 1966171168  }
  0xa7   : > { %v407_v57 = vunpack.c.l.s4 %v8754_v56 }
  0xa9   : > { %837 = vbcast.lane.b32.xlu1 %v8958_v59, 296 }
  0xaa   : > { %833 = vbcast.lane.b32.xlu0 %v8958_v59, 288 }
  0xad   : > { %845 = vbcast.lane.b32.xlu1 %v8964_v61, 296 }
  0xae   : > { %841 = vbcast.lane.b32.xlu0 %v8964_v61, 288  ;;  %v408_v61 = vunpack.c.0.s8 %v407_v57 }
  0xb0   : > { %v9057_v0 = vsub.s32 %v408_v61, %v8936_v53 }
  0xb1   : > { %853 = vbcast.lane.b32.xlu1 %v8970_v63, 296 }
  0xb2   : > { %849 = vbcast.lane.b32.xlu0 %v8970_v63, 288  ;;  %v307_v63 = vrot.slane %v298_v60, %v8942_v55 }
  0xb5   : > { %861 = vbcast.lane.b32.xlu1 %v573_v6, 296 }
  0xb6   : > { %857 = vbcast.lane.b32.xlu0 %v573_v6, 288 }
  0xb9   : > { %869 = vbcast.lane.b32.xlu1 %v585_v8, 296 }
  0xba   : > { %865 = vbcast.lane.b32.xlu0 %v585_v8, 288 }
  0xbd   : > { %877 = vbcast.lane.b32.xlu1 %v597_v13, 296 }
  0xbe   : > { %873 = vbcast.lane.b32.xlu0 %v597_v13, 288 }
  0xc1   : > { %1506 = vbcast.lane.b32.xlu1 %v1198_v17, 296 }
  0xc2   : > { %1502 = vbcast.lane.b32.xlu0 %v1198_v17, 288 }
  0xc5   : > { %1514 = vbcast.lane.b32.xlu1 %v1210_v1, 296 }
  0xc6   : > { %1510 = vbcast.lane.b32.xlu0 %v1210_v1, 288 }
  0xc9   : > { %1522 = vbcast.lane.b32.xlu1 %v1222_v21, 296 }
  0xca   : > { %1518 = vbcast.lane.b32.xlu0 %v1222_v21, 288 }
  0xcd   : > { %1530 = vbcast.lane.b32.xlu1 %v1234_v22, 296 }
  0xce   : > { %1526 = vbcast.lane.b32.xlu0 %v1234_v22, 288 }
  0xd1   : > { %1538 = vbcast.lane.b32.xlu1 %v1246_v23, 296 }
  0xd2   : > { %1534 = vbcast.lane.b32.xlu0 %v1246_v23, 288 }
  0xd3   : > { %v9037_v46 = vpop.permute.xlu1 %528 }
  0xd4   : > { %v9035_v45 = vpop.permute.xlu0 %516  ;;  %11641 = vst [vmem:[#allocation13_spill] sm:$0xff] %v9037_v46 }
  0xd5   : > { %1546 = vbcast.lane.b32.xlu1 %v1258_v24, 296  ;;  %11640 = vst [vmem:[#allocation12_spill] sm:$0xff] %v9035_v45 }
  0xd6   : > { %1542 = vbcast.lane.b32.xlu0 %v1258_v24, 288 }
  0xd7   : > { %v9041_v48 = vpop.permute.xlu1 %532 }
  0xd8   : > { %v9039_v47 = vpop.permute.xlu0 %520  ;;  %11643 = vst [vmem:[#allocation15_spill] sm:$0xff] %v9041_v48  ;;  %v609_v36 = vmul.f32 %v9041_v48, %v9068_v18 }
  0xd9   : > { %1554 = vbcast.lane.b32.xlu1 %v1270_v25, 296  ;;  %11642 = vst [vmem:[#allocation14_spill] sm:$0xff] %v9039_v47  ;;  %v607_v21 = vmul.f32 %v9039_v47, %v9068_v18 }
  0xda   : > { %1550 = vbcast.lane.b32.xlu0 %v1270_v25, 288 }
  0xdb   : > { %v9045_v50 = vpop.permute.xlu1 %544 }
  0xdc   : > { %v9043_v49 = vpop.permute.xlu0 %540  ;;  %11645 = vst [vmem:[#allocation17_spill] sm:$0xff] %v9045_v50  ;;  %v611_v37 = vmul.f32 %v9045_v50, %v9068_v18 }
  0xdd   : > { %1562 = vbcast.lane.b32.xlu1 %v1282_v26, 296  ;;  %11644 = vst [vmem:[#allocation16_spill] sm:$0xff] %v9043_v49  ;;  %v610_v42 = vmul.f32 %v9043_v49, %v9068_v18 }
  0xde   : > { %1558 = vbcast.lane.b32.xlu0 %v1282_v26, 288 }
  0xdf   : > { %v9049_v58 = vpop.permute.xlu1 %556 }
  0xe0   : > { %v9047_v52 = vpop.permute.xlu0 %552  ;;  %11647 = vst [vmem:[#allocation19_spill] sm:$0xff] %v9049_v58  ;;  %v613_v60 = vmul.f32 %v9049_v58, %v9068_v18 }
  0xe1   : > { %11646 = vst [vmem:[#allocation18_spill] sm:$0xff] %v9047_v52  ;;  %v612_v61 = vmul.f32 %v9047_v52, %v9068_v18 }
  0xe3   : > { %v9053_v62 = vpop.permute.xlu1 %568 }
  0xe4   : > { %v9051_v59 = vpop.permute.xlu0 %564  ;;  %11649 = vst [vmem:[#allocation21_spill] sm:$0xff] %v9053_v62 }
  0xe5   : > { %11648 = vst [vmem:[#allocation20_spill] sm:$0xff] %v9051_v59 }
  0xe7   : > { %v9061_v8 = vpop.permute.xlu1 %580 }
  0xe8   : > { %v9059_v3 = vpop.permute.xlu0 %576  ;;  %11651 = vst [vmem:[#allocation23_spill] sm:$0xff] %v9061_v8 }
  0xe9   : > { %11650 = vst [vmem:[#allocation22_spill] sm:$0xff] %v9059_v3 }
  0xeb   : > { %v9077_v24 = vpop.permute.xlu1 %592 }
  0xec   : > { %v9064_v14 = vpop.permute.xlu0 %588  ;;  %11653 = vst [vmem:[#allocation25_spill] sm:$0xff] %v9077_v24 }
  0xed   : > { %11652 = vst [vmem:[#allocation24_spill] sm:$0xff] %v9064_v14 }
 0x12f   : > { %v6743_v27 = vpop.f32.mrb[0].mxu0 }
 0x130   : > { %v253_v28 = vpop.f32.mrb[1].mxu0  ;;  %v259_v30 = vadd.f32 %v6743_v27, %v179_v2 }
 0x131   : > { %v254_v29 = vadd.f32 %v253_v28, %v179_v2  ;;  %v606_v28 = vmul.f32 %v9035_v45, %v9068_v18 }
 0x132   : > { %v263_v32 = vmax.f32 %v259_v30, 0.0 }
 0x133   : > { %v262_v31 = vmax.f32 %v254_v29, 0.0  ;;  %v9085_v29 = vpop.permute.xlu0 %600 }
 0x134   : > { %11654 = vst [vmem:[#allocation26_spill] sm:$0xff] %v9085_v29 }
 0x135   : > { %375 = vmatmul.mubr.f32.vlgmr.msra.gmra.mrb[0].mxu1 %v262_v31 }
 0x136   : > { %380 = vmatprep.mubr.f32.mxu1 %v11488_v51 }
 0x139   : > { %381 = vmatmul.mubr.f32.gmra.mrb[2].mxu1 %v263_v32  ;;  %v608_v32 = vmul.f32 %v9037_v46, %v9068_v18 }
 0x13a   : > { %1079 = vmatprep.mubr.f32.mxu1 %v11488_v51 }
 0x208   : > { %v376_v4 = vpop.f32.mrb[0].mxu1 }
 0x209   : > { %v378_v6 = vpop.f32.mrb[1].mxu1  ;;  %v9079_v25 = vadd.f32 %v376_v4, %v303_v15  ;;  %v615_v4 = vmul.f32 %v9053_v62, %v9068_v18 }
 0x20a   : > { %v379_v7 = vadd.f32 %v378_v6, %v307_v63  ;;  %v9107_v6 = vpop.permute.xlu1 %604 }
 0x20b   : > { %11655 = vst [vmem:[#allocation27_spill] sm:$0xff] %v9107_v6 }
 0x20c   : > { %v405_v9 = vcombine.high %v379_v7, %v379_v7  ;;  %v412_v10 = vrot.slane %v379_v7, %v9057_v0  ;;  %v382_v11 = vpop.f32.mrb[2].mxu1 }
 0x20d   : > { %v384_v13 = vpop.f32.mrb[3].mxu1  ;;  %v9075_v23 = vadd.f32 %v382_v11, %v303_v15 }
 0x20e   : > { %v420_v17 = vcombine.high %v412_v10, %v412_v10  ;;  %v428_v53 = vrot.slane %v412_v10, %v9057_v0  ;;  %v419_v19 = vrot.slane %v405_v9, %v9057_v0  ;;  %v614_v9 = vmul.f32 %v9051_v59, %v9068_v18 }
 0x20f   : > { %v9113_v10 = vadd.f32 %v384_v13, %v307_v63 }
 0x210   : > { %v442_v1 = vrot.slane %v420_v17, %v9057_v0  ;;  %v457_v22 = vrot.slane %v428_v53, %v8939_v54  ;;  %v450_v26 = vcombine.high %v428_v53, %v428_v53  ;;  %v9088_v30 = vrot.slane %v419_v19, %v9057_v0  ;;  %v9115_v17 = vpop.permute.xlu0 %1201 }
 0x211   : > { %v421_v43 = vcombine.high %v419_v19, %v419_v19  ;;  %11656 = vst [vmem:[#allocation28_spill] sm:$0xff] %v9115_v17 }
 0x212   : > { %v461_v2 = vrot.slane %v442_v1, %v8939_v54  ;;  %v495_v27 = vadd.f32 %v457_v22, %v9075_v23  ;;  %v494_v31 = vadd.f32 %v457_v22, %v9079_v25  ;;  %v465_v39 = vrot.slane %v450_v26, %v8939_v54 }
 0x213   : > { %v452_v56 = vcombine.high %v442_v1, %v442_v1  ;;  %v473_v7 = vrot.slane %v9088_v30, %v8939_v54  ;;  %v449_v22 = vrot.slane %v421_v43, %v9057_v0 }
 0x214   : > { %v623_v33 = vadd.f32 %v607_v21, %v495_v27  ;;  %v496_v34 = vadd.f32 %v461_v2, %v9079_v25  ;;  %v622_v40 = vadd.f32 %v606_v28, %v494_v31  ;;  %v497_v19 = vadd.f32 %v461_v2, %v9075_v23 }
 0x215   : > { %v498_v1 = vadd.f32 %v465_v39, %v9079_v25  ;;  %v499_v21 = vadd.f32 %v465_v39, %v9075_v23  ;;  %v469_v28 = vrot.slane %v452_v56, %v8939_v54  ;;  %v503_v56 = vadd.f32 %v473_v7, %v9075_v23 }
 0x216   : > { %v639_v57 = vmul.f32 0.2, %v623_v33  ;;  %v638_v11 = vmul.f32 0.2, %v622_v40  ;;  %v624_v15 = vadd.f32 %v608_v32, %v496_v34  ;;  %v625_v31 = vadd.f32 %v609_v36, %v497_v19 }
 0x217   : > { %v626_v63 = vadd.f32 %v610_v42, %v498_v1  ;;  %v627_v13 = vadd.f32 %v611_v37, %v499_v21  ;;  %v502_v32 = vadd.f32 %v473_v7, %v9079_v25  ;;  %v500_v34 = vadd.f32 %v469_v28, %v9079_v25 }
 0x218   : > { %v655_v53 = vmax.f32 %v623_v33, %v639_v57  ;;  %v654_v26 = vmax.f32 %v622_v40, %v638_v11  ;;  %v640_v27 = vmul.f32 0.2, %v624_v15  ;;  %v616_v33 = vmul.f32 %v9059_v3, %v9068_v18  ;;  %v9127_v57 = vpop.permute.xlu1 %1205 }
 0x219   : > { %v501_v39 = vadd.f32 %v469_v28, %v9075_v23  ;;  %11657 = vst [vmem:[#allocation29_spill] sm:$0xff] %v9127_v57  ;;  %v451_v40 = vcombine.high %v9088_v30, %v9088_v30  ;;  %v1097_v36 = vrot.slane %v9113_v10, %v9057_v0  ;;  %v641_v37 = vmul.f32 0.2, %v625_v31 }
 0x21a   : > { %6776 = vmatprep.mubr.f32.mxu0 %v654_v26  ;;  %v656_v2 = vmax.f32 %v624_v15, %v640_v27  ;;  %v642_v42 = vmul.f32 0.2, %v626_v63  ;;  %v628_v43 = vadd.f32 %v612_v61, %v500_v34  ;;  %v477_v11 = vrot.slane %v449_v22, %v8939_v54  ;;  %v9136_v15 = vpop.permute.xlu0 %1213 }
 0x21b   : > { %6777 = vmatmul.mubr.f32.vlgmr.msra.gmra.mrb[2].mxu0 %v655_v53  ;;  %11658 = vst [vmem:[#allocation30_spill] sm:$0xff] %v9136_v15  ;;  %v657_v19 = vmax.f32 %v625_v31, %v641_v37  ;;  %v643_v30 = vmul.f32 0.2, %v627_v13  ;;  %v629_v1 = vadd.f32 %v613_v60, %v501_v39  ;;  %v630_v21 = vadd.f32 %v614_v9, %v502_v32 }
 0x21c   : > { %6779 = vmatprep.mubr.f32.mxu0 %v656_v2  ;;  %7557 = vmatpush3.bf16.msra.mxu0 %v8973_v5  ;;  %v453_v26 = vcombine.high %v449_v22, %v449_v22  ;;  %v658_v53 = vmax.f32 %v626_v63, %v642_v42  ;;  %v644_v27 = vmul.f32 0.2, %v628_v43  ;;  %v504_v28 = vadd.f32 %v477_v11, %v9079_v25  ;;  %v9149_v9 = vpop.permute.xlu1 %1217 }
 0x21d   : > { %7559 = vmatprep.subr.bf16.mxu0 %v8983_v12  ;;  %v617_v5 = vmul.f32 %v9061_v8, %v9068_v18  ;;  %v618_v61 = vmul.f32 %v9064_v14, %v9068_v18  ;;  %v481_v7 = vrot.slane %v451_v40, %v8939_v54  ;;  %v1105_v31 = vcombine.high %v1097_v36, %v1097_v36 }
 0x21e   : > { %v9146_v2 = vrot.slane %v1097_v36, %v9057_v0  ;;  %v631_v60 = vadd.f32 %v615_v4, %v503_v56  ;;  %11659 = vst [vmem:[#allocation31_spill] sm:$0xff] %v9149_v9  ;;  %v659_v22 = vmax.f32 %v627_v13, %v643_v30  ;;  %v645_v63 = vmul.f32 0.2, %v629_v1  ;;  %v9155_v42 = vpop.permute.xlu0 %1225 }
 0x21f   : > { %6780 = vmatmul.mubr.f32.gmra.mrb[4].mxu0 %v657_v19  ;;  %v646_v32 = vmul.f32 0.2, %v630_v21  ;;  %v505_v34 = vadd.f32 %v477_v11, %v9075_v23  ;;  %v660_v39 = vmax.f32 %v628_v43, %v644_v27  ;;  %v632_v37 = vadd.f32 %v616_v33, %v504_v28  ;;  %11660 = vst [vmem:[#allocation32_spill] sm:$0xff] %v9155_v42 }
 0x220   : > { %6782 = vmatprep.mubr.f32.mxu0 %v658_v53  ;;  %7561 = vmatpush3.bf16.msra.mxu0 %v8983_v12  ;;  %v506_v40 = vadd.f32 %v481_v7, %v9079_v25  ;;  %v485_v36 = vrot.slane %v453_v26, %v8939_v54  ;;  %v619_v12 = vmul.f32 %v9077_v24, %v9068_v18  ;;  %v647_v33 = vmul.f32 0.2, %v631_v60 }
 0x221   : > { %7563 = vmatprep.subr.bf16.mxu0 %v8988_v16  ;;  %v620_v4 = vmul.f32 %v9085_v29, %v9068_v18  ;;  %v9162_v13 = vrot.slane %v1105_v31, %v9057_v0  ;;  %v1142_v43 = vrot.slane %v9146_v2, %v8939_v54  ;;  %v661_v56 = vmax.f32 %v629_v1, %v645_v63  ;;  %v9174_v31 = vpop.permute.xlu1 %1229 }
 0x222   : > { %v633_v11 = vadd.f32 %v617_v5, %v505_v34  ;;  %v507_v19 = vadd.f32 %v481_v7, %v9075_v23  ;;  %v662_v30 = vmax.f32 %v630_v21, %v646_v32  ;;  %v648_v26 = vmul.f32 0.2, %v632_v37  ;;  %11661 = vst [vmem:[#allocation33_spill] sm:$0xff] %v9174_v31 }
 0x223   : > { %6783 = vmatmul.mubr.f32.gmra.mrb[6].mxu0 %v659_v22  ;;  %v634_v53 = vadd.f32 %v618_v61, %v506_v40  ;;  %v508_v27 = vadd.f32 %v485_v36, %v9079_v25  ;;  %v621_v28 = vmul.f32 %v9107_v6, %v9068_v18  ;;  %v1090_v1 = vcombine.high %v9113_v10, %v9113_v10  ;;  %v9181_v61 = vpop.permute.xlu0 %1237 }
 0x224   : > { %6785 = vmatprep.mubr.f32.mxu0 %v660_v39  ;;  %7565 = vmatpush3.bf16.msra.mxu0 %v8988_v16  ;;  %v1291_v16 = vmul.f32 %v9115_v17, %v9068_v18  ;;  %v1135_v5 = vcombine.high %v9146_v2, %v9146_v2  ;;  %v663_v21 = vmax.f32 %v631_v60, %v647_v33  ;;  %v649_v7 = vmul.f32 0.2, %v633_v11 }
 0x225   : > { %7567 = vmatprep.subr.bf16.mxu0 %v8994_v20  ;;  %11662 = vst [vmem:[#allocation34_spill] sm:$0xff] %v9181_v61  ;;  %v635_v22 = vadd.f32 %v619_v12, %v507_v19  ;;  %v509_v63 = vadd.f32 %v485_v36, %v9075_v23  ;;  %v1179_v32 = vadd.f32 %v1142_v43, %v9079_v25  ;;  %v650_v39 = vmul.f32 0.2, %v634_v53 }
 0x226   : > { %v1146_v10 = vrot.slane %v9162_v13, %v8939_v54  ;;  %v664_v34 = vmax.f32 %v632_v37, %v648_v26  ;;  %v636_v2 = vadd.f32 %v620_v4, %v508_v27  ;;  %v1293_v60 = vmul.f32 %v9136_v15, %v9068_v18  ;;  %v9197_v37 = vpop.permute.xlu1 %1241 }
 0x227   : > { %6786 = vmatmul.mubr.f32.gmra.mrb[8].mxu0 %v661_v56  ;;  %v1104_v40 = vrot.slane %v1090_v1, %v9057_v0  ;;  %v1137_v36 = vcombine.high %v9162_v13, %v9162_v13  ;;  %v1180_v12 = vadd.f32 %v1142_v43, %v9075_v23  ;;  %11663 = vst [vmem:[#allocation35_spill] sm:$0xff] %v9197_v37  ;;  %v651_v33 = vmul.f32 0.2, %v635_v22  ;;  %v9206_v43 = vpop.permute.xlu0 %1249 }
 0x228   : > { %6788 = vmatprep.mubr.f32.mxu0 %v662_v30  ;;  %7569 = vmatpush3.bf16.msra.mxu0 %v8994_v20  ;;  %v1292_v20 = vmul.f32 %v9127_v57, %v9068_v18  ;;  %v665_v4 = vmax.f32 %v633_v11, %v649_v7  ;;  %v637_v56 = vadd.f32 %v621_v28, %v509_v63  ;;  %v652_v27 = vmul.f32 0.2, %v636_v2 }
 0x229   : > { %7571 = vmatprep.subr.bf16.mxu0 %v9018_v35  ;;  %v1307_v19 = vadd.f32 %v1291_v16, %v1179_v32  ;;  %v1150_v30 = vrot.slane %v1135_v5, %v8939_v54  ;;  %v666_v26 = vmax.f32 %v634_v53, %v650_v39  ;;  %v1181_v1 = vadd.f32 %v1146_v10, %v9079_v25 }
 0x22a   : > { %v1294_v13 = vmul.f32 %v9149_v9, %v9068_v18  ;;  %11664 = vst [vmem:[#allocation36_spill] sm:$0xff] %v9206_v43  ;;  %v1106_v11 = vcombine.high %v1104_v40, %v1104_v40  ;;  %v1308_v28 = vadd.f32 %v1292_v20, %v1180_v12  ;;  %v667_v53 = vmax.f32 %v635_v22, %v651_v33 }
 0x22b   : > { %6789 = vmatmul.mubr.f32.gmra.mrb[10].mxu0 %v663_v21  ;;  %v1120_v21 = vrot.slane %v1104_v40, %v9057_v0  ;;  %v653_v16 = vmul.f32 0.2, %v637_v56  ;;  %v1323_v5 = vmul.f32 0.2, %v1307_v19  ;;  %v1182_v7 = vadd.f32 %v1146_v10, %v9075_v23 }
 0x22c   : > { %6791 = vmatprep.mubr.f32.mxu0 %v664_v34  ;;  %7573 = vmatpush3.bf16.msra.mxu0 %v9018_v35  ;;  %v1295_v35 = vmul.f32 %v9155_v42, %v9068_v18  ;;  %v668_v63 = vmax.f32 %v636_v2, %v652_v27  ;;  %v1309_v32 = vadd.f32 %v1293_v60, %v1181_v1  ;;  %v1324_v40 = vmul.f32 0.2, %v1308_v28  ;;  %v9223_v2 = vpop.permute.xlu0 %1261 }
 0x22d   : > { %7575 = vmatprep.subr.bf16.mxu0 %v9022_v38  ;;  %v1183_v34 = vadd.f32 %v1150_v30, %v9079_v25  ;;  %v1154_v39 = vrot.slane %v1137_v36, %v8939_v54  ;;  %v1296_v20 = vmul.f32 %v9174_v31, %v9068_v18  ;;  %v1134_v22 = vrot.slane %v1106_v11, %v9057_v0 }
 0x22e   : > { %v1158_v10 = vrot.slane %v1120_v21, %v8939_v54  ;;  %11666 = vst [vmem:[#allocation38_spill] sm:$0xff] %v9223_v2  ;;  %v669_v60 = vmax.f32 %v637_v56, %v653_v16  ;;  %v1310_v36 = vadd.f32 %v1294_v13, %v1182_v7  ;;  %v1184_v12 = vadd.f32 %v1150_v30, %v9075_v23 }
 0x22f   : > { %6792 = vmatmul.mubr.f32.gmra.mrb[12].mxu0 %v665_v4  ;;  %v9214_v4 = vpop.permute.xlu1 %1253  ;;  %v1339_v33 = vmax.f32 %v1307_v19, %v1323_v5  ;;  %v1311_v27 = vadd.f32 %v1295_v35, %v1183_v34  ;;  %v1185_v1 = vadd.f32 %v1154_v39, %v9079_v25  ;;  %v1298_v11 = vmul.f32 %v9197_v37, %v9068_v18 }
 0x230   : > { %6794 = vmatprep.mubr.f32.mxu0 %v666_v26  ;;  %7577 = vmatpush3.bf16.msra.mxu0 %v9022_v38  ;;  %11665 = vst [vmem:[#allocation37_spill] sm:$0xff] %v9214_v4  ;;  %v1297_v38 = vmul.f32 %v9181_v61, %v9068_v18  ;;  %v1325_v26 = vmul.f32 0.2, %v1309_v32  ;;  %v1340_v56 = vmax.f32 %v1308_v28, %v1324_v40  ;;  %v1326_v30 = vmul.f32 0.2, %v1310_v36  ;;  %v9238_v34 = vpop.permute.xlu0 %1273 }
 0x231   : > { %7579 = vmatprep.subr.bf16.mxu0 %v9026_v41  ;;  %v1312_v19 = vadd.f32 %v1296_v20, %v1184_v12  ;;  %v1186_v35 = vadd.f32 %v1154_v39, %v9075_v23  ;;  %v1187_v16 = vadd.f32 %v1158_v10, %v9079_v25  ;;  %v1327_v7 = vmul.f32 0.2, %v1311_v27  ;;  %11668 = vst [vmem:[#allocation40_spill] sm:$0xff] %v9238_v34 }
 0x232   : > { %v1341_v5 = vmax.f32 %v1309_v32, %v1325_v26  ;;  %v1301_v28 = vmul.f32 %v9223_v2, %v9068_v18  ;;  %v1188_v39 = vadd.f32 %v1158_v10, %v9075_v23  ;;  %v1342_v20 = vmax.f32 %v1310_v36, %v1326_v30 }
 0x233   : > { %6795 = vmatmul.mubr.f32.gmra.mrb[14].mxu0 %v667_v53  ;;  %v1299_v53 = vmul.f32 %v9206_v43, %v9068_v18  ;;  %v9233_v13 = vpop.permute.xlu1 %1265  ;;  %v1328_v40 = vmul.f32 0.2, %v1312_v19  ;;  %v1314_v32 = vadd.f32 %v1298_v11, %v1186_v35 }
 0x234   : > { %6797 = vmatprep.mubr.f32.mxu0 %v668_v63  ;;  %7581 = vmatpush3.bf16.msra.mxu0 %v9026_v41  ;;  %v1136_v41 = vcombine.high %v1120_v21, %v1120_v21  ;;  %11667 = vst [vmem:[#allocation39_spill] sm:$0xff] %v9233_v13  ;;  %v1313_v63 = vadd.f32 %v1297_v38, %v1185_v1  ;;  %v9253_v36 = vpop.permute.xlu0 %1285 }
 0x235   : > { %7583 = vmatprep.subr.bf16.mxu0 %v9030_v44  ;;  %v1162_v21 = vrot.slane %v1134_v22, %v8939_v54  ;;  %v1315_v12 = vadd.f32 %v1299_v53, %v1187_v16  ;;  %v1343_v38 = vmax.f32 %v1311_v27, %v1327_v7  ;;  %11670 = vst [vmem:[#allocation42_spill] sm:$0xff] %v9253_v36  ;;  %v1330_v27 = vmul.f32 0.2, %v1314_v32 }
 0x236   : > { %v1166_v1 = vrot.slane %v1136_v41, %v8939_v54  ;;  %v1344_v11 = vmax.f32 %v1312_v19, %v1328_v40 }
 0x237   : > { %6798 = vmatmul.mubr.f32.gmra.mrb[16].mxu0 %v669_v60  ;;  %v1138_v60 = vcombine.high %v1134_v22, %v1134_v22  ;;  %v1189_v26 = vadd.f32 %v1162_v21, %v9079_v25  ;;  %v9247_v22 = vpop.permute.xlu1 %1277  ;;  %v1331_v53 = vmul.f32 0.2, %v1315_v12  ;;  %v1190_v30 = vadd.f32 %v1162_v21, %v9075_v23 }
 0x238   : > { %7585 = vmatpush3.bf16.msra.mxu0 %v9030_v44  ;;  %6832 = vmatprep.mubr.f32.mxu0 %v1339_v33  ;;  %v1300_v44 = vmul.f32 %v9214_v4, %v9068_v18  ;;  %v1329_v33 = vmul.f32 0.2, %v1313_v63  ;;  %11669 = vst [vmem:[#allocation41_spill] sm:$0xff] %v9247_v22  ;;  %v1191_v16 = vadd.f32 %v1166_v1, %v9079_v25 }
 0x239   : > { %v1317_v41 = vadd.f32 %v1301_v28, %v1189_v26  ;;  %v1170_v7 = vrot.slane %v1138_v60, %v8939_v54  ;;  %v1346_v19 = vmax.f32 %v1314_v32, %v1330_v27  ;;  %v1347_v21 = vmax.f32 %v1315_v12, %v1331_v53 }
 0x23a   : > { %v1316_v10 = vadd.f32 %v1300_v44, %v1188_v39  ;;  %v1345_v35 = vmax.f32 %v1313_v63, %v1329_v33  ;;  %v1305_v44 = vmul.f32 %v9253_v36, %v9068_v18  ;;  %v1192_v63 = vadd.f32 %v1166_v1, %v9075_v23 }
 0x23b   : > { %6833 = vmatmul.mubr.f32.vlgmr.msra.gmra.mrb[18].mxu0 %v1340_v56  ;;  %v1302_v56 = vmul.f32 %v9233_v13, %v9068_v18  ;;  %v9262_v39 = vpop.permute.xlu1 %1289  ;;  %v1333_v28 = vmul.f32 0.2, %v1317_v41  ;;  %v1193_v60 = vadd.f32 %v1170_v7, %v9079_v25  ;;  %v1194_v36 = vadd.f32 %v1170_v7, %v9075_v23 }
 0x23c   : > { %6835 = vmatprep.mubr.f32.mxu0 %v1341_v5  ;;  %v1303_v5 = vmul.f32 %v9238_v34, %v9068_v18  ;;  %11671 = vst [vmem:[#allocation43_spill] sm:$0xff] %v9262_v39  ;;  %v1332_v40 = vmul.f32 0.2, %v1316_v10  ;;  %v1306_v26 = vmul.f32 %v9262_v39, %v9068_v18  ;;  %v11672_v7 = vmov 0.0  }
 0x23d   : > { %v1349_v32 = vmax.f32 %v1317_v41, %v1333_v28  ;;  %v1787_v28 = vld [vmem:[#allocation5 + $0x230] sm:$0xff] }
 0x23e   : > { %v1319_v33 = vadd.f32 %v1303_v5, %v1191_v16  ;;  %v1322_v5 = vadd.f32 %v1306_v26, %v1194_v36 }
 0x23f   : > { %6836 = vmatmul.mubr.f32.gmra.mrb[20].mxu0 %v1342_v20  ;;  %v1304_v20 = vmul.f32 %v9247_v22, %v9068_v18  ;;  %v9270_v41 = vpop.permute.xlu1 %821 }
 0x240   : > { %6838 = vmatprep.mubr.f32.mxu0 %v1343_v38  ;;  %v1318_v38 = vadd.f32 %v1302_v56, %v1190_v30  ;;  %v1335_v27 = vmul.f32 0.2, %v1319_v33  ;;  %v1321_v56 = vadd.f32 %v1305_v44, %v1193_v60  ;;  %v1338_v18 = vmul.f32 0.2, %v1322_v5  ;;  %11673 = vst [vmem:[#allocation44_spill] sm:$0xff] %v9270_v41  ;;  %v1792_v60 = vld [vmem:[#allocation5 + $0x258] sm:$0xff] }
 0x242   : > { %v1334_v51 = vmul.f32 0.2, %v1318_v38  ;;  %v1351_v53 = vmax.f32 %v1319_v33, %v1335_v27  ;;  %v1337_v30 = vmul.f32 0.2, %v1321_v56  ;;  %v1790_v33 = vld [vmem:[#allocation5 + $0x248] sm:$0xff]  ;;  %v1791_v27 = vld [vmem:[#allocation5 + $0x250] sm:$0xff] }
 0x243   : > { %6839 = vmatmul.mubr.f32.gmra.mrb[22].mxu0 %v1344_v11  ;;  %v1348_v11 = vmax.f32 %v1316_v10, %v1332_v40  ;;  %v1354_v10 = vmax.f32 %v1322_v5, %v1338_v18  ;;  %v1786_v40 = vld [vmem:[#allocation5 + $0x228] sm:$0xff] }
 0x244   : > { %6841 = vmatprep.mubr.f32.mxu0 %v1345_v35  ;;  %v1320_v35 = vadd.f32 %v1304_v20, %v1192_v63  ;;  %v1350_v12 = vmax.f32 %v1318_v38, %v1334_v51  ;;  %v9272_v20 = vpop.permute.xlu0 %817  ;;  %v9274_v51 = vpop.permute.xlu1 %829  ;;  %v1788_v38 = vld [vmem:[#allocation5 + $0x238] sm:$0xff]  ;;  %v1785_v63 = vld [vmem:[#allocation5 + $0x220] sm:$0xff] }
 0x245   : > { %11674 = vst [vmem:[#allocation45_spill] sm:$0xff] %v9272_v20  ;;  %11675 = vst [vmem:[#allocation46_spill] sm:$0xff] %v9274_v51 }
 0x246   : > { %v1336_v1 = vmul.f32 0.2, %v1320_v35 }
 0x247   : > { %6842 = vmatmul.mubr.f32.gmra.mrb[24].mxu0 %v1346_v19  ;;  %v1353_v19 = vmax.f32 %v1321_v56, %v1337_v30 }
 0x248   : > { %6844 = vmatprep.mubr.f32.mxu0 %v1347_v21  ;;  %v1352_v16 = vmax.f32 %v1320_v35, %v1336_v1  ;;  %v9276_v36 = vpop.permute.xlu0 %825  ;;  %v9278_v44 = vpop.permute.xlu1 %837  ;;  %v7618_v21 = vpack.c.bf16 %v1788_v38, %v1786_v40  ;;  %v7622_v35 = vpack.c.bf16 %v1792_v60, %v1790_v33 }
 0x249   : > { %11676 = vst [vmem:[#allocation47_spill] sm:$0xff] %v9276_v36  ;;  %11677 = vst [vmem:[#allocation48_spill] sm:$0xff] %v9278_v44 }
 0x24a   : > { %7619 = vmatprep.subr.bf16.mxu0 %v7618_v21 }
 0x24b   : > { %6845 = vmatmul.mubr.f32.gmra.mrb[26].mxu0 %v1348_v11  ;;  %v7620_v11 = vpack.c.bf16 %v1787_v28, %v1785_v63 }
 0x24c   : > { %6847 = vmatprep.mubr.f32.mxu0 %v1349_v32  ;;  %v9280_v26 = vpop.permute.xlu0 %833  ;;  %v1789_v32 = vld [vmem:[#allocation5 + $0x240] sm:$0xff] }
 0x24d   : > { %11678 = vst [vmem:[#allocation49_spill] sm:$0xff] %v9280_v26  ;;  %7621 = vmatpush1.bf16.msra.mxu0 %v7620_v11  ;;  %v7624_v56 = vpack.c.bf16 %v1791_v27, %v1789_v32 }
 0x24e   : > { %7623 = vmatprep.subr.bf16.mxu0 %v7622_v35 }
 0x24f   : > { %6848 = vmatmul.mubr.f32.gmra.mrb[28].mxu0 %v1350_v12  ;;  %v9282_v12 = vpop.permute.xlu1 %845 }
 0x250   : > { %6850 = vmatprep.mubr.f32.mxu0 %v1351_v53  ;;  %11679 = vst [vmem:[#allocation50_spill] sm:$0xff] %v9282_v12  ;;  %v9284_v1 = vpop.permute.xlu0 %841 }
 0x251   : > { %11680 = vst [vmem:[#allocation51_spill] sm:$0xff] %v9284_v1  ;;  %7625 = vmatpush1.bf16.msra.mxu0 %v7624_v56 }
 0x253   : > { %6851 = vmatmul.mubr.f32.gmra.mrb[30].mxu0 %v1352_v16  ;;  %v9286_v5 = vpop.permute.xlu1 %853 }
 0x254   : > { %6853 = vmatprep.mubr.f32.mxu0 %v1353_v19  ;;  %11681 = vst [vmem:[#allocation52_spill] sm:$0xff] %v9286_v5  ;;  %v9288_v53 = vpop.permute.xlu0 %849 }
 0x255   : > { %11682 = vst [vmem:[#allocation53_spill] sm:$0xff] %v9288_v53 }
 0x257   : > { %6854 = vmatmul.mubr.f32.gmra.mrb[32].mxu0 %v1354_v10  ;;  %v9292_v10 = vpop.permute.xlu1 %861 }
 0x258   : > { %1894 = vmatprep.mubr.f32.mxu0 %v11672_v7  ;;  %11683 = vst [vmem:[#allocation54_spill] sm:$0xff] %v9292_v10  ;;  %v9297_v28 = vpop.permute.xlu0 %857 }
 0x259   : > { %11684 = vst [vmem:[#allocation55_spill] sm:$0xff] %v9297_v28 }
 0x2ee   : > { %v6778_v30 = vpop.f32.mrb[2].mxu0 }
 0x2ef   : > { %v880_v16 = vadd.f32 %v6778_v30, %v9270_v41  ;;  %v736_v18 = vpop.f32.mrb[3].mxu0  ;;  %v9304_v30 = vpop.permute.xlu1 %869 }
 0x2f0   : > { %v879_v19 = vadd.f32 %v9272_v20, %v736_v18  ;;  %11685 = vst [vmem:[#allocation56_spill] sm:$0xff] %v9304_v30 }
 0x2f2   : > { %v895_v40 = vmax.f32 %v879_v19, %v880_v16  ;;  %v6781_v38 = vpop.f32.mrb[4].mxu0 }
 0x2f3   : > { %v9295_v63 = vadd.f32 %v6781_v38, %v9274_v51  ;;  %v746_v21 = vpop.f32.mrb[5].mxu0  ;;  %v9309_v51 = vpop.permute.xlu0 %865 }
 0x2f4   : > { %v896_v33 = vrot.slane %v895_v40, 4  ;;  %v881_v60 = vadd.f32 %v9276_v36, %v746_v21  ;;  %11686 = vst [vmem:[#allocation57_spill] sm:$0xff] %v9309_v51 }
 0x2f6   : > { %v897_v11 = vmax.f32 %v895_v40, %v896_v33  ;;  %v902_v35 = vmax.f32 %v881_v60, %v9295_v63  ;;  %v6784_v32 = vpop.f32.mrb[6].mxu0 }
 0x2f7   : > { %v9302_v27 = vadd.f32 %v6784_v32, %v9278_v44  ;;  %v756_v56 = vpop.f32.mrb[7].mxu0 }
 0x2f8   : > { %v898_v18 = vrot.slane %v897_v11, 2  ;;  %v903_v20 = vrot.slane %v902_v35, 4  ;;  %v9307_v38 = vadd.f32 %v9280_v26, %v756_v56  ;;  %v9319_v56 = vpop.permute.xlu1 %877 }
 0x2f9   : > { %11687 = vst [vmem:[#allocation58_spill] sm:$0xff] %v9319_v56 }
 0x2fa   : > { %v899_v41 = vmax.f32 %v897_v11, %v898_v18  ;;  %v904_v39 = vmax.f32 %v902_v35, %v903_v20  ;;  %v909_v40 = vmax.f32 %v9307_v38, %v9302_v27  ;;  %v6787_v21 = vpop.f32.mrb[8].mxu0 }
 0x2fb   : > { %v9314_v33 = vadd.f32 %v6787_v21, %v9282_v12  ;;  %v766_v32 = vpop.f32.mrb[9].mxu0  ;;  %v9326_v12 = vpop.permute.xlu0 %873 }
 0x2fc   : > { %v900_v44 = vrot.slane %v899_v41, 1  ;;  %v905_v36 = vrot.slane %v904_v39, 2  ;;  %v910_v34 = vrot.slane %v909_v40, 4  ;;  %v9317_v22 = vadd.f32 %v9284_v1, %v766_v32  ;;  %11688 = vst [vmem:[#allocation59_spill] sm:$0xff] %v9326_v12 }
 0x2fe   : > { %v901_v26 = vmax.f32 %v899_v41, %v900_v44  ;;  %v906_v2 = vmax.f32 %v904_v39, %v905_v36  ;;  %v911_v11 = vmax.f32 %v909_v40, %v910_v34  ;;  %v916_v20 = vmax.f32 %v9317_v22, %v9314_v33  ;;  %v6790_v35 = vpop.f32.mrb[10].mxu0 }
 0x2ff   : > { %v9324_v18 = vadd.f32 %v6790_v35, %v9286_v5  ;;  %v776_v21 = vpop.f32.mrb[11].mxu0 }
 0x300   : > { %v951_v13 = vsub.f32 %v879_v19, %v901_v26  ;;  %v952_v43 = vsub.f32 %v880_v16, %v901_v26  ;;  %v907_v4 = vrot.slane %v906_v2, 1  ;;  %v912_v32 = vrot.slane %v911_v11, 2  ;;  %v9336_v26 = vpop.permute.xlu1 %1506 }
 0x301   : > { %v917_v1 = vrot.slane %v916_v20, 4  ;;  %v9329_v61 = vadd.f32 %v9288_v53, %v776_v21  ;;  %11689 = vst [vmem:[#allocation60_spill] sm:$0xff] %v9336_v26 }
 0x302   : > { %v967_v39 = vmul.f32 1.442695, %v951_v13  ;;  %v969_v34 = vmul.f32 1.442695, %v952_v43  ;;  %v908_v41 = vmax.f32 %v906_v2, %v907_v4  ;;  %v913_v36 = vmax.f32 %v911_v11, %v912_v32  ;;  %v6793_v44 = vpop.f32.mrb[12].mxu0  ;;  %v9342_v2 = vpop.permute.xlu0 %1502 }
 0x303   : > { %v918_v40 = vmax.f32 %v916_v20, %v917_v1  ;;  %v923_v35 = vmax.f32 %v9329_v61, %v9324_v18  ;;  %v9334_v5 = vadd.f32 %v6793_v44, %v9292_v10  ;;  %v786_v19 = vpop.f32.mrb[13].mxu0  ;;  %11690 = vst [vmem:[#allocation61_spill] sm:$0xff] %v9342_v2 }
 0x304   : > { %8341 = vpow2.f32 %v967_v39  ;;  %v953_v16 = vsub.f32 %v881_v60, %v908_v41  ;;  %v954_v21 = vsub.f32 %v9295_v63, %v908_v41  ;;  %v914_v53 = vrot.slane %v913_v36, 1 }
 0x305   : > { %v919_v13 = vrot.slane %v918_v40, 2  ;;  %v924_v43 = vrot.slane %v923_v35, 4  ;;  %v9340_v4 = vadd.f32 %v9297_v28, %v786_v19  ;;  %8343 = vpow2.f32 %v969_v34 }
 0x306   : > { %v971_v1 = vmul.f32 1.442695, %v953_v16  ;;  %v915_v11 = vmax.f32 %v913_v36, %v914_v53  ;;  %v6796_v20 = vpop.f32.mrb[14].mxu0  ;;  %v973_v41 = vmul.f32 1.442695, %v954_v21 }
 0x307   : > { %v920_v32 = vmax.f32 %v918_v40, %v919_v13  ;;  %v925_v44 = vmax.f32 %v923_v35, %v924_v43  ;;  %v930_v39 = vmax.f32 %v9340_v4, %v9334_v5  ;;  %v9347_v60 = vadd.f32 %v6796_v20, %v9304_v30  ;;  %v796_v63 = vpop.f32.mrb[15].mxu0  ;;  %v9354_v40 = vpop.permute.xlu1 %1514 }
 0x308   : > { %v955_v10 = vsub.f32 %v9307_v38, %v915_v11  ;;  %v956_v19 = vsub.f32 %v9302_v27, %v915_v11  ;;  %v9352_v28 = vadd.f32 %v9309_v51, %v796_v63  ;;  %11691 = vst [vmem:[#allocation62_spill] sm:$0xff] %v9354_v40  ;;  %8345 = vpow2.f32 %v971_v1  ;;  %v9361_v63 = vpop.permute.xlu0 %1510 }
 0x309   : > { %v921_v34 = vrot.slane %v920_v32, 1  ;;  %v926_v53 = vrot.slane %v925_v44, 2  ;;  %v931_v36 = vrot.slane %v930_v39, 4  ;;  %11692 = vst [vmem:[#allocation63_spill] sm:$0xff] %v9361_v63  ;;  %8347 = vpow2.f32 %v973_v41 }
 0x30a   : > { %v975_v35 = vmul.f32 1.442695, %v955_v10  ;;  %v977_v16 = vmul.f32 1.442695, %v956_v19  ;;  %v937_v13 = vmax.f32 %v9352_v28, %v9347_v60  ;;  %v6799_v43 = vpop.f32.mrb[16].mxu0 }
 0x30b   : > { %v922_v21 = vmax.f32 %v920_v32, %v921_v34  ;;  %v927_v20 = vmax.f32 %v925_v44, %v926_v53  ;;  %v932_v38 = vmax.f32 %v930_v39, %v931_v36  ;;  %v9359_v27 = vadd.f32 %v6799_v43, %v9319_v56  ;;  %v806_v11 = vpop.f32.mrb[17].mxu0 }
 0x30c   : > { %v938_v51 = vrot.slane %v937_v13, 4  ;;  %v9364_v30 = vadd.f32 %v9326_v12, %v806_v11  ;;  %8349 = vpow2.f32 %v975_v35 }
 0x30d   : > { %v957_v10 = vsub.f32 %v9317_v22, %v922_v21  ;;  %v958_v1 = vsub.f32 %v9314_v33, %v922_v21  ;;  %v928_v19 = vrot.slane %v927_v20, 1  ;;  %8351 = vpow2.f32 %v977_v16  ;;  %v9375_v22 = vpop.permute.xlu1 %1522 }
 0x30e   : > { %v9368_v32 = vpop.eup %8341  ;;  %v933_v44 = vrot.slane %v932_v38, 2  ;;  %v939_v39 = vmax.f32 %v937_v13, %v938_v51  ;;  %v944_v34 = vmax.f32 %v9364_v30, %v9359_v27  ;;  %v6834_v53 = vpop.f32.mrb[18].mxu0  ;;  %11693 = vst [vmem:[#allocation64_spill] sm:$0xff] %v9375_v22 }
 0x30f   : > { %v979_v41 = vmul.f32 1.442695, %v957_v10  ;;  %v981_v36 = vmul.f32 1.442695, %v958_v1  ;;  %v929_v43 = vmax.f32 %v927_v20, %v928_v19  ;;  %v9373_v11 = vadd.f32 %v6834_v53, %v9336_v26  ;;  %v1421_v35 = vpop.f32.mrb[19].mxu0  ;;  %v8344_v33 = vpop.eup %8343 }
 0x310   : > { %v934_v21 = vmax.f32 %v932_v38, %v933_v44  ;;  %v940_v12 = vrot.slane %v939_v39, 2  ;;  %v945_v56 = vrot.slane %v944_v34, 4  ;;  %v9378_v16 = vadd.f32 %v9342_v2, %v1421_v35  ;;  %v9384_v10 = vpop.permute.xlu0 %1518 }
 0x311   : > { %8353 = vpow2.f32 %v979_v41  ;;  %v959_v51 = vsub.f32 %v9329_v61, %v929_v43  ;;  %v960_v13 = vsub.f32 %v9324_v18, %v929_v43  ;;  %v999_v20 = vmul.f32 %v9368_v32, %v9079_v25  ;;  %11694 = vst [vmem:[#allocation65_spill] sm:$0xff] %v9384_v10 }
 0x312   : > { %8355 = vpow2.f32 %v981_v36  ;;  %v935_v1 = vrot.slane %v934_v21, 1  ;;  %v941_v19 = vmax.f32 %v939_v39, %v940_v12  ;;  %v946_v53 = vmax.f32 %v944_v34, %v945_v56  ;;  %v6837_v38 = vpop.f32.mrb[20].mxu0  ;;  %v9391_v18 = vpop.eup %8345 }
 0x313   : > { %v983_v44 = vmul.f32 1.442695, %v959_v51  ;;  %v985_v26 = vmul.f32 1.442695, %v960_v13  ;;  %v1580_v35 = vmax.f32 %v9378_v16, %v9373_v11  ;;  %v9389_v41 = vadd.f32 %v6837_v38, %v9354_v40  ;;  %v1431_v61 = vpop.f32.mrb[21].mxu0  ;;  %v9398_v34 = vpop.permute.xlu1 %1530 }
 0x314   : > { %v936_v43 = vmax.f32 %v934_v21, %v935_v1  ;;  %v942_v2 = vrot.slane %v941_v19, 1  ;;  %v947_v37 = vrot.slane %v946_v53, 2  ;;  %v1000_v36 = vmul.f32 %v8344_v33, %v9075_v23  ;;  %11695 = vst [vmem:[#allocation66_spill] sm:$0xff] %v9398_v34  ;;  %v9400_v51 = vpop.eup %8347 }
 0x315   : > { %8357 = vpow2.f32 %v983_v44  ;;  %v1581_v12 = vrot.slane %v1580_v35, 4  ;;  %v9395_v56 = vadd.f32 %v9361_v63, %v1431_v61  ;;  %v7524_v39 = vpack.c.bf16 %v8344_v33, %v9368_v32  ;;  %v9408_v33 = vpop.permute.xlu0 %1526 }
 0x316   : > { %8359 = vpow2.f32 %v985_v26  ;;  %v961_v13 = vsub.f32 %v9340_v4, %v936_v43  ;;  %v962_v21 = vsub.f32 %v9334_v5, %v936_v43  ;;  %v943_v1 = vmax.f32 %v941_v19, %v942_v2  ;;  %v6840_v38 = vpop.f32.mrb[22].mxu0  ;;  %v9404_v40 = vpop.eup %8349  ;;  %11696 = vst [vmem:[#allocation67_spill] sm:$0xff] %v9408_v33 }
 0x317   : > { %v948_v44 = vmax.f32 %v946_v53, %v947_v37  ;;  %v1582_v42 = vmax.f32 %v1580_v35, %v1581_v12  ;;  %v7522_v31 = vpack.c.bf16 %v1000_v36, %v999_v20  ;;  %v1587_v61 = vmax.f32 %v9395_v56, %v9389_v41  ;;  %v1441_v32 = vpop.f32.mrb[23].mxu0  ;;  %v9410_v63 = vpop.eup %8351 }
 0x318   : > { %v987_v26 = vmul.f32 1.442695, %v961_v13  ;;  %v989_v15 = vmul.f32 1.442695, %v962_v21  ;;  %v963_v4 = vsub.f32 %v9352_v28, %v943_v1  ;;  %v964_v5 = vsub.f32 %v9347_v60, %v943_v1 }
 0x319   : > { %v949_v2 = vrot.slane %v948_v44, 1  ;;  %v1583_v19 = vrot.slane %v1582_v42, 2  ;;  %7523 = vmatprep.subr.bf16.mxu1 %v7522_v31  ;;  %v1588_v37 = vrot.slane %v1587_v61, 4  ;;  %v9415_v20 = vadd.f32 %v6840_v38, %v9375_v22  ;;  %v9421_v31 = vpop.permute.xlu1 %1538 }
 0x31a   : > { %8361 = vpow2.f32 %v987_v26  ;;  %v991_v53 = vmul.f32 1.442695, %v963_v4  ;;  %v993_v35 = vmul.f32 1.442695, %v964_v5  ;;  %7525 = vmatpush1.bf16.msra.mxu1 %v7524_v39  ;;  %v1001_v43 = vmul.f32 %v9391_v18, %v9079_v25  ;;  %v6843_v36 = vpop.f32.mrb[24].mxu0  ;;  %11697 = vst [vmem:[#allocation68_spill] sm:$0xff] %v9421_v31 }
 0x31b   : > { %v9419_v12 = vpop.eup %8353  ;;  %8363 = vpow2.f32 %v989_v15  ;;  %v950_v28 = vmax.f32 %v948_v44, %v949_v2  ;;  %v1584_v60 = vmax.f32 %v1582_v42, %v1583_v19  ;;  %v1589_v13 = vmax.f32 %v1587_v61, %v1588_v37  ;;  %v1451_v21 = vpop.f32.mrb[25].mxu0 }
 0x31c   : > { %v9423_v1 = vpop.eup %8355  ;;  %8365 = vpow2.f32 %v991_v53  ;;  %v1002_v38 = vmul.f32 %v9400_v51, %v9075_v23  ;;  %v9428_v39 = vadd.f32 %v9384_v10, %v1441_v32  ;;  %v7528_v26 = vpack.c.bf16 %v9400_v51, %v9391_v18  ;;  %v9434_v61 = vpop.permute.xlu0 %1534 }
 0x31d   : > { %8367 = vpow2.f32 %v993_v35  ;;  %v965_v15 = vsub.f32 %v9364_v30, %v950_v28  ;;  %v966_v42 = vsub.f32 %v9359_v27, %v950_v28  ;;  %v1585_v44 = vrot.slane %v1584_v60, 1  ;;  %11698 = vst [vmem:[#allocation69_spill] sm:$0xff] %v9434_v61 }
 0x31e   : > { %v1590_v4 = vrot.slane %v1589_v13, 2  ;;  %v7526_v5 = vpack.c.bf16 %v1002_v38, %v1001_v43  ;;  %v1594_v2 = vmax.f32 %v9428_v39, %v9415_v20  ;;  %v9439_v19 = vadd.f32 %v6843_v36, %v9398_v34  ;;  %v6846_v32 = vpop.f32.mrb[26].mxu0 }
 0x31f   : > { %v9441_v37 = vpop.eup %8357  ;;  %v995_v18 = vmul.f32 1.442695, %v965_v15  ;;  %v997_v51 = vmul.f32 1.442695, %v966_v42  ;;  %v1586_v53 = vmax.f32 %v1584_v60, %v1585_v44  ;;  %v1003_v30 = vmul.f32 %v9404_v40, %v9079_v25  ;;  %v1461_v27 = vpop.f32.mrb[27].mxu0 }
 0x320   : > { %v9445_v35 = vpop.eup %8359  ;;  %v1591_v28 = vmax.f32 %v1589_v13, %v1590_v4  ;;  %7527 = vmatprep.subr.bf16.mxu1 %v7526_v5  ;;  %v1595_v43 = vrot.slane %v1594_v2, 4  ;;  %v1004_v38 = vmul.f32 %v9410_v63, %v9075_v23  ;;  %v9450_v36 = vadd.f32 %v9408_v33, %v1451_v21  ;;  %v9456_v44 = vpop.permute.xlu1 %1546 }
 0x321   : > { %8369 = vpow2.f32 %v995_v18  ;;  %v1636_v15 = vsub.f32 %v9378_v16, %v1586_v53  ;;  %v1637_v60 = vsub.f32 %v9373_v11, %v1586_v53  ;;  %7529 = vmatpush1.bf16.msra.mxu1 %v7528_v26  ;;  %v7532_v42 = vpack.c.bf16 %v9410_v63, %v9404_v40  ;;  %11699 = vst [vmem:[#allocation70_spill] sm:$0xff] %v9456_v44  ;;  %v9463_v11 = vpop.permute.xlu0 %1542 }
 0x322   : > { %8371 = vpow2.f32 %v997_v51  ;;  %v1592_v13 = vrot.slane %v1591_v28, 1  ;;  %v1596_v4 = vmax.f32 %v1594_v2, %v1595_v43  ;;  %v7530_v5 = vpack.c.bf16 %v1004_v38, %v1003_v30  ;;  %v6849_v34 = vpop.f32.mrb[28].mxu0  ;;  %11700 = vst [vmem:[#allocation71_spill] sm:$0xff] %v9463_v11 }
 0x323   : > { %v1652_v10 = vmul.f32 1.442695, %v1636_v15  ;;  %v1654_v22 = vmul.f32 1.442695, %v1637_v60  ;;  %v1601_v21 = vmax.f32 %v9450_v36, %v9439_v19  ;;  %v9461_v16 = vadd.f32 %v6846_v32, %v9421_v31  ;;  %v1471_v26 = vpop.f32.mrb[29].mxu0 }
 0x324   : > { %v9465_v18 = vpop.eup %8361  ;;  %v1593_v40 = vmax.f32 %v1591_v28, %v1592_v13  ;;  %v1597_v63 = vrot.slane %v1596_v4, 2  ;;  %7531 = vmatprep.subr.bf16.mxu1 %v7530_v5  ;;  %v1005_v2 = vmul.f32 %v9419_v12, %v9079_v25  ;;  %v1006_v51 = vmul.f32 %v9423_v1, %v9075_v23 }
 0x325   : > { %v9471_v53 = vpop.eup %8363  ;;  %8373 = vpow2.f32 %v1652_v10  ;;  %v1602_v30 = vrot.slane %v1601_v21, 4  ;;  %7533 = vmatpush1.bf16.msra.mxu1 %v7532_v42  ;;  %v9474_v32 = vadd.f32 %v9434_v61, %v1461_v27  ;;  %v7536_v43 = vpack.c.bf16 %v9423_v1, %v9419_v12  ;;  %v9489_v12 = vpop.permute.xlu1 %1554 }
 0x326   : > { %v9478_v28 = vpop.eup %8365  ;;  %8375 = vpow2.f32 %v1654_v22  ;;  %v1638_v38 = vsub.f32 %v9395_v56, %v1593_v40  ;;  %v1639_v15 = vsub.f32 %v9389_v41, %v1593_v40  ;;  %v1598_v60 = vmax.f32 %v1596_v4, %v1597_v63  ;;  %v6852_v13 = vpop.f32.mrb[30].mxu0  ;;  %11701 = vst [vmem:[#allocation72_spill] sm:$0xff] %v9489_v12 }
 0x327   : > { %v9482_v5 = vpop.eup %8367  ;;  %v1603_v10 = vmax.f32 %v1601_v21, %v1602_v30  ;;  %v7534_v31 = vpack.c.bf16 %v1006_v51, %v1005_v2  ;;  %v1608_v27 = vmax.f32 %v9474_v32, %v9461_v16  ;;  %v9487_v42 = vadd.f32 %v6849_v34, %v9456_v44  ;;  %v1481_v1 = vpop.f32.mrb[31].mxu0 }
 0x328   : > { %v1656_v22 = vmul.f32 1.442695, %v1638_v38  ;;  %v1658_v61 = vmul.f32 1.442695, %v1639_v15  ;;  %v1599_v56 = vrot.slane %v1598_v60, 1  ;;  %v1007_v41 = vmul.f32 %v9441_v37, %v9079_v25  ;;  %v9498_v34 = vpop.permute.xlu0 %1550 }
 0x329   : > { %v1604_v4 = vrot.slane %v1603_v10, 2  ;;  %7535 = vmatprep.subr.bf16.mxu1 %v7534_v31  ;;  %v1609_v40 = vrot.slane %v1608_v27, 4  ;;  %v1008_v21 = vmul.f32 %v9445_v35, %v9075_v23  ;;  %v9496_v63 = vadd.f32 %v9463_v11, %v1471_v26  ;;  %11702 = vst [vmem:[#allocation73_spill] sm:$0xff] %v9498_v34 }
 0x32a   : > { %8377 = vpow2.f32 %v1656_v22  ;;  %v1600_v2 = vmax.f32 %v1598_v60, %v1599_v56  ;;  %7537 = vmatpush1.bf16.msra.mxu1 %v7536_v43  ;;  %v7540_v51 = vpack.c.bf16 %v9445_v35, %v9441_v37  ;;  %v9503_v30 = vadd.f32 %v6852_v13, %v9489_v12  ;;  %v6855_v38 = vpop.f32.mrb[32].mxu0 }
 0x32b   : > { %v9505_v31 = vpop.eup %8369  ;;  %8379 = vpow2.f32 %v1658_v61  ;;  %v1605_v15 = vmax.f32 %v1603_v10, %v1604_v4  ;;  %v1610_v44 = vmax.f32 %v1608_v27, %v1609_v40  ;;  %v7538_v33 = vpack.c.bf16 %v1008_v21, %v1007_v41  ;;  %v1491_v26 = vpop.f32.mrb[33].mxu0 }
 0x32c   : > { %v9507_v11 = vpop.eup %8371  ;;  %v1640_v22 = vsub.f32 %v9428_v39, %v1600_v2  ;;  %v1641_v43 = vsub.f32 %v9415_v20, %v1600_v2  ;;  %v1615_v37 = vmax.f32 %v9496_v63, %v9487_v42  ;;  %v1009_v35 = vmul.f32 %v9465_v18, %v9079_v25  ;;  %v9520_v27 = vpop.permute.xlu1 %1562 }
 0x32d   : > { %v1606_v60 = vrot.slane %v1605_v15, 1  ;;  %v1611_v13 = vrot.slane %v1610_v44, 2  ;;  %7539 = vmatprep.subr.bf16.mxu1 %v7538_v33  ;;  %v1010_v61 = vmul.f32 %v9471_v53, %v9075_v23  ;;  %v9518_v10 = vadd.f32 %v9498_v34, %v1481_v1  ;;  %11703 = vst [vmem:[#allocation74_spill] sm:$0xff] %v9520_v27  ;;  %v9528_v12 = vpop.permute.xlu0 %1558 }
 0x32e   : > { %v1660_v39 = vmul.f32 1.442695, %v1640_v22  ;;  %v1662_v56 = vmul.f32 1.442695, %v1641_v43  ;;  %v1616_v20 = vrot.slane %v1615_v37, 4  ;;  %7541 = vmatpush1.bf16.msra.mxu1 %v7540_v51  ;;  %v7544_v41 = vpack.c.bf16 %v9471_v53, %v9465_v18  ;;  %11704 = vst [vmem:[#allocation75_spill] sm:$0xff] %v9528_v12 }
 0x32f   : > { %v9524_v4 = vpop.eup %8373  ;;  %v1607_v40 = vmax.f32 %v1605_v15, %v1606_v60  ;;  %v1612_v21 = vmax.f32 %v1610_v44, %v1611_v13  ;;  %v7542_v33 = vpack.c.bf16 %v1010_v61, %v1009_v35  ;;  %v1622_v2 = vmax.f32 %v9518_v10, %v9503_v30 }
 0x330   : > { %v9530_v1 = vpop.eup %8375  ;;  %8381 = vpow2.f32 %v1660_v39  ;;  %v1617_v22 = vmax.f32 %v1615_v37, %v1616_v20  ;;  %v9533_v43 = vadd.f32 %v6855_v38, %v9520_v27  ;;  %v1011_v18 = vmul.f32 %v9478_v28, %v9079_v25 }
 0x331   : > { %8383 = vpow2.f32 %v1662_v56  ;;  %v1642_v53 = vsub.f32 %v9450_v36, %v1607_v40  ;;  %v1643_v44 = vsub.f32 %v9439_v19, %v1607_v40  ;;  %v1613_v51 = vrot.slane %v1612_v21, 1  ;;  %7543 = vmatprep.subr.bf16.mxu1 %v7542_v33 }
 0x332   : > { %v1618_v15 = vrot.slane %v1617_v22, 2  ;;  %v1623_v35 = vrot.slane %v1622_v2, 4  ;;  %7545 = vmatpush1.bf16.msra.mxu1 %v7544_v41  ;;  %v1012_v60 = vmul.f32 %v9482_v5, %v9075_v23  ;;  %v9542_v37 = vadd.f32 %v9528_v12, %v1491_v26 }
 0x333   : > { %v1664_v38 = vmul.f32 1.442695, %v1642_v53  ;;  %v1666_v13 = vmul.f32 1.442695, %v1643_v44  ;;  %v1614_v61 = vmax.f32 %v1612_v21, %v1613_v51  ;;  %v7548_v39 = vpack.c.bf16 %v9482_v5, %v9478_v28 }
 0x334   : > { %v9546_v36 = vpop.eup %8377  ;;  %v1619_v19 = vmax.f32 %v1617_v22, %v1618_v15  ;;  %v1624_v56 = vmax.f32 %v1622_v2, %v1623_v35  ;;  %v7546_v20 = vpack.c.bf16 %v1012_v60, %v1011_v18  ;;  %v1629_v41 = vmax.f32 %v9542_v37, %v9533_v43 }
 0x335   : > { %v9550_v40 = vpop.eup %8379  ;;  %8385 = vpow2.f32 %v1664_v38  ;;  %v1644_v26 = vsub.f32 %v9474_v32, %v1614_v61  ;;  %v1645_v33 = vsub.f32 %v9461_v16, %v1614_v61  ;;  %v1013_v21 = vmul.f32 %v9505_v31, %v9079_v25 }
 0x336   : > { %8387 = vpow2.f32 %v1666_v13  ;;  %v1620_v28 = vrot.slane %v1619_v19, 1  ;;  %v1625_v5 = vrot.slane %v1624_v56, 2  ;;  %7547 = vmatprep.subr.bf16.mxu1 %v7546_v20  ;;  %v1630_v22 = vrot.slane %v1629_v41, 4 }
 0x337   : > { %v1668_v2 = vmul.f32 1.442695, %v1644_v26  ;;  %v1670_v18 = vmul.f32 1.442695, %v1645_v33  ;;  %7549 = vmatpush1.bf16.msra.mxu1 %v7548_v39  ;;  %v1014_v53 = vmul.f32 %v9507_v11, %v9075_v23  ;;  %v7552_v44 = vpack.c.bf16 %v9507_v11, %v9505_v31 }
 0x338   : > { %v1621_v32 = vmax.f32 %v1619_v19, %v1620_v28  ;;  %v1626_v51 = vmax.f32 %v1624_v56, %v1625_v5  ;;  %v1631_v16 = vmax.f32 %v1629_v41, %v1630_v22  ;;  %v1684_v15 = vmul.f32 %v9524_v4, %v9079_v25 }
 0x339   : > { %8389 = vpow2.f32 %v1668_v2  ;;  %v7550_v35 = vpack.c.bf16 %v1014_v53, %v1013_v21  ;;  %v1685_v60 = vmul.f32 %v9530_v1, %v9075_v23  ;;  %v7588_v38 = vpack.c.bf16 %v9530_v1, %v9524_v4  ;;  %v9572_v1 = vld [vmem:[#allocation5 + $0x10] sm:$0xff] }
 0x33a   : > { %v8382_v13 = vpop.eup %8381  ;;  %8391 = vpow2.f32 %v1670_v18  ;;  %v1646_v61 = vsub.f32 %v9496_v63, %v1621_v32  ;;  %v1647_v11 = vsub.f32 %v9487_v42, %v1621_v32  ;;  %v1627_v31 = vrot.slane %v1626_v51, 1 }
 0x33b   : > { %v8384_v39 = vpop.eup %8383  ;;  %v1632_v19 = vrot.slane %v1631_v16, 2  ;;  %7551 = vmatprep.subr.bf16.mxu1 %v7550_v35  ;;  %v7586_v56 = vpack.c.bf16 %v1685_v60, %v1684_v15  ;;  %v1686_v20 = vmul.f32 %v9546_v36, %v9079_v25  ;;  %v1687_v41 = vmul.f32 %v9550_v40, %v9075_v23 }
 0x33c   : > { %v1672_v26 = vmul.f32 1.442695, %v1646_v61  ;;  %v1674_v33 = vmul.f32 1.442695, %v1647_v11  ;;  %v1628_v4 = vmax.f32 %v1626_v51, %v1627_v31  ;;  %7553 = vmatpush1.bf16.msra.mxu1 %v7552_v44  ;;  %v7592_v42 = vpack.c.bf16 %v9550_v40, %v9546_v36 }
 0x33d   : > { %v1633_v63 = vmax.f32 %v1631_v16, %v1632_v19  ;;  %7587 = vmatprep.subr.bf16.mxu1 %v7586_v56  ;;  %v7590_v21 = vpack.c.bf16 %v1687_v41, %v1686_v20  ;;  %v1688_v28 = vmul.f32 %v8382_v13, %v9079_v25  ;;  %v1689_v5 = vmul.f32 %v8384_v39, %v9075_v23 }
 0x33e   : > { %8393 = vpow2.f32 %v1672_v26  ;;  %v1648_v22 = vsub.f32 %v9518_v10, %v1628_v4  ;;  %v1649_v2 = vsub.f32 %v9503_v30, %v1628_v4  ;;  %v7596_v18 = vpack.c.bf16 %v8384_v39, %v8382_v13 }
 0x33f   : > { %v8386_v53 = vpop.eup %8385  ;;  %8395 = vpow2.f32 %v1674_v33  ;;  %v1634_v44 = vrot.slane %v1633_v63, 1  ;;  %1080 = vmatmul.mubr.f32.vlgmr.msra.gmra.mrb[4].mxu1 %v9572_v1  ;;  %v7594_v32 = vpack.c.bf16 %v1689_v5, %v1688_v28 }
 0x340   : > { %v8388_v36 = vpop.eup %8387  ;;  %v1676_v40 = vmul.f32 1.442695, %v1648_v22  ;;  %v1678_v51 = vmul.f32 1.442695, %v1649_v2  ;;  %7589 = vmatpush1.bf16.msra.mxu1 %v7588_v38  ;;  %v1690_v16 = vmul.f32 %v8386_v53, %v9079_v25  ;;  %1764 = vmatprep.mubr.f32.mxu1 %v11672_v7 }
 0x341   : > { %v1635_v15 = vmax.f32 %v1633_v63, %v1634_v44  ;;  %7591 = vmatprep.subr.bf16.mxu1 %v7590_v21  ;;  %v1691_v10 = vmul.f32 %v8388_v36, %v9075_v23  ;;  %v7600_v30 = vpack.c.bf16 %v8388_v36, %v8386_v53 }
 0x342   : > { %8397 = vpow2.f32 %v1676_v40  ;;  %v1794_v40 = vld [vmem:[#allocation5 + $0x268] sm:$0xff] }
 0x343   : > { %v8390_v35 = vpop.eup %8389  ;;  %8399 = vpow2.f32 %v1678_v51  ;;  %v1650_v60 = vsub.f32 %v9542_v37, %v1635_v15  ;;  %v1651_v13 = vsub.f32 %v9533_v43, %v1635_v15  ;;  %v7598_v61 = vpack.c.bf16 %v1691_v10, %v1690_v16  ;;  %v1796_v51 = vld [vmem:[#allocation5 + $0x278] sm:$0xff]  ;;  %v1793_v15 = vld [vmem:[#allocation5 + $0x260] sm:$0xff]  ;;  %v1795_v10 = vld [vmem:[#allocation5 + $0x270] sm:$0xff] }
 0x344   : > { %v8392_v11 = vpop.eup %8391  ;;  %7593 = vmatpush1.bf16.msra.mxu1 %v7592_v42  ;;  %v1692_v38 = vmul.f32 %v8390_v35, %v9079_v25  ;;  %v7626_v16 = vpack.c.bf16 %v1796_v51, %v1794_v40 }
 0x345   : > { %v1680_v31 = vmul.f32 1.442695, %v1650_v60  ;;  %v1682_v39 = vmul.f32 1.442695, %v1651_v13  ;;  %7595 = vmatprep.subr.bf16.mxu1 %v7594_v32  ;;  %v1693_v19 = vmul.f32 %v8392_v11, %v9075_v23  ;;  %v7604_v56 = vpack.c.bf16 %v8392_v11, %v8390_v35  ;;  %v1800_v35 = vld [vmem:[#allocation5 + $0x298] sm:$0xff]  ;;  %v1797_v60 = vld [vmem:[#allocation5 + $0x280] sm:$0xff] }
 0x346   : > { %7627 = vmatprep.subr.bf16.mxu0 %v7626_v16  ;;  %v1799_v13 = vld [vmem:[#allocation5 + $0x290] sm:$0xff]  ;;  %v1802_v11 = vld [vmem:[#allocation5 + $0x2a8] sm:$0xff]  ;;  %v1774_v16 = vld [vmem:[#allocation5 + $0xf83] ss:$0 sm:$0xff] }
 0x347   : > { %8401 = vpow2.f32 %v1680_v31  ;;  %v7602_v20 = vpack.c.bf16 %v1693_v19, %v1692_v38  ;;  %v1804_v38 = vld [vmem:[#allocation5 + $0x2b8] sm:$0xff] }
 0x348   : > { %v8394_v41 = vpop.eup %8393  ;;  %8403 = vpow2.f32 %v1682_v39  ;;  %7597 = vmatpush1.bf16.msra.mxu1 %v7596_v18  ;;  %v7634_v31 = vpack.c.bf16 %v1804_v38, %v1802_v11  ;;  %v1803_v39 = vld [vmem:[#allocation5 + $0x2b0] sm:$0xff] }
 0x349   : > { %v8396_v26 = vpop.eup %8395  ;;  %7599 = vmatprep.subr.bf16.mxu1 %v7598_v61  ;;  %v1694_v43 = vmul.f32 %v8394_v41, %v9079_v25  ;;  %v7632_v61 = vpack.c.bf16 %v1799_v13, %v1797_v60 }
 0x34a   : > { %v1695_v37 = vmul.f32 %v8396_v26, %v9075_v23  ;;  %v7608_v33 = vpack.c.bf16 %v8396_v26, %v8394_v41  ;;  %v1805_v41 = vld [vmem:[#allocation5 + $0x2c0] sm:$0xff] }
 0x34c   : > { %v8398_v4 = vpop.eup %8397  ;;  %7601 = vmatpush1.bf16.msra.mxu1 %v7600_v30  ;;  %v7606_v42 = vpack.c.bf16 %v1695_v37, %v1694_v43  ;;  %v7628_v30 = vpack.c.bf16 %v1795_v10, %v1793_v15  ;;  %v1807_v43 = vld [vmem:[#allocation5 + $0x2d0] sm:$0xff]  ;;  %v1810_v37 = vld [vmem:[#allocation5 + $0x2e8] sm:$0xff]  ;;  %v1777_v10 = vld [vmem:[#allocation5 + $0xf84] ss:$0 sm:$0xff] }
 0x34d   : > { %v8400_v63 = vpop.eup %8399  ;;  %7603 = vmatprep.subr.bf16.mxu1 %v7602_v20  ;;  %v1696_v21 = vmul.f32 %v8398_v4, %v9079_v25  ;;  %v1808_v20 = vld [vmem:[#allocation5 + $0x2d8] sm:$0xff] }
 0x34e   : > { %v1697_v28 = vmul.f32 %v8400_v63, %v9075_v23  ;;  %v7612_v5 = vpack.c.bf16 %v8400_v63, %v8398_v4  ;;  %7629 = vmatpush1.bf16.msra.mxu0 %v7628_v30  ;;  %v7640_v4 = vpack.c.bf16 %v1807_v43, %v1805_v41  ;;  %v1809_v63 = vld [vmem:[#allocation5 + $0x2e0] sm:$0xff]  ;;  %v1909_v41 = vld [vmem:[#allocation5 + $0x330] sm:$0xff] }
 0x350   : > { %7605 = vmatpush1.bf16.msra.mxu1 %v7604_v56  ;;  %v7610_v22 = vpack.c.bf16 %v1697_v28, %v1696_v21  ;;  %v1806_v56 = vld [vmem:[#allocation5 + $0x2c8] sm:$0xff]  ;;  %v1811_v21 = vld [vmem:[#allocation5 + $0x2f0] sm:$0xff] }
 0x351   : > { %v8402_v2 = vpop.eup %8401  ;;  %7607 = vmatprep.subr.bf16.mxu1 %v7606_v42  ;;  %v7638_v26 = vpack.c.bf16 %v1808_v20, %v1806_v56  ;;  %v1814_v28 = vld [vmem:[#allocation5 + $0x308] sm:$0xff]  ;;  %v1908_v20 = vld [vmem:[#allocation5 + $0x320] sm:$0xff] }
 0x352   : > { %v8404_v18 = vpop.eup %8403  ;;  %v1698_v53 = vmul.f32 %v8402_v2, %v9079_v25  ;;  %v1798_v25 = vld [vmem:[#allocation5 + $0x288] sm:$0xff]  ;;  %v9607_v43 = vpack.c.bf16 %v1909_v41, %v1908_v20 }
 0x353   : > { %v1699_v44 = vmul.f32 %v8404_v18, %v9075_v23  ;;  %v7616_v32 = vpack.c.bf16 %v8404_v18, %v8402_v2  ;;  %v7630_v23 = vpack.c.bf16 %v1800_v35, %v1798_v25  ;;  %v1813_v18 = vld [vmem:[#allocation5 + $0x300] sm:$0xff] }
 0x354   : > { %7609 = vmatpush1.bf16.msra.mxu1 %v7608_v33  ;;  %v1812_v33 = vld [vmem:[#allocation5 + $0x2f8] sm:$0xff]  ;;  %v1780_v25 = vld [vmem:[#allocation5 + $0xf85] ss:$0 sm:$0xff] }
 0x355   : > { %7611 = vmatprep.subr.bf16.mxu1 %v7610_v22  ;;  %v7614_v36 = vpack.c.bf16 %v1699_v44, %v1698_v53  ;;  %7631 = vmatprep.subr.bf16.mxu0 %v7630_v23  ;;  %v7642_v42 = vpack.c.bf16 %v1812_v33, %v1810_v37  ;;  %v7644_v22 = vpack.c.bf16 %v1811_v21, %v1809_v63  ;;  %v1815_v53 = vld [vmem:[#allocation5 + $0x310] sm:$0xff]  ;;  %v1914_v63 = vld [vmem:[#allocation5 + $0x380] sm:$0xff] }
 0x356   : > { %7633 = vmatpush1.bf16.msra.mxu0 %v7632_v61  ;;  %v7648_v44 = vpack.c.bf16 %v1815_v53, %v1813_v18  ;;  %v1911_v37 = vld [vmem:[#allocation5 + $0x350] sm:$0xff]  ;;  %v1918_v53 = vld [vmem:[#allocation5 + $0x3c0] sm:$0xff] }
 0x357   : > { %7635 = vmatprep.subr.bf16.mxu0 %v7634_v31 }
 0x358   : > { %7613 = vmatpush1.bf16.msra.mxu1 %v7612_v5  ;;  %v1816_v5 = vld [vmem:[#allocation5 + $0x318] sm:$0xff] }
 0x359   : > { %7615 = vmatprep.subr.bf16.mxu1 %v7614_v36  ;;  %v7646_v2 = vpack.c.bf16 %v1816_v5, %v1814_v28  ;;  %v1915_v28 = vld [vmem:[#allocation5 + $0x390] sm:$0xff] }
 0x35a   : > { %v9617_v5 = vpack.c.bf16 %v1915_v28, %v1914_v63 }
 0x35c   : > { %7617 = vmatpush1.bf16.msra.mxu1 %v7616_v32 }
 0x35d   : > { %7651 = vmatprep.subr.bf16.mxu1 %v9607_v43 }
 0x35f   : > { %1765 = vmatmul.mubr.f32.vlgmr.msra.gmra.mrb[6].mxu1 %v9572_v1  ;;  %v1801_v1 = vld [vmem:[#allocation5 + $0x2a0] sm:$0xff] }
 0x360   : > { %v7636_v19 = vpack.c.bf16 %v1803_v39, %v1801_v1  ;;  %7653 = vmatpush3.bf16.msra.mxu1 %v9607_v43 }
 0x362   : > { %7637 = vmatpush1.bf16.msra.mxu0 %v7636_v19 }
 0x363   : > { %7639 = vmatprep.subr.bf16.mxu0 %v7638_v26  ;;  %v1910_v26 = vld [vmem:[#allocation5 + $0x340] sm:$0xff] }
 0x364   : > { %v9609_v33 = vpack.c.bf16 %v1911_v37, %v1910_v26 }
 0x366   : > { %7641 = vmatpush1.bf16.msra.mxu0 %v7640_v4  ;;  %7655 = vmatprep.subr.bf16.mxu1 %v9609_v33  ;;  %v1912_v4 = vld [vmem:[#allocation5 + $0x360] sm:$0xff] }
 0x367   : > { %7643 = vmatprep.subr.bf16.mxu0 %v7642_v42  ;;  %v1913_v42 = vld [vmem:[#allocation5 + $0x370] sm:$0xff]  ;;  %7657 = vmatpush3.bf16.msra.mxu1 %v9609_v33 }
 0x368   : > { %v9615_v21 = vpack.c.bf16 %v1913_v42, %v1912_v4 }
 0x36a   : > { %7645 = vmatpush1.bf16.msra.mxu0 %v7644_v22  ;;  %7659 = vmatprep.subr.bf16.mxu1 %v9615_v21  ;;  %v1916_v22 = vld [vmem:[#allocation5 + $0x3a0] sm:$0xff] }
 0x36b   : > { %7647 = vmatprep.subr.bf16.mxu0 %v7646_v2  ;;  %v1917_v2 = vld [vmem:[#allocation5 + $0x3b0] sm:$0xff]  ;;  %7661 = vmatpush3.bf16.msra.mxu1 %v9615_v21 }
 0x36c   : > { %7663 = vmatprep.subr.bf16.mxu1 %v9617_v5  ;;  %v9622_v18 = vpack.c.bf16 %v1917_v2, %v1916_v22 }
 0x36e   : > { %7649 = vmatpush1.bf16.msra.mxu0 %v7648_v44  ;;  %v1919_v44 = vld [vmem:[#allocation5 + $0x3d0] sm:$0xff] }
 0x36f   : > { %7665 = vmatpush3.bf16.msra.mxu1 %v9617_v5 }
 0x370   : > { %7667 = vmatprep.subr.bf16.mxu1 %v9622_v18 }
 0x373   : > { %7669 = vmatpush3.bf16.msra.mxu1 %v9622_v18 }
 0x412   : > { %v1081_v32 = vpop.f32.mrb[4].mxu1 }
 0x413   : > { %v1086_v36 = vmax.f32 %v1081_v32, 1e-16  ;;  %v1083_v40 = vpop.f32.mrb[5].mxu1  ;;  %v9626_v32 = vpack.c.bf16 %v1919_v44, %v1918_v53 }
 0x415   : > { %8405 = vrcp.f32 %v1086_v36  ;;  %7671 = vmatprep.subr.bf16.mxu1 %v9626_v32  ;;  %v1920_v36 = vld [vmem:[#allocation5 + $0x3e0] sm:$0xff] }
 0x416   : > { %7673 = vmatpush3.bf16.msra.mxu1 %v9626_v32 }
 0x41f   : > { %v8406_v51 = vpop.eup %8405 }
 0x420   : > { %v1088_v15 = vmul.f32 %v8406_v51, %v1083_v40  ;;  %v1921_v40 = vld [vmem:[#allocation5 + $0x3f0] sm:$0xff] }
 0x421   : > { %v9631_v51 = vpack.c.bf16 %v1921_v40, %v1920_v36 }
 0x422   : > { %v1775_v30 = vadd.f32 %v1774_v16, %v1088_v15  ;;  %v1923_v15 = vld [vmem:[#allocation5 + $0x410] sm:$0xff] }
 0x423   : > { %7675 = vmatprep.subr.bf16.mxu1 %v9631_v51 }
 0x424   : > { %v1778_v35 = vmul.f32 %v1777_v10, %v1775_v30  ;;  %7677 = vmatpush3.bf16.msra.mxu1 %v9631_v51  ;;  %v1818_v30 = vld [vmem:[#allocation5 + $0xf86] ss:$8 sm:$0x3] }
 0x426   : > { %v9595_v23 = vadd.f32 %v1780_v25, %v1778_v35 }
 0x428   : > { %v11575_v60 = vmax.f32 %v9595_v23, 0.0 }
 0x42a   : > { %1895 = vmatmul.mubr.f32.vlgmr.msra.gmra.mrb[34].mxu0 %v11575_v60 }
 0x42b   : > { %1900 = vmatprep.mubr.f32.mxu0 %v11672_v7 }
 0x432   : > { %v1766_v13 = vpop.f32.mrb[6].mxu1 }
 0x433   : > { %v1771_v61 = vmax.f32 %v1766_v13, 1e-16  ;;  %v1768_v11 = vpop.f32.mrb[7].mxu1 }
 0x435   : > { %8407 = vrcp.f32 %v1771_v61 }
 0x43f   : > { %v8408_v38 = vpop.eup %8407 }
 0x440   : > { %v1773_v31 = vmul.f32 %v8408_v38, %v1768_v11  ;;  %v9644_v11 = vld [vmem:[#allocation5 + $0xf87] ss:$0 sm:$0xff] }
 0x441   : > { %v2032_v26 = vmul.f32 %v9644_v11, %v9037_v46  ;;  %v2030_v37 = vmul.f32 %v9644_v11, %v9035_v45  ;;  %v2034_v4 = vmul.f32 %v9644_v11, %v9043_v49  ;;  %v2036_v42 = vmul.f32 %v9644_v11, %v9047_v52 }
 0x442   : > { %v1776_v1 = vadd.f32 %v1774_v16, %v1773_v31  ;;  %v1922_v16 = vld [vmem:[#allocation5 + $0x400] sm:$0xff]  ;;  %v2038_v53 = vmul.f32 %v9644_v11, %v9051_v59  ;;  %v2040_v44 = vmul.f32 %v9644_v11, %v9059_v3 }
 0x444   : > { %v1779_v39 = vmul.f32 %v1777_v10, %v1776_v1  ;;  %v9633_v10 = vpack.c.bf16 %v1923_v15, %v1922_v16  ;;  %v1823_v1 = vrot.slane %v1818_v30, %v8939_v54 }
 0x446   : > { %v9601_v19 = vadd.f32 %v1780_v25, %v1779_v39  ;;  %7679 = vmatprep.subr.bf16.mxu1 %v9633_v10  ;;  %v9641_v25 = vrot.slane %v1818_v30, %v8942_v55 }
 0x447   : > { %7681 = vmatpush3.bf16.msra.mxu1 %v9633_v10 }
 0x448   : > { %v11574_v56 = vmax.f32 %v9601_v19, 0.0  ;;  %7715 = vmatprep.subr.bf16.mxu1 %v9607_v43 }
 0x44a   : > { %1901 = vmatmul.mubr.f32.gmra.mrb[36].mxu0 %v11574_v56 }
 0x44b   : > { %2439 = vmatprep.mubr.f32.mxu0 %v11672_v7 }
 0x4fd   : > { %v1896_v35 = vpop.f32.mrb[34].mxu0 }
 0x4fe   : > { %v1898_v13 = vpop.f32.mrb[35].mxu0  ;;  %v9664_v36 = vadd.f32 %v1896_v35, %v1823_v1 }
 0x4ff   : > { %v1899_v61 = vadd.f32 %v1898_v13, %v9641_v25 }
 0x501   : > { %v1925_v38 = vcombine.high %v1899_v61, %v1899_v61  ;;  %v1932_v31 = vrot.slane %v1899_v61, %v9057_v0  ;;  %v2042_v61 = vmul.f32 %v9644_v11, %v9064_v14 }
 0x503   : > { %v1939_v39 = vrot.slane %v1925_v38, %v9057_v0  ;;  %v1940_v20 = vcombine.high %v1932_v31, %v1932_v31  ;;  %v1948_v41 = vrot.slane %v1932_v31, %v9057_v0 }
 0x505   : > { %v1941_v63 = vcombine.high %v1939_v39, %v1939_v39  ;;  %v1955_v28 = vrot.slane %v1939_v39, %v9057_v0  ;;  %v1962_v22 = vrot.slane %v1940_v20, %v9057_v0  ;;  %v1970_v2 = vcombine.high %v1948_v41, %v1948_v41 }
 0x506   : > { %v1977_v40 = vrot.slane %v1948_v41, %v8939_v54 }
 0x507   : > { %v1969_v16 = vrot.slane %v1941_v63, %v9057_v0  ;;  %v1971_v15 = vcombine.high %v1955_v28, %v1955_v28  ;;  %v1972_v30 = vcombine.high %v1962_v22, %v1962_v22  ;;  %v1981_v13 = vrot.slane %v1962_v22, %v8939_v54 }
 0x508   : > { %v1985_v38 = vrot.slane %v1970_v2, %v8939_v54  ;;  %v1993_v31 = vrot.slane %v1955_v28, %v8939_v54  ;;  %v2014_v39 = vadd.f32 %v1977_v40, %v9664_v36 }
 0x509   : > { %v1973_v20 = vcombine.high %v1969_v16, %v1969_v16  ;;  %v2016_v35 = vadd.f32 %v1981_v13, %v9664_v36  ;;  %v1989_v41 = vrot.slane %v1972_v30, %v8939_v54  ;;  %v1997_v63 = vrot.slane %v1969_v16, %v8939_v54 }
 0x50a   : > { %v2046_v56 = vadd.f32 %v2030_v37, %v2014_v39  ;;  %v2018_v60 = vadd.f32 %v1985_v38, %v9664_v36  ;;  %v2022_v22 = vadd.f32 %v1993_v31, %v9664_v36  ;;  %v9680_v14 = vrot.slane %v1971_v15, %v8939_v54 }
 0x50b   : > { %v9682_v2 = vadd.f32 %v2032_v26, %v2016_v35  ;;  %v2020_v28 = vadd.f32 %v1989_v41, %v9664_v36  ;;  %v2024_v3 = vadd.f32 %v1997_v63, %v9664_v36  ;;  %v9687_v59 = vrot.slane %v1973_v20, %v8939_v54 }
 0x50c   : > { %v2062_v30 = vmul.f32 0.2, %v2046_v56  ;;  %v9689_v52 = vadd.f32 %v2034_v4, %v2018_v60  ;;  %v9691_v37 = vadd.f32 %v2038_v53, %v2022_v22  ;;  %v2026_v16 = vadd.f32 %v9680_v14, %v9664_v36 }
 0x50d   : > { %v2044_v15 = vmul.f32 %v9644_v11, %v9085_v29  ;;  %v9697_v26 = vadd.f32 %v2036_v42, %v2020_v28  ;;  %v9699_v39 = vadd.f32 %v2040_v44, %v2024_v3  ;;  %v2028_v35 = vadd.f32 %v9687_v59, %v9664_v36  ;;  %v11706_v29 = vld [vmem:[#allocation33_spill] sm:$0xff] }
 0x50e   : > { %v2078_v20 = vmax.f32 %v2046_v56, %v2062_v30  ;;  %v9703_v49 = vadd.f32 %v2042_v61, %v2026_v16  ;;  %v2033_v4 = vmul.f32 %v9644_v11, %v9041_v48  ;;  %v2031_v53 = vmul.f32 %v9644_v11, %v9039_v47 }
 0x50f   : > { %v9705_v60 = vadd.f32 %v2044_v15, %v2028_v35  ;;  %v2035_v42 = vmul.f32 %v9644_v11, %v9045_v50  ;;  %v2037_v3 = vmul.f32 %v9644_v11, %v9049_v58  ;;  %v2039_v56 = vmul.f32 %v9644_v11, %v9053_v62 }
 0x510   : > { %6888 = vmatprep.mubr.f32.mxu1 %v2078_v20  ;;  %v2041_v44 = vmul.f32 %v9644_v11, %v9061_v8  ;;  %v2043_v22 = vmul.f32 %v9644_v11, %v9077_v24  ;;  %v2045_v28 = vmul.f32 %v9644_v11, %v9107_v6  ;;  %v2556_v30 = vmul.f32 %v9644_v11, %v9127_v57 }
 0x511   : > { %v2555_v35 = vmul.f32 %v9644_v11, %v9115_v17  ;;  %v9731_v20 = vmul.f32 %v9644_v11, %v9149_v9  ;;  %v2064_v24 = vmul.f32 0.2, %v9682_v2 }
 0x51d   : > { %v1902_v61 = vpop.f32.mrb[36].mxu0 }
 0x51e   : > { %v9725_v16 = vadd.f32 %v1902_v61, %v1823_v1  ;;  %v1904_v15 = vpop.f32.mrb[37].mxu0 }
 0x51f   : > { %v1905_v8 = vadd.f32 %v1904_v15, %v9641_v25 }
 0x520   : > { %v2015_v62 = vadd.f32 %v1977_v40, %v9725_v16  ;;  %v2017_v6 = vadd.f32 %v1981_v13, %v9725_v16  ;;  %v2019_v57 = vadd.f32 %v1985_v38, %v9725_v16  ;;  %v2021_v1 = vadd.f32 %v1989_v41, %v9725_v16  ;;  %v11705_v41 = vld [vmem:[#allocation30_spill] sm:$0xff] }
 0x521   : > { %v2450_v61 = vcombine.high %v1905_v8, %v1905_v8  ;;  %v2457_v58 = vrot.slane %v1905_v8, %v9057_v0  ;;  %v2023_v17 = vadd.f32 %v1993_v31, %v9725_v16  ;;  %v2025_v9 = vadd.f32 %v1997_v63, %v9725_v16 }
 0x522   : > { %v2047_v50 = vadd.f32 %v2031_v53, %v2015_v62  ;;  %v2049_v47 = vadd.f32 %v2033_v4, %v2017_v6  ;;  %v9742_v25 = vadd.f32 %v2035_v42, %v2019_v57  ;;  %v9744_v15 = vadd.f32 %v2037_v3, %v2021_v1  ;;  %v11707_v6 = vld [vmem:[#allocation32_spill] sm:$0xff] }
 0x523   : > { %v2464_v40 = vrot.slane %v2450_v61, %v9057_v0  ;;  %v2465_v13 = vcombine.high %v2457_v58, %v2457_v58  ;;  %v2473_v38 = vrot.slane %v2457_v58, %v9057_v0  ;;  %v9748_v48 = vadd.f32 %v2039_v56, %v2023_v17  ;;  %v11708_v58 = vld [vmem:[#allocation35_spill] sm:$0xff]  ;;  %v11709_v61 = vld [vmem:[#allocation34_spill] sm:$0xff] }
 0x524   : > { %v2557_v8 = vmul.f32 %v9644_v11, %v11705_v41  ;;  %v2560_v31 = vmul.f32 %v9644_v11, %v11706_v29  ;;  %v2063_v63 = vmul.f32 0.2, %v2047_v50  ;;  %v9754_v62 = vadd.f32 %v2041_v44, %v2025_v9  ;;  %v11710_v29 = vld [vmem:[#allocation37_spill] sm:$0xff] }
 0x525   : > { %v2559_v57 = vmul.f32 %v9644_v11, %v11707_v6  ;;  %v2487_v4 = vrot.slane %v2465_v13, %v9057_v0  ;;  %v2495_v53 = vcombine.high %v2473_v38, %v2473_v38  ;;  %v2066_v42 = vmul.f32 0.2, %v9689_v52 }
 0x526   : > { %v9762_v17 = vmul.f32 %v9644_v11, %v11708_v58  ;;  %v2502_v3 = vrot.slane %v2473_v38, %v8939_v54  ;;  %v2079_v56 = vmax.f32 %v2047_v50, %v2063_v63  ;;  %v2065_v1 = vmul.f32 0.2, %v2049_v47 }
 0x527   : > { %v9767_v9 = vmul.f32 %v9644_v11, %v11709_v61  ;;  %v2466_v44 = vcombine.high %v2464_v40, %v2464_v40  ;;  %v2506_v6 = vrot.slane %v2487_v4, %v8939_v54  ;;  %v2080_v13 = vmax.f32 %v9682_v2, %v2064_v24 }
 0x528   : > { %v2564_v41 = vmul.f32 %v9644_v11, %v11710_v29  ;;  %v9774_v45 = vrot.slane %v2464_v40, %v9057_v0  ;;  %v2540_v58 = vadd.f32 %v2502_v3, %v9725_v16  ;;  %6889 = vmatmul.mubr.f32.vlgmr.msra.gmra.mrb[8].mxu1 %v2079_v56  ;;  %v2068_v50 = vmul.f32 0.2, %v9697_v26 }
 0x529   : > { %v2510_v38 = vrot.slane %v2495_v53, %v8939_v54  ;;  %6891 = vmatprep.mubr.f32.mxu1 %v2080_v13  ;;  %7717 = vmatpush3.bf16.msra.mxu1 %v9607_v43  ;;  %v2082_v63 = vmax.f32 %v9689_v52, %v2066_v42  ;;  %v2067_v24 = vmul.f32 0.2, %v9742_v25  ;;  %v2027_v2 = vadd.f32 %v9680_v14, %v9725_v16 }
 0x52a   : > { %v9784_v29 = vadd.f32 %v2556_v30, %v2540_v58  ;;  %v2081_v40 = vmax.f32 %v2049_v47, %v2065_v1  ;;  %7719 = vmatprep.subr.bf16.mxu1 %v9609_v33  ;;  %v2029_v56 = vadd.f32 %v9687_v59, %v9725_v16  ;;  %v2539_v53 = vadd.f32 %v2502_v3, %v9664_v36  ;;  %v11711_v58 = vld [vmem:[#allocation36_spill] sm:$0xff] }
 0x52b   : > { %v2494_v13 = vrot.slane %v2466_v44, %v9057_v0  ;;  %v2497_v43 = vcombine.high %v2487_v4, %v2487_v4  ;;  %v9791_v61 = vadd.f32 %v2043_v22, %v2027_v2  ;;  %v2541_v52 = vadd.f32 %v2506_v6, %v9664_v36  ;;  %v11713_v2 = vld [vmem:[#allocation38_spill] sm:$0xff] }
 0x52c   : > { %v2518_v14 = vrot.slane %v9774_v45, %v8939_v54  ;;  %6892 = vmatmul.mubr.f32.gmra.mrb[10].mxu1 %v2081_v40  ;;  %v9796_v30 = vadd.f32 %v2045_v28, %v2029_v56  ;;  %v9798_v47 = vadd.f32 %v2555_v35, %v2539_v53  ;;  %v2542_v42 = vadd.f32 %v2506_v6, %v9725_v16  ;;  %v11714_v40 = vld [vmem:[#allocation41_spill] sm:$0xff] }
 0x52d   : > { %6894 = vmatprep.mubr.f32.mxu1 %v2082_v63  ;;  %7721 = vmatpush3.bf16.msra.mxu1 %v9609_v33  ;;  %v9802_v59 = vadd.f32 %v2557_v8, %v2541_v52  ;;  %v2543_v22 = vadd.f32 %v2510_v38, %v9664_v36  ;;  %v2544_v4 = vadd.f32 %v2510_v38, %v9725_v16  ;;  %v2069_v28 = vmul.f32 0.2, %v9744_v15  ;;  %v11712_v38 = vld [vmem:[#allocation39_spill] sm:$0xff] }
 0x52e   : > { %v2563_v3 = vmul.f32 %v9644_v11, %v11711_v58  ;;  %v2083_v1 = vmax.f32 %v9742_v25, %v2067_v24  ;;  %7723 = vmatprep.subr.bf16.mxu1 %v9615_v21  ;;  %v9812_v35 = vadd.f32 %v9731_v20, %v2542_v42  ;;  %v2084_v33 = vmax.f32 %v9697_v26, %v2068_v50 }
 0x52f   : > { %v2070_v8 = vmul.f32 0.2, %v9691_v37  ;;  %v9816_v6 = vadd.f32 %v2559_v57, %v2543_v22  ;;  %v9818_v44 = vadd.f32 %v2560_v31, %v2544_v4  ;;  %v2566_v63 = vmul.f32 %v9644_v11, %v11712_v38 }
 0x530   : > { %v2565_v25 = vmul.f32 %v9644_v11, %v11713_v2  ;;  %v2496_v24 = vcombine.high %v9774_v45, %v9774_v45  ;;  %6895 = vmatmul.mubr.f32.gmra.mrb[12].mxu1 %v2083_v1  ;;  %v2514_v20 = vrot.slane %v2497_v43, %v8939_v54  ;;  %v2568_v26 = vmul.f32 %v9644_v11, %v11714_v40 }
 0x531   : > { %v2498_v50 = vcombine.high %v2494_v13, %v2494_v13  ;;  %6897 = vmatprep.mubr.f32.mxu1 %v2084_v33  ;;  %7725 = vmatpush3.bf16.msra.mxu1 %v9615_v21  ;;  %v2071_v31 = vmul.f32 0.2, %v9748_v48  ;;  %v2547_v57 = vadd.f32 %v2518_v14, %v9664_v36  ;;  %v2085_v56 = vmax.f32 %v9744_v15, %v2069_v28 }
 0x532   : > { %7727 = vmatprep.subr.bf16.mxu1 %v9617_v5  ;;  %v2545_v45 = vadd.f32 %v2514_v20, %v9664_v36  ;;  %v2546_v53 = vadd.f32 %v2514_v20, %v9725_v16  ;;  %v2548_v43 = vadd.f32 %v2518_v14, %v9725_v16  ;;  %v2086_v52 = vmax.f32 %v9691_v37, %v2070_v8  ;;  %v11715_v14 = vld [vmem:[#allocation40_spill] sm:$0xff] }
 0x533   : > { %v2072_v42 = vmul.f32 0.2, %v9699_v39  ;;  %v9839_v22 = vadd.f32 %v2563_v3, %v2547_v57  ;;  %v2522_v21 = vrot.slane %v2494_v13, %v8939_v54  ;;  %v2526_v28 = vrot.slane %v2496_v24, %v8939_v54 }
 0x534   : > { %6898 = vmatmul.mubr.f32.gmra.mrb[14].mxu1 %v2085_v56  ;;  %v9843_v4 = vadd.f32 %v9767_v9, %v2545_v45  ;;  %v9846_v15 = vadd.f32 %v9762_v17, %v2546_v53  ;;  %v9848_v1 = vadd.f32 %v2564_v41, %v2548_v43  ;;  %v2567_v37 = vmul.f32 %v9644_v11, %v11715_v14 }
 0x535   : > { %6900 = vmatprep.mubr.f32.mxu1 %v2086_v52  ;;  %7729 = vmatpush3.bf16.msra.mxu1 %v9617_v5  ;;  %v2074_v3 = vmul.f32 0.2, %v9703_v49  ;;  %v2549_v13 = vadd.f32 %v2522_v21, %v9664_v36  ;;  %v2550_v9 = vadd.f32 %v2522_v21, %v9725_v16  ;;  %v2087_v33 = vmax.f32 %v9748_v48, %v2071_v31  ;;  %v11716_v31 = vld [vmem:[#allocation43_spill] sm:$0xff] }
 0x536   : > { %7731 = vmatprep.subr.bf16.mxu1 %v9622_v18  ;;  %v2073_v41 = vmul.f32 0.2, %v9754_v62  ;;  %v2551_v17 = vadd.f32 %v2526_v28, %v9664_v36  ;;  %v2530_v8 = vrot.slane %v2498_v50, %v8939_v54  ;;  %v2088_v24 = vmax.f32 %v9699_v39, %v2072_v42 }
 0x537   : > { %v9863_v20 = vadd.f32 %v2565_v25, %v2549_v13  ;;  %v9865_v5 = vadd.f32 %v2566_v63, %v2550_v9  ;;  %v2552_v57 = vadd.f32 %v2526_v28, %v9725_v16  ;;  %v2570_v45 = vmul.f32 %v9644_v11, %v11716_v31 }
 0x538   : > { %6901 = vmatmul.mubr.f32.gmra.mrb[16].mxu1 %v2087_v33  ;;  %v9868_v56 = vadd.f32 %v2567_v37, %v2551_v17  ;;  %v2089_v50 = vmax.f32 %v9754_v62, %v2073_v41  ;;  %v2075_v39 = vmul.f32 0.2, %v9791_v61  ;;  %v2554_v63 = vadd.f32 %v2530_v8, %v9725_v16 }
 0x539   : > { %6903 = vmatprep.mubr.f32.mxu1 %v2088_v24  ;;  %7733 = vmatpush3.bf16.msra.mxu1 %v9622_v18  ;;  %v9871_v48 = vadd.f32 %v2568_v26, %v2552_v57  ;;  %v2090_v25 = vmax.f32 %v9703_v49, %v2074_v3  ;;  %v2076_v53 = vmul.f32 0.2, %v9705_v60  ;;  %v2077_v62 = vmul.f32 0.2, %v9796_v30 }
 0x53a   : > { %7735 = vmatprep.subr.bf16.mxu1 %v9626_v32  ;;  %v9881_v43 = vadd.f32 %v2570_v45, %v2554_v63  ;;  %v2091_v18 = vmax.f32 %v9791_v61, %v2075_v39  ;;  %v2587_v52 = vmul.f32 0.2, %v9798_v47  ;;  %v2588_v49 = vmul.f32 0.2, %v9784_v29 }
 0x53b   : > { %v2092_v26 = vmax.f32 %v9705_v60, %v2076_v53  ;;  %v2093_v42 = vmax.f32 %v9796_v30, %v2077_v62  ;;  %v2589_v61 = vmul.f32 0.2, %v9802_v59  ;;  %v2590_v21 = vmul.f32 0.2, %v9812_v35  ;;  %v2987_v53 = vld [vmem:[#allocation5 + $0x420] sm:$0xff]  ;;  %v2992_v62 = vld [vmem:[#allocation5 + $0x448] sm:$0xff] }
 0x53c   : > { %6904 = vmatmul.mubr.f32.gmra.mrb[18].mxu1 %v2089_v50  ;;  %v2604_v60 = vmax.f32 %v9784_v29, %v2588_v49  ;;  %v2591_v28 = vmul.f32 0.2, %v9816_v6  ;;  %v2593_v3 = vmul.f32 0.2, %v9843_v4  ;;  %v2595_v13 = vmul.f32 0.2, %v9839_v22 }
 0x53d   : > { %6906 = vmatprep.mubr.f32.mxu1 %v2090_v25  ;;  %7737 = vmatpush3.bf16.msra.mxu1 %v9626_v32  ;;  %v2603_v32 = vmax.f32 %v9798_v47, %v2587_v52  ;;  %v2606_v30 = vmax.f32 %v9812_v35, %v2590_v21  ;;  %v2592_v47 = vmul.f32 0.2, %v9818_v44  ;;  %v2596_v9 = vmul.f32 0.2, %v9848_v1  ;;  %v2990_v25 = vld [vmem:[#allocation5 + $0x438] sm:$0xff] }
 0x53e   : > { %7739 = vmatprep.subr.bf16.mxu1 %v9631_v51  ;;  %v2607_v37 = vmax.f32 %v9816_v6, %v2591_v28  ;;  %v2611_v6 = vmax.f32 %v9839_v22, %v2595_v13  ;;  %v2597_v33 = vmul.f32 0.2, %v9863_v20  ;;  %v2553_v41 = vadd.f32 %v2530_v8, %v9664_v36 }
 0x53f   : > { %v2608_v29 = vmax.f32 %v9818_v44, %v2592_v47  ;;  %v11717_v44 = vld [vmem:[#allocation42_spill] sm:$0xff]  ;;  %v2598_v24 = vmul.f32 0.2, %v9865_v5  ;;  %v2600_v8 = vmul.f32 0.2, %v9871_v48 }
 0x540   : > { %6907 = vmatmul.mubr.f32.gmra.mrb[20].mxu1 %v2091_v18  ;;  %v2569_v17 = vmul.f32 %v9644_v11, %v11717_v44  ;;  %v2613_v57 = vmax.f32 %v9863_v20, %v2597_v33  ;;  %v11722_v33 = vld [vmem:[#allocation48_spill] sm:$0xff] }
 0x541   : > { %6909 = vmatprep.mubr.f32.mxu1 %v2092_v26  ;;  %7741 = vmatpush3.bf16.msra.mxu1 %v9631_v51  ;;  %v2605_v51 = vmax.f32 %v9802_v59, %v2589_v61  ;;  %v2609_v59 = vmax.f32 %v9843_v4, %v2593_v3  ;;  %v2612_v4 = vmax.f32 %v9848_v1, %v2596_v9  ;;  %v2602_v1 = vmul.f32 0.2, %v9881_v43  ;;  %v2994_v26 = vld [vmem:[#allocation5 + $0x458] sm:$0xff]  ;;  %v11718_v61 = vld [vmem:[#allocation44_spill] sm:$0xff] }
 0x542   : > { %7743 = vmatprep.subr.bf16.mxu1 %v9633_v10  ;;  %v2585_v45 = vadd.f32 %v2569_v17, %v2553_v41  ;;  %v2614_v22 = vmax.f32 %v9865_v5, %v2598_v24  ;;  %v2616_v11 = vmax.f32 %v9871_v48, %v2600_v8  ;;  %v2988_v5 = vld [vmem:[#allocation5 + $0x428] sm:$0xff]  ;;  %v7782_v49 = vpack.c.bf16 %v2994_v26, %v2992_v62  ;;  %v2991_v48 = vld [vmem:[#allocation5 + $0x440] sm:$0xff] }
 0x543   : > { %v2618_v20 = vmax.f32 %v9881_v43, %v2602_v1  ;;  %v7778_v18 = vpack.c.bf16 %v2990_v25, %v2988_v5  ;;  %v11725_v25 = vld [vmem:[#allocation51_spill] sm:$0xff] }
 0x544   : > { %6910 = vmatmul.mubr.f32.gmra.mrb[22].mxu1 %v2093_v42  ;;  %v2601_v39 = vmul.f32 0.2, %v2585_v45  ;;  %v2993_v42 = vld [vmem:[#allocation5 + $0x450] sm:$0xff] }
 0x545   : > { %7745 = vmatpush3.bf16.msra.mxu1 %v9633_v10  ;;  %6944 = vmatprep.mubr.f32.mxu1 %v2603_v32  ;;  %v2594_v10 = vmul.f32 0.2, %v9846_v15  ;;  %v7784_v32 = vpack.c.bf16 %v2993_v42, %v2991_v48 }
 0x546   : > { %v2617_v63 = vmax.f32 %v2585_v45, %v2601_v39  ;;  %7779 = vmatprep.subr.bf16.mxu1 %v7778_v18  ;;  %v11724_v39 = vld [vmem:[#allocation50_spill] sm:$0xff] }
 0x547   : > { %v2610_v35 = vmax.f32 %v9846_v15, %v2594_v10  ;;  %v2599_v15 = vmul.f32 0.2, %v9868_v56 }
 0x548   : > { %6945 = vmatmul.mubr.f32.vlgmr.msra.gmra.mrb[24].mxu1 %v2604_v60 }
 0x549   : > { %6947 = vmatprep.mubr.f32.mxu1 %v2605_v51  ;;  %v2615_v50 = vmax.f32 %v9868_v56, %v2599_v15  ;;  %v2989_v56 = vld [vmem:[#allocation5 + $0x430] sm:$0xff] }
 0x54a   : > { %v7780_v52 = vpack.c.bf16 %v2989_v56, %v2987_v53  ;;  %v11719_v51 = vld [vmem:[#allocation45_spill] sm:$0xff] }
 0x54c   : > { %6948 = vmatmul.mubr.f32.gmra.mrb[26].mxu1 %v2606_v30 }
 0x54d   : > { %6950 = vmatprep.mubr.f32.mxu1 %v2607_v37  ;;  %7781 = vmatpush1.bf16.msra.mxu1 %v7780_v52  ;;  %v11720_v37 = vld [vmem:[#allocation46_spill] sm:$0xff] }
 0x54e   : > { %7783 = vmatprep.subr.bf16.mxu1 %v7782_v49  ;;  %v11726_v49 = vld [vmem:[#allocation52_spill] sm:$0xff] }
 0x550   : > { %6951 = vmatmul.mubr.f32.gmra.mrb[28].mxu1 %v2608_v29 }
 0x551   : > { %6953 = vmatprep.mubr.f32.mxu1 %v2609_v59  ;;  %7785 = vmatpush1.bf16.msra.mxu1 %v7784_v32  ;;  %v11721_v59 = vld [vmem:[#allocation47_spill] sm:$0xff] }
 0x554   : > { %6954 = vmatmul.mubr.f32.gmra.mrb[30].mxu1 %v2610_v35 }
 0x555   : > { %6956 = vmatprep.mubr.f32.mxu1 %v2611_v6 }
 0x558   : > { %6957 = vmatmul.mubr.f32.gmra.mrb[32].mxu1 %v2612_v4 }
 0x559   : > { %6959 = vmatprep.mubr.f32.mxu1 %v2613_v57  ;;  %v11723_v57 = vld [vmem:[#allocation49_spill] sm:$0xff] }
 0x55c   : > { %6960 = vmatmul.mubr.f32.gmra.mrb[34].mxu1 %v2614_v22 }
 0x55d   : > { %6962 = vmatprep.mubr.f32.mxu1 %v2615_v50 }
 0x560   : > { %6963 = vmatmul.mubr.f32.gmra.mrb[36].mxu1 %v2616_v11 }
 0x561   : > { %6965 = vmatprep.mubr.f32.mxu1 %v2617_v63 }
 0x564   : > { %6966 = vmatmul.mubr.f32.gmra.mrb[38].mxu1 %v2618_v20 }
 0x565   : > { %3096 = vmatprep.mubr.f32.mxu1 %v11672_v7 }
 0x5fb   : > { %v6890_v43 = vpop.f32.mrb[8].mxu1 }
 0x5fc   : > { %v2240_v60 = vadd.f32 %v6890_v43, %v11718_v61  ;;  %v2160_v21 = vpop.f32.mrb[9].mxu1 }
 0x5fd   : > { %v2239_v28 = vadd.f32 %v2160_v21, %v11719_v51  ;;  %v11770_v51 = vld [vmem:[#allocation33_spill] sm:$0xff] }
 0x5ff   : > { %v2255_v30 = vmax.f32 %v2239_v28, %v2240_v60  ;;  %v6893_v47 = vpop.f32.mrb[10].mxu1 }
 0x600   : > { %v2242_v3 = vadd.f32 %v6893_v47, %v11720_v37  ;;  %v2170_v29 = vpop.f32.mrb[11].mxu1 }
 0x601   : > { %v2256_v10 = vrot.slane %v2255_v30, 4  ;;  %v2241_v13 = vadd.f32 %v2170_v29, %v11721_v59  ;;  %v11727_v29 = vld [vmem:[#allocation53_spill] sm:$0xff] }
 0x603   : > { %v2257_v35 = vmax.f32 %v2255_v30, %v2256_v10  ;;  %v2262_v9 = vmax.f32 %v2241_v13, %v2242_v3  ;;  %v6896_v6 = vpop.f32.mrb[12].mxu1 }
 0x604   : > { %v2244_v41 = vadd.f32 %v6896_v6, %v11722_v33  ;;  %v2180_v17 = vpop.f32.mrb[13].mxu1 }
 0x605   : > { %v2258_v4 = vrot.slane %v2257_v35, 2  ;;  %v2263_v24 = vrot.slane %v2262_v9, 4  ;;  %v2243_v15 = vadd.f32 %v2180_v17, %v11723_v57 }
 0x607   : > { %v2259_v45 = vmax.f32 %v2257_v35, %v2258_v4  ;;  %v2264_v22 = vmax.f32 %v2262_v9, %v2263_v24  ;;  %v2269_v8 = vmax.f32 %v2243_v15, %v2244_v41  ;;  %v6899_v50 = vpop.f32.mrb[14].mxu1 }
 0x608   : > { %v9933_v11 = vadd.f32 %v6899_v50, %v11724_v39  ;;  %v2190_v1 = vpop.f32.mrb[15].mxu1 }
 0x609   : > { %v2260_v63 = vrot.slane %v2259_v45, 1  ;;  %v2265_v20 = vrot.slane %v2264_v22, 2  ;;  %v2270_v5 = vrot.slane %v2269_v8, 4  ;;  %v9936_v53 = vadd.f32 %v2190_v1, %v11725_v25 }
 0x60b   : > { %v2261_v18 = vmax.f32 %v2259_v45, %v2260_v63  ;;  %v2266_v56 = vmax.f32 %v2264_v22, %v2265_v20  ;;  %v2271_v62 = vmax.f32 %v2269_v8, %v2270_v5  ;;  %v2276_v26 = vmax.f32 %v9936_v53, %v9933_v11  ;;  %v6902_v52 = vpop.f32.mrb[16].mxu1  ;;  %v11728_v22 = vld [vmem:[#allocation54_spill] sm:$0xff]  ;;  %v11729_v5 = vld [vmem:[#allocation55_spill] sm:$0xff] }
 0x60c   : > { %v9941_v48 = vadd.f32 %v6902_v52, %v11726_v49  ;;  %v2200_v42 = vpop.f32.mrb[17].mxu1 }
 0x60d   : > { %v2311_v32 = vsub.f32 %v2239_v28, %v2261_v18  ;;  %v2312_v43 = vsub.f32 %v2240_v60, %v2261_v18  ;;  %v2267_v21 = vrot.slane %v2266_v56, 1  ;;  %v2272_v30 = vrot.slane %v2271_v62, 2 }
 0x60e   : > { %v2277_v47 = vrot.slane %v2276_v26, 4  ;;  %v9944_v10 = vadd.f32 %v2200_v42, %v11727_v29 }
 0x60f   : > { %v2327_v35 = vmul.f32 1.442695, %v2311_v32  ;;  %v2329_v9 = vmul.f32 1.442695, %v2312_v43  ;;  %v2268_v6 = vmax.f32 %v2266_v56, %v2267_v21  ;;  %v2273_v17 = vmax.f32 %v2271_v62, %v2272_v30  ;;  %v6905_v4 = vpop.f32.mrb[18].mxu1  ;;  %v11730_v43 = vld [vmem:[#allocation56_spill] sm:$0xff] }
 0x610   : > { %v2278_v24 = vmax.f32 %v2276_v26, %v2277_v47  ;;  %v2283_v45 = vmax.f32 %v9944_v10, %v9941_v48  ;;  %v9949_v8 = vadd.f32 %v6905_v4, %v11728_v22  ;;  %v2210_v28 = vpop.f32.mrb[19].mxu1 }
 0x611   : > { %8409 = vpow2.f32 %v2327_v35  ;;  %v2313_v60 = vsub.f32 %v2241_v13, %v2268_v6  ;;  %v2314_v50 = vsub.f32 %v2242_v3, %v2268_v6  ;;  %v2274_v1 = vrot.slane %v2273_v17, 1  ;;  %v11731_v35 = vld [vmem:[#allocation57_spill] sm:$0xff] }
 0x612   : > { %v2279_v63 = vrot.slane %v2278_v24, 2  ;;  %v2284_v20 = vrot.slane %v2283_v45, 4  ;;  %v9952_v18 = vadd.f32 %v2210_v28, %v11729_v5  ;;  %8411 = vpow2.f32 %v2329_v9 }
 0x613   : > { %v2331_v56 = vmul.f32 1.442695, %v2313_v60  ;;  %v2275_v62 = vmax.f32 %v2273_v17, %v2274_v1  ;;  %v6908_v26 = vpop.f32.mrb[20].mxu1  ;;  %v2333_v3 = vmul.f32 1.442695, %v2314_v50 }
 0x614   : > { %v2280_v52 = vmax.f32 %v2278_v24, %v2279_v63  ;;  %v2285_v42 = vmax.f32 %v2283_v45, %v2284_v20  ;;  %v2290_v32 = vmax.f32 %v9952_v18, %v9949_v8  ;;  %v9957_v21 = vadd.f32 %v6908_v26, %v11730_v43  ;;  %v2220_v13 = vpop.f32.mrb[21].mxu1  ;;  %v11732_v26 = vld [vmem:[#allocation58_spill] sm:$0xff] }
 0x615   : > { %v2315_v30 = vsub.f32 %v2243_v15, %v2275_v62  ;;  %v2316_v47 = vsub.f32 %v2244_v41, %v2275_v62  ;;  %v9960_v6 = vadd.f32 %v2220_v13, %v11731_v35  ;;  %8413 = vpow2.f32 %v2331_v56  ;;  %v11733_v62 = vld [vmem:[#allocation59_spill] sm:$0xff] }
 0x616   : > { %v2281_v4 = vrot.slane %v2280_v52, 1  ;;  %v2286_v9 = vrot.slane %v2285_v42, 2  ;;  %v2291_v28 = vrot.slane %v2290_v32, 4  ;;  %8415 = vpow2.f32 %v2333_v3 }
 0x617   : > { %v2335_v17 = vmul.f32 1.442695, %v2315_v30  ;;  %v2337_v24 = vmul.f32 1.442695, %v2316_v47  ;;  %v2297_v45 = vmax.f32 %v9960_v6, %v9957_v21  ;;  %v6911_v60 = vpop.f32.mrb[22].mxu1 }
 0x618   : > { %v2282_v1 = vmax.f32 %v2280_v52, %v2281_v4  ;;  %v2287_v63 = vmax.f32 %v2285_v42, %v2286_v9  ;;  %v2292_v20 = vmax.f32 %v2290_v32, %v2291_v28  ;;  %v9965_v50 = vadd.f32 %v6911_v60, %v11732_v26  ;;  %v2230_v41 = vpop.f32.mrb[23].mxu1  ;;  %v11734_v60 = vld [vmem:[#allocation60_spill] sm:$0xff]  ;;  %v11735_v26 = vld [vmem:[#allocation61_spill] sm:$0xff] }
 0x619   : > { %v2298_v15 = vrot.slane %v2297_v45, 4  ;;  %v9968_v13 = vadd.f32 %v2230_v41, %v11733_v62  ;;  %8417 = vpow2.f32 %v2335_v17 }
 0x61a   : > { %v2317_v56 = vsub.f32 %v9936_v53, %v2282_v1  ;;  %v2318_v30 = vsub.f32 %v9933_v11, %v2282_v1  ;;  %v2288_v47 = vrot.slane %v2287_v63, 1  ;;  %8419 = vpow2.f32 %v2337_v24 }
 0x61b   : > { %v9972_v35 = vpop.eup %8409  ;;  %v2293_v52 = vrot.slane %v2292_v20, 2  ;;  %v2299_v42 = vmax.f32 %v2297_v45, %v2298_v15  ;;  %v2304_v32 = vmax.f32 %v9968_v13, %v9965_v50  ;;  %v6946_v4 = vpop.f32.mrb[24].mxu1 }
 0x61c   : > { %v2339_v3 = vmul.f32 1.442695, %v2317_v56  ;;  %v2341_v9 = vmul.f32 1.442695, %v2318_v30  ;;  %v2289_v28 = vmax.f32 %v2287_v63, %v2288_v47  ;;  %v9977_v41 = vadd.f32 %v6946_v4, %v11734_v60  ;;  %v2685_v17 = vpop.f32.mrb[25].mxu1  ;;  %v8412_v53 = vpop.eup %8411 }
 0x61d   : > { %v2294_v62 = vmax.f32 %v2292_v20, %v2293_v52  ;;  %v2300_v11 = vrot.slane %v2299_v42, 2  ;;  %v2305_v1 = vrot.slane %v2304_v32, 4  ;;  %v9980_v43 = vadd.f32 %v2685_v17, %v11735_v26  ;;  %v11736_v17 = vld [vmem:[#allocation62_spill] sm:$0xff] }
 0x61e   : > { %8421 = vpow2.f32 %v2339_v3  ;;  %v2319_v24 = vsub.f32 %v9944_v10, %v2289_v28  ;;  %v2320_v45 = vsub.f32 %v9941_v48, %v2289_v28  ;;  %v2359_v15 = vmul.f32 %v9972_v35, %v9664_v36 }
 0x61f   : > { %8423 = vpow2.f32 %v2341_v9  ;;  %v2295_v63 = vrot.slane %v2294_v62, 1  ;;  %v2301_v56 = vmax.f32 %v2299_v42, %v2300_v11  ;;  %v2306_v30 = vmax.f32 %v2304_v32, %v2305_v1  ;;  %v6949_v47 = vpop.f32.mrb[26].mxu1  ;;  %v9991_v10 = vpop.eup %8413  ;;  %v11737_v32 = vld [vmem:[#allocation63_spill] sm:$0xff] }
 0x620   : > { %v2343_v4 = vmul.f32 1.442695, %v2319_v24  ;;  %v2345_v20 = vmul.f32 1.442695, %v2320_v45  ;;  %v2780_v52 = vmax.f32 %v9980_v43, %v9977_v41  ;;  %v9989_v26 = vadd.f32 %v6949_v47, %v11736_v17  ;;  %v2695_v3 = vpop.f32.mrb[27].mxu1  ;;  %v9998_v24 = vpop.eup %8415 }
 0x621   : > { %v2296_v48 = vmax.f32 %v2294_v62, %v2295_v63  ;;  %v2302_v28 = vrot.slane %v2301_v56, 1  ;;  %v2307_v60 = vrot.slane %v2306_v30, 2  ;;  %v2360_v9 = vmul.f32 %v8412_v53, %v9725_v16 }
 0x622   : > { %8425 = vpow2.f32 %v2343_v4  ;;  %v2781_v42 = vrot.slane %v2780_v52, 4  ;;  %v9995_v11 = vadd.f32 %v2695_v3, %v11737_v32  ;;  %v7684_v1 = vpack.c.bf16 %v8412_v53, %v9972_v35 }
 0x623   : > { %8427 = vpow2.f32 %v2345_v20  ;;  %v2321_v45 = vsub.f32 %v9952_v18, %v2296_v48  ;;  %v2322_v47 = vsub.f32 %v9949_v8, %v2296_v48  ;;  %v2303_v17 = vmax.f32 %v2301_v56, %v2302_v28  ;;  %v6952_v62 = vpop.f32.mrb[28].mxu1  ;;  %v10002_v63 = vpop.eup %8417  ;;  %v11738_v28 = vld [vmem:[#allocation64_spill] sm:$0xff] }
 0x624   : > { %v2308_v5 = vmax.f32 %v2306_v30, %v2307_v60  ;;  %v2782_v22 = vmax.f32 %v2780_v52, %v2781_v42  ;;  %v7682_v4 = vpack.c.bf16 %v2360_v9, %v2359_v15  ;;  %v2787_v3 = vmax.f32 %v9995_v11, %v9989_v26  ;;  %v2705_v32 = vpop.f32.mrb[29].mxu1  ;;  %v10006_v29 = vpop.eup %8419 }
 0x625   : > { %v2347_v35 = vmul.f32 1.442695, %v2321_v45  ;;  %v2349_v53 = vmul.f32 1.442695, %v2322_v47  ;;  %v2323_v20 = vsub.f32 %v9960_v6, %v2303_v17  ;;  %v2324_v18 = vsub.f32 %v9957_v21, %v2303_v17 }
 0x626   : > { %v2309_v8 = vrot.slane %v2308_v5, 1  ;;  %v2783_v56 = vrot.slane %v2782_v22, 2  ;;  %7683 = vmatprep.subr.bf16.mxu0 %v7682_v4  ;;  %v2788_v48 = vrot.slane %v2787_v3, 4  ;;  %v10011_v60 = vadd.f32 %v6952_v62, %v11738_v28  ;;  %v11739_v4 = vld [vmem:[#allocation65_spill] sm:$0xff] }
 0x627   : > { %8429 = vpow2.f32 %v2347_v35  ;;  %v2351_v15 = vmul.f32 1.442695, %v2323_v20  ;;  %v2353_v30 = vmul.f32 1.442695, %v2324_v18  ;;  %7685 = vmatpush1.bf16.msra.mxu0 %v7684_v1  ;;  %v2361_v52 = vmul.f32 %v9991_v10, %v9664_v36  ;;  %v6955_v9 = vpop.f32.mrb[30].mxu1 }
 0x628   : > { %v10015_v42 = vpop.eup %8421  ;;  %8431 = vpow2.f32 %v2349_v53  ;;  %v2310_v6 = vmax.f32 %v2308_v5, %v2309_v8  ;;  %v2784_v21 = vmax.f32 %v2782_v22, %v2783_v56  ;;  %v2789_v17 = vmax.f32 %v2787_v3, %v2788_v48  ;;  %v2715_v45 = vpop.f32.mrb[31].mxu1  ;;  %v11740_v8 = vld [vmem:[#allocation66_spill] sm:$0xff] }
 0x629   : > { %v10017_v47 = vpop.eup %8423  ;;  %8433 = vpow2.f32 %v2351_v15  ;;  %v2362_v62 = vmul.f32 %v9998_v24, %v9725_v16  ;;  %v10022_v35 = vadd.f32 %v2705_v32, %v11739_v4  ;;  %v7688_v1 = vpack.c.bf16 %v9998_v24, %v9991_v10 }
 0x62a   : > { %8435 = vpow2.f32 %v2353_v30  ;;  %v2325_v20 = vsub.f32 %v9968_v13, %v2310_v6  ;;  %v2326_v5 = vsub.f32 %v9965_v50, %v2310_v6  ;;  %v2785_v22 = vrot.slane %v2784_v21, 1 }
 0x62b   : > { %v2790_v3 = vrot.slane %v2789_v17, 2  ;;  %v7686_v53 = vpack.c.bf16 %v2362_v62, %v2361_v52  ;;  %v2794_v18 = vmax.f32 %v10022_v35, %v10011_v60  ;;  %v10031_v56 = vadd.f32 %v6955_v9, %v11740_v8  ;;  %v6958_v48 = vpop.f32.mrb[32].mxu1  ;;  %v11741_v9 = vld [vmem:[#allocation67_spill] sm:$0xff] }
 0x62c   : > { %v10033_v32 = vpop.eup %8425  ;;  %v2355_v15 = vmul.f32 1.442695, %v2325_v20  ;;  %v2357_v4 = vmul.f32 1.442695, %v2326_v5  ;;  %v2786_v10 = vmax.f32 %v2784_v21, %v2785_v22  ;;  %v2363_v13 = vmul.f32 %v10002_v63, %v9664_v36  ;;  %v2725_v24 = vpop.f32.mrb[33].mxu1 }
 0x62d   : > { %v10037_v50 = vpop.eup %8427  ;;  %v2791_v30 = vmax.f32 %v2789_v17, %v2790_v3  ;;  %7687 = vmatprep.subr.bf16.mxu0 %v7686_v53  ;;  %v2795_v52 = vrot.slane %v2794_v18, 4  ;;  %v2364_v6 = vmul.f32 %v10006_v29, %v9725_v16  ;;  %v10042_v62 = vadd.f32 %v2715_v45, %v11741_v9  ;;  %v11742_v9 = vld [vmem:[#allocation68_spill] sm:$0xff] }
 0x62e   : > { %8437 = vpow2.f32 %v2355_v15  ;;  %v2836_v20 = vsub.f32 %v9980_v43, %v2786_v10  ;;  %v2837_v21 = vsub.f32 %v9977_v41, %v2786_v10  ;;  %7689 = vmatpush1.bf16.msra.mxu0 %v7688_v1  ;;  %v7692_v5 = vpack.c.bf16 %v10006_v29, %v10002_v63  ;;  %v11743_v10 = vld [vmem:[#allocation69_spill] sm:$0xff] }
 0x62f   : > { %8439 = vpow2.f32 %v2357_v4  ;;  %v2792_v22 = vrot.slane %v2791_v30, 1  ;;  %v2796_v17 = vmax.f32 %v2794_v18, %v2795_v52  ;;  %v7690_v3 = vpack.c.bf16 %v2364_v6, %v2363_v13  ;;  %v6961_v53 = vpop.f32.mrb[34].mxu1 }
 0x630   : > { %v2852_v8 = vmul.f32 1.442695, %v2836_v20  ;;  %v2854_v28 = vmul.f32 1.442695, %v2837_v21  ;;  %v2801_v45 = vmax.f32 %v10042_v62, %v10031_v56  ;;  %v10051_v15 = vadd.f32 %v6958_v48, %v11742_v9  ;;  %v2735_v43 = vpop.f32.mrb[35].mxu1 }
 0x631   : > { %v10053_v49 = vpop.eup %8429  ;;  %v2793_v41 = vmax.f32 %v2791_v30, %v2792_v22  ;;  %v2797_v1 = vrot.slane %v2796_v17, 2  ;;  %7691 = vmatprep.subr.bf16.mxu0 %v7690_v3  ;;  %v2365_v29 = vmul.f32 %v10015_v42, %v9664_v36  ;;  %v2366_v63 = vmul.f32 %v10017_v47, %v9725_v16 }
 0x632   : > { %v10059_v4 = vpop.eup %8431  ;;  %8441 = vpow2.f32 %v2852_v8  ;;  %v2802_v18 = vrot.slane %v2801_v45, 4  ;;  %7693 = vmatpush1.bf16.msra.mxu0 %v7692_v5  ;;  %v10062_v48 = vadd.f32 %v2725_v24, %v11743_v10  ;;  %v7696_v13 = vpack.c.bf16 %v10017_v47, %v10015_v42  ;;  %v11744_v5 = vld [vmem:[#allocation70_spill] sm:$0xff] }
 0x633   : > { %v10066_v30 = vpop.eup %8433  ;;  %8443 = vpow2.f32 %v2854_v28  ;;  %v2838_v52 = vsub.f32 %v9995_v11, %v2793_v41  ;;  %v2839_v6 = vsub.f32 %v9989_v26, %v2793_v41  ;;  %v2798_v20 = vmax.f32 %v2796_v17, %v2797_v1  ;;  %v6964_v21 = vpop.f32.mrb[36].mxu1  ;;  %v11745_v41 = vld [vmem:[#allocation71_spill] sm:$0xff] }
 0x634   : > { %v10070_v22 = vpop.eup %8435  ;;  %v2803_v8 = vmax.f32 %v2801_v45, %v2802_v18  ;;  %v7694_v3 = vpack.c.bf16 %v2366_v63, %v2365_v29  ;;  %v2808_v24 = vmax.f32 %v10062_v48, %v10051_v15  ;;  %v10075_v10 = vadd.f32 %v6961_v53, %v11744_v5  ;;  %v2745_v42 = vpop.f32.mrb[37].mxu1  ;;  %v11746_v63 = vld [vmem:[#allocation72_spill] sm:$0xff] }
 0x635   : > { %v2856_v47 = vmul.f32 1.442695, %v2838_v52  ;;  %v2858_v9 = vmul.f32 1.442695, %v2839_v6  ;;  %v2799_v28 = vrot.slane %v2798_v20, 1  ;;  %v2367_v11 = vmul.f32 %v10033_v32, %v9664_v36 }
 0x636   : > { %v2804_v26 = vrot.slane %v2803_v8, 2  ;;  %7695 = vmatprep.subr.bf16.mxu0 %v7694_v3  ;;  %v2809_v17 = vrot.slane %v2808_v24, 4  ;;  %v2368_v45 = vmul.f32 %v10037_v50, %v9725_v16  ;;  %v10082_v1 = vadd.f32 %v2735_v43, %v11745_v41 }
 0x637   : > { %8445 = vpow2.f32 %v2856_v47  ;;  %v2800_v29 = vmax.f32 %v2798_v20, %v2799_v28  ;;  %7697 = vmatpush1.bf16.msra.mxu0 %v7696_v13  ;;  %v7700_v53 = vpack.c.bf16 %v10037_v50, %v10033_v32  ;;  %v10087_v18 = vadd.f32 %v6964_v21, %v11746_v63  ;;  %v6967_v52 = vpop.f32.mrb[38].mxu1 }
 0x638   : > { %v10089_v6 = vpop.eup %8437  ;;  %8447 = vpow2.f32 %v2858_v9  ;;  %v2805_v3 = vmax.f32 %v2803_v8, %v2804_v26  ;;  %v2810_v5 = vmax.f32 %v2808_v24, %v2809_v17  ;;  %v7698_v25 = vpack.c.bf16 %v2368_v45, %v2367_v11  ;;  %v2755_v39 = vpop.f32.mrb[39].mxu1 }
 0x639   : > { %v10091_v57 = vpop.eup %8439  ;;  %v2840_v43 = vsub.f32 %v10022_v35, %v2800_v29  ;;  %v2841_v13 = vsub.f32 %v10011_v60, %v2800_v29  ;;  %v2815_v32 = vmax.f32 %v10082_v1, %v10075_v10  ;;  %v2369_v50 = vmul.f32 %v10053_v49, %v9664_v36 }
 0x63a   : > { %v2806_v20 = vrot.slane %v2805_v3, 1  ;;  %v2811_v21 = vrot.slane %v2810_v5, 2  ;;  %7699 = vmatprep.subr.bf16.mxu0 %v7698_v25  ;;  %v2370_v9 = vmul.f32 %v10059_v4, %v9725_v16  ;;  %v10102_v8 = vadd.f32 %v2745_v42, %v9498_v34 }
 0x63b   : > { %v2860_v24 = vmul.f32 1.442695, %v2840_v43  ;;  %v2862_v47 = vmul.f32 1.442695, %v2841_v13  ;;  %v2816_v35 = vrot.slane %v2815_v32, 4  ;;  %7701 = vmatpush1.bf16.msra.mxu0 %v7700_v53  ;;  %v7704_v60 = vpack.c.bf16 %v10059_v4, %v10053_v49 }
 0x63c   : > { %v10106_v28 = vpop.eup %8441  ;;  %v2807_v11 = vmax.f32 %v2805_v3, %v2806_v20  ;;  %v2812_v26 = vmax.f32 %v2810_v5, %v2811_v21  ;;  %v7702_v17 = vpack.c.bf16 %v2370_v9, %v2369_v50  ;;  %v2822_v25 = vmax.f32 %v10102_v8, %v10087_v18 }
 0x63d   : > { %v10110_v45 = vpop.eup %8443  ;;  %8449 = vpow2.f32 %v2860_v24  ;;  %v2817_v42 = vmax.f32 %v2815_v32, %v2816_v35  ;;  %v10113_v29 = vadd.f32 %v6967_v52, %v9520_v27  ;;  %v2371_v53 = vmul.f32 %v10066_v30, %v9664_v36 }
 0x63e   : > { %8451 = vpow2.f32 %v2862_v47  ;;  %v2842_v49 = vsub.f32 %v10042_v62, %v2807_v11  ;;  %v2843_v4 = vsub.f32 %v10031_v56, %v2807_v11  ;;  %v2813_v5 = vrot.slane %v2812_v26, 1  ;;  %7703 = vmatprep.subr.bf16.mxu0 %v7702_v17 }
 0x63f   : > { %v2818_v3 = vrot.slane %v2817_v42, 2  ;;  %v2823_v43 = vrot.slane %v2822_v25, 4  ;;  %7705 = vmatpush1.bf16.msra.mxu0 %v7704_v60  ;;  %v2372_v13 = vmul.f32 %v10070_v22, %v9725_v16  ;;  %v10122_v32 = vadd.f32 %v2755_v39, %v9528_v12 }
 0x640   : > { %v2864_v52 = vmul.f32 1.442695, %v2842_v49  ;;  %v2866_v50 = vmul.f32 1.442695, %v2843_v4  ;;  %v2814_v20 = vmax.f32 %v2812_v26, %v2813_v5  ;;  %v7708_v21 = vpack.c.bf16 %v10070_v22, %v10066_v30 }
 0x641   : > { %v10126_v62 = vpop.eup %8445  ;;  %v2819_v56 = vmax.f32 %v2817_v42, %v2818_v3  ;;  %v2824_v9 = vmax.f32 %v2822_v25, %v2823_v43  ;;  %v7706_v24 = vpack.c.bf16 %v2372_v13, %v2371_v53  ;;  %v2829_v47 = vmax.f32 %v10122_v32, %v10113_v29 }
 0x642   : > { %v10130_v35 = vpop.eup %8447  ;;  %8453 = vpow2.f32 %v2864_v52  ;;  %v2844_v39 = vsub.f32 %v10062_v48, %v2814_v20  ;;  %v2845_v60 = vsub.f32 %v10051_v15, %v2814_v20  ;;  %v2373_v11 = vmul.f32 %v10089_v6, %v9664_v36 }
 0x643   : > { %8455 = vpow2.f32 %v2866_v50  ;;  %v2820_v30 = vrot.slane %v2819_v56, 1  ;;  %v2825_v22 = vrot.slane %v2824_v9, 2  ;;  %7707 = vmatprep.subr.bf16.mxu0 %v7706_v24  ;;  %v2830_v26 = vrot.slane %v2829_v47, 4 }
 0x644   : > { %v2868_v17 = vmul.f32 1.442695, %v2844_v39  ;;  %v2870_v25 = vmul.f32 1.442695, %v2845_v60  ;;  %7709 = vmatpush1.bf16.msra.mxu0 %v7708_v21  ;;  %v2374_v42 = vmul.f32 %v10091_v57, %v9725_v16  ;;  %v7712_v53 = vpack.c.bf16 %v10091_v57, %v10089_v6 }
 0x645   : > { %v2821_v48 = vmax.f32 %v2819_v56, %v2820_v30  ;;  %v2826_v49 = vmax.f32 %v2824_v9, %v2825_v22  ;;  %v2831_v15 = vmax.f32 %v2829_v47, %v2830_v26  ;;  %v2884_v4 = vmul.f32 %v10106_v28, %v9664_v36 }
 0x646   : > { %8457 = vpow2.f32 %v2868_v17  ;;  %v7710_v5 = vpack.c.bf16 %v2374_v42, %v2373_v11  ;;  %v2885_v3 = vmul.f32 %v10110_v45, %v9725_v16  ;;  %v7748_v43 = vpack.c.bf16 %v10110_v45, %v10106_v28 }
 0x647   : > { %v8450_v13 = vpop.eup %8449  ;;  %8459 = vpow2.f32 %v2870_v25  ;;  %v2846_v52 = vsub.f32 %v10082_v1, %v2821_v48  ;;  %v2847_v57 = vsub.f32 %v10075_v10, %v2821_v48  ;;  %v2827_v6 = vrot.slane %v2826_v49, 1  ;;  %v8613_v25 = vld [vmem:[#allocation5 + $0x10] sm:$0xff] }
 0x648   : > { %v8452_v50 = vpop.eup %8451  ;;  %v2832_v20 = vrot.slane %v2831_v15, 2  ;;  %7711 = vmatprep.subr.bf16.mxu0 %v7710_v5  ;;  %v7746_v21 = vpack.c.bf16 %v2885_v3, %v2884_v4  ;;  %v2886_v56 = vmul.f32 %v10126_v62, %v9664_v36  ;;  %v2887_v9 = vmul.f32 %v10130_v35, %v9725_v16 }
 0x649   : > { %v2872_v24 = vmul.f32 1.442695, %v2846_v52  ;;  %v2874_v47 = vmul.f32 1.442695, %v2847_v57  ;;  %v2828_v28 = vmax.f32 %v2826_v49, %v2827_v6  ;;  %7713 = vmatpush1.bf16.msra.mxu0 %v7712_v53  ;;  %v7752_v1 = vpack.c.bf16 %v10130_v35, %v10126_v62 }
 0x64a   : > { %v2833_v45 = vmax.f32 %v2831_v15, %v2832_v20  ;;  %7747 = vmatprep.subr.bf16.mxu0 %v7746_v21  ;;  %v7750_v10 = vpack.c.bf16 %v2887_v9, %v2886_v56  ;;  %v2888_v39 = vmul.f32 %v8450_v13, %v9664_v36  ;;  %v2889_v60 = vmul.f32 %v8452_v50, %v9725_v16 }
 0x64b   : > { %8461 = vpow2.f32 %v2872_v24  ;;  %v2848_v11 = vsub.f32 %v10102_v8, %v2828_v28  ;;  %v2849_v30 = vsub.f32 %v10087_v18, %v2828_v28  ;;  %v7756_v22 = vpack.c.bf16 %v8452_v50, %v8450_v13 }
 0x64c   : > { %v8454_v26 = vpop.eup %8453  ;;  %8463 = vpow2.f32 %v2874_v47  ;;  %v2834_v17 = vrot.slane %v2833_v45, 1  ;;  %2440 = vmatmul.mubr.f32.vlgmr.msra.gmra.mrb[38].mxu0 %v8613_v25  ;;  %v7754_v42 = vpack.c.bf16 %v2889_v60, %v2888_v39 }
 0x64d   : > { %v8456_v62 = vpop.eup %8455  ;;  %v2876_v35 = vmul.f32 1.442695, %v2848_v11  ;;  %v2878_v53 = vmul.f32 1.442695, %v2849_v30  ;;  %7749 = vmatpush1.bf16.msra.mxu0 %v7748_v43  ;;  %v2890_v48 = vmul.f32 %v8454_v26, %v9664_v36  ;;  %2964 = vmatprep.mubr.f32.mxu0 %v11672_v7 }
 0x64e   : > { %v2835_v49 = vmax.f32 %v2833_v45, %v2834_v17  ;;  %7751 = vmatprep.subr.bf16.mxu0 %v7750_v10  ;;  %v2891_v8 = vmul.f32 %v8456_v62, %v9725_v16  ;;  %v7760_v18 = vpack.c.bf16 %v8456_v62, %v8454_v26  ;;  %v2998_v62 = vld [vmem:[#allocation5 + $0x478] sm:$0xff] }
 0x64f   : > { %8465 = vpow2.f32 %v2876_v35 }
 0x650   : > { %v8458_v15 = vpop.eup %8457  ;;  %8467 = vpow2.f32 %v2878_v53  ;;  %v2850_v4 = vsub.f32 %v10122_v32, %v2835_v49  ;;  %v2851_v5 = vsub.f32 %v10113_v29, %v2835_v49  ;;  %v7758_v3 = vpack.c.bf16 %v2891_v8, %v2890_v48  ;;  %v2995_v53 = vld [vmem:[#allocation5 + $0x460] sm:$0xff]  ;;  %v2997_v48 = vld [vmem:[#allocation5 + $0x470] sm:$0xff]  ;;  %v3000_v8 = vld [vmem:[#allocation5 + $0x488] sm:$0xff] }
 0x651   : > { %v8460_v13 = vpop.eup %8459  ;;  %7753 = vmatpush1.bf16.msra.mxu0 %v7752_v1  ;;  %v2892_v43 = vmul.f32 %v8458_v15, %v9664_v36  ;;  %v7788_v49 = vpack.c.bf16 %v2997_v48, %v2995_v53  ;;  %v2980_v48 = vld [vmem:[#allocation5 + $0xf92] ss:$0 sm:$0xff] }
 0x652   : > { %v2880_v52 = vmul.f32 1.442695, %v2850_v4  ;;  %v2882_v57 = vmul.f32 1.442695, %v2851_v5  ;;  %7755 = vmatprep.subr.bf16.mxu0 %v7754_v42  ;;  %v2893_v6 = vmul.f32 %v8460_v13, %v9725_v16  ;;  %v7764_v50 = vpack.c.bf16 %v8460_v13, %v8458_v15  ;;  %v2996_v42 = vld [vmem:[#allocation5 + $0x468] sm:$0xff]  ;;  %v3001_v15 = vld [vmem:[#allocation5 + $0x490] sm:$0xff] }
 0x653   : > { %v7786_v35 = vpack.c.bf16 %v2998_v62, %v2996_v42  ;;  %v3004_v5 = vld [vmem:[#allocation5 + $0x4a8] sm:$0xff]  ;;  %v2974_v42 = vld [vmem:[#allocation5 + $0xf90] ss:$0 sm:$0xff] }
 0x654   : > { %8469 = vpow2.f32 %v2880_v52  ;;  %v7762_v20 = vpack.c.bf16 %v2893_v6, %v2892_v43  ;;  %v3005_v43 = vld [vmem:[#allocation5 + $0x4b0] sm:$0xff]  ;;  %v3010_v6 = vld [vmem:[#allocation5 + $0x4d8] sm:$0xff] }
 0x655   : > { %v8462_v21 = vpop.eup %8461  ;;  %8471 = vpow2.f32 %v2882_v57  ;;  %7757 = vmatpush1.bf16.msra.mxu0 %v7756_v22  ;;  %7787 = vmatprep.subr.bf16.mxu1 %v7786_v35  ;;  %v3008_v57 = vld [vmem:[#allocation5 + $0x4c8] sm:$0xff]  ;;  %v2977_v35 = vld [vmem:[#allocation5 + $0xf91] ss:$0 sm:$0xff] }
 0x656   : > { %v8464_v56 = vpop.eup %8463  ;;  %7759 = vmatprep.subr.bf16.mxu0 %v7758_v3  ;;  %v2894_v29 = vmul.f32 %v8462_v21, %v9664_v36  ;;  %7789 = vmatpush1.bf16.msra.mxu1 %v7788_v49  ;;  %v3006_v3 = vld [vmem:[#allocation5 + $0x4b8] sm:$0xff] }
 0x657   : > { %v2895_v32 = vmul.f32 %v8464_v56, %v9725_v16  ;;  %v7768_v9 = vpack.c.bf16 %v8464_v56, %v8462_v21  ;;  %v7794_v13 = vpack.c.bf16 %v3006_v3, %v3004_v5  ;;  %v3009_v21 = vld [vmem:[#allocation5 + $0x4d0] sm:$0xff] }
 0x659   : > { %v8466_v24 = vpop.eup %8465  ;;  %7761 = vmatpush1.bf16.msra.mxu0 %v7760_v18  ;;  %v7766_v47 = vpack.c.bf16 %v2895_v32, %v2894_v29  ;;  %v3012_v29 = vld [vmem:[#allocation5 + $0x4e8] sm:$0xff]  ;;  %v3014_v32 = vld [vmem:[#allocation5 + $0x4f8] sm:$0xff] }
 0x65a   : > { %v8468_v28 = vpop.eup %8467  ;;  %7763 = vmatprep.subr.bf16.mxu0 %v7762_v20  ;;  %v2896_v1 = vmul.f32 %v8466_v24, %v9664_v36  ;;  %v3007_v20 = vld [vmem:[#allocation5 + $0x4c0] sm:$0xff] }
 0x65b   : > { %v2897_v45 = vmul.f32 %v8468_v28, %v9725_v16  ;;  %v7772_v10 = vpack.c.bf16 %v8468_v28, %v8466_v24  ;;  %v7800_v56 = vpack.c.bf16 %v3009_v21, %v3007_v20  ;;  %v3011_v24 = vld [vmem:[#allocation5 + $0x4e0] sm:$0xff]  ;;  %v3111_v20 = vld [vmem:[#allocation5 + $0x530] sm:$0xff] }
 0x65d   : > { %7765 = vmatpush1.bf16.msra.mxu0 %v7764_v50  ;;  %v7770_v39 = vpack.c.bf16 %v2897_v45, %v2896_v1  ;;  %v7798_v50 = vpack.c.bf16 %v3010_v6, %v3008_v57  ;;  %v3016_v1 = vld [vmem:[#allocation5 + $0x508] sm:$0xff]  ;;  %v3018_v45 = vld [vmem:[#allocation5 + $0x518] sm:$0xff] }
 0x65e   : > { %v8470_v60 = vpop.eup %8469  ;;  %7767 = vmatprep.subr.bf16.mxu0 %v7766_v47  ;;  %v3013_v47 = vld [vmem:[#allocation5 + $0x4f0] sm:$0xff] }
 0x65f   : > { %v8472_v11 = vpop.eup %8471  ;;  %v2898_v30 = vmul.f32 %v8470_v60, %v9664_v36  ;;  %v3002_v36 = vld [vmem:[#allocation5 + $0x498] sm:$0xff]  ;;  %v7804_v28 = vpack.c.bf16 %v3013_v47, %v3011_v24  ;;  %v3116_v47 = vld [vmem:[#allocation5 + $0x580] sm:$0xff] }
 0x660   : > { %v2899_v22 = vmul.f32 %v8472_v11, %v9725_v16  ;;  %v7776_v26 = vpack.c.bf16 %v8472_v11, %v8470_v60  ;;  %v7790_v18 = vpack.c.bf16 %v3002_v36, %v3000_v8  ;;  %v2999_v16 = vld [vmem:[#allocation5 + $0x480] sm:$0xff]  ;;  %v3017_v60 = vld [vmem:[#allocation5 + $0x510] sm:$0xff]  ;;  %v11747_v36 = vmax.f32 %v9595_v23, 0.0 }
 0x661   : > { %7769 = vmatpush1.bf16.msra.mxu0 %v7768_v9  ;;  %v7792_v4 = vpack.c.bf16 %v3001_v15, %v2999_v16  ;;  %v7802_v9 = vpack.c.bf16 %v3014_v32, %v3012_v29  ;;  %v11749_v23 = vmax.f32 %v9601_v19, 0.0  ;;  %v3113_v29 = vld [vmem:[#allocation5 + $0x550] sm:$0xff]  ;;  %v3114_v19 = vld [vmem:[#allocation5 + $0x560] sm:$0xff] }
 0x662   : > { %7771 = vmatprep.subr.bf16.mxu0 %v7770_v39  ;;  %v7774_v17 = vpack.c.bf16 %v2899_v22, %v2898_v30  ;;  %7791 = vmatprep.subr.bf16.mxu1 %v7790_v18  ;;  %v3015_v39 = vld [vmem:[#allocation5 + $0x500] sm:$0xff] }
 0x663   : > { %7793 = vmatpush1.bf16.msra.mxu1 %v7792_v4  ;;  %v7808_v11 = vpack.c.bf16 %v3017_v60, %v3015_v39  ;;  %v3120_v60 = vld [vmem:[#allocation5 + $0x5c0] sm:$0xff] }
 0x664   : > { %7795 = vmatprep.subr.bf16.mxu1 %v7794_v13 }
 0x665   : > { %7773 = vmatpush1.bf16.msra.mxu0 %v7772_v10  ;;  %v7806_v10 = vpack.c.bf16 %v3018_v45, %v3016_v1  ;;  %v3118_v45 = vld [vmem:[#allocation5 + $0x5a0] sm:$0xff] }
 0x666   : > { %7775 = vmatprep.subr.bf16.mxu0 %v7774_v17 }
 0x669   : > { %7777 = vmatpush1.bf16.msra.mxu0 %v7776_v26 }
 0x66c   : > { %2965 = vmatmul.mubr.f32.vlgmr.msra.gmra.mrb[40].mxu0 %v8613_v25  ;;  %v3003_v25 = vld [vmem:[#allocation5 + $0x4a0] sm:$0xff] }
 0x66d   : > { %v7796_v52 = vpack.c.bf16 %v3005_v43, %v3003_v25 }
 0x66f   : > { %7797 = vmatpush1.bf16.msra.mxu1 %v7796_v52 }
 0x670   : > { %7799 = vmatprep.subr.bf16.mxu1 %v7798_v50  ;;  %v3110_v50 = vld [vmem:[#allocation5 + $0x520] sm:$0xff] }
 0x671   : > { %v10187_v21 = vpack.c.bf16 %v3111_v20, %v3110_v50  ;;  %v11752_v20 = vld [vmem:[#allocation16_spill] sm:$0xff] }
 0x673   : > { %7801 = vmatpush1.bf16.msra.mxu1 %v7800_v56  ;;  %v3112_v56 = vld [vmem:[#allocation5 + $0x540] sm:$0xff]  ;;  %7811 = vmatprep.subr.bf16.mxu0 %v10187_v21 }
 0x674   : > { %7803 = vmatprep.subr.bf16.mxu1 %v7802_v9  ;;  %v10190_v32 = vpack.c.bf16 %v3113_v29, %v3112_v56  ;;  %7813 = vmatpush3.bf16.msra.mxu0 %v10187_v21  ;;  %v3115_v9 = vld [vmem:[#allocation5 + $0x570] sm:$0xff]  ;;  %v11753_v29 = vld [vmem:[#allocation18_spill] sm:$0xff] }
 0x675   : > { %v10195_v24 = vpack.c.bf16 %v3115_v9, %v3114_v19 }
 0x676   : > { %7815 = vmatprep.subr.bf16.mxu0 %v10190_v32 }
 0x677   : > { %7805 = vmatpush1.bf16.msra.mxu1 %v7804_v28  ;;  %v3117_v28 = vld [vmem:[#allocation5 + $0x590] sm:$0xff] }
 0x678   : > { %7807 = vmatprep.subr.bf16.mxu1 %v7806_v10  ;;  %7817 = vmatpush3.bf16.msra.mxu0 %v10190_v32  ;;  %v10197_v1 = vpack.c.bf16 %v3117_v28, %v3116_v47  ;;  %v3119_v10 = vld [vmem:[#allocation5 + $0x5b0] sm:$0xff] }
 0x679   : > { %7819 = vmatprep.subr.bf16.mxu0 %v10195_v24  ;;  %v10202_v39 = vpack.c.bf16 %v3119_v10, %v3118_v45  ;;  %v11754_v10 = vld [vmem:[#allocation20_spill] sm:$0xff] }
 0x67b   : > { %7809 = vmatpush1.bf16.msra.mxu1 %v7808_v11  ;;  %v3121_v11 = vld [vmem:[#allocation5 + $0x5d0] sm:$0xff] }
 0x67c   : > { %7821 = vmatpush3.bf16.msra.mxu0 %v10195_v24 }
 0x67d   : > { %7823 = vmatprep.subr.bf16.mxu0 %v10197_v1 }
 0x680   : > { %7825 = vmatpush3.bf16.msra.mxu0 %v10197_v1 }
 0x681   : > { %7827 = vmatprep.subr.bf16.mxu0 %v10202_v39 }
 0x684   : > { %7829 = vmatpush3.bf16.msra.mxu0 %v10202_v39 }
 0x71f   : > { %v2441_v30 = vpop.f32.mrb[38].mxu0 }
 0x720   : > { %v2446_v22 = vmax.f32 %v2441_v30, 1e-16  ;;  %v2443_v26 = vpop.f32.mrb[39].mxu0  ;;  %v10206_v30 = vpack.c.bf16 %v3121_v11, %v3120_v60  ;;  %v11755_v11 = vld [vmem:[#allocation22_spill] sm:$0xff] }
 0x722   : > { %8473 = vrcp.f32 %v2446_v22  ;;  %7831 = vmatprep.subr.bf16.mxu0 %v10206_v30  ;;  %v3122_v22 = vld [vmem:[#allocation5 + $0x5e0] sm:$0xff] }
 0x723   : > { %7833 = vmatpush3.bf16.msra.mxu0 %v10206_v30 }
 0x72c   : > { %v8474_v17 = vpop.eup %8473 }
 0x72d   : > { %v2448_v62 = vmul.f32 %v8474_v17, %v2443_v26  ;;  %v3123_v26 = vld [vmem:[#allocation5 + $0x5f0] sm:$0xff] }
 0x72e   : > { %v10211_v17 = vpack.c.bf16 %v3123_v26, %v3122_v22 }
 0x72f   : > { %v2975_v53 = vadd.f32 %v2974_v42, %v2448_v62  ;;  %v3125_v62 = vld [vmem:[#allocation5 + $0x610] sm:$0xff] }
 0x730   : > { %7835 = vmatprep.subr.bf16.mxu0 %v10211_v17 }
 0x731   : > { %v2978_v49 = vmul.f32 %v2977_v35, %v2975_v53  ;;  %7837 = vmatpush3.bf16.msra.mxu0 %v10211_v17  ;;  %v3020_v53 = vld [vmem:[#allocation5 + $0xf93] ss:$8 sm:$0x3] }
 0x733   : > { %v2981_v8 = vadd.f32 %v2980_v48, %v2978_v49 }
 0x735   : > { %v10173_v18 = vadd.f32 %v2981_v8, %v11747_v36 }
 0x737   : > { %11748 = vst [vmem:[#allocation36_spill] sm:$0xff] %v10173_v18  ;;  %v11613_v16 = vmax.f32 %v10173_v18, 0.0 }
 0x739   : > { %3097 = vmatmul.mubr.f32.vlgmr.msra.gmra.mrb[40].mxu1 %v11613_v16 }
 0x73a   : > { %3102 = vmatprep.mubr.f32.mxu1 %v11672_v7 }
 0x73f   : > { %v2966_v15 = vpop.f32.mrb[40].mxu0 }
 0x740   : > { %v2971_v4 = vmax.f32 %v2966_v15, 1e-16  ;;  %v2968_v5 = vpop.f32.mrb[41].mxu0  ;;  %v10224_v15 = vld [vmem:[#allocation5 + $0xf94] ss:$0 sm:$0xff] }
 0x741   : > { %v3236_v56 = vmul.f32 %v10224_v15, %v11752_v20  ;;  %v3238_v19 = vmul.f32 %v10224_v15, %v11753_v29  ;;  %v3240_v60 = vmul.f32 %v10224_v15, %v11754_v10  ;;  %v3242_v22 = vmul.f32 %v10224_v15, %v11755_v11 }
 0x742   : > { %8475 = vrcp.f32 %v2971_v4 }
 0x74c   : > { %v8476_v3 = vpop.eup %8475 }
 0x74d   : > { %v2973_v13 = vmul.f32 %v8476_v3, %v2968_v5  ;;  %v3025_v3 = vrot.slane %v3020_v53, %v8939_v54 }
 0x74f   : > { %v2976_v25 = vadd.f32 %v2974_v42, %v2973_v13  ;;  %v3124_v42 = vld [vmem:[#allocation5 + $0x600] sm:$0xff] }
 0x751   : > { %v2979_v43 = vmul.f32 %v2977_v35, %v2976_v25  ;;  %v10215_v35 = vpack.c.bf16 %v3125_v62, %v3124_v42 }
 0x753   : > { %v2982_v52 = vadd.f32 %v2980_v48, %v2979_v43  ;;  %7839 = vmatprep.subr.bf16.mxu0 %v10215_v35  ;;  %v10221_v48 = vrot.slane %v3020_v53, %v8942_v55 }
 0x754   : > { %7841 = vmatpush3.bf16.msra.mxu0 %v10215_v35 }
 0x755   : > { %v10181_v57 = vadd.f32 %v2982_v52, %v11749_v23  ;;  %7875 = vmatprep.subr.bf16.mxu0 %v10187_v21  ;;  %v3234_v52 = vmul.f32 %v10224_v15, %v9037_v46  ;;  %v11751_v23 = vld [vmem:[#allocation12_spill] sm:$0xff] }
 0x756   : > { %v3232_v50 = vmul.f32 %v10224_v15, %v11751_v23 }
 0x757   : > { %11750 = vst [vmem:[#allocation39_spill] sm:$0xff] %v10181_v57  ;;  %v11612_v6 = vmax.f32 %v10181_v57, 0.0 }
 0x759   : > { %3103 = vmatmul.mubr.f32.gmra.mrb[42].mxu1 %v11612_v6 }
 0x75a   : > { %3641 = vmatprep.mubr.f32.mxu1 %v11672_v7 }
 0x80c   : > { %v3098_v49 = vpop.f32.mrb[40].mxu1 }
 0x80d   : > { %v3100_v8 = vpop.f32.mrb[41].mxu1  ;;  %v10244_v26 = vadd.f32 %v3098_v49, %v3025_v3 }
 0x80e   : > { %v3101_v36 = vadd.f32 %v3100_v8, %v10221_v48 }
 0x810   : > { %v3127_v4 = vcombine.high %v3101_v36, %v3101_v36  ;;  %v3134_v5 = vrot.slane %v3101_v36, %v9057_v0 }
 0x812   : > { %v3141_v13 = vrot.slane %v3127_v4, %v9057_v0  ;;  %v3142_v25 = vcombine.high %v3134_v5, %v3134_v5  ;;  %v3150_v43 = vrot.slane %v3134_v5, %v9057_v0  ;;  %v11756_v4 = vld [vmem:[#allocation24_spill] sm:$0xff] }
 0x813   : > { %v3244_v5 = vmul.f32 %v10224_v15, %v11756_v4 }
 0x814   : > { %v3143_v9 = vcombine.high %v3141_v13, %v3141_v13  ;;  %v3157_v47 = vrot.slane %v3141_v13, %v9057_v0  ;;  %v3164_v28 = vrot.slane %v3142_v25, %v9057_v0  ;;  %v3172_v45 = vcombine.high %v3150_v43, %v3150_v43 }
 0x815   : > { %v3179_v42 = vrot.slane %v3150_v43, %v8939_v54 }
 0x816   : > { %v3171_v62 = vrot.slane %v3143_v9, %v9057_v0  ;;  %v3173_v53 = vcombine.high %v3157_v47, %v3157_v47  ;;  %v3174_v8 = vcombine.high %v3164_v28, %v3164_v28  ;;  %v3183_v36 = vrot.slane %v3164_v28, %v8939_v54 }
 0x817   : > { %v3187_v13 = vrot.slane %v3172_v45, %v8939_v54  ;;  %v3195_v25 = vrot.slane %v3157_v47, %v8939_v54  ;;  %v3216_v6 = vadd.f32 %v3179_v42, %v10244_v26 }
 0x818   : > { %v3175_v16 = vcombine.high %v3171_v62, %v3171_v62  ;;  %v3218_v49 = vadd.f32 %v3183_v36, %v10244_v26  ;;  %v3191_v43 = vrot.slane %v3174_v8, %v8939_v54  ;;  %v3199_v9 = vrot.slane %v3171_v62, %v8939_v54  ;;  %v11757_v62 = vld [vmem:[#allocation26_spill] sm:$0xff] }
 0x819   : > { %v3248_v11 = vadd.f32 %v3232_v50, %v3216_v6  ;;  %v3220_v10 = vadd.f32 %v3187_v13, %v10244_v26  ;;  %v3224_v28 = vadd.f32 %v3195_v25, %v10244_v26  ;;  %v10260_v4 = vrot.slane %v3173_v53, %v8939_v54 }
 0x81a   : > { %v10262_v45 = vadd.f32 %v3234_v52, %v3218_v49  ;;  %v3222_v47 = vadd.f32 %v3191_v43, %v10244_v26  ;;  %v3226_v29 = vadd.f32 %v3199_v9, %v10244_v26  ;;  %v10267_v20 = vrot.slane %v3175_v16, %v8939_v54 }
 0x81b   : > { %v3264_v8 = vmul.f32 0.2, %v3248_v11  ;;  %v10269_v23 = vadd.f32 %v3236_v56, %v3220_v10  ;;  %v10271_v6 = vadd.f32 %v3240_v60, %v3224_v28  ;;  %v3228_v50 = vadd.f32 %v10260_v4, %v10244_v26  ;;  %v11758_v10 = vld [vmem:[#allocation15_spill] sm:$0xff]  ;;  %v11759_v28 = vld [vmem:[#allocation14_spill] sm:$0xff] }
 0x81c   : > { %v3246_v53 = vmul.f32 %v10224_v15, %v11757_v62  ;;  %v10277_v52 = vadd.f32 %v3238_v19, %v3222_v47  ;;  %v10279_v49 = vadd.f32 %v3242_v22, %v3226_v29  ;;  %v3230_v46 = vadd.f32 %v10267_v20, %v10244_v26  ;;  %v11760_v62 = vld [vmem:[#allocation17_spill] sm:$0xff]  ;;  %v11761_v29 = vld [vmem:[#allocation19_spill] sm:$0xff] }
 0x81d   : > { %v3280_v16 = vmax.f32 %v3248_v11, %v3264_v8  ;;  %v10283_v55 = vadd.f32 %v3244_v5, %v3228_v50  ;;  %v3235_v60 = vmul.f32 %v10224_v15, %v11758_v10  ;;  %v3233_v57 = vmul.f32 %v10224_v15, %v11759_v28  ;;  %v11762_v47 = vld [vmem:[#allocation21_spill] sm:$0xff]  ;;  %v11763_v5 = vld [vmem:[#allocation23_spill] sm:$0xff] }
 0x81e   : > { %v10285_v56 = vadd.f32 %v3246_v53, %v3230_v46  ;;  %v3237_v19 = vmul.f32 %v10224_v15, %v11760_v62  ;;  %v3239_v22 = vmul.f32 %v10224_v15, %v11761_v29  ;;  %v3241_v11 = vmul.f32 %v10224_v15, %v11762_v47  ;;  %v11764_v50 = vld [vmem:[#allocation25_spill] sm:$0xff]  ;;  %v11767_v29 = vld [vmem:[#allocation28_spill] sm:$0xff]  ;;  %v11768_v47 = vld [vmem:[#allocation31_spill] sm:$0xff] }
 0x81f   : > { %7000 = vmatprep.mubr.f32.mxu0 %v3280_v16  ;;  %v3243_v46 = vmul.f32 %v10224_v15, %v11763_v5  ;;  %v3245_v53 = vmul.f32 %v10224_v15, %v11764_v50  ;;  %v11765_v16 = vld [vmem:[#allocation27_spill] sm:$0xff]  ;;  %v11766_v28 = vld [vmem:[#allocation29_spill] sm:$0xff]  ;;  %v3757_v27 = vmul.f32 %v10224_v15, %v11767_v29  ;;  %v10311_v34 = vmul.f32 %v10224_v15, %v11768_v47 }
 0x820   : > { %v3247_v10 = vmul.f32 %v10224_v15, %v11765_v16  ;;  %v3758_v18 = vmul.f32 %v10224_v15, %v11766_v28  ;;  %v3266_v50 = vmul.f32 0.2, %v10262_v45 }
 0x82c   : > { %v3104_v8 = vpop.f32.mrb[42].mxu1 }
 0x82d   : > { %v10305_v62 = vadd.f32 %v3104_v8, %v3025_v3  ;;  %v3106_v12 = vpop.f32.mrb[43].mxu1 }
 0x82e   : > { %v3107_v5 = vadd.f32 %v3106_v12, %v10221_v48 }
 0x82f   : > { %v3217_v63 = vadd.f32 %v3179_v42, %v10305_v62  ;;  %v3219_v16 = vadd.f32 %v3183_v36, %v10305_v62  ;;  %v3221_v28 = vadd.f32 %v3187_v13, %v10305_v62  ;;  %v3223_v3 = vadd.f32 %v3191_v43, %v10305_v62  ;;  %v11769_v43 = vld [vmem:[#allocation30_spill] sm:$0xff] }
 0x830   : > { %v3652_v8 = vcombine.high %v3107_v5, %v3107_v5  ;;  %v3659_v41 = vrot.slane %v3107_v5, %v9057_v0  ;;  %v3225_v29 = vadd.f32 %v3195_v25, %v10305_v62  ;;  %v3227_v47 = vadd.f32 %v3199_v9, %v10305_v62 }
 0x831   : > { %v3249_v33 = vadd.f32 %v3233_v57, %v3217_v63  ;;  %v3251_v59 = vadd.f32 %v3235_v60, %v3219_v16  ;;  %v10322_v12 = vadd.f32 %v3237_v19, %v3221_v28  ;;  %v10324_v48 = vadd.f32 %v3239_v22, %v3223_v3  ;;  %v11771_v57 = vld [vmem:[#allocation32_spill] sm:$0xff] }
 0x832   : > { %v3666_v42 = vrot.slane %v3652_v8, %v9057_v0  ;;  %v3667_v36 = vcombine.high %v3659_v41, %v3659_v41  ;;  %v3675_v13 = vrot.slane %v3659_v41, %v9057_v0  ;;  %v10328_v37 = vadd.f32 %v3241_v11, %v3225_v29  ;;  %v11772_v41 = vld [vmem:[#allocation35_spill] sm:$0xff]  ;;  %v11773_v8 = vld [vmem:[#allocation34_spill] sm:$0xff] }
 0x833   : > { %v3759_v5 = vmul.f32 %v10224_v15, %v11769_v43  ;;  %v3762_v25 = vmul.f32 %v10224_v15, %v11770_v51  ;;  %v3265_v9 = vmul.f32 0.2, %v3249_v33  ;;  %v10334_v63 = vadd.f32 %v3243_v46, %v3227_v47  ;;  %v11774_v51 = vld [vmem:[#allocation37_spill] sm:$0xff] }
 0x834   : > { %v3761_v60 = vmul.f32 %v10224_v15, %v11771_v57  ;;  %v3689_v28 = vrot.slane %v3667_v36, %v9057_v0  ;;  %v3697_v19 = vcombine.high %v3675_v13, %v3675_v13  ;;  %v3268_v22 = vmul.f32 0.2, %v10269_v23 }
 0x835   : > { %v10342_v29 = vmul.f32 %v10224_v15, %v11772_v41  ;;  %v3704_v11 = vrot.slane %v3675_v13, %v8939_v54  ;;  %v3281_v16 = vmax.f32 %v3249_v33, %v3265_v9  ;;  %v3267_v3 = vmul.f32 0.2, %v3251_v59 }
 0x836   : > { %v10347_v47 = vmul.f32 %v10224_v15, %v11773_v8  ;;  %v3668_v46 = vcombine.high %v3666_v42, %v3666_v42  ;;  %v3708_v57 = vrot.slane %v3689_v28, %v8939_v54  ;;  %v3282_v36 = vmax.f32 %v10262_v45, %v3266_v50 }
 0x837   : > { %v3766_v43 = vmul.f32 %v10224_v15, %v11774_v51  ;;  %v10354_v61 = vrot.slane %v3666_v42, %v9057_v0  ;;  %v3742_v41 = vadd.f32 %v3704_v11, %v10305_v62  ;;  %7001 = vmatmul.mubr.f32.vlgmr.msra.gmra.mrb[42].mxu0 %v3281_v16  ;;  %v3270_v33 = vmul.f32 0.2, %v10277_v52 }
 0x838   : > { %v3712_v13 = vrot.slane %v3697_v19, %v8939_v54  ;;  %7003 = vmatprep.mubr.f32.mxu0 %v3282_v36  ;;  %7877 = vmatpush3.bf16.msra.mxu0 %v10187_v21  ;;  %v3284_v9 = vmax.f32 %v10269_v23, %v3268_v22  ;;  %v3269_v45 = vmul.f32 0.2, %v10322_v12  ;;  %v3229_v50 = vadd.f32 %v10260_v4, %v10305_v62 }
 0x839   : > { %v10364_v51 = vadd.f32 %v3758_v18, %v3742_v41  ;;  %v3283_v42 = vmax.f32 %v3251_v59, %v3267_v3  ;;  %7879 = vmatprep.subr.bf16.mxu0 %v10190_v32  ;;  %v3231_v16 = vadd.f32 %v10267_v20, %v10305_v62  ;;  %v3741_v19 = vadd.f32 %v3704_v11, %v10244_v26 }
 0x83a   : > { %v3696_v36 = vrot.slane %v3668_v46, %v9057_v0  ;;  %v3699_v21 = vcombine.high %v3689_v28, %v3689_v28  ;;  %v10371_v8 = vadd.f32 %v3245_v53, %v3229_v50  ;;  %v3743_v23 = vadd.f32 %v3708_v57, %v10244_v26 }
 0x83b   : > { %v3720_v4 = vrot.slane %v10354_v61, %v8939_v54  ;;  %7004 = vmatmul.mubr.f32.gmra.mrb[44].mxu0 %v3283_v42  ;;  %v10376_v18 = vadd.f32 %v3247_v10, %v3231_v16  ;;  %v10378_v59 = vadd.f32 %v3757_v27, %v3741_v19  ;;  %v3744_v22 = vadd.f32 %v3708_v57, %v10305_v62 }
 0x83c   : > { %7006 = vmatprep.mubr.f32.mxu0 %v3284_v9  ;;  %7881 = vmatpush3.bf16.msra.mxu0 %v10190_v32  ;;  %v10382_v20 = vadd.f32 %v3759_v5, %v3743_v23  ;;  %v3745_v53 = vadd.f32 %v3712_v13, %v10244_v26  ;;  %v3746_v28 = vadd.f32 %v3712_v13, %v10305_v62  ;;  %v3271_v27 = vmul.f32 0.2, %v10324_v48 }
 0x83d   : > { %v3765_v41 = vmul.f32 %v10224_v15, %v11711_v58  ;;  %v3285_v11 = vmax.f32 %v10322_v12, %v3269_v45  ;;  %7883 = vmatprep.subr.bf16.mxu0 %v10195_v24  ;;  %v10392_v10 = vadd.f32 %v10311_v34, %v3744_v22  ;;  %v3286_v32 = vmax.f32 %v10277_v52, %v3270_v33 }
 0x83e   : > { %v3272_v5 = vmul.f32 0.2, %v10271_v6  ;;  %v10396_v57 = vadd.f32 %v3761_v60, %v3745_v53  ;;  %v10398_v3 = vadd.f32 %v3762_v25, %v3746_v28  ;;  %v3768_v46 = vmul.f32 %v10224_v15, %v11712_v38 }
 0x83f   : > { %v3767_v12 = vmul.f32 %v10224_v15, %v11713_v2  ;;  %v3698_v13 = vcombine.high %v10354_v61, %v10354_v61  ;;  %7007 = vmatmul.mubr.f32.gmra.mrb[46].mxu0 %v3285_v11  ;;  %v3716_v34 = vrot.slane %v3699_v21, %v8939_v54  ;;  %v3770_v52 = vmul.f32 %v10224_v15, %v11714_v40 }
 0x840   : > { %v3700_v33 = vcombine.high %v3696_v36, %v3696_v36  ;;  %7009 = vmatprep.mubr.f32.mxu0 %v3286_v32  ;;  %7885 = vmatpush3.bf16.msra.mxu0 %v10195_v24  ;;  %v3273_v25 = vmul.f32 0.2, %v10328_v37  ;;  %v3749_v60 = vadd.f32 %v3720_v4, %v10244_v26  ;;  %v3287_v9 = vmax.f32 %v10324_v48, %v3271_v27 }
 0x841   : > { %7887 = vmatprep.subr.bf16.mxu0 %v10197_v1  ;;  %v3747_v61 = vadd.f32 %v3716_v34, %v10244_v26  ;;  %v3748_v45 = vadd.f32 %v3716_v34, %v10305_v62  ;;  %v3750_v50 = vadd.f32 %v3720_v4, %v10305_v62  ;;  %v3288_v42 = vmax.f32 %v10271_v6, %v3272_v5 }
 0x842   : > { %v3274_v16 = vmul.f32 0.2, %v10279_v49  ;;  %v10419_v19 = vadd.f32 %v3765_v41, %v3749_v60  ;;  %v3724_v24 = vrot.slane %v3696_v36, %v8939_v54  ;;  %v3728_v22 = vrot.slane %v3698_v13, %v8939_v54 }
 0x843   : > { %7010 = vmatmul.mubr.f32.gmra.mrb[48].mxu0 %v3287_v9  ;;  %v10423_v21 = vadd.f32 %v10347_v47, %v3747_v61  ;;  %v10426_v48 = vadd.f32 %v10342_v29, %v3748_v45  ;;  %v10428_v23 = vadd.f32 %v3766_v43, %v3750_v50  ;;  %v3769_v6 = vmul.f32 %v10224_v15, %v11715_v14 }
 0x844   : > { %7012 = vmatprep.mubr.f32.mxu0 %v3288_v42  ;;  %7889 = vmatpush3.bf16.msra.mxu0 %v10197_v1  ;;  %v3276_v4 = vmul.f32 0.2, %v10283_v55  ;;  %v3751_v36 = vadd.f32 %v3724_v24, %v10244_v26  ;;  %v3752_v47 = vadd.f32 %v3724_v24, %v10305_v62  ;;  %v3289_v53 = vmax.f32 %v10328_v37, %v3273_v25 }
 0x845   : > { %7891 = vmatprep.subr.bf16.mxu0 %v10202_v39  ;;  %v3275_v43 = vmul.f32 0.2, %v10334_v63  ;;  %v3753_v29 = vadd.f32 %v3728_v22, %v10244_v26  ;;  %v3732_v28 = vrot.slane %v3700_v33, %v8939_v54  ;;  %v3290_v41 = vmax.f32 %v10279_v49, %v3274_v16 }
 0x846   : > { %v10443_v11 = vadd.f32 %v3767_v12, %v3751_v36  ;;  %v10445_v1 = vadd.f32 %v3768_v46, %v3752_v47  ;;  %v3754_v27 = vadd.f32 %v3728_v22, %v10305_v62  ;;  %v3772_v5 = vmul.f32 %v10224_v15, %v11716_v31 }
 0x847   : > { %7013 = vmatmul.mubr.f32.gmra.mrb[50].mxu0 %v3289_v53  ;;  %v10448_v32 = vadd.f32 %v3769_v6, %v3753_v29  ;;  %v3291_v13 = vmax.f32 %v10334_v63, %v3275_v43  ;;  %v3277_v49 = vmul.f32 0.2, %v10371_v8  ;;  %v3756_v46 = vadd.f32 %v3732_v28, %v10305_v62 }
 0x848   : > { %7015 = vmatprep.mubr.f32.mxu0 %v3290_v41  ;;  %7893 = vmatpush3.bf16.msra.mxu0 %v10202_v39  ;;  %v10451_v37 = vadd.f32 %v3770_v52, %v3754_v27  ;;  %v3292_v12 = vmax.f32 %v10283_v55, %v3276_v4  ;;  %v3278_v34 = vmul.f32 0.2, %v10285_v56  ;;  %v3279_v63 = vmul.f32 0.2, %v10376_v18  ;;  %v4190_v41 = vld [vmem:[#allocation5 + $0x628] sm:$0xff] }
 0x849   : > { %7895 = vmatprep.subr.bf16.mxu0 %v10206_v30  ;;  %v10461_v33 = vadd.f32 %v3772_v5, %v3756_v46  ;;  %v3293_v39 = vmax.f32 %v10371_v8, %v3277_v49  ;;  %v3789_v25 = vmul.f32 0.2, %v10378_v59  ;;  %v3790_v55 = vmul.f32 0.2, %v10364_v51  ;;  %v4194_v5 = vld [vmem:[#allocation5 + $0x648] sm:$0xff] }
 0x84a   : > { %v3294_v52 = vmax.f32 %v10285_v56, %v3278_v34  ;;  %v3295_v60 = vmax.f32 %v10376_v18, %v3279_v63  ;;  %v3791_v8 = vmul.f32 0.2, %v10382_v20  ;;  %v3792_v9 = vmul.f32 0.2, %v10392_v10 }
 0x84b   : > { %7016 = vmatmul.mubr.f32.gmra.mrb[52].mxu0 %v3291_v13  ;;  %v3806_v56 = vmax.f32 %v10364_v51, %v3790_v55  ;;  %v3793_v61 = vmul.f32 0.2, %v10396_v57  ;;  %v3795_v50 = vmul.f32 0.2, %v10423_v21  ;;  %v3797_v42 = vmul.f32 0.2, %v10419_v19 }
 0x84c   : > { %7018 = vmatprep.mubr.f32.mxu0 %v3292_v12  ;;  %7897 = vmatpush3.bf16.msra.mxu0 %v10206_v30  ;;  %v3805_v30 = vmax.f32 %v10378_v59, %v3789_v25  ;;  %v3808_v18 = vmax.f32 %v10392_v10, %v3792_v9  ;;  %v3794_v59 = vmul.f32 0.2, %v10398_v3  ;;  %v3798_v16 = vmul.f32 0.2, %v10428_v23  ;;  %v4196_v13 = vld [vmem:[#allocation5 + $0x658] sm:$0xff]  ;;  %v4195_v12 = vld [vmem:[#allocation5 + $0x650] sm:$0xff] }
 0x84d   : > { %7899 = vmatprep.subr.bf16.mxu0 %v10211_v17  ;;  %v3809_v45 = vmax.f32 %v10396_v57, %v3793_v61  ;;  %v3813_v57 = vmax.f32 %v10419_v19, %v3797_v42  ;;  %v3799_v24 = vmul.f32 0.2, %v10443_v11  ;;  %v3755_v22 = vadd.f32 %v3732_v28, %v10244_v26  ;;  %v11776_v25 = vld [vmem:[#allocation45_spill] sm:$0xff]  ;;  %v11778_v61 = vld [vmem:[#allocation47_spill] sm:$0xff] }
 0x84e   : > { %v3810_v51 = vmax.f32 %v10398_v3, %v3794_v59  ;;  %v3771_v3 = vmul.f32 %v10224_v15, %v11717_v44  ;;  %v3800_v6 = vmul.f32 0.2, %v10445_v1  ;;  %v3802_v47 = vmul.f32 0.2, %v10451_v37 }
 0x84f   : > { %7019 = vmatmul.mubr.f32.gmra.mrb[54].mxu0 %v3293_v39  ;;  %v3815_v4 = vmax.f32 %v10443_v11, %v3799_v24  ;;  %v4192_v11 = vld [vmem:[#allocation5 + $0x638] sm:$0xff]  ;;  %v7942_v46 = vpack.c.bf16 %v4196_v13, %v4194_v5  ;;  %v11775_v39 = vld [vmem:[#allocation44_spill] sm:$0xff] }
 0x850   : > { %7021 = vmatprep.mubr.f32.mxu0 %v3294_v52  ;;  %7901 = vmatpush3.bf16.msra.mxu0 %v10211_v17  ;;  %v3807_v17 = vmax.f32 %v10382_v20, %v3791_v8  ;;  %v3811_v20 = vmax.f32 %v10423_v21, %v3795_v50  ;;  %v3814_v21 = vmax.f32 %v10428_v23, %v3798_v16  ;;  %v3804_v23 = vmul.f32 0.2, %v10461_v33  ;;  %v11777_v8 = vld [vmem:[#allocation46_spill] sm:$0xff]  ;;  %v11780_v16 = vld [vmem:[#allocation49_spill] sm:$0xff] }
 0x851   : > { %7903 = vmatprep.subr.bf16.mxu0 %v10215_v35  ;;  %v3787_v36 = vadd.f32 %v3771_v3, %v3755_v22  ;;  %v3816_v19 = vmax.f32 %v10445_v1, %v3800_v6  ;;  %v3818_v15 = vmax.f32 %v10451_v37, %v3802_v47  ;;  %v4189_v1 = vld [vmem:[#allocation5 + $0x620] sm:$0xff]  ;;  %v7938_v27 = vpack.c.bf16 %v4192_v11, %v4190_v41  ;;  %v11783_v11 = vld [vmem:[#allocation52_spill] sm:$0xff] }
 0x852   : > { %v3820_v28 = vmax.f32 %v10461_v33, %v3804_v23  ;;  %v4193_v37 = vld [vmem:[#allocation5 + $0x640] sm:$0xff] }
 0x853   : > { %7022 = vmatmul.mubr.f32.gmra.mrb[56].mxu0 %v3295_v60  ;;  %v3803_v43 = vmul.f32 0.2, %v3787_v36  ;;  %v7944_v34 = vpack.c.bf16 %v4195_v12, %v4193_v37  ;;  %v11781_v6 = vld [vmem:[#allocation50_spill] sm:$0xff]  ;;  %v11784_v37 = vld [vmem:[#allocation53_spill] sm:$0xff] }
 0x854   : > { %7905 = vmatpush3.bf16.msra.mxu0 %v10215_v35  ;;  %7056 = vmatprep.mubr.f32.mxu0 %v3805_v30  ;;  %v3796_v35 = vmul.f32 0.2, %v10426_v48 }
 0x855   : > { %v3819_v29 = vmax.f32 %v3787_v36, %v3803_v43  ;;  %7939 = vmatprep.subr.bf16.mxu0 %v7938_v27 }
 0x856   : > { %v3812_v10 = vmax.f32 %v10426_v48, %v3796_v35  ;;  %v3801_v48 = vmul.f32 0.2, %v10448_v32 }
 0x857   : > { %7057 = vmatmul.mubr.f32.vlgmr.msra.gmra.mrb[58].mxu0 %v3806_v56 }
 0x858   : > { %7059 = vmatprep.mubr.f32.mxu0 %v3807_v17  ;;  %v3817_v53 = vmax.f32 %v10448_v32, %v3801_v48  ;;  %v4191_v32 = vld [vmem:[#allocation5 + $0x630] sm:$0xff] }
 0x859   : > { %v7940_v49 = vpack.c.bf16 %v4191_v32, %v4189_v1 }
 0x85b   : > { %7060 = vmatmul.mubr.f32.gmra.mrb[60].mxu0 %v3808_v18 }
 0x85c   : > { %7062 = vmatprep.mubr.f32.mxu0 %v3809_v45  ;;  %7941 = vmatpush1.bf16.msra.mxu0 %v7940_v49 }
 0x85d   : > { %7943 = vmatprep.subr.bf16.mxu0 %v7942_v46 }
 0x85f   : > { %7063 = vmatmul.mubr.f32.gmra.mrb[62].mxu0 %v3810_v51  ;;  %v11779_v51 = vld [vmem:[#allocation48_spill] sm:$0xff] }
 0x860   : > { %7065 = vmatprep.mubr.f32.mxu0 %v3811_v20  ;;  %7945 = vmatpush1.bf16.msra.mxu0 %v7944_v34 }
 0x863   : > { %7066 = vmatmul.mubr.f32.gmra.mrb[64].mxu0 %v3812_v10 }
 0x864   : > { %7068 = vmatprep.mubr.f32.mxu0 %v3813_v57 }
 0x867   : > { %7069 = vmatmul.mubr.f32.gmra.mrb[66].mxu0 %v3814_v21 }
 0x868   : > { %7071 = vmatprep.mubr.f32.mxu0 %v3815_v4 }
 0x86b   : > { %7072 = vmatmul.mubr.f32.gmra.mrb[68].mxu0 %v3816_v19 }
 0x86c   : > { %7074 = vmatprep.mubr.f32.mxu0 %v3817_v53  ;;  %v11782_v53 = vld [vmem:[#allocation51_spill] sm:$0xff] }
 0x86f   : > { %7075 = vmatmul.mubr.f32.gmra.mrb[70].mxu0 %v3818_v15 }
 0x870   : > { %7077 = vmatprep.mubr.f32.mxu0 %v3819_v29 }
 0x873   : > { %7078 = vmatmul.mubr.f32.gmra.mrb[72].mxu0 %v3820_v28 }
 0x874   : > { %4298 = vmatprep.mubr.f32.mxu0 %v11672_v7 }
 0x90a   : > { %v7002_v33 = vpop.f32.mrb[42].mxu0 }
 0x90b   : > { %v3442_v63 = vadd.f32 %v7002_v33, %v11775_v39  ;;  %v3362_v52 = vpop.f32.mrb[43].mxu0 }
 0x90c   : > { %v3441_v55 = vadd.f32 %v3362_v52, %v11776_v25  ;;  %v11834_v25 = vld [vmem:[#allocation33_spill] sm:$0xff] }
 0x90e   : > { %v3457_v60 = vmax.f32 %v3441_v55, %v3442_v63  ;;  %v7005_v30 = vpop.f32.mrb[44].mxu0 }
 0x90f   : > { %v3444_v56 = vadd.f32 %v7005_v30, %v11777_v8  ;;  %v3372_v9 = vpop.f32.mrb[45].mxu0 }
 0x910   : > { %v3458_v17 = vrot.slane %v3457_v60, 4  ;;  %v3443_v18 = vadd.f32 %v3372_v9, %v11778_v61 }
 0x912   : > { %v3459_v59 = vmax.f32 %v3457_v60, %v3458_v17  ;;  %v3464_v45 = vmax.f32 %v3443_v18, %v3444_v56  ;;  %v7008_v50 = vpop.f32.mrb[46].mxu0 }
 0x913   : > { %v3446_v35 = vadd.f32 %v7008_v50, %v11779_v51  ;;  %v3382_v20 = vpop.f32.mrb[47].mxu0 }
 0x914   : > { %v3460_v42 = vrot.slane %v3459_v59, 2  ;;  %v3465_v10 = vrot.slane %v3464_v45, 4  ;;  %v3445_v57 = vadd.f32 %v3382_v20, %v11780_v16 }
 0x916   : > { %v3461_v24 = vmax.f32 %v3459_v59, %v3460_v42  ;;  %v3466_v22 = vmax.f32 %v3464_v45, %v3465_v10  ;;  %v3471_v3 = vmax.f32 %v3445_v57, %v3446_v35  ;;  %v7011_v21 = vpop.f32.mrb[48].mxu0  ;;  %v11785_v59 = vld [vmem:[#allocation54_spill] sm:$0xff] }
 0x917   : > { %v10513_v4 = vadd.f32 %v7011_v21, %v11781_v6  ;;  %v3392_v48 = vpop.f32.mrb[49].mxu0 }
 0x918   : > { %v3462_v36 = vrot.slane %v3461_v24, 1  ;;  %v3467_v19 = vrot.slane %v3466_v22, 2  ;;  %v3472_v47 = vrot.slane %v3471_v3, 4  ;;  %v10516_v43 = vadd.f32 %v3392_v48, %v11782_v53 }
 0x91a   : > { %v3463_v15 = vmax.f32 %v3461_v24, %v3462_v36  ;;  %v3468_v23 = vmax.f32 %v3466_v22, %v3467_v19  ;;  %v3473_v29 = vmax.f32 %v3471_v3, %v3472_v47  ;;  %v3478_v28 = vmax.f32 %v10516_v43, %v10513_v4  ;;  %v7014_v41 = vpop.f32.mrb[50].mxu0  ;;  %v11786_v24 = vld [vmem:[#allocation55_spill] sm:$0xff] }
 0x91b   : > { %v10521_v1 = vadd.f32 %v7014_v41, %v11783_v11  ;;  %v3402_v27 = vpop.f32.mrb[51].mxu0  ;;  %v11788_v41 = vld [vmem:[#allocation57_spill] sm:$0xff] }
 0x91c   : > { %v3513_v32 = vsub.f32 %v3441_v55, %v3463_v15  ;;  %v3514_v5 = vsub.f32 %v3442_v63, %v3463_v15  ;;  %v3469_v13 = vrot.slane %v3468_v23, 1  ;;  %v3474_v49 = vrot.slane %v3473_v29, 2  ;;  %v11787_v15 = vld [vmem:[#allocation56_spill] sm:$0xff] }
 0x91d   : > { %v3479_v46 = vrot.slane %v3478_v28, 4  ;;  %v10524_v12 = vadd.f32 %v3402_v27, %v11784_v37 }
 0x91e   : > { %v3529_v34 = vmul.f32 1.442695, %v3513_v32  ;;  %v3531_v33 = vmul.f32 1.442695, %v3514_v5  ;;  %v3470_v52 = vmax.f32 %v3468_v23, %v3469_v13  ;;  %v3475_v60 = vmax.f32 %v3473_v29, %v3474_v49  ;;  %v7017_v30 = vpop.f32.mrb[52].mxu0 }
 0x91f   : > { %v3480_v9 = vmax.f32 %v3478_v28, %v3479_v46  ;;  %v3485_v17 = vmax.f32 %v10524_v12, %v10521_v1  ;;  %v10529_v45 = vadd.f32 %v7017_v30, %v11785_v59  ;;  %v3412_v55 = vpop.f32.mrb[53].mxu0 }
 0x920   : > { %8477 = vpow2.f32 %v3529_v34  ;;  %v3515_v63 = vsub.f32 %v3443_v18, %v3470_v52  ;;  %v3516_v50 = vsub.f32 %v3444_v56, %v3470_v52  ;;  %v3476_v20 = vrot.slane %v3475_v60, 1 }
 0x921   : > { %v3481_v42 = vrot.slane %v3480_v9, 2  ;;  %v3486_v10 = vrot.slane %v3485_v17, 4  ;;  %v10532_v22 = vadd.f32 %v3412_v55, %v11786_v24  ;;  %8479 = vpow2.f32 %v3531_v33  ;;  %v11790_v55 = vld [vmem:[#allocation59_spill] sm:$0xff] }
 0x922   : > { %v3533_v3 = vmul.f32 1.442695, %v3515_v63  ;;  %v3477_v21 = vmax.f32 %v3475_v60, %v3476_v20  ;;  %v7020_v48 = vpop.f32.mrb[54].mxu0  ;;  %v3535_v56 = vmul.f32 1.442695, %v3516_v50 }
 0x923   : > { %v3482_v36 = vmax.f32 %v3480_v9, %v3481_v42  ;;  %v3487_v19 = vmax.f32 %v3485_v17, %v3486_v10  ;;  %v3492_v47 = vmax.f32 %v10532_v22, %v10529_v45  ;;  %v10537_v23 = vadd.f32 %v7020_v48, %v11787_v15  ;;  %v3422_v18 = vpop.f32.mrb[55].mxu0  ;;  %v11789_v9 = vld [vmem:[#allocation58_spill] sm:$0xff] }
 0x924   : > { %v3517_v29 = vsub.f32 %v3445_v57, %v3477_v21  ;;  %v3518_v28 = vsub.f32 %v3446_v35, %v3477_v21  ;;  %v10540_v27 = vadd.f32 %v3422_v18, %v11788_v41  ;;  %8481 = vpow2.f32 %v3533_v3 }
 0x925   : > { %v3483_v32 = vrot.slane %v3482_v36, 1  ;;  %v3488_v5 = vrot.slane %v3487_v19, 2  ;;  %v3493_v13 = vrot.slane %v3492_v47, 4  ;;  %8483 = vpow2.f32 %v3535_v56  ;;  %v11791_v56 = vld [vmem:[#allocation60_spill] sm:$0xff] }
 0x926   : > { %v3537_v49 = vmul.f32 1.442695, %v3517_v29  ;;  %v3539_v46 = vmul.f32 1.442695, %v3518_v28  ;;  %v3499_v34 = vmax.f32 %v10540_v27, %v10537_v23  ;;  %v7023_v33 = vpop.f32.mrb[56].mxu0 }
 0x927   : > { %v3484_v52 = vmax.f32 %v3482_v36, %v3483_v32  ;;  %v3489_v60 = vmax.f32 %v3487_v19, %v3488_v5  ;;  %v3494_v30 = vmax.f32 %v3492_v47, %v3493_v13  ;;  %v10545_v17 = vadd.f32 %v7023_v33, %v11789_v9  ;;  %v3432_v35 = vpop.f32.mrb[57].mxu0  ;;  %v11792_v13 = vld [vmem:[#allocation61_spill] sm:$0xff] }
 0x928   : > { %v3500_v57 = vrot.slane %v3499_v34, 4  ;;  %v10548_v63 = vadd.f32 %v3432_v35, %v11790_v55  ;;  %8485 = vpow2.f32 %v3537_v49 }
 0x929   : > { %v3519_v50 = vsub.f32 %v10516_v43, %v3484_v52  ;;  %v3520_v20 = vsub.f32 %v10513_v4, %v3484_v52  ;;  %v3490_v42 = vrot.slane %v3489_v60, 1  ;;  %8487 = vpow2.f32 %v3539_v46 }
 0x92a   : > { %v10552_v10 = vpop.eup %8477  ;;  %v3495_v3 = vrot.slane %v3494_v30, 2  ;;  %v3501_v21 = vmax.f32 %v3499_v34, %v3500_v57  ;;  %v3506_v48 = vmax.f32 %v10548_v63, %v10545_v17  ;;  %v7058_v36 = vpop.f32.mrb[58].mxu0 }
 0x92b   : > { %v3541_v19 = vmul.f32 1.442695, %v3519_v50  ;;  %v3543_v47 = vmul.f32 1.442695, %v3520_v20  ;;  %v3491_v18 = vmax.f32 %v3489_v60, %v3490_v42  ;;  %v10557_v29 = vadd.f32 %v7058_v36, %v11791_v56  ;;  %v3887_v28 = vpop.f32.mrb[59].mxu0  ;;  %v8480_v43 = vpop.eup %8479  ;;  %v11793_v42 = vld [vmem:[#allocation62_spill] sm:$0xff] }
 0x92c   : > { %v3496_v32 = vmax.f32 %v3494_v30, %v3495_v3  ;;  %v3502_v4 = vrot.slane %v3501_v21, 2  ;;  %v3507_v5 = vrot.slane %v3506_v48, 4  ;;  %v10560_v49 = vadd.f32 %v3887_v28, %v11792_v13 }
 0x92d   : > { %8489 = vpow2.f32 %v3541_v19  ;;  %v3521_v46 = vsub.f32 %v10524_v12, %v3491_v18  ;;  %v3522_v34 = vsub.f32 %v10521_v1, %v3491_v18  ;;  %v3561_v33 = vmul.f32 %v10552_v10, %v10244_v26 }
 0x92e   : > { %8491 = vpow2.f32 %v3543_v47  ;;  %v3497_v52 = vrot.slane %v3496_v32, 1  ;;  %v3503_v60 = vmax.f32 %v3501_v21, %v3502_v4  ;;  %v3508_v35 = vmax.f32 %v3506_v48, %v3507_v5  ;;  %v7061_v57 = vpop.f32.mrb[60].mxu0  ;;  %v10571_v12 = vpop.eup %8481  ;;  %v11794_v48 = vld [vmem:[#allocation63_spill] sm:$0xff] }
 0x92f   : > { %v3545_v50 = vmul.f32 1.442695, %v3521_v46  ;;  %v3547_v30 = vmul.f32 1.442695, %v3522_v34  ;;  %v3982_v20 = vmax.f32 %v10560_v49, %v10557_v29  ;;  %v10569_v3 = vadd.f32 %v7061_v57, %v11793_v42  ;;  %v3897_v36 = vpop.f32.mrb[61].mxu0  ;;  %v10578_v5 = vpop.eup %8483 }
 0x930   : > { %v3498_v1 = vmax.f32 %v3496_v32, %v3497_v52  ;;  %v3504_v19 = vrot.slane %v3503_v60, 1  ;;  %v3509_v18 = vrot.slane %v3508_v35, 2  ;;  %v3562_v47 = vmul.f32 %v8480_v43, %v10305_v62 }
 0x931   : > { %8493 = vpow2.f32 %v3545_v50  ;;  %v3983_v21 = vrot.slane %v3982_v20, 4  ;;  %v10575_v28 = vadd.f32 %v3897_v36, %v11794_v48  ;;  %v7844_v4 = vpack.c.bf16 %v8480_v43, %v10552_v10 }
 0x932   : > { %8495 = vpow2.f32 %v3547_v30  ;;  %v3523_v46 = vsub.f32 %v10532_v22, %v3498_v1  ;;  %v3524_v34 = vsub.f32 %v10529_v45, %v3498_v1  ;;  %v3505_v57 = vmax.f32 %v3503_v60, %v3504_v19  ;;  %v7064_v32 = vpop.f32.mrb[62].mxu0  ;;  %v10582_v52 = vpop.eup %8485  ;;  %v11795_v19 = vld [vmem:[#allocation64_spill] sm:$0xff] }
 0x933   : > { %v3510_v42 = vmax.f32 %v3508_v35, %v3509_v18  ;;  %v3984_v13 = vmax.f32 %v3982_v20, %v3983_v21  ;;  %v7842_v50 = vpack.c.bf16 %v3562_v47, %v3561_v33  ;;  %v3989_v36 = vmax.f32 %v10575_v28, %v10569_v3  ;;  %v3907_v48 = vpop.f32.mrb[63].mxu0  ;;  %v10586_v56 = vpop.eup %8487 }
 0x934   : > { %v3549_v10 = vmul.f32 1.442695, %v3523_v46  ;;  %v3551_v43 = vmul.f32 1.442695, %v3524_v34  ;;  %v3525_v30 = vsub.f32 %v10540_v27, %v3505_v57  ;;  %v3526_v22 = vsub.f32 %v10537_v23, %v3505_v57 }
 0x935   : > { %v3511_v45 = vrot.slane %v3510_v42, 1  ;;  %v3985_v60 = vrot.slane %v3984_v13, 2  ;;  %7843 = vmatprep.subr.bf16.mxu1 %v7842_v50  ;;  %v3990_v1 = vrot.slane %v3989_v36, 4  ;;  %v10591_v35 = vadd.f32 %v7064_v32, %v11795_v19  ;;  %v11796_v50 = vld [vmem:[#allocation65_spill] sm:$0xff] }
 0x936   : > { %8497 = vpow2.f32 %v3549_v10  ;;  %v3553_v33 = vmul.f32 1.442695, %v3525_v30  ;;  %v3555_v20 = vmul.f32 1.442695, %v3526_v22  ;;  %7845 = vmatpush1.bf16.msra.mxu1 %v7844_v4  ;;  %v3563_v18 = vmul.f32 %v10571_v12, %v10244_v26  ;;  %v7067_v47 = vpop.f32.mrb[64].mxu0 }
 0x937   : > { %v10595_v21 = vpop.eup %8489  ;;  %8499 = vpow2.f32 %v3551_v43  ;;  %v3512_v27 = vmax.f32 %v3510_v42, %v3511_v45  ;;  %v3986_v23 = vmax.f32 %v3984_v13, %v3985_v60  ;;  %v3991_v46 = vmax.f32 %v3989_v36, %v3990_v1  ;;  %v3917_v34 = vpop.f32.mrb[65].mxu0  ;;  %v11797_v45 = vld [vmem:[#allocation66_spill] sm:$0xff] }
 0x938   : > { %v10597_v57 = vpop.eup %8491  ;;  %8501 = vpow2.f32 %v3553_v33  ;;  %v3564_v32 = vmul.f32 %v10578_v5, %v10305_v62  ;;  %v10602_v10 = vadd.f32 %v3907_v48, %v11796_v50  ;;  %v7848_v4 = vpack.c.bf16 %v10578_v5, %v10571_v12 }
 0x939   : > { %8503 = vpow2.f32 %v3555_v20  ;;  %v3527_v30 = vsub.f32 %v10548_v63, %v3512_v27  ;;  %v3528_v42 = vsub.f32 %v10545_v17, %v3512_v27  ;;  %v3987_v13 = vrot.slane %v3986_v23, 1 }
 0x93a   : > { %v3992_v36 = vrot.slane %v3991_v46, 2  ;;  %v7846_v43 = vpack.c.bf16 %v3564_v32, %v3563_v18  ;;  %v3996_v22 = vmax.f32 %v10602_v10, %v10591_v35  ;;  %v10611_v60 = vadd.f32 %v7067_v47, %v11797_v45  ;;  %v7070_v1 = vpop.f32.mrb[66].mxu0  ;;  %v11798_v47 = vld [vmem:[#allocation67_spill] sm:$0xff] }
 0x93b   : > { %v10613_v48 = vpop.eup %8493  ;;  %v3557_v33 = vmul.f32 1.442695, %v3527_v30  ;;  %v3559_v50 = vmul.f32 1.442695, %v3528_v42  ;;  %v3988_v12 = vmax.f32 %v3986_v23, %v3987_v13  ;;  %v3565_v63 = vmul.f32 %v10582_v52, %v10244_v26  ;;  %v3927_v5 = vpop.f32.mrb[67].mxu0 }
 0x93c   : > { %v10617_v17 = vpop.eup %8495  ;;  %v3993_v20 = vmax.f32 %v3991_v46, %v3992_v36  ;;  %7847 = vmatprep.subr.bf16.mxu1 %v7846_v43  ;;  %v3997_v18 = vrot.slane %v3996_v22, 4  ;;  %v3566_v27 = vmul.f32 %v10586_v56, %v10305_v62  ;;  %v10622_v32 = vadd.f32 %v3917_v34, %v11798_v47  ;;  %v11799_v47 = vld [vmem:[#allocation68_spill] sm:$0xff] }
 0x93d   : > { %8505 = vpow2.f32 %v3557_v33  ;;  %v4038_v30 = vsub.f32 %v10560_v49, %v3988_v12  ;;  %v4039_v23 = vsub.f32 %v10557_v29, %v3988_v12  ;;  %7849 = vmatpush1.bf16.msra.mxu1 %v7848_v4  ;;  %v7852_v42 = vpack.c.bf16 %v10586_v56, %v10582_v52  ;;  %v11800_v12 = vld [vmem:[#allocation69_spill] sm:$0xff] }
 0x93e   : > { %8507 = vpow2.f32 %v3559_v50  ;;  %v3994_v13 = vrot.slane %v3993_v20, 1  ;;  %v3998_v46 = vmax.f32 %v3996_v22, %v3997_v18  ;;  %v7850_v36 = vpack.c.bf16 %v3566_v27, %v3565_v63  ;;  %v7073_v43 = vpop.f32.mrb[68].mxu0 }
 0x93f   : > { %v4054_v45 = vmul.f32 1.442695, %v4038_v30  ;;  %v4056_v19 = vmul.f32 1.442695, %v4039_v23  ;;  %v4003_v34 = vmax.f32 %v10622_v32, %v10611_v60  ;;  %v10631_v33 = vadd.f32 %v7070_v1, %v11799_v47  ;;  %v3937_v49 = vpop.f32.mrb[69].mxu0 }
 0x940   : > { %v10633_v55 = vpop.eup %8497  ;;  %v3995_v29 = vmax.f32 %v3993_v20, %v3994_v13  ;;  %v3999_v4 = vrot.slane %v3998_v46, 2  ;;  %7851 = vmatprep.subr.bf16.mxu1 %v7850_v36  ;;  %v3567_v56 = vmul.f32 %v10595_v21, %v10244_v26  ;;  %v3568_v52 = vmul.f32 %v10597_v57, %v10305_v62 }
 0x941   : > { %v10639_v50 = vpop.eup %8499  ;;  %8509 = vpow2.f32 %v4054_v45  ;;  %v4004_v22 = vrot.slane %v4003_v34, 4  ;;  %7853 = vmatpush1.bf16.msra.mxu1 %v7852_v42  ;;  %v10642_v1 = vadd.f32 %v3927_v5, %v11800_v12  ;;  %v7856_v63 = vpack.c.bf16 %v10597_v57, %v10595_v21  ;;  %v11801_v42 = vld [vmem:[#allocation70_spill] sm:$0xff] }
 0x942   : > { %v10646_v20 = vpop.eup %8501  ;;  %8511 = vpow2.f32 %v4056_v19  ;;  %v4040_v18 = vsub.f32 %v10575_v28, %v3995_v29  ;;  %v4041_v27 = vsub.f32 %v10569_v3, %v3995_v29  ;;  %v4000_v30 = vmax.f32 %v3998_v46, %v3999_v4  ;;  %v7076_v23 = vpop.f32.mrb[70].mxu0  ;;  %v11802_v29 = vld [vmem:[#allocation71_spill] sm:$0xff] }
 0x943   : > { %v10650_v13 = vpop.eup %8503  ;;  %v4005_v45 = vmax.f32 %v4003_v34, %v4004_v22  ;;  %v7854_v36 = vpack.c.bf16 %v3568_v52, %v3567_v56  ;;  %v4010_v5 = vmax.f32 %v10642_v1, %v10631_v33  ;;  %v10655_v12 = vadd.f32 %v7073_v43, %v11801_v42  ;;  %v3947_v21 = vpop.f32.mrb[71].mxu0  ;;  %v11803_v52 = vld [vmem:[#allocation72_spill] sm:$0xff] }
 0x944   : > { %v4058_v57 = vmul.f32 1.442695, %v4040_v18  ;;  %v4060_v47 = vmul.f32 1.442695, %v4041_v27  ;;  %v4001_v19 = vrot.slane %v4000_v30, 1  ;;  %v3569_v28 = vmul.f32 %v10613_v48, %v10244_v26 }
 0x945   : > { %v4006_v3 = vrot.slane %v4005_v45, 2  ;;  %7855 = vmatprep.subr.bf16.mxu1 %v7854_v36  ;;  %v4011_v46 = vrot.slane %v4010_v5, 4  ;;  %v3570_v34 = vmul.f32 %v10617_v17, %v10305_v62  ;;  %v10662_v4 = vadd.f32 %v3937_v49, %v11802_v29 }
 0x946   : > { %8513 = vpow2.f32 %v4058_v57  ;;  %v4002_v56 = vmax.f32 %v4000_v30, %v4001_v19  ;;  %7857 = vmatpush1.bf16.msra.mxu1 %v7856_v63  ;;  %v7860_v43 = vpack.c.bf16 %v10617_v17, %v10613_v48  ;;  %v10667_v22 = vadd.f32 %v7076_v23, %v11803_v52  ;;  %v7079_v18 = vpop.f32.mrb[72].mxu0 }
 0x947   : > { %v10669_v27 = vpop.eup %8505  ;;  %8515 = vpow2.f32 %v4060_v47  ;;  %v4007_v36 = vmax.f32 %v4005_v45, %v4006_v3  ;;  %v4012_v42 = vmax.f32 %v4010_v5, %v4011_v46  ;;  %v7858_v9 = vpack.c.bf16 %v3570_v34, %v3569_v28  ;;  %v3957_v41 = vpop.f32.mrb[73].mxu0  ;;  %v11804_v45 = vld [vmem:[#allocation73_spill] sm:$0xff] }
 0x948   : > { %v10671_v15 = vpop.eup %8507  ;;  %v4042_v49 = vsub.f32 %v10602_v10, %v4002_v56  ;;  %v4043_v63 = vsub.f32 %v10591_v35, %v4002_v56  ;;  %v4017_v48 = vmax.f32 %v10662_v4, %v10655_v12  ;;  %v3571_v17 = vmul.f32 %v10633_v55, %v10244_v26 }
 0x949   : > { %v4008_v30 = vrot.slane %v4007_v36, 1  ;;  %v4013_v23 = vrot.slane %v4012_v42, 2  ;;  %7859 = vmatprep.subr.bf16.mxu1 %v7858_v9  ;;  %v3572_v47 = vmul.f32 %v10639_v50, %v10305_v62  ;;  %v10682_v5 = vadd.f32 %v3947_v21, %v11804_v45  ;;  %v11805_v45 = vld [vmem:[#allocation74_spill] sm:$0xff] }
 0x94a   : > { %v4062_v57 = vmul.f32 1.442695, %v4042_v49  ;;  %v4064_v19 = vmul.f32 1.442695, %v4043_v63  ;;  %v4018_v10 = vrot.slane %v4017_v48, 4  ;;  %7861 = vmatpush1.bf16.msra.mxu1 %v7860_v43  ;;  %v7864_v35 = vpack.c.bf16 %v10639_v50, %v10633_v55 }
 0x94b   : > { %v10686_v28 = vpop.eup %8509  ;;  %v4009_v3 = vmax.f32 %v4007_v36, %v4008_v30  ;;  %v4014_v46 = vmax.f32 %v4012_v42, %v4013_v23  ;;  %v7862_v34 = vpack.c.bf16 %v3572_v47, %v3571_v17  ;;  %v4024_v9 = vmax.f32 %v10682_v5, %v10667_v22 }
 0x94c   : > { %v10690_v56 = vpop.eup %8511  ;;  %8517 = vpow2.f32 %v4062_v57  ;;  %v4019_v21 = vmax.f32 %v4017_v48, %v4018_v10  ;;  %v10693_v49 = vadd.f32 %v7079_v18, %v11805_v45  ;;  %v3573_v43 = vmul.f32 %v10646_v20, %v10244_v26  ;;  %v11806_v48 = vld [vmem:[#allocation75_spill] sm:$0xff] }
 0x94d   : > { %8519 = vpow2.f32 %v4064_v19  ;;  %v4044_v55 = vsub.f32 %v10622_v32, %v4009_v3  ;;  %v4045_v50 = vsub.f32 %v10611_v60, %v4009_v3  ;;  %v4015_v42 = vrot.slane %v4014_v46, 1  ;;  %7863 = vmatprep.subr.bf16.mxu1 %v7862_v34 }
 0x94e   : > { %v4020_v36 = vrot.slane %v4019_v21, 2  ;;  %v4025_v63 = vrot.slane %v4024_v9, 4  ;;  %7865 = vmatpush1.bf16.msra.mxu1 %v7864_v35  ;;  %v3574_v17 = vmul.f32 %v10650_v13, %v10305_v62  ;;  %v10702_v30 = vadd.f32 %v3957_v41, %v11806_v48 }
 0x94f   : > { %v4066_v18 = vmul.f32 1.442695, %v4044_v55  ;;  %v4068_v23 = vmul.f32 1.442695, %v4045_v50  ;;  %v4016_v47 = vmax.f32 %v4014_v46, %v4015_v42  ;;  %v7868_v57 = vpack.c.bf16 %v10650_v13, %v10646_v20 }
 0x950   : > { %v10706_v32 = vpop.eup %8513  ;;  %v4021_v60 = vmax.f32 %v4019_v21, %v4020_v36  ;;  %v4026_v19 = vmax.f32 %v4024_v9, %v4025_v63  ;;  %v7866_v10 = vpack.c.bf16 %v3574_v17, %v3573_v43  ;;  %v4031_v35 = vmax.f32 %v10702_v30, %v10693_v49 }
 0x951   : > { %v10710_v3 = vpop.eup %8515  ;;  %8521 = vpow2.f32 %v4066_v18  ;;  %v4046_v41 = vsub.f32 %v10642_v1, %v4016_v47  ;;  %v4047_v34 = vsub.f32 %v10631_v33, %v4016_v47  ;;  %v3575_v46 = vmul.f32 %v10669_v27, %v10244_v26 }
 0x952   : > { %8523 = vpow2.f32 %v4068_v23  ;;  %v4022_v20 = vrot.slane %v4021_v60, 1  ;;  %v4027_v13 = vrot.slane %v4026_v19, 2  ;;  %7867 = vmatprep.subr.bf16.mxu1 %v7866_v10  ;;  %v4032_v21 = vrot.slane %v4031_v35, 4 }
 0x953   : > { %v4070_v9 = vmul.f32 1.442695, %v4046_v41  ;;  %v4072_v43 = vmul.f32 1.442695, %v4047_v34  ;;  %7869 = vmatpush1.bf16.msra.mxu1 %v7868_v57  ;;  %v3576_v55 = vmul.f32 %v10671_v15, %v10305_v62  ;;  %v7872_v50 = vpack.c.bf16 %v10671_v15, %v10669_v27 }
 0x954   : > { %v4023_v1 = vmax.f32 %v4021_v60, %v4022_v20  ;;  %v4028_v42 = vmax.f32 %v4026_v19, %v4027_v13  ;;  %v4033_v33 = vmax.f32 %v4031_v35, %v4032_v21  ;;  %v4086_v36 = vmul.f32 %v10686_v28, %v10244_v26 }
 0x955   : > { %8525 = vpow2.f32 %v4070_v9  ;;  %v7870_v63 = vpack.c.bf16 %v3576_v55, %v3575_v46  ;;  %v4087_v17 = vmul.f32 %v10690_v56, %v10305_v62  ;;  %v7908_v18 = vpack.c.bf16 %v10690_v56, %v10686_v28 }
 0x956   : > { %v8518_v23 = vpop.eup %8517  ;;  %8527 = vpow2.f32 %v4072_v43  ;;  %v4048_v47 = vsub.f32 %v10662_v4, %v4023_v1  ;;  %v4049_v15 = vsub.f32 %v10655_v12, %v4023_v1  ;;  %v4029_v27 = vrot.slane %v4028_v42, 1 }
 0x957   : > { %v8520_v57 = vpop.eup %8519  ;;  %v4034_v60 = vrot.slane %v4033_v33, 2  ;;  %7871 = vmatprep.subr.bf16.mxu1 %v7870_v63  ;;  %v7906_v19 = vpack.c.bf16 %v4087_v17, %v4086_v36  ;;  %v4088_v10 = vmul.f32 %v10706_v32, %v10244_v26  ;;  %v4089_v35 = vmul.f32 %v10710_v3, %v10305_v62 }
 0x958   : > { %v4074_v41 = vmul.f32 1.442695, %v4048_v47  ;;  %v4076_v34 = vmul.f32 1.442695, %v4049_v15  ;;  %v4030_v28 = vmax.f32 %v4028_v42, %v4029_v27  ;;  %7873 = vmatpush1.bf16.msra.mxu1 %v7872_v50  ;;  %v7912_v4 = vpack.c.bf16 %v10710_v3, %v10706_v32  ;;  %v8614_v50 = vld [vmem:[#allocation5 + $0x10] sm:$0xff] }
 0x959   : > { %v4035_v56 = vmax.f32 %v4033_v33, %v4034_v60  ;;  %7907 = vmatprep.subr.bf16.mxu1 %v7906_v19  ;;  %v7910_v12 = vpack.c.bf16 %v4089_v35, %v4088_v10  ;;  %v4090_v46 = vmul.f32 %v8518_v23, %v10244_v26  ;;  %v4091_v20 = vmul.f32 %v8520_v57, %v10305_v62 }
 0x95a   : > { %8529 = vpow2.f32 %v4074_v41  ;;  %v4050_v13 = vsub.f32 %v10682_v5, %v4030_v28  ;;  %v4051_v21 = vsub.f32 %v10667_v22, %v4030_v28  ;;  %v7916_v9 = vpack.c.bf16 %v8520_v57, %v8518_v23 }
 0x95b   : > { %v8522_v43 = vpop.eup %8521  ;;  %8531 = vpow2.f32 %v4076_v34  ;;  %v4036_v55 = vrot.slane %v4035_v56, 1  ;;  %3642 = vmatmul.mubr.f32.vlgmr.msra.gmra.mrb[44].mxu1 %v8614_v50  ;;  %v7914_v1 = vpack.c.bf16 %v4091_v20, %v4090_v46 }
 0x95c   : > { %v8524_v32 = vpop.eup %8523  ;;  %v4078_v3 = vmul.f32 1.442695, %v4050_v13  ;;  %v4080_v42 = vmul.f32 1.442695, %v4051_v21  ;;  %7909 = vmatpush1.bf16.msra.mxu1 %v7908_v18  ;;  %v4092_v33 = vmul.f32 %v8522_v43, %v10244_v26  ;;  %4166 = vmatprep.mubr.f32.mxu1 %v11672_v7 }
 0x95d   : > { %v4037_v36 = vmax.f32 %v4035_v56, %v4036_v55  ;;  %7911 = vmatprep.subr.bf16.mxu1 %v7910_v12  ;;  %v4093_v5 = vmul.f32 %v8524_v32, %v10305_v62  ;;  %v7920_v22 = vpack.c.bf16 %v8524_v32, %v8522_v43 }
 0x95e   : > { %8533 = vpow2.f32 %v4078_v3  ;;  %v4198_v3 = vld [vmem:[#allocation5 + $0x668] sm:$0xff] }
 0x95f   : > { %v8526_v63 = vpop.eup %8525  ;;  %8535 = vpow2.f32 %v4080_v42  ;;  %v4052_v17 = vsub.f32 %v10702_v30, %v4037_v36  ;;  %v4053_v23 = vsub.f32 %v10693_v49, %v4037_v36  ;;  %v7918_v47 = vpack.c.bf16 %v4093_v5, %v4092_v33  ;;  %v4200_v42 = vld [vmem:[#allocation5 + $0x678] sm:$0xff]  ;;  %v4197_v36 = vld [vmem:[#allocation5 + $0x660] sm:$0xff]  ;;  %v4199_v5 = vld [vmem:[#allocation5 + $0x670] sm:$0xff] }
 0x960   : > { %v8528_v15 = vpop.eup %8527  ;;  %7913 = vmatpush1.bf16.msra.mxu1 %v7912_v4  ;;  %v4094_v18 = vmul.f32 %v8526_v63, %v10244_v26  ;;  %v7946_v33 = vpack.c.bf16 %v4200_v42, %v4198_v3 }
 0x961   : > { %v4082_v27 = vmul.f32 1.442695, %v4052_v17  ;;  %v4084_v57 = vmul.f32 1.442695, %v4053_v23  ;;  %7915 = vmatprep.subr.bf16.mxu1 %v7914_v1  ;;  %v4095_v60 = vmul.f32 %v8528_v15, %v10305_v62  ;;  %v7924_v19 = vpack.c.bf16 %v8528_v15, %v8526_v63  ;;  %v4202_v63 = vld [vmem:[#allocation5 + $0x688] sm:$0xff]  ;;  %v4203_v23 = vld [vmem:[#allocation5 + $0x690] sm:$0xff] }
 0x962   : > { %7947 = vmatprep.subr.bf16.mxu0 %v7946_v33  ;;  %v4206_v15 = vld [vmem:[#allocation5 + $0x6a8] sm:$0xff]  ;;  %v4176_v33 = vld [vmem:[#allocation5 + $0xf95] ss:$0 sm:$0xff] }
 0x963   : > { %8537 = vpow2.f32 %v4082_v27  ;;  %v7922_v10 = vpack.c.bf16 %v4095_v60, %v4094_v18  ;;  %v4208_v18 = vld [vmem:[#allocation5 + $0x6b8] sm:$0xff] }
 0x964   : > { %v8530_v35 = vpop.eup %8529  ;;  %8539 = vpow2.f32 %v4084_v57  ;;  %7917 = vmatpush1.bf16.msra.mxu1 %v7916_v9  ;;  %v7954_v27 = vpack.c.bf16 %v4208_v18, %v4206_v15  ;;  %v4207_v57 = vld [vmem:[#allocation5 + $0x6b0] sm:$0xff] }
 0x965   : > { %v8532_v41 = vpop.eup %8531  ;;  %7919 = vmatprep.subr.bf16.mxu1 %v7918_v47  ;;  %v4096_v49 = vmul.f32 %v8530_v35, %v10244_v26 }
 0x966   : > { %v4097_v30 = vmul.f32 %v8532_v41, %v10305_v62  ;;  %v7928_v34 = vpack.c.bf16 %v8532_v41, %v8530_v35  ;;  %v4209_v41 = vld [vmem:[#allocation5 + $0x6c0] sm:$0xff] }
 0x968   : > { %v8534_v28 = vpop.eup %8533  ;;  %7921 = vmatpush1.bf16.msra.mxu1 %v7920_v22  ;;  %v7926_v4 = vpack.c.bf16 %v4097_v30, %v4096_v49  ;;  %v7948_v22 = vpack.c.bf16 %v4199_v5, %v4197_v36  ;;  %v4211_v49 = vld [vmem:[#allocation5 + $0x6d0] sm:$0xff] }
 0x969   : > { %v8536_v56 = vpop.eup %8535  ;;  %7923 = vmatprep.subr.bf16.mxu1 %v7922_v10  ;;  %v4098_v12 = vmul.f32 %v8534_v28, %v10244_v26  ;;  %v4212_v10 = vld [vmem:[#allocation5 + $0x6d8] sm:$0xff]  ;;  %v7960_v30 = vpack.c.bf16 %v4211_v49, %v4209_v41  ;;  %v4179_v5 = vld [vmem:[#allocation5 + $0xf96] ss:$0 sm:$0xff]  ;;  %v11810_v41 = vld [vmem:[#allocation39_spill] sm:$0xff] }
 0x96a   : > { %v4099_v46 = vmul.f32 %v8536_v56, %v10305_v62  ;;  %v7932_v20 = vpack.c.bf16 %v8536_v56, %v8534_v28  ;;  %7949 = vmatpush1.bf16.msra.mxu0 %v7948_v22  ;;  %v4216_v28 = vld [vmem:[#allocation5 + $0x6f8] sm:$0xff]  ;;  %v4213_v56 = vld [vmem:[#allocation5 + $0x6e0] sm:$0xff]  ;;  %v11811_v49 = vmax.f32 %v11810_v41, 0.0 }
 0x96c   : > { %7925 = vmatpush1.bf16.msra.mxu1 %v7924_v19  ;;  %v7930_v13 = vpack.c.bf16 %v4099_v46, %v4098_v12  ;;  %v4210_v19 = vld [vmem:[#allocation5 + $0x6c8] sm:$0xff]  ;;  %v4215_v12 = vld [vmem:[#allocation5 + $0x6f0] sm:$0xff] }
 0x96d   : > { %v8538_v21 = vpop.eup %8537  ;;  %7927 = vmatprep.subr.bf16.mxu1 %v7926_v4  ;;  %v7958_v35 = vpack.c.bf16 %v4212_v10, %v4210_v19  ;;  %v7964_v46 = vpack.c.bf16 %v4215_v12, %v4213_v56  ;;  %v4314_v12 = vld [vmem:[#allocation5 + $0x740] sm:$0xff] }
 0x96e   : > { %v8540_v9 = vpop.eup %8539  ;;  %v4100_v43 = vmul.f32 %v8538_v21, %v10244_v26  ;;  %v4204_v26 = vld [vmem:[#allocation5 + $0x698] sm:$0xff] }
 0x96f   : > { %v4101_v55 = vmul.f32 %v8540_v9, %v10305_v62  ;;  %v7936_v1 = vpack.c.bf16 %v8540_v9, %v8538_v21  ;;  %v7950_v17 = vpack.c.bf16 %v4204_v26, %v4202_v63  ;;  %v4201_v62 = vld [vmem:[#allocation5 + $0x680] sm:$0xff]  ;;  %v4182_v63 = vld [vmem:[#allocation5 + $0xf97] ss:$0 sm:$0xff] }
 0x970   : > { %7929 = vmatpush1.bf16.msra.mxu1 %v7928_v34  ;;  %v7952_v47 = vpack.c.bf16 %v4203_v23, %v4201_v62  ;;  %v4214_v34 = vld [vmem:[#allocation5 + $0x6e8] sm:$0xff]  ;;  %v4217_v9 = vld [vmem:[#allocation5 + $0x700] sm:$0xff] }
 0x971   : > { %7931 = vmatprep.subr.bf16.mxu1 %v7930_v13  ;;  %v7934_v32 = vpack.c.bf16 %v4101_v55, %v4100_v43  ;;  %7951 = vmatprep.subr.bf16.mxu0 %v7950_v17  ;;  %v7962_v4 = vpack.c.bf16 %v4216_v28, %v4214_v34  ;;  %v4220_v13 = vld [vmem:[#allocation5 + $0x718] sm:$0xff]  ;;  %v4219_v43 = vld [vmem:[#allocation5 + $0x710] sm:$0xff]  ;;  %v4312_v28 = vld [vmem:[#allocation5 + $0x720] sm:$0xff] }
 0x972   : > { %7953 = vmatpush1.bf16.msra.mxu0 %v7952_v47  ;;  %v7968_v55 = vpack.c.bf16 %v4219_v43, %v4217_v9  ;;  %v11807_v62 = vld [vmem:[#allocation36_spill] sm:$0xff]  ;;  %v4318_v43 = vld [vmem:[#allocation5 + $0x780] sm:$0xff] }
 0x973   : > { %7955 = vmatprep.subr.bf16.mxu0 %v7954_v27  ;;  %v11808_v23 = vmax.f32 %v11807_v62, 0.0  ;;  %v4327_v62 = vld [vmem:[#allocation5 + $0x810] sm:$0xff] }
 0x974   : > { %7933 = vmatpush1.bf16.msra.mxu1 %v7932_v20  ;;  %v4218_v20 = vld [vmem:[#allocation5 + $0x708] sm:$0xff] }
 0x975   : > { %7935 = vmatprep.subr.bf16.mxu1 %v7934_v32  ;;  %v7966_v21 = vpack.c.bf16 %v4220_v13, %v4218_v20  ;;  %v4316_v13 = vld [vmem:[#allocation5 + $0x760] sm:$0xff] }
 0x978   : > { %7937 = vmatpush1.bf16.msra.mxu1 %v7936_v1 }
 0x97b   : > { %4167 = vmatmul.mubr.f32.vlgmr.msra.gmra.mrb[46].mxu1 %v8614_v50  ;;  %v4205_v50 = vld [vmem:[#allocation5 + $0x6a0] sm:$0xff] }
 0x97c   : > { %v7956_v60 = vpack.c.bf16 %v4207_v57, %v4205_v50 }
 0x97e   : > { %7957 = vmatpush1.bf16.msra.mxu0 %v7956_v60 }
 0x97f   : > { %7959 = vmatprep.subr.bf16.mxu0 %v7958_v35 }
 0x982   : > { %7961 = vmatpush1.bf16.msra.mxu0 %v7960_v30 }
 0x983   : > { %7963 = vmatprep.subr.bf16.mxu0 %v7962_v4  ;;  %v4313_v4 = vld [vmem:[#allocation5 + $0x730] sm:$0xff] }
 0x984   : > { %v10767_v56 = vpack.c.bf16 %v4313_v4, %v4312_v28 }
 0x986   : > { %7965 = vmatpush1.bf16.msra.mxu0 %v7964_v46  ;;  %7971 = vmatprep.subr.bf16.mxu1 %v10767_v56  ;;  %v4315_v46 = vld [vmem:[#allocation5 + $0x750] sm:$0xff] }
 0x987   : > { %7967 = vmatprep.subr.bf16.mxu0 %v7966_v21  ;;  %7973 = vmatpush3.bf16.msra.mxu1 %v10767_v56  ;;  %v10771_v20 = vpack.c.bf16 %v4315_v46, %v4314_v12  ;;  %v4317_v21 = vld [vmem:[#allocation5 + $0x770] sm:$0xff] }
 0x988   : > { %v10775_v9 = vpack.c.bf16 %v4317_v21, %v4316_v13  ;;  %v11814_v13 = vld [vmem:[#allocation13_spill] sm:$0xff] }
 0x989   : > { %7975 = vmatprep.subr.bf16.mxu1 %v10771_v20 }
 0x98a   : > { %7969 = vmatpush1.bf16.msra.mxu0 %v7968_v55  ;;  %v4319_v55 = vld [vmem:[#allocation5 + $0x790] sm:$0xff] }
 0x98b   : > { %7977 = vmatpush3.bf16.msra.mxu1 %v10771_v20 }
 0x98c   : > { %7979 = vmatprep.subr.bf16.mxu1 %v10775_v9 }
 0x98f   : > { %7981 = vmatpush3.bf16.msra.mxu1 %v10775_v9 }
 0xa2e   : > { %v3643_v1 = vpop.f32.mrb[44].mxu1 }
 0xa2f   : > { %v3648_v32 = vmax.f32 %v3643_v1, 1e-16  ;;  %v3645_v3 = vpop.f32.mrb[45].mxu1  ;;  %v4320_v1 = vld [vmem:[#allocation5 + $0x7a0] sm:$0xff] }
 0xa31   : > { %8541 = vrcp.f32 %v3648_v32  ;;  %v10778_v32 = vpack.c.bf16 %v4319_v55, %v4318_v43  ;;  %v11815_v43 = vld [vmem:[#allocation12_spill] sm:$0xff] }
 0xa33   : > { %7983 = vmatprep.subr.bf16.mxu1 %v10778_v32 }
 0xa34   : > { %7985 = vmatpush3.bf16.msra.mxu1 %v10778_v32 }
 0xa3b   : > { %v8542_v42 = vpop.eup %8541 }
 0xa3c   : > { %v3650_v36 = vmul.f32 %v8542_v42, %v3645_v3  ;;  %v4321_v3 = vld [vmem:[#allocation5 + $0x7b0] sm:$0xff] }
 0xa3d   : > { %v10782_v42 = vpack.c.bf16 %v4321_v3, %v4320_v1  ;;  %v11816_v1 = vld [vmem:[#allocation16_spill] sm:$0xff] }
 0xa3e   : > { %v4177_v22 = vadd.f32 %v4176_v33, %v3650_v36  ;;  %v4323_v36 = vld [vmem:[#allocation5 + $0x7d0] sm:$0xff] }
 0xa3f   : > { %7987 = vmatprep.subr.bf16.mxu1 %v10782_v42 }
 0xa40   : > { %v4180_v26 = vmul.f32 %v4179_v5, %v4177_v22  ;;  %7989 = vmatpush3.bf16.msra.mxu1 %v10782_v42  ;;  %v4324_v22 = vld [vmem:[#allocation5 + $0x7e0] sm:$0xff] }
 0xa42   : > { %v4183_v17 = vadd.f32 %v4182_v63, %v4180_v26 }
 0xa44   : > { %v10753_v47 = vadd.f32 %v4183_v17, %v11808_v23  ;;  %v4326_v17 = vld [vmem:[#allocation5 + $0x800] sm:$0xff] }
 0xa45   : > { %v10795_v23 = vpack.c.bf16 %v4327_v62, %v4326_v17 }
 0xa46   : > { %11809 = vst [vmem:[#allocation38_spill] sm:$0xff] %v10753_v47  ;;  %v11625_v15 = vmax.f32 %v10753_v47, 0.0 }
 0xa48   : > { %4299 = vmatmul.mubr.f32.vlgmr.msra.gmra.mrb[74].mxu0 %v11625_v15 }
 0xa49   : > { %4304 = vmatprep.mubr.f32.mxu0 %v11672_v7 }
 0xa4e   : > { %v4168_v18 = vpop.f32.mrb[46].mxu1 }
 0xa4f   : > { %v4173_v27 = vmax.f32 %v4168_v18, 1e-16  ;;  %v4170_v50 = vpop.f32.mrb[47].mxu1  ;;  %v8615_v18 = vld [vmem:[%s8917_s3] sm:$0xff] }
 0xa50   : > { %5403 = vrot.lane.b32.xlu0 %v8615_v18, %s8755_s15  ;;  %v11818_v18 = vld [vmem:[#allocation20_spill] sm:$0xff] }
 0xa51   : > { %8543 = vrcp.f32 %v4173_v27  ;;  %v4222_v27 = vld [vmem:[#allocation5 + $0xfa0] ss:$8 sm:$0x3] }
 0xa52   : > { %v4227_v28 = vrot.slane %v4222_v27, %v8939_v54 }
 0xa5b   : > { %v8544_v57 = vpop.eup %8543 }
 0xa5c   : > { %v4175_v60 = vmul.f32 %v8544_v57, %v4170_v50  ;;  %v11813_v50 = vld [vmem:[#allocation11_spill] sm:$0xff] }
 0xa5d   : > { %v10802_v57 = vrot.slane %v4222_v27, %v11813_v50  ;;  %v11819_v50 = vld [vmem:[#allocation22_spill] sm:$0xff] }
 0xa5e   : > { %v4178_v19 = vadd.f32 %v4176_v33, %v4175_v60  ;;  %v4322_v33 = vld [vmem:[#allocation5 + $0x7c0] sm:$0xff] }
 0xa60   : > { %v4181_v10 = vmul.f32 %v4179_v5, %v4178_v19  ;;  %v10786_v5 = vpack.c.bf16 %v4323_v36, %v4322_v33  ;;  %v11817_v33 = vld [vmem:[#allocation18_spill] sm:$0xff] }
 0xa62   : > { %v4184_v35 = vadd.f32 %v4182_v63, %v4181_v10  ;;  %7991 = vmatprep.subr.bf16.mxu1 %v10786_v5  ;;  %v4325_v63 = vld [vmem:[#allocation5 + $0x7f0] sm:$0xff] }
 0xa63   : > { %7993 = vmatpush3.bf16.msra.mxu1 %v10786_v5  ;;  %v10791_v26 = vpack.c.bf16 %v4325_v63, %v4324_v22 }
 0xa64   : > { %v10761_v30 = vadd.f32 %v4184_v35, %v11811_v49  ;;  %v10805_v35 = vld [vmem:[#allocation5 + $0xfa1] ss:$0 sm:$0xff] }
 0xa65   : > { %7995 = vmatprep.subr.bf16.mxu1 %v10791_v26  ;;  %v4436_v21 = vmul.f32 %v10805_v35, %v11814_v13  ;;  %v4434_v55 = vmul.f32 %v10805_v35, %v11815_v43  ;;  %v4438_v3 = vmul.f32 %v10805_v35, %v11816_v1  ;;  %v4440_v36 = vmul.f32 %v10805_v35, %v11817_v33 }
 0xa66   : > { %11812 = vst [vmem:[#allocation41_spill] sm:$0xff] %v10761_v30  ;;  %v11624_v34 = vmax.f32 %v10761_v30, 0.0  ;;  %v4442_v27 = vmul.f32 %v10805_v35, %v11818_v18 }
 0xa67   : > { %7997 = vmatpush3.bf16.msra.mxu1 %v10791_v26 }
 0xa68   : > { %4305 = vmatmul.mubr.f32.gmra.mrb[76].mxu0 %v11624_v34  ;;  %7999 = vmatprep.subr.bf16.mxu1 %v10795_v23 }
 0xa69   : > { %4843 = vmatprep.mubr.f32.mxu0 %v11672_v7 }
 0xa6b   : > { %8001 = vmatpush3.bf16.msra.mxu1 %v10795_v23 }
 0xa6c   : > { %8035 = vmatprep.subr.bf16.mxu1 %v10767_v56 }
 0xb1b   : > { %v4300_v60 = vpop.f32.mrb[74].mxu0 }
 0xb1c   : > { %v4302_v19 = vpop.f32.mrb[75].mxu0 }
 0xb1d   : > { %v4303_v10 = vadd.f32 %v4302_v19, %v10802_v57  ;;  %v4444_v19 = vmul.f32 %v10805_v35, %v11819_v50 }
 0xb1f   : > { %v4329_v41 = vcombine.high %v4303_v10, %v4303_v10  ;;  %v4336_v49 = vrot.slane %v4303_v10, %v9057_v0  ;;  %v10825_v10 = vadd.f32 %v4300_v60, %v4227_v28 }
 0xb21   : > { %v4343_v4 = vrot.slane %v4329_v41, %v9057_v0  ;;  %v4344_v12 = vcombine.high %v4336_v49, %v4336_v49  ;;  %v4352_v46 = vrot.slane %v4336_v49, %v9057_v0 }
 0xb23   : > { %v4345_v22 = vcombine.high %v4343_v4, %v4343_v4  ;;  %v4359_v63 = vrot.slane %v4343_v4, %v9057_v0  ;;  %v4366_v17 = vrot.slane %v4344_v12, %v9057_v0  ;;  %v4374_v62 = vcombine.high %v4352_v46, %v4352_v46  ;;  %v11820_v4 = vld [vmem:[#allocation24_spill] sm:$0xff] }
 0xb24   : > { %v4381_v41 = vrot.slane %v4352_v46, %v8939_v54  ;;  %v4446_v12 = vmul.f32 %v10805_v35, %v11820_v4 }
 0xb25   : > { %v4373_v49 = vrot.slane %v4345_v22, %v9057_v0  ;;  %v4375_v13 = vcombine.high %v4359_v63, %v4359_v63  ;;  %v4376_v43 = vcombine.high %v4366_v17, %v4366_v17  ;;  %v4385_v1 = vrot.slane %v4366_v17, %v8939_v54 }
 0xb26   : > { %v4389_v33 = vrot.slane %v4374_v62, %v8939_v54  ;;  %v4397_v18 = vrot.slane %v4359_v63, %v8939_v54  ;;  %v4418_v34 = vadd.f32 %v4381_v41, %v10825_v10 }
 0xb27   : > { %v4377_v50 = vcombine.high %v4373_v49, %v4373_v49  ;;  %v4420_v60 = vadd.f32 %v4385_v1, %v10825_v10  ;;  %v4393_v46 = vrot.slane %v4376_v43, %v8939_v54  ;;  %v4401_v22 = vrot.slane %v4373_v49, %v8939_v54  ;;  %v11821_v49 = vld [vmem:[#allocation26_spill] sm:$0xff] }
 0xb28   : > { %v4450_v15 = vadd.f32 %v4434_v55, %v4418_v34  ;;  %v4422_v30 = vadd.f32 %v4389_v33, %v10825_v10  ;;  %v4426_v17 = vadd.f32 %v4397_v18, %v10825_v10  ;;  %v10841_v4 = vrot.slane %v4375_v13, %v8939_v54 }
 0xb29   : > { %v10843_v62 = vadd.f32 %v4436_v21, %v4420_v60  ;;  %v4424_v63 = vadd.f32 %v4393_v46, %v10825_v10  ;;  %v4428_v47 = vadd.f32 %v4401_v22, %v10825_v10  ;;  %v10848_v48 = vrot.slane %v4377_v50, %v8939_v54 }
 0xb2a   : > { %v4466_v43 = vmul.f32 0.2, %v4450_v15  ;;  %v10850_v45 = vadd.f32 %v4438_v3, %v4422_v30  ;;  %v10852_v34 = vadd.f32 %v4442_v27, %v4426_v17  ;;  %v4430_v55 = vadd.f32 %v10841_v4, %v10825_v10  ;;  %v11822_v3 = vld [vmem:[#allocation15_spill] sm:$0xff]  ;;  %v11823_v17 = vld [vmem:[#allocation14_spill] sm:$0xff] }
 0xb2b   : > { %v4448_v13 = vmul.f32 %v10805_v35, %v11821_v49  ;;  %v10858_v21 = vadd.f32 %v4440_v36, %v4424_v63  ;;  %v10860_v60 = vadd.f32 %v4444_v19, %v4428_v47  ;;  %v4432_v52 = vadd.f32 %v10848_v48, %v10825_v10  ;;  %v11824_v49 = vld [vmem:[#allocation17_spill] sm:$0xff]  ;;  %v11825_v47 = vld [vmem:[#allocation19_spill] sm:$0xff] }
 0xb2c   : > { %v4482_v50 = vmax.f32 %v4450_v15, %v4466_v43  ;;  %v10864_v29 = vadd.f32 %v4446_v12, %v4430_v55  ;;  %v4437_v27 = vmul.f32 %v10805_v35, %v11822_v3  ;;  %v4435_v24 = vmul.f32 %v10805_v35, %v11823_v17  ;;  %v11826_v63 = vld [vmem:[#allocation21_spill] sm:$0xff]  ;;  %v11827_v12 = vld [vmem:[#allocation23_spill] sm:$0xff] }
 0xb2d   : > { %v10866_v30 = vadd.f32 %v4448_v13, %v4432_v52  ;;  %v4439_v36 = vmul.f32 %v10805_v35, %v11824_v49  ;;  %v4441_v19 = vmul.f32 %v10805_v35, %v11825_v47  ;;  %v4443_v15 = vmul.f32 %v10805_v35, %v11826_v63  ;;  %v11828_v55 = vld [vmem:[#allocation25_spill] sm:$0xff]  ;;  %v11831_v47 = vld [vmem:[#allocation28_spill] sm:$0xff]  ;;  %v11832_v63 = vld [vmem:[#allocation31_spill] sm:$0xff] }
 0xb2e   : > { %7112 = vmatprep.mubr.f32.mxu1 %v4482_v50  ;;  %v4445_v52 = vmul.f32 %v10805_v35, %v11827_v12  ;;  %v4447_v13 = vmul.f32 %v10805_v35, %v11828_v55  ;;  %v11829_v50 = vld [vmem:[#allocation27_spill] sm:$0xff]  ;;  %v11830_v17 = vld [vmem:[#allocation29_spill] sm:$0xff]  ;;  %v4959_v11 = vmul.f32 %v10805_v35, %v11831_v47  ;;  %v10892_v53 = vmul.f32 %v10805_v35, %v11832_v63 }
 0xb2f   : > { %v4449_v3 = vmul.f32 %v10805_v35, %v11829_v50  ;;  %v4960_v59 = vmul.f32 %v10805_v35, %v11830_v17  ;;  %v4468_v55 = vmul.f32 0.2, %v10843_v62 }
 0xb3b   : > { %v4306_v43 = vpop.f32.mrb[76].mxu0 }
 0xb3c   : > { %v10886_v49 = vadd.f32 %v4306_v43, %v4227_v28  ;;  %v4308_v37 = vpop.f32.mrb[77].mxu0 }
 0xb3d   : > { %v4309_v12 = vadd.f32 %v4308_v37, %v10802_v57 }
 0xb3e   : > { %v4419_v6 = vadd.f32 %v4381_v41, %v10886_v49  ;;  %v4421_v50 = vadd.f32 %v4385_v1, %v10886_v49  ;;  %v4423_v17 = vadd.f32 %v4389_v33, %v10886_v49  ;;  %v4425_v28 = vadd.f32 %v4393_v46, %v10886_v49  ;;  %v11833_v46 = vld [vmem:[#allocation30_spill] sm:$0xff] }
 0xb3f   : > { %v4854_v43 = vcombine.high %v4309_v12, %v4309_v12  ;;  %v4861_v16 = vrot.slane %v4309_v12, %v9057_v0  ;;  %v4427_v47 = vadd.f32 %v4397_v18, %v10886_v49  ;;  %v4429_v63 = vadd.f32 %v4401_v22, %v10886_v49 }
 0xb40   : > { %v4451_v51 = vadd.f32 %v4435_v24, %v4419_v6  ;;  %v4453_v61 = vadd.f32 %v4437_v27, %v4421_v50  ;;  %v10903_v37 = vadd.f32 %v4439_v36, %v4423_v17  ;;  %v10905_v57 = vadd.f32 %v4441_v19, %v4425_v28  ;;  %v11835_v24 = vld [vmem:[#allocation32_spill] sm:$0xff] }
 0xb41   : > { %v4868_v41 = vrot.slane %v4854_v43, %v9057_v0  ;;  %v4869_v1 = vcombine.high %v4861_v16, %v4861_v16  ;;  %v4877_v33 = vrot.slane %v4861_v16, %v9057_v0  ;;  %v10909_v8 = vadd.f32 %v4443_v15, %v4427_v47  ;;  %v11836_v16 = vld [vmem:[#allocation35_spill] sm:$0xff] }
 0xb42   : > { %v4961_v12 = vmul.f32 %v10805_v35, %v11833_v46  ;;  %v4964_v18 = vmul.f32 %v10805_v35, %v11834_v25  ;;  %v4467_v22 = vmul.f32 0.2, %v4451_v51  ;;  %v10915_v6 = vadd.f32 %v4445_v52, %v4429_v63  ;;  %v11837_v25 = vld [vmem:[#allocation34_spill] sm:$0xff]  ;;  %v11838_v46 = vld [vmem:[#allocation37_spill] sm:$0xff] }
 0xb43   : > { %v4963_v27 = vmul.f32 %v10805_v35, %v11835_v24  ;;  %v4891_v36 = vrot.slane %v4869_v1, %v9057_v0  ;;  %v4899_v19 = vcombine.high %v4877_v33, %v4877_v33  ;;  %v4470_v50 = vmul.f32 0.2, %v10850_v45 }
 0xb44   : > { %v10923_v15 = vmul.f32 %v10805_v35, %v11836_v16  ;;  %v4906_v17 = vrot.slane %v4877_v33, %v8939_v54  ;;  %v4483_v28 = vmax.f32 %v4451_v51, %v4467_v22  ;;  %v4469_v43 = vmul.f32 0.2, %v4453_v61 }
 0xb45   : > { %v10928_v52 = vmul.f32 %v10805_v35, %v11837_v25  ;;  %v4870_v47 = vcombine.high %v4868_v41, %v4868_v41  ;;  %v4910_v63 = vrot.slane %v4891_v36, %v8939_v54  ;;  %v4484_v1 = vmax.f32 %v10843_v62, %v4468_v55 }
 0xb46   : > { %v4968_v24 = vmul.f32 %v10805_v35, %v11838_v46  ;;  %v10935_v39 = vrot.slane %v4868_v41, %v9057_v0  ;;  %v4944_v16 = vadd.f32 %v4906_v17, %v10886_v49  ;;  %7113 = vmatmul.mubr.f32.vlgmr.msra.gmra.mrb[48].mxu1 %v4483_v28  ;;  %v4472_v51 = vmul.f32 0.2, %v10858_v21 }
 0xb47   : > { %v4914_v33 = vrot.slane %v4899_v19, %v8939_v54  ;;  %7115 = vmatprep.mubr.f32.mxu1 %v4484_v1  ;;  %8037 = vmatpush3.bf16.msra.mxu1 %v10767_v56  ;;  %v4486_v22 = vmax.f32 %v10850_v45, %v4470_v50  ;;  %v4471_v62 = vmul.f32 0.2, %v10903_v37  ;;  %v4431_v55 = vadd.f32 %v10841_v4, %v10886_v49 }
 0xb48   : > { %v10945_v25 = vadd.f32 %v4960_v59, %v4944_v16  ;;  %v4485_v41 = vmax.f32 %v4453_v61, %v4469_v43  ;;  %8039 = vmatprep.subr.bf16.mxu1 %v10771_v20  ;;  %v4433_v28 = vadd.f32 %v10848_v48, %v10886_v49  ;;  %v4943_v19 = vadd.f32 %v4906_v17, %v10825_v10 }
 0xb49   : > { %v4898_v1 = vrot.slane %v4870_v47, %v9057_v0  ;;  %v4901_v56 = vcombine.high %v4891_v36, %v4891_v36  ;;  %v10952_v46 = vadd.f32 %v4447_v13, %v4431_v55  ;;  %v4945_v45 = vadd.f32 %v4910_v63, %v10825_v10 }
 0xb4a   : > { %v4922_v4 = vrot.slane %v10935_v39, %v8939_v54  ;;  %7116 = vmatmul.mubr.f32.gmra.mrb[50].mxu1 %v4485_v41  ;;  %v10957_v59 = vadd.f32 %v4449_v3, %v4433_v28  ;;  %v10959_v61 = vadd.f32 %v4959_v11, %v4943_v19  ;;  %v4946_v50 = vadd.f32 %v4910_v63, %v10886_v49 }
 0xb4b   : > { %7118 = vmatprep.mubr.f32.mxu1 %v4486_v22  ;;  %8041 = vmatpush3.bf16.msra.mxu1 %v10771_v20  ;;  %v10963_v48 = vadd.f32 %v4961_v12, %v4945_v45  ;;  %v4947_v0 = vadd.f32 %v4914_v33, %v10825_v10  ;;  %v4948_v13 = vadd.f32 %v4914_v33, %v10886_v49  ;;  %v4473_v11 = vmul.f32 0.2, %v10905_v57 }
 0xb4c   : > { %v4967_v36 = vmul.f32 %v10805_v35, %v11711_v58  ;;  %v4487_v17 = vmax.f32 %v10903_v37, %v4471_v62  ;;  %8043 = vmatprep.subr.bf16.mxu1 %v10775_v9  ;;  %v10973_v3 = vadd.f32 %v10892_v53, %v4946_v50  ;;  %v4488_v20 = vmax.f32 %v10858_v21, %v4472_v51 }
 0xb4d   : > { %v4474_v12 = vmul.f32 0.2, %v10852_v34  ;;  %v10977_v43 = vadd.f32 %v4963_v27, %v4947_v0  ;;  %v10979_v47 = vadd.f32 %v4964_v18, %v4948_v13  ;;  %v4970_v58 = vmul.f32 %v10805_v35, %v11712_v38 }
 0xb4e   : > { %v4969_v37 = vmul.f32 %v10805_v35, %v11713_v2  ;;  %v4900_v63 = vcombine.high %v10935_v39, %v10935_v39  ;;  %7119 = vmatmul.mubr.f32.gmra.mrb[52].mxu1 %v4487_v17  ;;  %v4918_v53 = vrot.slane %v4901_v56, %v8939_v54  ;;  %v4972_v21 = vmul.f32 %v10805_v35, %v11714_v40 }
 0xb4f   : > { %v4902_v16 = vcombine.high %v4898_v1, %v4898_v1  ;;  %7121 = vmatprep.mubr.f32.mxu1 %v4488_v20  ;;  %8045 = vmatpush3.bf16.msra.mxu1 %v10775_v9  ;;  %v4475_v18 = vmul.f32 0.2, %v10909_v8  ;;  %v4951_v38 = vadd.f32 %v4922_v4, %v10825_v10  ;;  %v4489_v27 = vmax.f32 %v10905_v57, %v4473_v11 }
 0xb50   : > { %8047 = vmatprep.subr.bf16.mxu1 %v10778_v32  ;;  %v4949_v2 = vadd.f32 %v4918_v53, %v10825_v10  ;;  %v4950_v39 = vadd.f32 %v4918_v53, %v10886_v49  ;;  %v4952_v51 = vadd.f32 %v4922_v4, %v10886_v49  ;;  %v4490_v40 = vmax.f32 %v10852_v34, %v4474_v12 }
 0xb51   : > { %v4476_v33 = vmul.f32 0.2, %v10860_v60  ;;  %v11000_v22 = vadd.f32 %v4967_v36, %v4951_v38  ;;  %v4926_v9 = vrot.slane %v4898_v1, %v8939_v54  ;;  %v4930_v41 = vrot.slane %v4900_v63, %v8939_v54 }
 0xb52   : > { %7122 = vmatmul.mubr.f32.gmra.mrb[54].mxu1 %v4489_v27  ;;  %v11004_v62 = vadd.f32 %v10928_v52, %v4949_v2  ;;  %v11007_v57 = vadd.f32 %v10923_v15, %v4950_v39  ;;  %v11009_v55 = vadd.f32 %v4968_v24, %v4952_v51  ;;  %v4971_v34 = vmul.f32 %v10805_v35, %v11715_v14 }
 0xb53   : > { %7124 = vmatprep.mubr.f32.mxu1 %v4490_v40  ;;  %8049 = vmatpush3.bf16.msra.mxu1 %v10778_v32  ;;  %v4478_v28 = vmul.f32 0.2, %v10864_v29  ;;  %v4953_v19 = vadd.f32 %v4926_v9, %v10825_v10  ;;  %v4954_v52 = vadd.f32 %v4926_v9, %v10886_v49  ;;  %v4491_v1 = vmax.f32 %v10909_v8, %v4475_v18 }
 0xb54   : > { %8051 = vmatprep.subr.bf16.mxu1 %v10782_v42  ;;  %v4477_v15 = vmul.f32 0.2, %v10915_v6  ;;  %v4955_v24 = vadd.f32 %v4930_v41, %v10825_v10  ;;  %v4934_v56 = vrot.slane %v4902_v16, %v8939_v54  ;;  %v4492_v14 = vmax.f32 %v10860_v60, %v4476_v33 }
 0xb55   : > { %v11024_v45 = vadd.f32 %v4969_v37, %v4953_v19  ;;  %v11026_v32 = vadd.f32 %v4970_v58, %v4954_v52  ;;  %v4956_v4 = vadd.f32 %v4930_v41, %v10886_v49  ;;  %v4974_v0 = vmul.f32 %v10805_v35, %v11716_v31 }
 0xb56   : > { %7125 = vmatmul.mubr.f32.gmra.mrb[56].mxu1 %v4491_v1  ;;  %v11029_v50 = vadd.f32 %v4971_v34, %v4955_v24  ;;  %v4493_v54 = vmax.f32 %v10915_v6, %v4477_v15  ;;  %v4479_v60 = vmul.f32 0.2, %v10952_v46  ;;  %v4958_v13 = vadd.f32 %v4934_v56, %v10886_v49  ;;  %v11840_v1 = vld [vmem:[#allocation45_spill] sm:$0xff] }
 0xb57   : > { %7127 = vmatprep.mubr.f32.mxu1 %v4492_v14  ;;  %8053 = vmatpush3.bf16.msra.mxu1 %v10782_v42  ;;  %v11032_v8 = vadd.f32 %v4972_v21, %v4956_v4  ;;  %v4494_v36 = vmax.f32 %v10864_v29, %v4478_v28  ;;  %v4480_v17 = vmul.f32 0.2, %v10866_v30  ;;  %v4481_v42 = vmul.f32 0.2, %v10957_v59  ;;  %v11839_v28 = vld [vmem:[#allocation44_spill] sm:$0xff]  ;;  %v11841_v14 = vld [vmem:[#allocation46_spill] sm:$0xff] }
 0xb58   : > { %8055 = vmatprep.subr.bf16.mxu1 %v10786_v5  ;;  %v11042_v11 = vadd.f32 %v4974_v0, %v4958_v13  ;;  %v4495_v31 = vmax.f32 %v10952_v46, %v4479_v60  ;;  %v4991_v20 = vmul.f32 0.2, %v10959_v61  ;;  %v4992_v29 = vmul.f32 0.2, %v10945_v25  ;;  %v11843_v13 = vld [vmem:[#allocation48_spill] sm:$0xff] }
 0xb59   : > { %v4496_v6 = vmax.f32 %v10866_v30, %v4480_v17  ;;  %v4497_v12 = vmax.f32 %v10957_v59, %v4481_v42  ;;  %v4993_v46 = vmul.f32 0.2, %v10963_v48  ;;  %v4994_v58 = vmul.f32 0.2, %v10973_v3  ;;  %v11844_v42 = vld [vmem:[#allocation49_spill] sm:$0xff] }
 0xb5a   : > { %7128 = vmatmul.mubr.f32.gmra.mrb[58].mxu1 %v4493_v54  ;;  %v5008_v30 = vmax.f32 %v10945_v25, %v4992_v29  ;;  %v4995_v37 = vmul.f32 0.2, %v10977_v43  ;;  %v4997_v53 = vmul.f32 0.2, %v11004_v62  ;;  %v4998_v25 = vmul.f32 0.2, %v11007_v57 }
 0xb5b   : > { %7130 = vmatprep.mubr.f32.mxu1 %v4494_v36  ;;  %8057 = vmatpush3.bf16.msra.mxu1 %v10786_v5  ;;  %v5007_v5 = vmax.f32 %v10959_v61, %v4991_v20  ;;  %v5010_v59 = vmax.f32 %v10973_v3, %v4994_v58  ;;  %v4996_v61 = vmul.f32 0.2, %v10979_v47  ;;  %v4999_v21 = vmul.f32 0.2, %v11000_v22 }
 0xb5c   : > { %8059 = vmatprep.subr.bf16.mxu1 %v10791_v26  ;;  %v5011_v63 = vmax.f32 %v10977_v43, %v4995_v37  ;;  %v5014_v3 = vmax.f32 %v11007_v57, %v4998_v25  ;;  %v5000_v16 = vmul.f32 0.2, %v11009_v55  ;;  %v5001_v18 = vmul.f32 0.2, %v11024_v45 }
 0xb5d   : > { %v5015_v43 = vmax.f32 %v11000_v22, %v4999_v21  ;;  %v4957_v38 = vadd.f32 %v4934_v56, %v10825_v10  ;;  %v5002_v2 = vmul.f32 0.2, %v11026_v32  ;;  %v5003_v51 = vmul.f32 0.2, %v11029_v50 }
 0xb5e   : > { %7131 = vmatmul.mubr.f32.gmra.mrb[60].mxu1 %v4495_v31  ;;  %v5016_v27 = vmax.f32 %v11009_v55, %v5000_v16  ;;  %v5017_v39 = vmax.f32 %v11024_v45, %v5001_v18  ;;  %v5004_v22 = vmul.f32 0.2, %v11032_v8  ;;  %v8756_v41 = vmov 0.0|0.0  }
 0xb5f   : > { %7133 = vmatprep.mubr.f32.mxu1 %v4496_v6  ;;  %8061 = vmatpush3.bf16.msra.mxu1 %v10791_v26  ;;  %v5009_v26 = vmax.f32 %v10963_v48, %v4993_v46  ;;  %v5013_v48 = vmax.f32 %v11004_v62, %v4997_v53  ;;  %v5018_v33 = vmax.f32 %v11026_v32, %v5002_v2  ;;  %v11845_v46 = vld [vmem:[#allocation50_spill] sm:$0xff] }
 0xb60   : > { %8063 = vmatprep.subr.bf16.mxu1 %v10795_v23  ;;  %v5019_v9 = vmax.f32 %v11029_v50, %v5003_v51  ;;  %v11842_v50 = vld [vmem:[#allocation47_spill] sm:$0xff] }
 0xb62   : > { %7134 = vmatmul.mubr.f32.gmra.mrb[62].mxu1 %v4497_v12 }
 0xb63   : > { %8065 = vmatpush3.bf16.msra.mxu1 %v10795_v23  ;;  %7168 = vmatprep.mubr.f32.mxu1 %v5007_v5  ;;  %v5012_v23 = vmax.f32 %v10979_v47, %v4996_v61  ;;  %v4973_v47 = vmul.f32 %v10805_v35, %v11717_v44  ;;  %v5020_v44 = vmax.f32 %v11032_v8, %v5004_v22  ;;  %v5006_v35 = vmul.f32 0.2, %v11042_v11  ;;  %v11846_v61 = vld [vmem:[#allocation51_spill] sm:$0xff] }
 0xb64   : > { %8101 = vmatprep.subr.bf16.mxu1 %v8756_v41 }
 0xb65   : > { %v4989_v40 = vadd.f32 %v4973_v47, %v4957_v38  ;;  %v5022_v55 = vmax.f32 %v11042_v11, %v5006_v35 }
 0xb66   : > { %7169 = vmatmul.mubr.f32.vlgmr.msra.gmra.mrb[64].mxu1 %v5008_v30 }
 0xb67   : > { %7171 = vmatprep.mubr.f32.mxu1 %v5009_v26  ;;  %v5005_v62 = vmul.f32 0.2, %v4989_v40 }
 0xb69   : > { %v5021_v57 = vmax.f32 %v4989_v40, %v5005_v62 }
 0xb6a   : > { %7172 = vmatmul.mubr.f32.gmra.mrb[66].mxu1 %v5010_v59 }
 0xb6b   : > { %7174 = vmatprep.mubr.f32.mxu1 %v5011_v63 }
 0xb6e   : > { %7175 = vmatmul.mubr.f32.gmra.mrb[68].mxu1 %v5012_v23 }
 0xb6f   : > { %7177 = vmatprep.mubr.f32.mxu1 %v5013_v48 }
 0xb72   : > { %7178 = vmatmul.mubr.f32.gmra.mrb[70].mxu1 %v5014_v3  ;;  %v11847_v3 = vld [vmem:[#allocation52_spill] sm:$0xff] }
 0xb73   : > { %7180 = vmatprep.mubr.f32.mxu1 %v5015_v43 }
 0xb76   : > { %7181 = vmatmul.mubr.f32.gmra.mrb[72].mxu1 %v5016_v27 }
 0xb77   : > { %7183 = vmatprep.mubr.f32.mxu1 %v5017_v39  ;;  %v11848_v39 = vld [vmem:[#allocation53_spill] sm:$0xff] }
 0xb7a   : > { %7184 = vmatmul.mubr.f32.gmra.mrb[74].mxu1 %v5018_v33 }
 0xb7b   : > { %7186 = vmatprep.mubr.f32.mxu1 %v5019_v9 }
 0xb7e   : > { %7187 = vmatmul.mubr.f32.gmra.mrb[76].mxu1 %v5020_v44 }
 0xb7f   : > { %7189 = vmatprep.mubr.f32.mxu1 %v5021_v57  ;;  %v11849_v57 = vld [vmem:[#allocation54_spill] sm:$0xff] }
 0xb82   : > { %7190 = vmatmul.mubr.f32.gmra.mrb[78].mxu1 %v5022_v55 }
 0xb83   : > { %7231 = vmatprep.mubr.msk.f32.mxu1 %vm8757_vm1, %v11672_v7 }
 0xc19   : > { %v7114_v34 = vpop.f32.mrb[48].mxu1 }
 0xc1a   : > { %v4644_v19 = vadd.f32 %v7114_v34, %v11839_v28  ;;  %v4564_v52 = vpop.f32.mrb[49].mxu1 }
 0xc1b   : > { %v4643_v15 = vadd.f32 %v4564_v52, %v11840_v1 }
 0xc1d   : > { %v4659_v24 = vmax.f32 %v4643_v15, %v4644_v19  ;;  %v7117_v56 = vpop.f32.mrb[50].mxu1 }
 0xc1e   : > { %v4646_v45 = vadd.f32 %v7117_v56, %v11841_v14  ;;  %v4574_v32 = vpop.f32.mrb[51].mxu1 }
 0xc1f   : > { %v4660_v4 = vrot.slane %v4659_v24, 4  ;;  %v4645_v8 = vadd.f32 %v4574_v32, %v11842_v50 }
 0xc21   : > { %v4661_v0 = vmax.f32 %v4659_v24, %v4660_v4  ;;  %v4666_v54 = vmax.f32 %v4645_v8, %v4646_v45  ;;  %v7120_v60 = vpop.f32.mrb[52].mxu1  ;;  %v11850_v24 = vld [vmem:[#allocation55_spill] sm:$0xff] }
 0xc22   : > { %v4648_v36 = vadd.f32 %v7120_v60, %v11843_v13  ;;  %v4584_v17 = vpop.f32.mrb[53].mxu1  ;;  %v11851_v60 = vld [vmem:[#allocation56_spill] sm:$0xff] }
 0xc23   : > { %v4662_v11 = vrot.slane %v4661_v0, 2  ;;  %v4667_v31 = vrot.slane %v4666_v54, 4  ;;  %v4647_v6 = vadd.f32 %v4584_v17, %v11844_v42 }
 0xc25   : > { %v4663_v20 = vmax.f32 %v4661_v0, %v4662_v11  ;;  %v4668_v29 = vmax.f32 %v4666_v54, %v4667_v31  ;;  %v4673_v12 = vmax.f32 %v4647_v6, %v4648_v36  ;;  %v7123_v5 = vpop.f32.mrb[54].mxu1  ;;  %v11852_v31 = vld [vmem:[#allocation57_spill] sm:$0xff] }
 0xc26   : > { %v11096_v30 = vadd.f32 %v7123_v5, %v11845_v46  ;;  %v4594_v58 = vpop.f32.mrb[55].mxu1 }
 0xc27   : > { %v4664_v26 = vrot.slane %v4663_v20, 1  ;;  %v4669_v37 = vrot.slane %v4668_v29, 2  ;;  %v4674_v59 = vrot.slane %v4673_v12, 4  ;;  %v11099_v63 = vadd.f32 %v4594_v58, %v11846_v61 }
 0xc29   : > { %v4665_v53 = vmax.f32 %v4663_v20, %v4664_v26  ;;  %v4670_v23 = vmax.f32 %v4668_v29, %v4669_v37  ;;  %v4675_v25 = vmax.f32 %v4673_v12, %v4674_v59  ;;  %v4680_v48 = vmax.f32 %v11099_v63, %v11096_v30  ;;  %v7126_v21 = vpop.f32.mrb[56].mxu1 }
 0xc2a   : > { %v11104_v16 = vadd.f32 %v7126_v21, %v11847_v3  ;;  %v4604_v43 = vpop.f32.mrb[57].mxu1 }
 0xc2b   : > { %v4715_v18 = vsub.f32 %v4643_v15, %v4665_v53  ;;  %v4716_v38 = vsub.f32 %v4644_v19, %v4665_v53  ;;  %v4671_v47 = vrot.slane %v4670_v23, 1  ;;  %v4676_v27 = vrot.slane %v4675_v25, 2  ;;  %v11853_v53 = vld [vmem:[#allocation58_spill] sm:$0xff] }
 0xc2c   : > { %v4681_v2 = vrot.slane %v4680_v48, 4  ;;  %v11107_v51 = vadd.f32 %v4604_v43, %v11848_v39 }
 0xc2d   : > { %v4731_v40 = vmul.f32 1.442695, %v4715_v18  ;;  %v4733_v33 = vmul.f32 1.442695, %v4716_v38  ;;  %v4672_v22 = vmax.f32 %v4670_v23, %v4671_v47  ;;  %v4677_v9 = vmax.f32 %v4675_v25, %v4676_v27  ;;  %v7129_v62 = vpop.f32.mrb[58].mxu1  ;;  %v11854_v25 = vld [vmem:[#allocation59_spill] sm:$0xff] }
 0xc2e   : > { %v4682_v44 = vmax.f32 %v4680_v48, %v4681_v2  ;;  %v4687_v35 = vmax.f32 %v11107_v51, %v11104_v16  ;;  %v11112_v55 = vadd.f32 %v7129_v62, %v11849_v57  ;;  %v4614_v34 = vpop.f32.mrb[59].mxu1  ;;  %v11856_v57 = vld [vmem:[#allocation61_spill] sm:$0xff] }
 0xc2f   : > { %8545 = vpow2.f32 %v4731_v40  ;;  %v4717_v28 = vsub.f32 %v4645_v8, %v4672_v22  ;;  %v4718_v19 = vsub.f32 %v4646_v45, %v4672_v22  ;;  %v4678_v52 = vrot.slane %v4677_v9, 1  ;;  %v11855_v22 = vld [vmem:[#allocation60_spill] sm:$0xff] }
 0xc30   : > { %v4683_v1 = vrot.slane %v4682_v44, 2  ;;  %v4688_v15 = vrot.slane %v4687_v35, 4  ;;  %v11115_v56 = vadd.f32 %v4614_v34, %v11850_v24  ;;  %8547 = vpow2.f32 %v4733_v33 }
 0xc31   : > { %v4735_v14 = vmul.f32 1.442695, %v4717_v28  ;;  %v4679_v32 = vmax.f32 %v4677_v9, %v4678_v52  ;;  %v7132_v4 = vpop.f32.mrb[60].mxu1  ;;  %v4737_v45 = vmul.f32 1.442695, %v4718_v19 }
 0xc32   : > { %v4684_v50 = vmax.f32 %v4682_v44, %v4683_v1  ;;  %v4689_v0 = vmax.f32 %v4687_v35, %v4688_v15  ;;  %v4694_v54 = vmax.f32 %v11115_v56, %v11112_v55  ;;  %v11120_v13 = vadd.f32 %v7132_v4, %v11851_v60  ;;  %v4624_v8 = vpop.f32.mrb[61].mxu1 }
 0xc33   : > { %v4719_v17 = vsub.f32 %v4647_v6, %v4679_v32  ;;  %v4720_v11 = vsub.f32 %v4648_v36, %v4679_v32  ;;  %v11123_v42 = vadd.f32 %v4624_v8, %v11852_v31  ;;  %8549 = vpow2.f32 %v4735_v14  ;;  %v11858_v31 = vld [vmem:[#allocation63_spill] sm:$0xff] }
 0xc34   : > { %v4685_v20 = vrot.slane %v4684_v50, 1  ;;  %v4690_v29 = vrot.slane %v4689_v0, 2  ;;  %v4695_v12 = vrot.slane %v4694_v54, 4  ;;  %8551 = vpow2.f32 %v4737_v45 }
 0xc35   : > { %v4739_v5 = vmul.f32 1.442695, %v4719_v17  ;;  %v4741_v46 = vmul.f32 1.442695, %v4720_v11  ;;  %v4701_v58 = vmax.f32 %v11123_v42, %v11120_v13  ;;  %v7135_v26 = vpop.f32.mrb[62].mxu1 }
 0xc36   : > { %v4686_v37 = vmax.f32 %v4684_v50, %v4685_v20  ;;  %v4691_v59 = vmax.f32 %v4689_v0, %v4690_v29  ;;  %v4696_v61 = vmax.f32 %v4694_v54, %v4695_v12  ;;  %v11128_v23 = vadd.f32 %v7135_v26, %v11853_v53  ;;  %v4634_v36 = vpop.f32.mrb[63].mxu1  ;;  %v11857_v0 = vld [vmem:[#allocation62_spill] sm:$0xff] }
 0xc37   : > { %v4702_v6 = vrot.slane %v4701_v58, 4  ;;  %v11131_v48 = vadd.f32 %v4634_v36, %v11854_v25  ;;  %8553 = vpow2.f32 %v4739_v5 }
 0xc38   : > { %v4721_v21 = vsub.f32 %v11099_v63, %v4686_v37  ;;  %v4722_v3 = vsub.f32 %v11096_v30, %v4686_v37  ;;  %v4692_v43 = vrot.slane %v4691_v59, 1  ;;  %8555 = vpow2.f32 %v4741_v46 }
 0xc39   : > { %v11135_v18 = vpop.eup %8545  ;;  %v4697_v38 = vrot.slane %v4696_v61, 2  ;;  %v4703_v47 = vmax.f32 %v4701_v58, %v4702_v6  ;;  %v4708_v27 = vmax.f32 %v11131_v48, %v11128_v23  ;;  %v7170_v2 = vpop.f32.mrb[64].mxu1 }
 0xc3a   : > { %v4743_v39 = vmul.f32 1.442695, %v4721_v21  ;;  %v4745_v40 = vmul.f32 1.442695, %v4722_v3  ;;  %v4693_v33 = vmax.f32 %v4691_v59, %v4692_v43  ;;  %v11140_v9 = vadd.f32 %v7170_v2, %v11855_v22  ;;  %v5089_v62 = vpop.f32.mrb[65].mxu1  ;;  %v8548_v63 = vpop.eup %8547 }
 0xc3b   : > { %v4698_v44 = vmax.f32 %v4696_v61, %v4697_v38  ;;  %v4704_v30 = vrot.slane %v4703_v47, 2  ;;  %v4709_v35 = vrot.slane %v4708_v27, 4  ;;  %v11143_v34 = vadd.f32 %v5089_v62, %v11856_v57 }
 0xc3c   : > { %8557 = vpow2.f32 %v4743_v39  ;;  %v4723_v28 = vsub.f32 %v11107_v51, %v4693_v33  ;;  %v4724_v19 = vsub.f32 %v11104_v16, %v4693_v33  ;;  %v4763_v52 = vmul.f32 %v11135_v18, %v10825_v10 }
 0xc3d   : > { %8559 = vpow2.f32 %v4745_v40  ;;  %v4699_v1 = vrot.slane %v4698_v44, 1  ;;  %v4705_v15 = vmax.f32 %v4703_v47, %v4704_v30  ;;  %v4710_v24 = vmax.f32 %v4708_v27, %v4709_v35  ;;  %v7173_v14 = vpop.f32.mrb[66].mxu1  ;;  %v11154_v51 = vpop.eup %8549  ;;  %v11859_v47 = vld [vmem:[#allocation64_spill] sm:$0xff]  ;;  %v11860_v35 = vld [vmem:[#allocation65_spill] sm:$0xff] }
 0xc3e   : > { %v4747_v32 = vmul.f32 1.442695, %v4723_v28  ;;  %v4749_v4 = vmul.f32 1.442695, %v4724_v19  ;;  %v5184_v50 = vmax.f32 %v11143_v34, %v11140_v9  ;;  %v11152_v54 = vadd.f32 %v7173_v14, %v11857_v0  ;;  %v5099_v60 = vpop.f32.mrb[67].mxu1  ;;  %v11161_v12 = vpop.eup %8551 }
 0xc3f   : > { %v4700_v16 = vmax.f32 %v4698_v44, %v4699_v1  ;;  %v4706_v8 = vrot.slane %v4705_v15, 1  ;;  %v4711_v45 = vrot.slane %v4710_v24, 2  ;;  %v4764_v17 = vmul.f32 %v8548_v63, %v10886_v49 }
 0xc40   : > { %8561 = vpow2.f32 %v4747_v32  ;;  %v5185_v11 = vrot.slane %v5184_v50, 4  ;;  %v11158_v20 = vadd.f32 %v5099_v60, %v11858_v31  ;;  %v8004_v29 = vpack.c.bf16 %v8548_v63, %v11135_v18  ;;  %v11861_v32 = vld [vmem:[#allocation66_spill] sm:$0xff]  ;;  %v11862_v31 = vld [vmem:[#allocation67_spill] sm:$0xff] }
 0xc41   : > { %8563 = vpow2.f32 %v4749_v4  ;;  %v4725_v5 = vsub.f32 %v11115_v56, %v4700_v16  ;;  %v4726_v46 = vsub.f32 %v11112_v55, %v4700_v16  ;;  %v4707_v58 = vmax.f32 %v4705_v15, %v4706_v8  ;;  %v7176_v26 = vpop.f32.mrb[68].mxu1  ;;  %v11165_v37 = vpop.eup %8553 }
 0xc42   : > { %v4712_v59 = vmax.f32 %v4710_v24, %v4711_v45  ;;  %v5186_v61 = vmax.f32 %v5184_v50, %v5185_v11  ;;  %v8002_v53 = vpack.c.bf16 %v4764_v17, %v4763_v52  ;;  %v5191_v36 = vmax.f32 %v11158_v20, %v11152_v54  ;;  %v5109_v6 = vpop.f32.mrb[69].mxu1  ;;  %v11169_v25 = vpop.eup %8555 }
 0xc43   : > { %v4751_v21 = vmul.f32 1.442695, %v4725_v5  ;;  %v4753_v3 = vmul.f32 1.442695, %v4726_v46  ;;  %v4727_v43 = vsub.f32 %v11123_v42, %v4707_v58  ;;  %v4728_v56 = vsub.f32 %v11120_v13, %v4707_v58 }
 0xc44   : > { %v4713_v55 = vrot.slane %v4712_v59, 1  ;;  %v5187_v18 = vrot.slane %v5186_v61, 2  ;;  %8003 = vmatprep.subr.bf16.mxu0 %v8002_v53  ;;  %v5192_v38 = vrot.slane %v5191_v36, 4  ;;  %v11174_v27 = vadd.f32 %v7176_v26, %v11859_v47 }
 0xc45   : > { %8565 = vpow2.f32 %v4751_v21  ;;  %v4755_v2 = vmul.f32 1.442695, %v4727_v43  ;;  %v4757_v39 = vmul.f32 1.442695, %v4728_v56  ;;  %8005 = vmatpush1.bf16.msra.mxu0 %v8004_v29  ;;  %v4765_v40 = vmul.f32 %v11154_v51, %v10825_v10  ;;  %v7179_v33 = vpop.f32.mrb[70].mxu1  ;;  %v11863_v21 = vld [vmem:[#allocation68_spill] sm:$0xff] }
 0xc46   : > { %v11178_v22 = vpop.eup %8557  ;;  %8567 = vpow2.f32 %v4753_v3  ;;  %v4714_v42 = vmax.f32 %v4712_v59, %v4713_v55  ;;  %v5188_v13 = vmax.f32 %v5186_v61, %v5187_v18  ;;  %v5193_v62 = vmax.f32 %v5191_v36, %v5192_v38  ;;  %v5119_v63 = vpop.f32.mrb[71].mxu1  ;;  %v11864_v38 = vld [vmem:[#allocation69_spill] sm:$0xff] }
 0xc47   : > { %v11180_v44 = vpop.eup %8559  ;;  %8569 = vpow2.f32 %v4755_v2  ;;  %v4766_v30 = vmul.f32 %v11161_v12, %v10886_v49  ;;  %v11185_v57 = vadd.f32 %v5109_v6, %v11860_v35  ;;  %v8008_v28 = vpack.c.bf16 %v11161_v12, %v11154_v51 }
 0xc48   : > { %8571 = vpow2.f32 %v4757_v39  ;;  %v4729_v19 = vsub.f32 %v11131_v48, %v4714_v42  ;;  %v4730_v52 = vsub.f32 %v11128_v23, %v4714_v42  ;;  %v5189_v1 = vrot.slane %v5188_v13, 1 }
 0xc49   : > { %v5194_v15 = vrot.slane %v5193_v62, 2  ;;  %v8006_v24 = vpack.c.bf16 %v4766_v30, %v4765_v40  ;;  %v5198_v14 = vmax.f32 %v11185_v57, %v11174_v27  ;;  %v11194_v4 = vadd.f32 %v7179_v33, %v11861_v32  ;;  %v7182_v50 = vpop.f32.mrb[72].mxu1 }
 0xc4a   : > { %v11196_v0 = vpop.eup %8561  ;;  %v4759_v60 = vmul.f32 1.442695, %v4729_v19  ;;  %v4761_v16 = vmul.f32 1.442695, %v4730_v52  ;;  %v5190_v51 = vmax.f32 %v5188_v13, %v5189_v1  ;;  %v4767_v48 = vmul.f32 %v11165_v37, %v10825_v10  ;;  %v5129_v8 = vpop.f32.mrb[73].mxu1 }
 0xc4b   : > { %v11200_v23 = vpop.eup %8563  ;;  %v5195_v45 = vmax.f32 %v5193_v62, %v5194_v15  ;;  %8007 = vmatprep.subr.bf16.mxu0 %v8006_v24  ;;  %v5199_v17 = vrot.slane %v5198_v14, 4  ;;  %v4768_v11 = vmul.f32 %v11169_v25, %v10886_v49  ;;  %v11205_v29 = vadd.f32 %v5119_v63, %v11862_v31 }
 0xc4c   : > { %8573 = vpow2.f32 %v4759_v60  ;;  %v5240_v12 = vsub.f32 %v11143_v34, %v5190_v51  ;;  %v5241_v5 = vsub.f32 %v11140_v9, %v5190_v51  ;;  %8009 = vmatpush1.bf16.msra.mxu0 %v8008_v28  ;;  %v8012_v46 = vpack.c.bf16 %v11169_v25, %v11165_v37  ;;  %v11865_v28 = vld [vmem:[#allocation70_spill] sm:$0xff] }
 0xc4d   : > { %8575 = vpow2.f32 %v4761_v16  ;;  %v5196_v58 = vrot.slane %v5195_v45, 1  ;;  %v5200_v26 = vmax.f32 %v5198_v14, %v5199_v17  ;;  %v8010_v59 = vpack.c.bf16 %v4768_v11, %v4767_v48  ;;  %v7185_v61 = vpop.f32.mrb[74].mxu1  ;;  %v11866_v14 = vld [vmem:[#allocation71_spill] sm:$0xff]  ;;  %v11867_v16 = vld [vmem:[#allocation72_spill] sm:$0xff] }
 0xc4e   : > { %v5256_v53 = vmul.f32 1.442695, %v5240_v12  ;;  %v5258_v36 = vmul.f32 1.442695, %v5241_v5  ;;  %v5205_v6 = vmax.f32 %v11205_v29, %v11194_v4  ;;  %v11214_v3 = vadd.f32 %v7182_v50, %v11863_v21  ;;  %v5139_v34 = vpop.f32.mrb[75].mxu1 }
 0xc4f   : > { %v11216_v43 = vpop.eup %8565  ;;  %v5197_v9 = vmax.f32 %v5195_v45, %v5196_v58  ;;  %v5201_v56 = vrot.slane %v5200_v26, 2  ;;  %8011 = vmatprep.subr.bf16.mxu0 %v8010_v59  ;;  %v4769_v37 = vmul.f32 %v11178_v22, %v10825_v10  ;;  %v4770_v25 = vmul.f32 %v11180_v44, %v10886_v49 }
 0xc50   : > { %v11222_v55 = vpop.eup %8567  ;;  %8577 = vpow2.f32 %v5256_v53  ;;  %v5206_v18 = vrot.slane %v5205_v6, 4  ;;  %8013 = vmatpush1.bf16.msra.mxu0 %v8012_v46  ;;  %v11225_v47 = vadd.f32 %v5129_v8, %v11864_v38  ;;  %v8016_v2 = vpack.c.bf16 %v11180_v44, %v11178_v22  ;;  %v11869_v38 = vld [vmem:[#allocation74_spill] sm:$0xff] }
 0xc51   : > { %v11229_v39 = vpop.eup %8569  ;;  %8579 = vpow2.f32 %v5258_v36  ;;  %v5242_v40 = vsub.f32 %v11158_v20, %v5197_v9  ;;  %v5243_v33 = vsub.f32 %v11152_v54, %v5197_v9  ;;  %v5202_v42 = vmax.f32 %v5200_v26, %v5201_v56  ;;  %v7188_v13 = vpop.f32.mrb[76].mxu1 }
 0xc52   : > { %v11233_v62 = vpop.eup %8571  ;;  %v5207_v63 = vmax.f32 %v5205_v6, %v5206_v18  ;;  %v8014_v30 = vpack.c.bf16 %v4770_v25, %v4769_v37  ;;  %v5212_v35 = vmax.f32 %v11225_v47, %v11214_v3  ;;  %v11238_v19 = vadd.f32 %v7185_v61, %v11865_v28  ;;  %v5149_v22 = vpop.f32.mrb[77].mxu1  ;;  %v11868_v61 = vld [vmem:[#allocation73_spill] sm:$0xff] }
 0xc53   : > { %v5260_v44 = vmul.f32 1.442695, %v5242_v40  ;;  %v5262_v52 = vmul.f32 1.442695, %v5243_v33  ;;  %v5203_v1 = vrot.slane %v5202_v42, 1  ;;  %v4771_v20 = vmul.f32 %v11196_v0, %v10825_v10 }
 0xc54   : > { %v5208_v54 = vrot.slane %v5207_v63, 2  ;;  %8015 = vmatprep.subr.bf16.mxu0 %v8014_v30  ;;  %v5213_v15 = vrot.slane %v5212_v35, 4  ;;  %v4772_v24 = vmul.f32 %v11200_v23, %v10886_v49  ;;  %v11245_v32 = vadd.f32 %v5139_v34, %v11866_v14  ;;  %v11870_v30 = vld [vmem:[#allocation75_spill] sm:$0xff] }
 0xc55   : > { %8581 = vpow2.f32 %v5260_v44  ;;  %v5204_v50 = vmax.f32 %v5202_v42, %v5203_v1  ;;  %8017 = vmatpush1.bf16.msra.mxu0 %v8016_v2  ;;  %v8020_v60 = vpack.c.bf16 %v11200_v23, %v11196_v0  ;;  %v11250_v51 = vadd.f32 %v7188_v13, %v11867_v16  ;;  %v7191_v48 = vpop.f32.mrb[78].mxu1 }
 0xc56   : > { %v11252_v8 = vpop.eup %8573  ;;  %8583 = vpow2.f32 %v5262_v52  ;;  %v5209_v45 = vmax.f32 %v5207_v63, %v5208_v54  ;;  %v5214_v17 = vmax.f32 %v5212_v35, %v5213_v15  ;;  %v8018_v11 = vpack.c.bf16 %v4772_v24, %v4771_v20  ;;  %v5159_v31 = vpop.f32.mrb[79].mxu1 }
 0xc57   : > { %v11254_v12 = vpop.eup %8575  ;;  %v5244_v5 = vsub.f32 %v11185_v57, %v5204_v50  ;;  %v5245_v46 = vsub.f32 %v11174_v27, %v5204_v50  ;;  %v5219_v0 = vmax.f32 %v11245_v32, %v11238_v19  ;;  %v4773_v23 = vmul.f32 %v11216_v43, %v10825_v10 }
 0xc58   : > { %v5210_v58 = vrot.slane %v5209_v45, 1  ;;  %v5215_v26 = vrot.slane %v5214_v17, 2  ;;  %8019 = vmatprep.subr.bf16.mxu0 %v8018_v11  ;;  %v4774_v59 = vmul.f32 %v11222_v55, %v10886_v49  ;;  %v11265_v53 = vadd.f32 %v5149_v22, %v11868_v61 }
 0xc59   : > { %v5264_v36 = vmul.f32 1.442695, %v5244_v5  ;;  %v5266_v6 = vmul.f32 1.442695, %v5245_v46  ;;  %v5220_v57 = vrot.slane %v5219_v0, 4  ;;  %8021 = vmatpush1.bf16.msra.mxu0 %v8020_v60  ;;  %v8024_v27 = vpack.c.bf16 %v11222_v55, %v11216_v43 }
 0xc5a   : > { %v11269_v21 = vpop.eup %8577  ;;  %v5211_v34 = vmax.f32 %v5209_v45, %v5210_v58  ;;  %v5216_v9 = vmax.f32 %v5214_v17, %v5215_v26  ;;  %v8022_v56 = vpack.c.bf16 %v4774_v59, %v4773_v23  ;;  %v5226_v37 = vmax.f32 %v11265_v53, %v11250_v51 }
 0xc5b   : > { %v11273_v25 = vpop.eup %8579  ;;  %8585 = vpow2.f32 %v5264_v36  ;;  %v5221_v18 = vmax.f32 %v5219_v0, %v5220_v57  ;;  %v11276_v2 = vadd.f32 %v7191_v48, %v11869_v38  ;;  %v4775_v40 = vmul.f32 %v11229_v39, %v10825_v10 }
 0xc5c   : > { %8587 = vpow2.f32 %v5266_v6  ;;  %v5246_v43 = vsub.f32 %v11205_v29, %v5211_v34  ;;  %v5247_v55 = vsub.f32 %v11194_v4, %v5211_v34  ;;  %v5217_v33 = vrot.slane %v5216_v9, 1  ;;  %8023 = vmatprep.subr.bf16.mxu0 %v8022_v56 }
 0xc5d   : > { %v5222_v42 = vrot.slane %v5221_v18, 2  ;;  %v5227_v13 = vrot.slane %v5226_v37, 4  ;;  %8025 = vmatpush1.bf16.msra.mxu0 %v8024_v27  ;;  %v4776_v63 = vmul.f32 %v11233_v62, %v10886_v49  ;;  %v11285_v35 = vadd.f32 %v5159_v31, %v11870_v30 }
 0xc5e   : > { %v5268_v28 = vmul.f32 1.442695, %v5246_v43  ;;  %v5270_v22 = vmul.f32 1.442695, %v5247_v55  ;;  %v5218_v44 = vmax.f32 %v5216_v9, %v5217_v33  ;;  %v8028_v52 = vpack.c.bf16 %v11233_v62, %v11229_v39  ;;  %v11321_v43 = vld [vmem:[#allocation5 + $0x10] sm:$0xff] }
 0xc5f   : > { %v11289_v29 = vpop.eup %8581  ;;  %v5223_v4 = vmax.f32 %v5221_v18, %v5222_v42  ;;  %v5228_v1 = vmax.f32 %v5226_v37, %v5227_v13  ;;  %v8026_v20 = vpack.c.bf16 %v4776_v63, %v4775_v40  ;;  %v5233_v54 = vmax.f32 %v11285_v35, %v11276_v2 }
 0xc60   : > { %v11293_v15 = vpop.eup %8583  ;;  %8589 = vpow2.f32 %v5268_v28  ;;  %v5248_v24 = vsub.f32 %v11225_v47, %v5218_v44  ;;  %v5249_v14 = vsub.f32 %v11214_v3, %v5218_v44  ;;  %v4777_v50 = vmul.f32 %v11252_v8, %v10825_v10 }
 0xc61   : > { %8591 = vpow2.f32 %v5270_v22  ;;  %v5224_v39 = vrot.slane %v5223_v4, 1  ;;  %v5229_v62 = vrot.slane %v5228_v1, 2  ;;  %8027 = vmatprep.subr.bf16.mxu0 %v8026_v20  ;;  %v5234_v60 = vrot.slane %v5233_v54, 4 }
 0xc62   : > { %v5272_v16 = vmul.f32 1.442695, %v5248_v24  ;;  %v5274_v48 = vmul.f32 1.442695, %v5249_v14  ;;  %8029 = vmatpush1.bf16.msra.mxu0 %v8028_v52  ;;  %v4778_v45 = vmul.f32 %v11254_v12, %v10886_v49  ;;  %v8032_v17 = vpack.c.bf16 %v11254_v12, %v11252_v8 }
 0xc63   : > { %v5225_v47 = vmax.f32 %v5223_v4, %v5224_v39  ;;  %v5230_v11 = vmax.f32 %v5228_v1, %v5229_v62  ;;  %v5235_v3 = vmax.f32 %v5233_v54, %v5234_v60  ;;  %v5288_v31 = vmul.f32 %v11269_v21, %v10825_v10 }
 0xc64   : > { %8593 = vpow2.f32 %v5272_v16  ;;  %v8030_v5 = vpack.c.bf16 %v4778_v45, %v4777_v50  ;;  %v5289_v46 = vmul.f32 %v11273_v25, %v10886_v49  ;;  %v8068_v0 = vpack.c.bf16 %v11273_v25, %v11269_v21 }
 0xc65   : > { %v8586_v23 = vpop.eup %8585  ;;  %8595 = vpow2.f32 %v5274_v48  ;;  %v5250_v58 = vsub.f32 %v11245_v32, %v5225_v47  ;;  %v5251_v8 = vsub.f32 %v11238_v19, %v5225_v47  ;;  %v5231_v12 = vrot.slane %v5230_v11, 1 }
 0xc66   : > { %v8588_v26 = vpop.eup %8587  ;;  %v5236_v59 = vrot.slane %v5235_v3, 2  ;;  %8031 = vmatprep.subr.bf16.mxu0 %v8030_v5  ;;  %v8066_v61 = vpack.c.bf16 %v5289_v46, %v5288_v31  ;;  %v5290_v36 = vmul.f32 %v11289_v29, %v10825_v10  ;;  %v5291_v6 = vmul.f32 %v11293_v15, %v10886_v49 }
 0xc67   : > { %v5276_v57 = vmul.f32 1.442695, %v5250_v58  ;;  %v5278_v27 = vmul.f32 1.442695, %v5251_v8  ;;  %v5232_v21 = vmax.f32 %v5230_v11, %v5231_v12  ;;  %8033 = vmatpush1.bf16.msra.mxu0 %v8032_v17  ;;  %v8072_v32 = vpack.c.bf16 %v11293_v15, %v11289_v29  ;;  %v5401_v58 = vld [vmem:[#allocation5 + $0x830] sm:$0xff]  ;;  %v5567_v12 = vld [vmem:[#allocation5 + $0x940] sm:$0xff] }
 0xc68   : > { %v5237_v34 = vmax.f32 %v5235_v3, %v5236_v59  ;;  %8067 = vmatprep.subr.bf16.mxu0 %v8066_v61  ;;  %v8070_v19 = vpack.c.bf16 %v5291_v6, %v5290_v36  ;;  %v5292_v9 = vmul.f32 %v8586_v23, %v10825_v10  ;;  %v5293_v56 = vmul.f32 %v8588_v26, %v10886_v49  ;;  %v5479_v59 = vld [vmem:[#allocation5 + $0x840] sm:$0xff]  ;;  %v5480_v61 = vld [vmem:[#allocation5 + $0x850] sm:$0xff] }
 0xc69   : > { %8597 = vpow2.f32 %v5276_v57  ;;  %v5252_v37 = vsub.f32 %v11265_v53, %v5232_v21  ;;  %v5253_v25 = vsub.f32 %v11250_v51, %v5232_v21  ;;  %v8076_v18 = vpack.c.bf16 %v8588_v26, %v8586_v23  ;;  %v5400_v23 = vld [vmem:[#allocation5 + $0x820] sm:$0xff]  ;;  %v5568_v26 = vld [vmem:[#allocation5 + $0x950] sm:$0xff] }
 0xc6a   : > { %v8590_v38 = vpop.eup %8589  ;;  %8599 = vpow2.f32 %v5278_v27  ;;  %v5238_v40 = vrot.slane %v5237_v34, 1  ;;  %4844 = vmatmul.mubr.f32.vlgmr.msra.gmra.mrb[78].mxu0 %v11321_v43  ;;  %v8074_v55 = vpack.c.bf16 %v5293_v56, %v5292_v9  ;;  %v8099_v8 = vpack.c.bf16 %v5401_v58, %v5400_v23  ;;  %v5481_v6 = vld [vmem:[#allocation5 + $0x860] sm:$0xff]  ;;  %v5482_v57 = vld [vmem:[#allocation5 + $0x870] sm:$0xff] }
 0xc6b   : > { %v8592_v33 = vpop.eup %8591  ;;  %v5280_v42 = vmul.f32 1.442695, %v5252_v37  ;;  %v5282_v13 = vmul.f32 1.442695, %v5253_v25  ;;  %8069 = vmatpush1.bf16.msra.mxu0 %v8068_v0  ;;  %v5294_v63 = vmul.f32 %v8590_v38, %v10825_v10  ;;  %5368 = vmatprep.mubr.f32.mxu0 %v11672_v7  ;;  %v8102_v36 = vpack.c.bf16 %v5480_v61, %v5479_v59  ;;  %v5641_v27 = vld [vmem:[#allocation5 + $0x960] sm:$0xff]  ;;  %v5484_v9 = vld [vmem:[#allocation5 + $0x890] sm:$0xff] }
 0xc6c   : > { %v5239_v53 = vmax.f32 %v5237_v34, %v5238_v40  ;;  %8071 = vmatprep.subr.bf16.mxu0 %v8070_v19  ;;  %v5295_v51 = vmul.f32 %v8592_v33, %v10886_v49  ;;  %v8080_v30 = vpack.c.bf16 %v8592_v33, %v8590_v38  ;;  %v8105_v21 = vpack.c.bf16 %v5482_v57, %v5481_v6  ;;  %v5483_v19 = vld [vmem:[#allocation5 + $0x880] sm:$0xff]  ;;  %v5644_v25 = vld [vmem:[#allocation5 + $0x990] sm:$0xff] }
 0xc6d   : > { %8601 = vpow2.f32 %v5280_v42  ;;  %8103 = vmatpush3.bf16.msra.mxu1 %v8102_v36  ;;  %v8108_v56 = vpack.c.bf16 %v5484_v9, %v5483_v19  ;;  %v5643_v37 = vld [vmem:[#allocation5 + $0x980] sm:$0xff]  ;;  %v5486_v40 = vld [vmem:[#allocation5 + $0x8b0] sm:$0xff] }
 0xc6e   : > { %v8594_v28 = vpop.eup %8593  ;;  %8603 = vpow2.f32 %v5282_v13  ;;  %v5254_v22 = vsub.f32 %v11285_v35, %v5239_v53  ;;  %v5255_v44 = vsub.f32 %v11276_v2, %v5239_v53  ;;  %v8078_v52 = vpack.c.bf16 %v5295_v51, %v5294_v63  ;;  %8104 = vmatprep.subr.bf16.mxu1 %v8756_v41  ;;  %v5485_v38 = vld [vmem:[#allocation5 + $0x8a0] sm:$0xff]  ;;  %v5646_v33 = vld [vmem:[#allocation5 + $0x9b0] sm:$0xff] }
 0xc6f   : > { %v8596_v29 = vpop.eup %8595  ;;  %8073 = vmatpush1.bf16.msra.mxu0 %v8072_v32  ;;  %v5296_v4 = vmul.f32 %v8594_v28, %v10825_v10  ;;  %v5642_v32 = vld [vmem:[#allocation5 + $0x970] sm:$0xff]  ;;  %v5487_v13 = vld [vmem:[#allocation5 + $0x8c0] sm:$0xff] }
 0xc70   : > { %v5284_v1 = vmul.f32 1.442695, %v5254_v22  ;;  %v5286_v20 = vmul.f32 1.442695, %v5255_v44  ;;  %8075 = vmatprep.subr.bf16.mxu0 %v8074_v55  ;;  %v5297_v54 = vmul.f32 %v8596_v29, %v10886_v49  ;;  %v8084_v15 = vpack.c.bf16 %v8596_v29, %v8594_v28  ;;  %v5488_v63 = vld [vmem:[#allocation5 + $0x8d0] sm:$0xff]  ;;  %v5647_v53 = vld [vmem:[#allocation5 + $0x9c0] sm:$0xff] }
 0xc71   : > { %v8129_v34 = vpack.c.bf16 %v5642_v32, %v5641_v27  ;;  %8106 = vmatpush3.bf16.msra.mxu1 %v8105_v21  ;;  %v8111_v55 = vpack.c.bf16 %v5486_v40, %v5485_v38  ;;  %v8114_v51 = vpack.c.bf16 %v5488_v63, %v5487_v13  ;;  %v5489_v28 = vld [vmem:[#allocation5 + $0x8e0] sm:$0xff]  ;;  %v5490_v22 = vld [vmem:[#allocation5 + $0x8f0] sm:$0xff] }
 0xc72   : > { %8605 = vpow2.f32 %v5284_v1  ;;  %v8082_v24 = vpack.c.bf16 %v5297_v54, %v5296_v4  ;;  %8107 = vmatprep.subr.bf16.mxu1 %v8756_v41  ;;  %v5650_v29 = vld [vmem:[#allocation5 + $0x9f0] sm:$0xff]  ;;  %v8117_v4 = vpack.c.bf16 %v5490_v22, %v5489_v28  ;;  %v5402_v58 = vld [vmem:[#allocation5 + $0xfa5] ss:$0 sm:$0xff]  ;;  %v5569_v36 = vld [vmem:[#allocation5 + $0xfa7] ss:$0 sm:$0xff] }
 0xc73   : > { %v8598_v14 = vpop.eup %8597  ;;  %8607 = vpow2.f32 %v5286_v20  ;;  %8077 = vmatpush1.bf16.msra.mxu0 %v8076_v18  ;;  %v8132_v18 = vpack.c.bf16 %v5644_v25, %v5643_v37  ;;  %v5491_v20 = vld [vmem:[#allocation5 + $0x900] sm:$0xff]  ;;  %v5492_v54 = vld [vmem:[#allocation5 + $0x910] sm:$0xff] }
 0xc74   : > { %v8600_v50 = vpop.eup %8599  ;;  %8079 = vmatprep.subr.bf16.mxu0 %v8078_v52  ;;  %v5298_v2 = vmul.f32 %v8598_v14, %v10825_v10  ;;  %v5649_v52 = vld [vmem:[#allocation5 + $0x9e0] sm:$0xff]  ;;  %v5731_v21 = vld [vmem:[#allocation5 + $0xa70] sm:$0xff] }
 0xc75   : > { %v5299_v35 = vmul.f32 %v8600_v50, %v10886_v49  ;;  %v8088_v39 = vpack.c.bf16 %v8600_v50, %v8598_v14  ;;  %8109 = vmatpush3.bf16.msra.mxu1 %v8108_v56  ;;  %v8141_v1 = vpack.c.bf16 %v5650_v29, %v5649_v52  ;;  %v5652_v14 = vld [vmem:[#allocation5 + $0xa10] sm:$0xff]  ;;  %v5730_v27 = vld [vmem:[#allocation5 + $0xa60] sm:$0xff] }
 0xc76   : > { %8110 = vmatprep.subr.bf16.mxu1 %v8756_v41  ;;  %v5806_v19 = vld [vmem:[#allocation5 + $0xaa0] sm:$0xff]  ;;  %v5807_v9 = vld [vmem:[#allocation5 + $0xab0] sm:$0xff] }
 0xc77   : > { %v8602_v62 = vpop.eup %8601  ;;  %8081 = vmatpush1.bf16.msra.mxu0 %v8080_v30  ;;  %v8086_v60 = vpack.c.bf16 %v5299_v35, %v5298_v2  ;;  %v5648_v30 = vld [vmem:[#allocation5 + $0x9d0] sm:$0xff]  ;;  %v5493_v2 = vld [vmem:[#allocation5 + $0x920] sm:$0xff]  ;;  %v8159_v40 = vpack.c.bf16 %v5807_v9, %v5806_v19 }
 0xc78   : > { %v8604_v16 = vpop.eup %8603  ;;  %8083 = vmatprep.subr.bf16.mxu0 %v8082_v24  ;;  %v5300_v48 = vmul.f32 %v8602_v62, %v10825_v10  ;;  %v8138_v44 = vpack.c.bf16 %v5648_v30, %v5647_v53  ;;  %v8120_v24 = vpack.c.bf16 %v5492_v54, %v5491_v20  ;;  %v5494_v35 = vld [vmem:[#allocation5 + $0x930] sm:$0xff]  ;;  %v5381_v56 = vld [vmem:[#allocation5 + $0xfa3] ss:$0 sm:$0xff]  ;;  %v5384_v13 = vld [vmem:[#allocation5 + $0xfa4] ss:$0 sm:$0xff] }
 0xc79   : > { %v5301_v45 = vmul.f32 %v8604_v16, %v10886_v49  ;;  %v8092_v17 = vpack.c.bf16 %v8604_v16, %v8602_v62  ;;  %8112 = vmatpush3.bf16.msra.mxu1 %v8111_v55  ;;  %v8123_v62 = vpack.c.bf16 %v5494_v35, %v5493_v2  ;;  %v5808_v55 = vld [vmem:[#allocation5 + $0xac0] sm:$0xff]  ;;  %v5811_v22 = vld [vmem:[#allocation5 + $0xaf0] sm:$0xff] }
 0xc7a   : > { %8113 = vmatprep.subr.bf16.mxu1 %v8756_v41  ;;  %v5810_v28 = vld [vmem:[#allocation5 + $0xae0] sm:$0xff] }
 0xc7b   : > { %8085 = vmatpush1.bf16.msra.mxu0 %v8084_v15  ;;  %v8090_v47 = vpack.c.bf16 %v5301_v45, %v5300_v48  ;;  %v5651_v15 = vld [vmem:[#allocation5 + $0xa00] sm:$0xff]  ;;  %v5656_v45 = vld [vmem:[#allocation5 + $0xa50] sm:$0xff]  ;;  %v8165_v52 = vpack.c.bf16 %v5811_v22, %v5810_v28 }
 0xc7c   : > { %v8606_v11 = vpop.eup %8605  ;;  %8087 = vmatprep.subr.bf16.mxu0 %v8086_v60  ;;  %v8144_v50 = vpack.c.bf16 %v5652_v14, %v5651_v15  ;;  %v5654_v60 = vld [vmem:[#allocation5 + $0xa30] sm:$0xff]  ;;  %v5655_v48 = vld [vmem:[#allocation5 + $0xa40] sm:$0xff] }
 0xc7d   : > { %v8608_v3 = vpop.eup %8607  ;;  %v5302_v31 = vmul.f32 %v8606_v11, %v10825_v10  ;;  %v11339_v10 = vpop.permute.xlu0 %5403  ;;  %8115 = vmatpush3.bf16.msra.mxu1 %v8114_v51  ;;  %v11871_v29 = vld [vmem:[#allocation38_spill] sm:$0xff]  ;;  %v5813_v15 = vld [vmem:[#allocation5 + $0xb10] sm:$0xff] }
 0xc7e   : > { %v5303_v5 = vmul.f32 %v8608_v3, %v10886_v49  ;;  %v8096_v46 = vpack.c.bf16 %v8608_v3, %v8606_v11  ;;  %v8126_v49 = vpack.c.bf16 %v5568_v26, %v5567_v12  ;;  %8116 = vmatprep.subr.bf16.mxu1 %v8756_v41  ;;  %v5805_v12 = vld [vmem:[#allocation5 + $0xa90] sm:$0xff]  ;;  %v5812_v54 = vld [vmem:[#allocation5 + $0xb00] sm:$0xff] }
 0xc7f   : > { %8089 = vmatpush1.bf16.msra.mxu0 %v8088_v39  ;;  %v5653_v39 = vld [vmem:[#allocation5 + $0xa20] sm:$0xff]  ;;  %v8168_v2 = vpack.c.bf16 %v5813_v15, %v5812_v54  ;;  %v5900_v15 = vld [vmem:[#allocation5 + $0xbf0] sm:$0xff] }
 0xc80   : > { %8091 = vmatprep.subr.bf16.mxu0 %v8090_v47  ;;  %v8094_v0 = vpack.c.bf16 %v5303_v5, %v5302_v31  ;;  %v8147_v16 = vpack.c.bf16 %v5654_v60, %v5653_v39  ;;  %v5815_v60 = vld [vmem:[#allocation5 + $0xb30] sm:$0xff]  ;;  %v5895_v22 = vld [vmem:[#allocation5 + $0xba0] sm:$0xff] }
 0xc81   : > { %8118 = vmatpush3.bf16.msra.mxu1 %v8117_v4  ;;  %v11872_v4 = vmax.f32 %v11871_v29, 0.0  ;;  %v5897_v29 = vld [vmem:[#allocation5 + $0xbc0] sm:$0xff] }
 0xc82   : > { %8119 = vmatprep.subr.bf16.mxu1 %v8756_v41  ;;  %v5899_v54 = vld [vmem:[#allocation5 + $0xbe0] sm:$0xff] }
 0xc83   : > { %8093 = vmatpush1.bf16.msra.mxu0 %v8092_v17  ;;  %v8150_v17 = vpack.c.bf16 %v5656_v45, %v5655_v48  ;;  %v5816_v48 = vld [vmem:[#allocation5 + $0xb40] sm:$0xff]  ;;  %v5817_v45 = vld [vmem:[#allocation5 + $0xb50] sm:$0xff] }
 0xc84   : > { %8095 = vmatprep.subr.bf16.mxu0 %v8094_v0 }
 0xc85   : > { %8121 = vmatpush3.bf16.msra.mxu1 %v8120_v24  ;;  %v11873_v24 = vld [vmem:[#allocation41_spill] sm:$0xff] }
 0xc86   : > { %8122 = vmatprep.subr.bf16.mxu1 %v8756_v41  ;;  %v11874_v14 = vmax.f32 %v11873_v24, 0.0  ;;  %v8213_v24 = vpack.c.bf16 %v5900_v15, %v5899_v54  ;;  %v6159_v54 = vld [vmem:[#allocation5 + $0xeb0] sm:$0xff] }
 0xc87   : > { %8097 = vmatpush1.bf16.msra.mxu0 %v8096_v46 }
 0xc88   : > { %8098 = vmatprep.subr.bf16.mxu0 %v8756_v41 }
 0xc89   : > { %8124 = vmatpush3.bf16.msra.mxu1 %v8123_v62  ;;  %v5814_v62 = vld [vmem:[#allocation5 + $0xb20] sm:$0xff] }
 0xc8a   : > { %5369 = vmatmul.mubr.f32.vlgmr.msra.gmra.mrb[80].mxu0 %v11321_v43  ;;  %v5645_v43 = vld [vmem:[#allocation5 + $0x9a0] sm:$0xff]  ;;  %8155 = vmatprep.subr.bf16.mxu1 %v8756_v41 }
 0xc8b   : > { %8100 = vmatpush3.bf16.msra.mxu0 %v8099_v8  ;;  %7196 = vmatprep.mubr.msk.f32.mxu0 %vm8757_vm1, %v11672_v7  ;;  %v8135_v42 = vpack.c.bf16 %v5646_v33, %v5645_v43  ;;  %v5804_v8 = vld [vmem:[#allocation5 + $0xa80] sm:$0xff]  ;;  %v5809_v33 = vld [vmem:[#allocation5 + $0xad0] sm:$0xff] }
 0xc8c   : > { %8125 = vmatprep.subr.bf16.mxu0 %v8756_v41  ;;  %v8156_v6 = vpack.c.bf16 %v5805_v12, %v5804_v8  ;;  %v8162_v53 = vpack.c.bf16 %v5809_v33, %v5808_v55  ;;  %v5913_v8 = vld [vmem:[#allocation5 + $0xcc0] sm:$0xff]  ;;  %v5914_v12 = vld [vmem:[#allocation5 + $0xcd0] sm:$0xff] }
 0xc8d   : > { %v5893_v33 = vld [vmem:[#allocation5 + $0xb80] sm:$0xff] }
 0xc8e   : > { %7197 = vmatmul.mubr.msk.f32.vlgmr.msra.gmra.mrb[82].mxu0 %vm5405_vm2, %v11339_v10 }
 0xc8f   : > { %8127 = vmatpush3.bf16.msra.mxu0 %v8126_v49  ;;  %7238 = vmatprep.mubr.msk.f32.mxu0 %vm8757_vm1, %v11672_v7  ;;  %v5378_v49 = vld [vmem:[#allocation5 + $0xfa2] ss:$0 sm:$0xff] }
 0xc90   : > { %8128 = vmatprep.subr.bf16.mxu0 %v8756_v41 }
 0xc92   : > { %7239 = vmatmul.mubr.msk.f32.vlgmr.msra.gmra.mrb[84].mxu0 %vm5405_vm2, %v11339_v10 }
 0xc93   : > { %7273 = vmatprep.mubr.msk.f32.mxu0 %vm8757_vm1, %v11672_v7  ;;  %8130 = vmatpush3.bf16.msra.mxu0 %v8129_v34 }
 0xc94   : > { %8131 = vmatprep.subr.bf16.mxu0 %v8756_v41 }
 0xc97   : > { %8133 = vmatpush3.bf16.msra.mxu0 %v8132_v18  ;;  %v8153_v18 = vpack.c.bf16 %v5731_v21, %v5730_v27  ;;  %v5919_v27 = vld [vmem:[#allocation5 + $0xd20] sm:$0xff]  ;;  %v5920_v21 = vld [vmem:[#allocation5 + $0xd30] sm:$0xff] }
 0xc98   : > { %8134 = vmatprep.subr.bf16.mxu0 %v8756_v41 }
 0xc9b   : > { %8136 = vmatpush3.bf16.msra.mxu0 %v8135_v42 }
 0xc9c   : > { %8137 = vmatprep.subr.bf16.mxu0 %v8756_v41 }
 0xc9f   : > { %8139 = vmatpush3.bf16.msra.mxu0 %v8138_v44 }
 0xca0   : > { %8140 = vmatprep.subr.bf16.mxu0 %v8756_v41 }
 0xca3   : > { %8142 = vmatpush3.bf16.msra.mxu0 %v8141_v1 }
 0xca4   : > { %8143 = vmatprep.subr.bf16.mxu0 %v8756_v41 }
 0xca7   : > { %8145 = vmatpush3.bf16.msra.mxu0 %v8144_v50 }
 0xca8   : > { %8146 = vmatprep.subr.bf16.mxu0 %v8756_v41 }
 0xcab   : > { %8148 = vmatpush3.bf16.msra.mxu0 %v8147_v16  ;;  %v8171_v16 = vpack.c.bf16 %v5815_v60, %v5814_v62  ;;  %v5904_v62 = vld [vmem:[#allocation5 + $0xc30] sm:$0xff] }
 0xcac   : > { %8149 = vmatprep.subr.bf16.mxu0 %v8756_v41 }
 0xcaf   : > { %8151 = vmatpush3.bf16.msra.mxu0 %v8150_v17  ;;  %v8174_v17 = vpack.c.bf16 %v5817_v45, %v5816_v48  ;;  %v5905_v48 = vld [vmem:[#allocation5 + $0xc40] sm:$0xff]  ;;  %v5906_v45 = vld [vmem:[#allocation5 + $0xc50] sm:$0xff] }
 0xcb0   : > { %8152 = vmatprep.subr.bf16.mxu0 %v8756_v41 }
 0xd3d   : > { %v4845_v47 = vpop.f32.mrb[78].mxu0 }
 0xd3e   : > { %v4850_v11 = vmax.f32 %v4845_v47, 1e-16  ;;  %v4847_v3 = vpop.f32.mrb[79].mxu0  ;;  %v5818_v47 = vld [vmem:[#allocation5 + $0xb60] sm:$0xff] }
 0xd40   : > { %8609 = vrcp.f32 %v4850_v11  ;;  %v5819_v11 = vld [vmem:[#allocation5 + $0xb70] sm:$0xff] }
 0xd4a   : > { %v8610_v31 = vpop.eup %8609 }
 0xd4b   : > { %v4852_v5 = vmul.f32 %v8610_v31, %v4847_v3  ;;  %v8177_v3 = vpack.c.bf16 %v5819_v11, %v5818_v47  ;;  %v5909_v31 = vld [vmem:[#allocation5 + $0xc80] sm:$0xff]  ;;  %v8222_v47 = vpack.c.bf16 %v5906_v45, %v5905_v48  ;;  %v6167_v45 = vld [vmem:[#allocation5 + $0xf30] sm:$0xff] }
 0xd4c   : > { %v5907_v11 = vld [vmem:[#allocation5 + $0xc60] sm:$0xff] }
 0xd4d   : > { %v5379_v32 = vadd.f32 %v5378_v49, %v4852_v5  ;;  %v5910_v5 = vld [vmem:[#allocation5 + $0xc90] sm:$0xff]  ;;  %v6166_v48 = vld [vmem:[#allocation5 + $0xf20] sm:$0xff] }
 0xd4f   : > { %v5382_v43 = vmul.f32 %v5381_v56, %v5379_v32  ;;  %v8195_v32 = vpack.c.bf16 %v5920_v21, %v5919_v27 }
 0xd51   : > { %v5385_v51 = vadd.f32 %v5384_v13, %v5382_v43 }
 0xd53   : > { %v5387_v1 = vadd.f32 %v5385_v51, %v11872_v4  ;;  %v5898_v4 = vld [vmem:[#allocation5 + $0xbd0] sm:$0xff] }
 0xd5d   : > { %v5370_v46 = vpop.f32.mrb[80].mxu0 }
 0xd5e   : > { %v5375_v0 = vmax.f32 %v5370_v46, 1e-16  ;;  %v5372_v23 = vpop.f32.mrb[81].mxu0  ;;  %v5911_v46 = vld [vmem:[#allocation5 + $0xca0] sm:$0xff] }
 0xd60   : > { %8611 = vrcp.f32 %v5375_v0  ;;  %v8180_v0 = vpack.c.bf16 %v5910_v5, %v5909_v31 }
 0xd61   : > { %v5474_v26 = vpop.f32.mrb[82].mxu0 }
 0xd62   : > { %v5475_v59 = vadd.f32 %v5474_v26, %v5402_v58  ;;  %v7198_v61 = vpop.f32.mrb[83].mxu0  ;;  %v8186_v26 = vpack.c.bf16 %v5914_v12, %v5913_v8  ;;  %v5923_v8 = vld [vmem:[#allocation5 + $0xd60] sm:$0xff]  ;;  %v5924_v12 = vld [vmem:[#allocation5 + $0xd70] sm:$0xff] }
 0xd64   : > { %v5478_v57 = vmax.f32 %v5475_v59, 0.0  ;;  %v5916_v59 = vld [vmem:[#allocation5 + $0xcf0] sm:$0xff] }
 0xd65   : > { %v5636_v34 = vpop.f32.mrb[84].mxu0 }
 0xd66   : > { %v5637_v37 = vadd.f32 %v5636_v34, %v5569_v36  ;;  %7232 = vmatmul.mubr.f32.vlgmr.msra.gmra.mrb[80].mxu1 %v5478_v57  ;;  %v7240_v25 = vpop.f32.mrb[85].mxu0  ;;  %v5917_v36 = vld [vmem:[#allocation5 + $0xd00] sm:$0xff] }
 0xd67   : > { %8157 = vmatpush3.bf16.msra.mxu1 %v8156_v6  ;;  %7315 = vmatprep.mubr.msk.f32.mxu1 %vm8757_vm1, %v11672_v7  ;;  %v5918_v6 = vld [vmem:[#allocation5 + $0xd10] sm:$0xff]  ;;  %v5495_v34 = vld [vmem:[#allocation5 + $0xfa6] ss:$0 sm:$0xff] }
 0xd68   : > { %v5640_v38 = vmax.f32 %v5637_v37, 0.0  ;;  %8158 = vmatprep.subr.bf16.mxu1 %v8756_v41  ;;  %v8192_v57 = vpack.c.bf16 %v5918_v6, %v5917_v36  ;;  %v6068_v6 = vld [vmem:[#allocation5 + $0xd80] sm:$0xff] }
 0xd6a   : > { %v8612_v42 = vpop.eup %8611  ;;  %7274 = vmatmul.mubr.f32.vlgmr.msra.gmra.mrb[86].mxu0 %v5640_v38 }
 0xd6b   : > { %v5377_v63 = vmul.f32 %v8612_v42, %v5372_v23  ;;  %8154 = vmatpush3.bf16.msra.mxu0 %v8153_v18  ;;  %7280 = vmatprep.mubr.msk.f32.mxu0 %vm8757_vm1, %v11672_v7  ;;  %v5912_v23 = vld [vmem:[#allocation5 + $0xcb0] sm:$0xff] }
 0xd6c   : > { %8160 = vmatpush3.bf16.msra.mxu1 %v8159_v40  ;;  %8179 = vmatprep.subr.bf16.mxu0 %v8756_v41  ;;  %v8183_v58 = vpack.c.bf16 %v5912_v23, %v5911_v46  ;;  %v5732_v40 = vld [vmem:[#allocation5 + $0xfb1] ss:$0 sm:$0xff] }
 0xd6d   : > { %v5380_v30 = vadd.f32 %v5378_v49, %v5377_v63  ;;  %8161 = vmatprep.subr.bf16.mxu1 %v8756_v41  ;;  %v5915_v49 = vld [vmem:[#allocation5 + $0xce0] sm:$0xff]  ;;  %v5894_v42 = vld [vmem:[#allocation5 + $0xb90] sm:$0xff] }
 0xd6e   : > { %7281 = vmatmul.mubr.msk.f32.vlgmr.msra.gmra.mrb[88].mxu0 %vm5405_vm2, %v11339_v10  ;;  %v5389_v10 = vmax.f32 %v5387_v1, 0.0  ;;  %v8189_v61 = vpack.c.bf16 %v5916_v59, %v5915_v49  ;;  %v8210_v1 = vpack.c.bf16 %v5898_v4, %v5897_v29  ;;  %v5922_v23 = vld [vmem:[#allocation5 + $0xd50] sm:$0xff]  ;;  %v6156_v29 = vld [vmem:[#allocation5 + $0xe80] sm:$0xff] }
 0xd6f   : > { %v5383_v44 = vmul.f32 %v5381_v56, %v5380_v30  ;;  %7350 = vmatprep.mubr.msk.f32.mxu0 %vm8757_vm1, %v11672_v7  ;;  %8181 = vmatpush3.bf16.msra.mxu0 %v8180_v0  ;;  %v5657_v56 = vld [vmem:[#allocation5 + $0xfb0] ss:$0 sm:$0xff]  ;;  %v8204_v30 = vpack.c.bf16 %v5894_v42, %v5893_v33  ;;  %v5921_v0 = vld [vmem:[#allocation5 + $0xd40] sm:$0xff]  ;;  %v5820_v49 = vld [vmem:[#allocation5 + $0xfb2] ss:$0 sm:$0xff] }
 0xd70   : > { %8163 = vmatpush3.bf16.msra.mxu1 %v8162_v53  ;;  %8182 = vmatprep.subr.bf16.mxu0 %v8756_v41  ;;  %v6079_v42 = vld [vmem:[#allocation5 + $0xe30] sm:$0xff] }
 0xd71   : > { %v5386_v20 = vadd.f32 %v5384_v13, %v5383_v44  ;;  %8164 = vmatprep.subr.bf16.mxu1 %v8756_v41  ;;  %v5896_v44 = vld [vmem:[#allocation5 + $0xbb0] sm:$0xff] }
 0xd72   : > { %v6157_v4 = vld [vmem:[#allocation5 + $0xe90] sm:$0xff] }
 0xd73   : > { %v5388_v50 = vadd.f32 %v5386_v20, %v11874_v14  ;;  %8184 = vmatpush3.bf16.msra.mxu0 %v8183_v58  ;;  %v5901_v14 = vld [vmem:[#allocation5 + $0xc00] sm:$0xff]  ;;  %v8198_v58 = vpack.c.bf16 %v5922_v23, %v5921_v0 }
 0xd74   : > { %8166 = vmatpush3.bf16.msra.mxu1 %v8165_v52  ;;  %8185 = vmatprep.subr.bf16.mxu0 %v8756_v41  ;;  %v8207_v52 = vpack.c.bf16 %v5896_v44, %v5895_v22  ;;  %v6082_v22 = vld [vmem:[#allocation5 + $0xe60] sm:$0xff]  ;;  %v6083_v44 = vld [vmem:[#allocation5 + $0xe70] sm:$0xff] }
 0xd75   : > { %v5390_v35 = vmax.f32 %v5388_v50, 0.0  ;;  %8167 = vmatprep.subr.bf16.mxu1 %v8756_v41  ;;  %v5902_v50 = vld [vmem:[#allocation5 + $0xc10] sm:$0xff] }
 0xd77   : > { %v11386_v39 = vadd.f32 %v5390_v35, %v5389_v10  ;;  %8187 = vmatpush3.bf16.msra.mxu0 %v8186_v26  ;;  %v8216_v10 = vpack.c.bf16 %v5902_v50, %v5901_v14  ;;  %v5903_v35 = vld [vmem:[#allocation5 + $0xc20] sm:$0xff]  ;;  %v8201_v26 = vpack.c.bf16 %v5924_v12, %v5923_v8  ;;  %v6161_v14 = vld [vmem:[#allocation5 + $0xed0] sm:$0xff] }
 0xd78   : > { %8169 = vmatpush3.bf16.msra.mxu1 %v8168_v2  ;;  %8188 = vmatprep.subr.bf16.mxu0 %v8756_v41  ;;  %v6171_v8 = vld [vmem:[#allocation5 + $0xf70] sm:$0xff] }
 0xd79   : > { %8170 = vmatprep.subr.bf16.mxu1 %v8756_v41  ;;  %v5392_v20 = vrot.slane %v11386_v39, 4 }
 0xd7b   : > { %8190 = vmatpush3.bf16.msra.mxu0 %v8189_v61  ;;  %v5393_v2 = vadd.f32 %v5392_v20, %v11386_v39  ;;  %v5908_v39 = vld [vmem:[#allocation5 + $0xc70] sm:$0xff]  ;;  %v8252_v20 = vpack.c.bf16 %v6157_v4, %v6156_v29 }
 0xd7c   : > { %8172 = vmatpush3.bf16.msra.mxu1 %v8171_v16  ;;  %8191 = vmatprep.subr.bf16.mxu0 %v8756_v41  ;;  %v8219_v16 = vpack.c.bf16 %v5904_v62, %v5903_v35  ;;  %v8225_v31 = vpack.c.bf16 %v5908_v39, %v5907_v11  ;;  %v6164_v62 = vld [vmem:[#allocation5 + $0xf00] sm:$0xff]  ;;  %v6169_v11 = vld [vmem:[#allocation5 + $0xf50] sm:$0xff] }
 0xd7d   : > { %8173 = vmatprep.subr.bf16.mxu1 %v8756_v41  ;;  %v5394_v60 = vrot.slane %v5393_v2, 2 }
 0xd7f   : > { %8193 = vmatpush3.bf16.msra.mxu0 %v8192_v57  ;;  %v6069_v57 = vld [vmem:[#allocation5 + $0xd90] sm:$0xff] }
 0xd80   : > { %8175 = vmatpush3.bf16.msra.mxu1 %v8174_v17  ;;  %8194 = vmatprep.subr.bf16.mxu0 %v8756_v41  ;;  %v5395_v17 = vadd.f32 %v5394_v60, %v5393_v2  ;;  %v8228_v21 = vpack.c.bf16 %v6069_v57, %v6068_v6  ;;  %v6162_v2 = vld [vmem:[#allocation5 + $0xee0] sm:$0xff]  ;;  %v6165_v60 = vld [vmem:[#allocation5 + $0xf10] sm:$0xff] }
 0xd81   : > { %8176 = vmatprep.subr.bf16.mxu1 %v8756_v41 }
 0xd83   : > { %8196 = vmatpush3.bf16.msra.mxu0 %v8195_v32 }
 0xd84   : > { %8178 = vmatpush3.bf16.msra.mxu1 %v8177_v3  ;;  %8197 = vmatprep.subr.bf16.mxu0 %v8756_v41  ;;  %v5396_v3 = vrot.slane %v5395_v17, 1 }
 0xd85   : > { %8203 = vmatprep.subr.bf16.mxu1 %v8756_v41 }
 0xd86   : > { %v5397_v5 = vadd.f32 %v5396_v3, %v5395_v17  ;;  %v8267_v17 = vpack.c.bf16 %v6167_v45, %v6166_v48 }
 0xd87   : > { %8199 = vmatpush3.bf16.msra.mxu0 %v8198_v58  ;;  %v6170_v58 = vld [vmem:[#allocation5 + $0xf60] sm:$0xff] }
 0xd88   : > { %v5399_v46 = vmul.f32 0.0625, %v5397_v5  ;;  %8200 = vmatprep.subr.bf16.mxu0 %v8756_v41  ;;  %v8273_v12 = vpack.c.bf16 %v6171_v8, %v6170_v58 }
 0xd8b   : > { %8202 = vmatpush3.bf16.msra.mxu0 %v8201_v26  ;;  %v6084_v26 = vld [vmem:[#allocation5 + $0xfb4] ss:$0 sm:$0xff] }
 0xd8c   : > { %8227 = vmatprep.subr.bf16.mxu0 %v8756_v41 }
 0xe39   : > { %v5562_v19 = vpop.f32.mrb[80].mxu1 }
 0xe3a   : > { %v7233_v9 = vpop.f32.mrb[81].mxu1  ;;  %v5563_v37 = vadd.f32 %v5562_v19, %v5495_v34  ;;  %v6070_v34 = vld [vmem:[#allocation5 + $0xda0] sm:$0xff]  ;;  %v6071_v19 = vld [vmem:[#allocation5 + $0xdb0] sm:$0xff] }
 0xe3b   : > { %v8231_v9 = vpack.c.bf16 %v6071_v19, %v6070_v34 }
 0xe3c   : > { %v5566_v43 = vmax.f32 %v5563_v37, 0.0  ;;  %v6073_v37 = vld [vmem:[#allocation5 + $0xdd0] sm:$0xff] }
 0xe3d   : > { %v5724_v25 = vpop.f32.mrb[86].mxu0 }
 0xe3e   : > { %v5725_v18 = vadd.f32 %v5724_v25, %v5657_v56  ;;  %v7275_v38 = vpop.f32.mrb[87].mxu0  ;;  %v6072_v56 = vld [vmem:[#allocation5 + $0xdc0] sm:$0xff] }
 0xe3f   : > { %v8234_v25 = vpack.c.bf16 %v6073_v37, %v6072_v56  ;;  %v6075_v38 = vld [vmem:[#allocation5 + $0xdf0] sm:$0xff] }
 0xe40   : > { %v5728_v55 = vmax.f32 %v5725_v18, 0.0  ;;  %v6074_v18 = vld [vmem:[#allocation5 + $0xde0] sm:$0xff] }
 0xe41   : > { %v5799_v13 = vpop.f32.mrb[88].mxu0 }
 0xe42   : > { %v11398_v63 = vadd.f32 %v5728_v55, %v5566_v43  ;;  %v5800_v53 = vadd.f32 %v5799_v13, %v5732_v40  ;;  %v7282_v51 = vpop.f32.mrb[89].mxu0  ;;  %v8237_v40 = vpack.c.bf16 %v6075_v38, %v6074_v18  ;;  %v6076_v43 = vld [vmem:[#allocation5 + $0xe00] sm:$0xff]  ;;  %v6077_v55 = vld [vmem:[#allocation5 + $0xe10] sm:$0xff] }
 0xe43   : > { %v8240_v33 = vpack.c.bf16 %v6077_v55, %v6076_v43  ;;  %v6080_v51 = vld [vmem:[#allocation5 + $0xe40] sm:$0xff] }
 0xe44   : > { %v5803_v28 = vmax.f32 %v5800_v53, 0.0 }
 0xe46   : > { %7316 = vmatmul.mubr.f32.vlgmr.msra.gmra.mrb[82].mxu1 %v5803_v28 }
 0xe47   : > { %8205 = vmatpush3.bf16.msra.mxu1 %v8204_v30  ;;  %7385 = vmatprep.mubr.msk.f32.mxu1 %vm8757_vm1, %v11672_v7  ;;  %v6081_v30 = vld [vmem:[#allocation5 + $0xe50] sm:$0xff] }
 0xe48   : > { %8206 = vmatprep.subr.bf16.mxu1 %v8756_v41  ;;  %v8246_v28 = vpack.c.bf16 %v6081_v30, %v6080_v51 }
 0xe4b   : > { %8208 = vmatpush3.bf16.msra.mxu1 %v8207_v52  ;;  %v8249_v52 = vpack.c.bf16 %v6083_v44, %v6082_v22 }
 0xe4c   : > { %8209 = vmatprep.subr.bf16.mxu1 %v8756_v41 }
 0xe4f   : > { %8211 = vmatpush3.bf16.msra.mxu1 %v8210_v1  ;;  %v6158_v1 = vld [vmem:[#allocation5 + $0xea0] sm:$0xff] }
 0xe50   : > { %8212 = vmatprep.subr.bf16.mxu1 %v8756_v41  ;;  %v8255_v15 = vpack.c.bf16 %v6159_v54, %v6158_v1 }
 0xe53   : > { %8214 = vmatpush3.bf16.msra.mxu1 %v8213_v24  ;;  %v6160_v24 = vld [vmem:[#allocation5 + $0xec0] sm:$0xff] }
 0xe54   : > { %8215 = vmatprep.subr.bf16.mxu1 %v8756_v41  ;;  %v8258_v50 = vpack.c.bf16 %v6161_v14, %v6160_v24 }
 0xe57   : > { %8217 = vmatpush3.bf16.msra.mxu1 %v8216_v10  ;;  %v6163_v10 = vld [vmem:[#allocation5 + $0xef0] sm:$0xff] }
 0xe58   : > { %8218 = vmatprep.subr.bf16.mxu1 %v8756_v41  ;;  %v8261_v35 = vpack.c.bf16 %v6163_v10, %v6162_v2 }
 0xe5b   : > { %8220 = vmatpush3.bf16.msra.mxu1 %v8219_v16  ;;  %v8264_v16 = vpack.c.bf16 %v6165_v60, %v6164_v62 }
 0xe5c   : > { %8221 = vmatprep.subr.bf16.mxu1 %v8756_v41 }
 0xe5f   : > { %8223 = vmatpush3.bf16.msra.mxu1 %v8222_v47  ;;  %v6168_v47 = vld [vmem:[#allocation5 + $0xf40] sm:$0xff] }
 0xe60   : > { %8224 = vmatprep.subr.bf16.mxu1 %v8756_v41  ;;  %v8270_v39 = vpack.c.bf16 %v6169_v11, %v6168_v47 }
 0xe63   : > { %8226 = vmatpush3.bf16.msra.mxu1 %v8225_v31  ;;  %v6065_v31 = vld [vmem:[#allocation5 + $0xfb3] ss:$0 sm:$0xff] }
 0xe64   : > { %8251 = vmatprep.subr.bf16.mxu1 %v8756_v41 }
 0xe66   : > { %7386 = vmatmul.mubr.f32.vlgmr.msra.gmra.mrb[84].mxu1 %v5399_v46 }
 0xe67   : > { %7455 = vmatprep.mubr.msk.f32.mxu1 %vm8757_vm1, %v11672_v7  ;;  %8253 = vmatpush3.bf16.msra.mxu1 %v8252_v20 }
 0xe68   : > { %8254 = vmatprep.subr.bf16.mxu1 %v8756_v41 }
 0xe6b   : > { %8256 = vmatpush3.bf16.msra.mxu1 %v8255_v15 }
 0xe6c   : > { %8257 = vmatprep.subr.bf16.mxu1 %v8756_v41 }
 0xe6f   : > { %8259 = vmatpush3.bf16.msra.mxu1 %v8258_v50 }
 0xe70   : > { %8260 = vmatprep.subr.bf16.mxu1 %v8756_v41 }
 0xe73   : > { %8262 = vmatpush3.bf16.msra.mxu1 %v8261_v35 }
 0xe74   : > { %8263 = vmatprep.subr.bf16.mxu1 %v8756_v41 }
 0xe77   : > { %8265 = vmatpush3.bf16.msra.mxu1 %v8264_v16 }
 0xe78   : > { %8266 = vmatprep.subr.bf16.mxu1 %v8756_v41 }
 0xe7b   : > { %8268 = vmatpush3.bf16.msra.mxu1 %v8267_v17 }
 0xe7c   : > { %8269 = vmatprep.subr.bf16.mxu1 %v8756_v41 }
 0xe7f   : > { %8271 = vmatpush3.bf16.msra.mxu1 %v8270_v39 }
 0xe80   : > { %8272 = vmatprep.subr.bf16.mxu1 %v8756_v41 }
 0xe83   : > { %8274 = vmatpush3.bf16.msra.mxu1 %v8273_v12 }
 0xf19   : > { %v5887_v59 = vpop.f32.mrb[82].mxu1 }
 0xf1a   : > { %v5888_v61 = vadd.f32 %v5887_v59, %v5820_v49  ;;  %v7317_v36 = vpop.f32.mrb[83].mxu1 }
 0xf1b   : > { %v6172_v36 = vld [vmem:[#allocation5 + $0xfb5] ss:$0 sm:$0xff] }
 0xf1c   : > { %v5891_v27 = vmax.f32 %v5888_v61, 0.0 }
 0xf1e   : > { %v5892_v32 = vadd.f32 %v5891_v27, %v11398_v63 }
 0xf20   : > { %7351 = vmatmul.mubr.f32.vlgmr.msra.gmra.mrb[90].mxu0 %v5892_v32 }
 0xf21   : > { %8229 = vmatpush3.bf16.msra.mxu0 %v8228_v21  ;;  %7420 = vmatprep.mubr.msk.f32.mxu0 %vm8757_vm1, %v11672_v7  ;;  %v6078_v7 = vld [vmem:[#allocation5 + $0xe20] sm:$0xff] }
 0xf22   : > { %8230 = vmatprep.subr.bf16.mxu0 %v8756_v41  ;;  %v8243_v13 = vpack.c.bf16 %v6079_v42, %v6078_v7 }
 0xf25   : > { %8232 = vmatpush3.bf16.msra.mxu0 %v8231_v9 }
 0xf26   : > { %8233 = vmatprep.subr.bf16.mxu0 %v8756_v41 }
 0xf29   : > { %8235 = vmatpush3.bf16.msra.mxu0 %v8234_v25 }
 0xf2a   : > { %8236 = vmatprep.subr.bf16.mxu0 %v8756_v41 }
 0xf2d   : > { %8238 = vmatpush3.bf16.msra.mxu0 %v8237_v40 }
 0xf2e   : > { %8239 = vmatprep.subr.bf16.mxu0 %v8756_v41 }
 0xf31   : > { %8241 = vmatpush3.bf16.msra.mxu0 %v8240_v33 }
 0xf32   : > { %8242 = vmatprep.subr.bf16.mxu0 %v8756_v41 }
 0xf35   : > { %8244 = vmatpush3.bf16.msra.mxu0 %v8243_v13 }
 0xf36   : > { %8245 = vmatprep.subr.bf16.mxu0 %v8756_v41 }
 0xf39   : > { %v6061_v63 = vpop.f32.mrb[84].mxu1  ;;  %8247 = vmatpush3.bf16.msra.mxu0 %v8246_v28 }
 0xf3a   : > { %v7387_v53 = vpop.f32.mrb[85].mxu1  ;;  %8248 = vmatprep.subr.bf16.mxu0 %v8756_v41 }
 0xf3d   : > { %8250 = vmatpush3.bf16.msra.mxu0 %v8249_v52 }
 0xff3   : > { %v5991_v3 = vpop.f32.mrb[90].mxu0 }
 0xff4   : > { %v6062_v5 = vadd.f32 %v6061_v63, %v5991_v3  ;;  %v7352_v46 = vpop.f32.mrb[91].mxu0 }
 0xff6   : > { %v6066_v0 = vadd.f32 %v6065_v31, %v6062_v5 }
 0xff8   : > { %v6067_v23 = vmax.f32 %v6066_v0, 0.0 }
 0xffa   : > { %7421 = vmatmul.mubr.f32.vlgmr.msra.gmra.mrb[92].mxu0 %v6067_v23 }
0x10cd   : > { %v6151_v49 = vpop.f32.mrb[92].mxu0 }
0x10ce   : > { %v6152_v59 = vadd.f32 %v6151_v49, %v6084_v26  ;;  %v7422_v61 = vpop.f32.mrb[93].mxu0 }
0x10d0   : > { %v6155_v41 = vmax.f32 %v6152_v59, 0.0 }
0x10d2   : > { %7456 = vmatmul.mubr.f32.vlgmr.msra.gmra.mrb[86].mxu1 %v6155_v41 }
0x11a5   : > { %v6239_v6 = vpop.f32.mrb[86].mxu1 }
0x11a6   : > { %v6240_v57 = vadd.f32 %v6239_v6, %v6172_v36  ;;  %v7457_v27 = vpop.f32.mrb[87].mxu1 }
0x11a8   : > { %6243 = vst [vmem:[%s175_s27] sm:$0x1] %v6240_v57 }
0x11a9   : > { %8688 = shalt.err (!%p8685_p7)
}
0x11aa   : > { %s8689_s24 = scalar_lea.hbm %s11438_s4, 16  ;;  %s8693_s26 = scalar_lea.hbm %s11484_s2, 32 }
0x11ab   : > { %p8690_p9 = scmp.ne.s32.totalorder %s11438_s4, %s8689_s24  ;;  %p8694_p5 = scmp.lt.u32.totalorder %s11438_s4, %s11484_s2 }
0x11ac   : > { %p8695_p11 = scmp.lt.u32.totalorder %s8693_s26, %s8689_s24  ;;  %p8697_p4 = scmp.lt.u32.totalorder %s8689_s24, %s11438_s4 }
0x11ad   : > { %p8691_p2 = pnand %p8690_p9, %p8865_p12 }
0x11ae   : > { %p8696_p1 = por %p8695_p11, %p8694_p5 }
0x11af   : > { %p8692_p0 = pneg %p8691_p2 }
0x11b0   : > { %p8698_p6 = por %p8697_p4, %p8696_p1 }
0x11b2   : > { %p8699_p8 = pnand %p8698_p6, %p8692_p0 }
0x11b4   : > { %8702 = shalt.err (!%p8699_p8)
}
0x11b5   : > { %8281 = dma.vmem_to_hbm [thread:$0]  (%p8865_p12), %s11440_s22, 16, %s11438_s4, %s6245_s5  }
0x11b6 PF: > { %s6269_s30 = sand.u32 1, %s8733_s9   ;;  %p11875_p10 = scmp.ne.s32.totalorder %s11629_s16, 0 }
0x11b7   : > { %p11876_p13 = scmp.ge.s32.totalorder %s8745_s12, 2  ;;  %s6270_s3 = scalar_lea.sflag [#allocation4], %s6269_s30 }
0x11b9   : > { %p8292_p3 = pnand %p11876_p13, %p11875_p10 }
0x11bb   : > { %8728 = dma.done.wait (!%p8292_p3), %s6270_s3, 16  }
0x11bc   : > { %8730 = vsyncadd (!%p8292_p3), %s6270_s3, 4294967280  ;;  %p16_p7 = scmp.ge.s32.totalorder %s8830_s21, 4   ;;  %s11877_s9 = smov %s8737_s10 }
0x11bd   : > { %s11878_s10 = smov %s8741_s11  ;;  %s11879_s11 = smov %s8861_s8 }
0x11be   : > { %s11880_s12 = smov %s8830_s21  ;;  %18 = sbr.rel (!%p16_p7) target bundleno = 6 (0x6), region = 81 }
0x11c5   :  { %6274 = vsyncpa [#allocation3], 1 }
0x11c6   :  { %6276 = vsyncpa [#allocation3 + $0x1], 1 }
0x11c7   :  { %6277 = vsyncpa [#allocation6], 1 }
0x11c8   :  { %6278 = vsyncpa [#allocation4], 1 }
0x11c9   :  { %6280 = vsyncpa [#allocation4 + $0x1], 1 }

</bundles_post_ra>
